<compile_context>
chip_gen: v7x
topology: tpu7x:2x2x1
jax: 0.10.0
libtpu: 0.0.40
codegen_flags: <defaults>
</compile_context>

<pallas_src>
import functools
import math

import jax
import jax.numpy as jnp
from jax.experimental import pallas as pl
from jax.experimental.pallas import tpu as pltpu

D_MODEL = 128
N_HEADS = 4
HEAD_DIM = D_MODEL // N_HEADS
DIM_FF = 2048          # nn.TransformerEncoderLayer default dim_feedforward
N_LAYERS = 2
LN_EPS = 1e-5
LANE = 128


def _pad_to_lane(n):
    return ((n + LANE - 1) // LANE) * LANE


def small_param_layout(num_classes):
    """Static (offset, width) layout of the packed small-parameter buffer."""
    names = [("fc1_b", D_MODEL), ("fc2_b", D_MODEL),
             ("fc3_b", 64), ("fc4_b", num_classes)]
    for l in range(N_LAYERS):
        names += [
            (f"in_b_{l}", 3 * D_MODEL), (f"out_b_{l}", D_MODEL),
            (f"ln1_w_{l}", D_MODEL), (f"ln1_b_{l}", D_MODEL),
            (f"l1_b_{l}", DIM_FF), (f"l2_b_{l}", D_MODEL),
            (f"ln2_w_{l}", D_MODEL), (f"ln2_b_{l}", D_MODEL),
        ]
    layout, off = {}, 0
    for name, width in names:
        layout[name] = (off, width)
        off += _pad_to_lane(width)          # keep every segment 128-lane aligned
    return layout, off


# ------------------------------ kernel --------------------------------------
def pct_kernel(x_ref, sp_ref, fc1_w, fc2_w, fc3_w, fc4_w, *rest, layout):
    layer_w = rest[:-1]          # 4 big bf16 weights per encoder layer
    out_ref = rest[-1]           # (A, C)

    def sp(name):                # (1, width) f32 slice of the packed buffer
        off, width = layout[name]
        return sp_ref[:, off:off + width]

    def linear(h2, w_ref, bias):
        # h2: (M, Din) f32, w_ref: (Din, Dout) bf16, bias: (1, Dout) f32
        return jnp.dot(h2, w_ref[...].astype(jnp.float32),
                       preferred_element_type=jnp.float32) + bias

    def layernorm(h2, w, b):
        mu = jnp.mean(h2, axis=-1, keepdims=True)
        var = jnp.mean(jnp.square(h2 - mu), axis=-1, keepdims=True)
        return (h2 - mu) * jax.lax.rsqrt(var + LN_EPS) * w + b

    B, A, Din = x_ref.shape
    M = B * A

    h = x_ref[...].astype(jnp.float32).reshape(M, Din)
    h = jnp.maximum(linear(h, fc1_w, sp("fc1_b")), 0.0)           # relu(fc1)
    h = jnp.maximum(linear(h, fc2_w, sp("fc2_b")), 0.0)           # relu(fc2)

    for l in range(N_LAYERS):                                     # unrolled
        in_w, out_w, l1_w, l2_w = layer_w[4 * l:4 * (l + 1)]

        # --- multi-head self-attention (post-norm encoder layer) ---
        qkv = linear(h, in_w, sp(f"in_b_{l}")).reshape(B, A, 3 * D_MODEL)
        q = qkv[:, :, 0:D_MODEL]                 # 1/sqrt(Dh) already folded in
        k = qkv[:, :, D_MODEL:2 * D_MODEL]
        v = qkv[:, :, 2 * D_MODEL:3 * D_MODEL]

        head_outs = []
        for hh in range(N_HEADS):
            lo = hh * HEAD_DIM
            hi = lo + HEAD_DIM
            qh = q[:, :, lo:hi]                                   # (B, A, Dh)
            kh = k[:, :, lo:hi]
            vh = v[:, :, lo:hi]
            s = jnp.einsum('bqd,bkd->bqk', qh, kh,
                           preferred_element_type=jnp.float32)    # (B, A, A)
            s = s - jnp.max(s, axis=-1, keepdims=True)
            e = jnp.exp(s)
            attn_p = e * pl.reciprocal(jnp.sum(e, axis=-1, keepdims=True),
                                       approx=False)
            head_outs.append(jnp.einsum('bqk,bkd->bqd', attn_p, vh,
                                        preferred_element_type=jnp.float32))
        attn = jnp.concatenate(head_outs, axis=-1).reshape(M, D_MODEL)
        attn = linear(attn, out_w, sp(f"out_b_{l}"))

        h = layernorm(h + attn, sp(f"ln1_w_{l}"), sp(f"ln1_b_{l}"))

        # --- feed-forward block ---
        ff = jnp.maximum(linear(h, l1_w, sp(f"l1_b_{l}")), 0.0)   # (M, 2048)
        ff = linear(ff, l2_w, sp(f"l2_b_{l}"))                    # (M, 128)
        h = layernorm(h + ff, sp(f"ln2_w_{l}"), sp(f"ln2_b_{l}"))

    # torch.sum(x, dim=1): torch dim 1 == B == kernel leading axis
    pooled = jnp.sum(h.reshape(B, A, D_MODEL), axis=0)            # (A, 128)

    z = jnp.maximum(linear(pooled, fc3_w, sp("fc3_b")), 0.0)      # (A, 64)
    logits = linear(z, fc4_w, sp("fc4_b"))                        # (A, C)

    m = jnp.max(logits, axis=-1, keepdims=True)
    lse = jnp.log(jnp.sum(jnp.exp(logits - m), axis=-1, keepdims=True)) + m
    out_ref[...] = (logits - lse).astype(out_ref.dtype)           # log_softmax


# ------------------------------ wrapper --------------------------------------
def simple_pct_forward(x, small_packed, big_weights, num_classes):
    """x: (A, B, input_dim) PyTorch layout; returns (A, num_classes) log-probs."""
    A, B, _ = x.shape
    layout, _ = small_param_layout(num_classes)
    x_k = jnp.transpose(x, (1, 0, 2))               # kernel layout (B, A, Din)
    inputs = (x_k, small_packed, *big_weights)
    kernel = functools.partial(pct_kernel, layout=layout)
    return pl.pallas_call(
        kernel,
        out_shape=jax.ShapeDtypeStruct((A, num_classes), jnp.float32),
        in_specs=[pl.BlockSpec(memory_space=pltpu.MemorySpace.VMEM)] * len(inputs),
        out_specs=pl.BlockSpec(memory_space=pltpu.MemorySpace.VMEM),
        compiler_params=pltpu.CompilerParams(vmem_limit_bytes=16 * 1024 * 1024),
    )(*inputs)


# -------------------------- deterministic params -----------------------------
def init_params(key, input_dim, num_classes):
    """Canonical (PyTorch-equivalent) params: big weights bf16, vectors f32."""
    keys = iter(jax.random.split(key, 64))

    def w(shape, scale=0.05):
        return (scale * jax.random.normal(next(keys), shape,
                                          dtype=jnp.float32)).astype(jnp.bfloat16)

    def b(dim):
        return 0.01 * jax.random.normal(next(keys), (1, dim), dtype=jnp.float32)

    p = {
        "fc1_w": w((input_dim, D_MODEL)), "fc1_b": b(D_MODEL),
        "fc2_w": w((D_MODEL, D_MODEL)), "fc2_b": b(D_MODEL),
        "fc3_w": w((D_MODEL, 64)), "fc3_b": b(64),
        "fc4_w": w((64, num_classes)), "fc4_b": b(num_classes),
    }
    for l in range(N_LAYERS):
        p[f"in_w_{l}"] = w((D_MODEL, 3 * D_MODEL)); p[f"in_b_{l}"] = b(3 * D_MODEL)
        p[f"out_w_{l}"] = w((D_MODEL, D_MODEL));    p[f"out_b_{l}"] = b(D_MODEL)
        p[f"ln1_w_{l}"] = jnp.ones((1, D_MODEL), jnp.float32)
        p[f"ln1_b_{l}"] = jnp.zeros((1, D_MODEL), jnp.float32)
        p[f"l1_w_{l}"] = w((D_MODEL, DIM_FF));      p[f"l1_b_{l}"] = b(DIM_FF)
        p[f"l2_w_{l}"] = w((DIM_FF, D_MODEL));      p[f"l2_b_{l}"] = b(D_MODEL)
        p[f"ln2_w_{l}"] = jnp.ones((1, D_MODEL), jnp.float32)
        p[f"ln2_b_{l}"] = jnp.zeros((1, D_MODEL), jnp.float32)
    return p


def prepare_kernel_params(params, num_classes):
    """One-time prep: fold q-scale into in_proj, pack small vectors into one buffer."""
    layout, total = small_param_layout(num_classes)
    scale = 1.0 / math.sqrt(HEAD_DIM)

    small_vals = dict(params)
    for l in range(N_LAYERS):                       # fold scale into q bias (exact, f32)
        small_vals[f"in_b_{l}"] = params[f"in_b_{l}"].at[:, :D_MODEL].multiply(scale)

    pieces = []
    for name, (_, width) in layout.items():         # insertion order == offsets
        v = small_vals[name].reshape(1, width).astype(jnp.float32)
        pad = _pad_to_lane(width) - width
        if pad:
            v = jnp.pad(v, ((0, 0), (0, pad)))
        pieces.append(v)
    small_packed = jnp.concatenate(pieces, axis=-1)
    assert small_packed.shape == (1, total)

    big = [params["fc1_w"], params["fc2_w"], params["fc3_w"], params["fc4_w"]]
    for l in range(N_LAYERS):
        in_w = params[f"in_w_{l}"].astype(jnp.float32)
        in_w = in_w.at[:, :D_MODEL].multiply(scale)  # fold scale into q weight columns
        big += [in_w.astype(jnp.bfloat16), params[f"out_w_{l}"],
                params[f"l1_w_{l}"], params[f"l2_w_{l}"]]
    return small_packed, big


# ----------------------- pure-JAX reference (check) ---------------------------
def _ln_ref(h, w, b):
    mu = jnp.mean(h, axis=-1, keepdims=True)
    var = jnp.mean(jnp.square(h - mu), axis=-1, keepdims=True)
    return (h - mu) * jax.lax.rsqrt(var + LN_EPS) * w + b


def simple_pct_reference(x, params):
    """Faithful PyTorch-semantics forward in f32 (bf16 weights cast up)."""
    def mm(h, name):
        return h @ params[name].astype(jnp.float32)

    A, B, _ = x.shape
    scale = 1.0 / math.sqrt(HEAD_DIM)
    h = jnp.maximum(mm(x, "fc1_w") + params["fc1_b"], 0.0)
    h = jnp.maximum(mm(h, "fc2_w") + params["fc2_b"], 0.0)
    for l in range(N_LAYERS):
        qkv = mm(h, f"in_w_{l}") + params[f"in_b_{l}"]
        q, k, v = jnp.split(qkv, 3, axis=-1)
        q = q.reshape(A, B, N_HEADS, HEAD_DIM) * scale
        k = k.reshape(A, B, N_HEADS, HEAD_DIM)
        v = v.reshape(A, B, N_HEADS, HEAD_DIM)
        s = jnp.einsum('qbhd,kbhd->bhqk', q, k)
        p = jax.nn.softmax(s, axis=-1)
        o = jnp.einsum('bhqk,kbhd->qbhd', p, v).reshape(A, B, D_MODEL)
        o = mm(o, f"out_w_{l}") + params[f"out_b_{l}"]
        h = _ln_ref(h + o, params[f"ln1_w_{l}"], params[f"ln1_b_{l}"])
        ff = jnp.maximum(mm(h, f"l1_w_{l}") + params[f"l1_b_{l}"], 0.0)
        ff = mm(ff, f"l2_w_{l}") + params[f"l2_b_{l}"]
        h = _ln_ref(h + ff, params[f"ln2_w_{l}"], params[f"ln2_b_{l}"])
    pooled = jnp.sum(h, axis=1)
    z = jnp.maximum(mm(pooled, "fc3_w") + params["fc3_b"], 0.0)
    logits = mm(z, "fc4_w") + params["fc4_b"]
    return jax.nn.log_softmax(logits, axis=-1)


# --------------------------------- main ---------------------------------------
if __name__ == "__main__":
    key = jax.random.PRNGKey(0)
    kx, kp = jax.random.split(key)

    # x: (seq A, batch B, input_dim) = (8, 8, 16); num_classes = 10.
    # A = B = 8 keeps every in-kernel reshape sublane-aligned.
    A, B, Din, C = 8, 8, 16, 10
    x = jax.random.normal(kx, (A, B, Din), dtype=jnp.float32)
    params = init_params(kp, Din, C)

    # One-time parameter preparation (packing + scale folding), outside the hot path.
    small_packed, big_weights = prepare_kernel_params(params, C)

    out = simple_pct_forward(x, small_packed, big_weights, C)
    out = jax.block_until_ready(out)

    assert out.shape == (A, C), out.shape
    # log_softmax sanity: probabilities sum to 1 per row.
    probs = jnp.exp(out).sum(axis=-1)
    assert jnp.allclose(probs, 1.0, atol=1e-3), probs
    # Compare against a pure-JAX reference of the same math.
    ref = simple_pct_reference(x, params)
    assert jnp.allclose(out, ref, atol=5e-2, rtol=5e-2), float(jnp.max(jnp.abs(out - ref)))

    print("KERNEL_OK")
</pallas_src>

<mosaic_0001>
module attributes {stable_mosaic.version = 11 : i64} {
  func.func @pct_kernel(%arg0: memref<8x8x16xf32, #tpu.memory_space<vmem>>, %arg1: memref<1x6912xf32, #tpu.memory_space<vmem>>, %arg2: memref<16x128xbf16, #tpu.memory_space<vmem>>, %arg3: memref<128x128xbf16, #tpu.memory_space<vmem>>, %arg4: memref<128x64xbf16, #tpu.memory_space<vmem>>, %arg5: memref<64x10xbf16, #tpu.memory_space<vmem>>, %arg6: memref<128x384xbf16, #tpu.memory_space<vmem>>, %arg7: memref<128x128xbf16, #tpu.memory_space<vmem>>, %arg8: memref<128x2048xbf16, #tpu.memory_space<vmem>>, %arg9: memref<2048x128xbf16, #tpu.memory_space<vmem>>, %arg10: memref<128x384xbf16, #tpu.memory_space<vmem>>, %arg11: memref<128x128xbf16, #tpu.memory_space<vmem>>, %arg12: memref<128x2048xbf16, #tpu.memory_space<vmem>>, %arg13: memref<2048x128xbf16, #tpu.memory_space<vmem>>, %arg14: memref<8x10xf32, #tpu.memory_space<vmem>>) attributes {dimension_semantics = [], scalar_prefetch = 0 : i64, scratch_operands = 0 : i64, tpu.core_type = #tpu.core_type<tc>} {
    %c0 = arith.constant 0 : index
    %c0_0 = arith.constant 0 : index
    %c0_1 = arith.constant 0 : index
    %0 = vector.load %arg0[%c0, %c0_0, %c0_1] : memref<8x8x16xf32, #tpu.memory_space<vmem>>, vector<8x8x16xf32>
    %1 = vector.shape_cast %0 : vector<8x8x16xf32> to vector<64x16xf32>
    %c0_2 = arith.constant 0 : index
    %c0_3 = arith.constant 0 : index
    %2 = vector.load %arg1[%c0_2, %c0_3] : memref<1x6912xf32, #tpu.memory_space<vmem>>, vector<1x128xf32>
    %c0_4 = arith.constant 0 : index
    %c0_5 = arith.constant 0 : index
    %3 = vector.load %arg2[%c0_4, %c0_5] : memref<16x128xbf16, #tpu.memory_space<vmem>>, vector<16x128xbf16>
    %4 = arith.extf %3 : vector<16x128xbf16> to vector<16x128xf32>
    %cst = arith.constant dense<0.000000e+00> : vector<64x128xf32>
    %5 = tpu.matmul %1, %4, %cst {dimension_numbers = #tpu.dot_dimension_numbers<[1], [0], [0], [1], [0, 0, 1, 1], [], []>} : vector<64x16xf32>, vector<16x128xf32>, vector<64x128xf32> -> vector<64x128xf32>
    %6 = vector.broadcast %2 : vector<1x128xf32> to vector<64x128xf32>
    %7 = arith.addf %5, %6 : vector<64x128xf32>
    %cst_6 = arith.constant 0.000000e+00 : f32
    %8 = vector.broadcast %cst_6 : f32 to vector<64x128xf32>
    %9 = arith.maximumf %7, %8 : vector<64x128xf32>
    %c0_7 = arith.constant 0 : index
    %c128 = arith.constant 128 : index
    %10 = vector.load %arg1[%c0_7, %c128] : memref<1x6912xf32, #tpu.memory_space<vmem>>, vector<1x128xf32>
    %c0_8 = arith.constant 0 : index
    %c0_9 = arith.constant 0 : index
    %11 = vector.load %arg3[%c0_8, %c0_9] : memref<128x128xbf16, #tpu.memory_space<vmem>>, vector<128x128xbf16>
    %12 = arith.extf %11 : vector<128x128xbf16> to vector<128x128xf32>
    %cst_10 = arith.constant dense<0.000000e+00> : vector<64x128xf32>
    %13 = tpu.matmul %9, %12, %cst_10 {dimension_numbers = #tpu.dot_dimension_numbers<[1], [0], [0], [1], [0, 0, 1, 1], [], []>} : vector<64x128xf32>, vector<128x128xf32>, vector<64x128xf32> -> vector<64x128xf32>
    %14 = vector.broadcast %10 : vector<1x128xf32> to vector<64x128xf32>
    %15 = arith.addf %13, %14 : vector<64x128xf32>
    %cst_11 = arith.constant 0.000000e+00 : f32
    %16 = vector.broadcast %cst_11 : f32 to vector<64x128xf32>
    %17 = arith.maximumf %15, %16 : vector<64x128xf32>
    %c0_12 = arith.constant 0 : index
    %c512 = arith.constant 512 : index
    %18 = vector.load %arg1[%c0_12, %c512] : memref<1x6912xf32, #tpu.memory_space<vmem>>, vector<1x384xf32>
    %c0_13 = arith.constant 0 : index
    %c0_14 = arith.constant 0 : index
    %19 = vector.load %arg6[%c0_13, %c0_14] : memref<128x384xbf16, #tpu.memory_space<vmem>>, vector<128x384xbf16>
    %20 = arith.extf %19 : vector<128x384xbf16> to vector<128x384xf32>
    %cst_15 = arith.constant dense<0.000000e+00> : vector<64x384xf32>
    %21 = tpu.matmul %17, %20, %cst_15 {dimension_numbers = #tpu.dot_dimension_numbers<[1], [0], [0], [1], [0, 0, 1, 1], [], []>} : vector<64x128xf32>, vector<128x384xf32>, vector<64x384xf32> -> vector<64x384xf32>
    %22 = vector.broadcast %18 : vector<1x384xf32> to vector<64x384xf32>
    %23 = arith.addf %21, %22 : vector<64x384xf32>
    %24 = vector.shape_cast %23 : vector<64x384xf32> to vector<8x8x384xf32>
    %25 = vector.extract_strided_slice %24 {offsets = [0, 0, 0], sizes = [8, 8, 128], strides = [1, 1, 1]} : vector<8x8x384xf32> to vector<8x8x128xf32>
    %26 = vector.extract_strided_slice %24 {offsets = [0, 0, 128], sizes = [8, 8, 128], strides = [1, 1, 1]} : vector<8x8x384xf32> to vector<8x8x128xf32>
    %27 = vector.extract_strided_slice %24 {offsets = [0, 0, 256], sizes = [8, 8, 128], strides = [1, 1, 1]} : vector<8x8x384xf32> to vector<8x8x128xf32>
    %28 = vector.extract_strided_slice %25 {offsets = [0, 0, 0], sizes = [8, 8, 32], strides = [1, 1, 1]} : vector<8x8x128xf32> to vector<8x8x32xf32>
    %29 = vector.extract_strided_slice %26 {offsets = [0, 0, 0], sizes = [8, 8, 32], strides = [1, 1, 1]} : vector<8x8x128xf32> to vector<8x8x32xf32>
    %30 = vector.extract_strided_slice %27 {offsets = [0, 0, 0], sizes = [8, 8, 32], strides = [1, 1, 1]} : vector<8x8x128xf32> to vector<8x8x32xf32>
    "tpu.trace_start"() <{level = 10 : i32, message = "bqd,bkd->bqk"}> : () -> ()
    %cst_16 = arith.constant dense<0.000000e+00> : vector<8x8x8xf32>
    %31 = tpu.matmul %28, %29, %cst_16 {dimension_numbers = #tpu.dot_dimension_numbers<[2], [2], [1], [1], [0, 0, 0, 1, 1, 1], [0], [0]>} : vector<8x8x32xf32>, vector<8x8x32xf32>, vector<8x8x8xf32> -> vector<8x8x8xf32>
    "tpu.trace_stop"() : () -> ()
    %cst_17 = arith.constant dense<0xFF800000> : vector<8x8xf32>
    %32 = vector.multi_reduction <maximumf>, %31, %cst_17 [2] : vector<8x8x8xf32> to vector<8x8xf32>
    %33 = vector.shape_cast %32 : vector<8x8xf32> to vector<8x8x1xf32>
    %34 = vector.broadcast %33 : vector<8x8x1xf32> to vector<8x8x8xf32>
    %35 = arith.subf %31, %34 : vector<8x8x8xf32>
    %36 = math.exp %35 : vector<8x8x8xf32>
    %cst_18 = arith.constant dense<0.000000e+00> : vector<8x8xf32>
    %37 = vector.multi_reduction <add>, %36, %cst_18 [2] : vector<8x8x8xf32> to vector<8x8xf32>
    %38 = vector.shape_cast %37 : vector<8x8xf32> to vector<8x8x1xf32>
    %39 = tpu.reciprocal %38 : vector<8x8x1xf32> -> vector<8x8x1xf32>
    %40 = vector.broadcast %39 : vector<8x8x1xf32> to vector<8x8x8xf32>
    %41 = arith.mulf %36, %40 : vector<8x8x8xf32>
    "tpu.trace_start"() <{level = 10 : i32, message = "bqk,bkd->bqd"}> : () -> ()
    %cst_19 = arith.constant dense<0.000000e+00> : vector<8x8x32xf32>
    %42 = tpu.matmul %41, %30, %cst_19 {dimension_numbers = #tpu.dot_dimension_numbers<[2], [1], [1], [2], [0, 0, 0, 1, 1, 2], [0], [0]>} : vector<8x8x8xf32>, vector<8x8x32xf32>, vector<8x8x32xf32> -> vector<8x8x32xf32>
    "tpu.trace_stop"() : () -> ()
    %43 = vector.extract_strided_slice %25 {offsets = [0, 0, 32], sizes = [8, 8, 32], strides = [1, 1, 1]} : vector<8x8x128xf32> to vector<8x8x32xf32>
    %44 = vector.extract_strided_slice %26 {offsets = [0, 0, 32], sizes = [8, 8, 32], strides = [1, 1, 1]} : vector<8x8x128xf32> to vector<8x8x32xf32>
    %45 = vector.extract_strided_slice %27 {offsets = [0, 0, 32], sizes = [8, 8, 32], strides = [1, 1, 1]} : vector<8x8x128xf32> to vector<8x8x32xf32>
    "tpu.trace_start"() <{level = 10 : i32, message = "bqd,bkd->bqk"}> : () -> ()
    %cst_20 = arith.constant dense<0.000000e+00> : vector<8x8x8xf32>
    %46 = tpu.matmul %43, %44, %cst_20 {dimension_numbers = #tpu.dot_dimension_numbers<[2], [2], [1], [1], [0, 0, 0, 1, 1, 1], [0], [0]>} : vector<8x8x32xf32>, vector<8x8x32xf32>, vector<8x8x8xf32> -> vector<8x8x8xf32>
    "tpu.trace_stop"() : () -> ()
    %cst_21 = arith.constant dense<0xFF800000> : vector<8x8xf32>
    %47 = vector.multi_reduction <maximumf>, %46, %cst_21 [2] : vector<8x8x8xf32> to vector<8x8xf32>
    %48 = vector.shape_cast %47 : vector<8x8xf32> to vector<8x8x1xf32>
    %49 = vector.broadcast %48 : vector<8x8x1xf32> to vector<8x8x8xf32>
    %50 = arith.subf %46, %49 : vector<8x8x8xf32>
    %51 = math.exp %50 : vector<8x8x8xf32>
    %cst_22 = arith.constant dense<0.000000e+00> : vector<8x8xf32>
    %52 = vector.multi_reduction <add>, %51, %cst_22 [2] : vector<8x8x8xf32> to vector<8x8xf32>
    %53 = vector.shape_cast %52 : vector<8x8xf32> to vector<8x8x1xf32>
    %54 = tpu.reciprocal %53 : vector<8x8x1xf32> -> vector<8x8x1xf32>
    %55 = vector.broadcast %54 : vector<8x8x1xf32> to vector<8x8x8xf32>
    %56 = arith.mulf %51, %55 : vector<8x8x8xf32>
    "tpu.trace_start"() <{level = 10 : i32, message = "bqk,bkd->bqd"}> : () -> ()
    %cst_23 = arith.constant dense<0.000000e+00> : vector<8x8x32xf32>
    %57 = tpu.matmul %56, %45, %cst_23 {dimension_numbers = #tpu.dot_dimension_numbers<[2], [1], [1], [2], [0, 0, 0, 1, 1, 2], [0], [0]>} : vector<8x8x8xf32>, vector<8x8x32xf32>, vector<8x8x32xf32> -> vector<8x8x32xf32>
    "tpu.trace_stop"() : () -> ()
    %58 = vector.extract_strided_slice %25 {offsets = [0, 0, 64], sizes = [8, 8, 32], strides = [1, 1, 1]} : vector<8x8x128xf32> to vector<8x8x32xf32>
    %59 = vector.extract_strided_slice %26 {offsets = [0, 0, 64], sizes = [8, 8, 32], strides = [1, 1, 1]} : vector<8x8x128xf32> to vector<8x8x32xf32>
    %60 = vector.extract_strided_slice %27 {offsets = [0, 0, 64], sizes = [8, 8, 32], strides = [1, 1, 1]} : vector<8x8x128xf32> to vector<8x8x32xf32>
    "tpu.trace_start"() <{level = 10 : i32, message = "bqd,bkd->bqk"}> : () -> ()
    %cst_24 = arith.constant dense<0.000000e+00> : vector<8x8x8xf32>
    %61 = tpu.matmul %58, %59, %cst_24 {dimension_numbers = #tpu.dot_dimension_numbers<[2], [2], [1], [1], [0, 0, 0, 1, 1, 1], [0], [0]>} : vector<8x8x32xf32>, vector<8x8x32xf32>, vector<8x8x8xf32> -> vector<8x8x8xf32>
    "tpu.trace_stop"() : () -> ()
    %cst_25 = arith.constant dense<0xFF800000> : vector<8x8xf32>
    %62 = vector.multi_reduction <maximumf>, %61, %cst_25 [2] : vector<8x8x8xf32> to vector<8x8xf32>
    %63 = vector.shape_cast %62 : vector<8x8xf32> to vector<8x8x1xf32>
    %64 = vector.broadcast %63 : vector<8x8x1xf32> to vector<8x8x8xf32>
    %65 = arith.subf %61, %64 : vector<8x8x8xf32>
    %66 = math.exp %65 : vector<8x8x8xf32>
    %cst_26 = arith.constant dense<0.000000e+00> : vector<8x8xf32>
    %67 = vector.multi_reduction <add>, %66, %cst_26 [2] : vector<8x8x8xf32> to vector<8x8xf32>
    %68 = vector.shape_cast %67 : vector<8x8xf32> to vector<8x8x1xf32>
    %69 = tpu.reciprocal %68 : vector<8x8x1xf32> -> vector<8x8x1xf32>
    %70 = vector.broadcast %69 : vector<8x8x1xf32> to vector<8x8x8xf32>
    %71 = arith.mulf %66, %70 : vector<8x8x8xf32>
    "tpu.trace_start"() <{level = 10 : i32, message = "bqk,bkd->bqd"}> : () -> ()
    %cst_27 = arith.constant dense<0.000000e+00> : vector<8x8x32xf32>
    %72 = tpu.matmul %71, %60, %cst_27 {dimension_numbers = #tpu.dot_dimension_numbers<[2], [1], [1], [2], [0, 0, 0, 1, 1, 2], [0], [0]>} : vector<8x8x8xf32>, vector<8x8x32xf32>, vector<8x8x32xf32> -> vector<8x8x32xf32>
    "tpu.trace_stop"() : () -> ()
    %73 = vector.extract_strided_slice %25 {offsets = [0, 0, 96], sizes = [8, 8, 32], strides = [1, 1, 1]} : vector<8x8x128xf32> to vector<8x8x32xf32>
    %74 = vector.extract_strided_slice %26 {offsets = [0, 0, 96], sizes = [8, 8, 32], strides = [1, 1, 1]} : vector<8x8x128xf32> to vector<8x8x32xf32>
    %75 = vector.extract_strided_slice %27 {offsets = [0, 0, 96], sizes = [8, 8, 32], strides = [1, 1, 1]} : vector<8x8x128xf32> to vector<8x8x32xf32>
    "tpu.trace_start"() <{level = 10 : i32, message = "bqd,bkd->bqk"}> : () -> ()
    %cst_28 = arith.constant dense<0.000000e+00> : vector<8x8x8xf32>
    %76 = tpu.matmul %73, %74, %cst_28 {dimension_numbers = #tpu.dot_dimension_numbers<[2], [2], [1], [1], [0, 0, 0, 1, 1, 1], [0], [0]>} : vector<8x8x32xf32>, vector<8x8x32xf32>, vector<8x8x8xf32> -> vector<8x8x8xf32>
    "tpu.trace_stop"() : () -> ()
    %cst_29 = arith.constant dense<0xFF800000> : vector<8x8xf32>
    %77 = vector.multi_reduction <maximumf>, %76, %cst_29 [2] : vector<8x8x8xf32> to vector<8x8xf32>
    %78 = vector.shape_cast %77 : vector<8x8xf32> to vector<8x8x1xf32>
    %79 = vector.broadcast %78 : vector<8x8x1xf32> to vector<8x8x8xf32>
    %80 = arith.subf %76, %79 : vector<8x8x8xf32>
    %81 = math.exp %80 : vector<8x8x8xf32>
    %cst_30 = arith.constant dense<0.000000e+00> : vector<8x8xf32>
    %82 = vector.multi_reduction <add>, %81, %cst_30 [2] : vector<8x8x8xf32> to vector<8x8xf32>
    %83 = vector.shape_cast %82 : vector<8x8xf32> to vector<8x8x1xf32>
    %84 = tpu.reciprocal %83 : vector<8x8x1xf32> -> vector<8x8x1xf32>
    %85 = vector.broadcast %84 : vector<8x8x1xf32> to vector<8x8x8xf32>
    %86 = arith.mulf %81, %85 : vector<8x8x8xf32>
    "tpu.trace_start"() <{level = 10 : i32, message = "bqk,bkd->bqd"}> : () -> ()
    %cst_31 = arith.constant dense<0.000000e+00> : vector<8x8x32xf32>
    %87 = tpu.matmul %86, %75, %cst_31 {dimension_numbers = #tpu.dot_dimension_numbers<[2], [1], [1], [2], [0, 0, 0, 1, 1, 2], [0], [0]>} : vector<8x8x8xf32>, vector<8x8x32xf32>, vector<8x8x32xf32> -> vector<8x8x32xf32>
    "tpu.trace_stop"() : () -> ()
    %88 = tpu.concatenate %42, %57, %72, %87 in 2 : vector<8x8x32xf32>, vector<8x8x32xf32>, vector<8x8x32xf32>, vector<8x8x32xf32> -> vector<8x8x128xf32>
    %89 = vector.shape_cast %88 : vector<8x8x128xf32> to vector<64x128xf32>
    %c0_32 = arith.constant 0 : index
    %c896 = arith.constant 896 : index
    %90 = vector.load %arg1[%c0_32, %c896] : memref<1x6912xf32, #tpu.memory_space<vmem>>, vector<1x128xf32>
    %c0_33 = arith.constant 0 : index
    %c0_34 = arith.constant 0 : index
    %91 = vector.load %arg7[%c0_33, %c0_34] : memref<128x128xbf16, #tpu.memory_space<vmem>>, vector<128x128xbf16>
    %92 = arith.extf %91 : vector<128x128xbf16> to vector<128x128xf32>
    %cst_35 = arith.constant dense<0.000000e+00> : vector<64x128xf32>
    %93 = tpu.matmul %89, %92, %cst_35 {dimension_numbers = #tpu.dot_dimension_numbers<[1], [0], [0], [1], [0, 0, 1, 1], [], []>} : vector<64x128xf32>, vector<128x128xf32>, vector<64x128xf32> -> vector<64x128xf32>
    %94 = vector.broadcast %90 : vector<1x128xf32> to vector<64x128xf32>
    %95 = arith.addf %93, %94 : vector<64x128xf32>
    %96 = arith.addf %17, %95 : vector<64x128xf32>
    %c0_36 = arith.constant 0 : index
    %c1024 = arith.constant 1024 : index
    %97 = vector.load %arg1[%c0_36, %c1024] : memref<1x6912xf32, #tpu.memory_space<vmem>>, vector<1x128xf32>
    %c0_37 = arith.constant 0 : index
    %c1152 = arith.constant 1152 : index
    %98 = vector.load %arg1[%c0_37, %c1152] : memref<1x6912xf32, #tpu.memory_space<vmem>>, vector<1x128xf32>
    %cst_38 = arith.constant dense<0.000000e+00> : vector<64xf32>
    %99 = vector.multi_reduction <add>, %96, %cst_38 [1] : vector<64x128xf32> to vector<64xf32>
    %100 = vector.shape_cast %99 : vector<64xf32> to vector<64x1xf32>
    %cst_39 = arith.constant 1.280000e+02 : f32
    %101 = vector.broadcast %cst_39 : f32 to vector<64x1xf32>
    %102 = arith.divf %100, %101 : vector<64x1xf32>
    %103 = vector.broadcast %102 : vector<64x1xf32> to vector<64x128xf32>
    %104 = arith.subf %96, %103 : vector<64x128xf32>
    %105 = arith.mulf %104, %104 : vector<64x128xf32>
    %cst_40 = arith.constant dense<0.000000e+00> : vector<64xf32>
    %106 = vector.multi_reduction <add>, %105, %cst_40 [1] : vector<64x128xf32> to vector<64xf32>
    %107 = vector.shape_cast %106 : vector<64xf32> to vector<64x1xf32>
    %cst_41 = arith.constant 1.280000e+02 : f32
    %108 = vector.broadcast %cst_41 : f32 to vector<64x1xf32>
    %109 = arith.divf %107, %108 : vector<64x1xf32>
    %110 = vector.broadcast %102 : vector<64x1xf32> to vector<64x128xf32>
    %111 = arith.subf %96, %110 : vector<64x128xf32>
    %cst_42 = arith.constant 9.99999974E-6 : f32
    %112 = vector.broadcast %cst_42 : f32 to vector<64x1xf32>
    %113 = arith.addf %109, %112 : vector<64x1xf32>
    %114 = math.rsqrt %113 : vector<64x1xf32>
    %115 = vector.broadcast %114 : vector<64x1xf32> to vector<64x128xf32>
    %116 = arith.mulf %111, %115 : vector<64x128xf32>
    %117 = vector.broadcast %97 : vector<1x128xf32> to vector<64x128xf32>
    %118 = arith.mulf %116, %117 : vector<64x128xf32>
    %119 = vector.broadcast %98 : vector<1x128xf32> to vector<64x128xf32>
    %120 = arith.addf %118, %119 : vector<64x128xf32>
    %c0_43 = arith.constant 0 : index
    %c1280 = arith.constant 1280 : index
    %121 = vector.load %arg1[%c0_43, %c1280] : memref<1x6912xf32, #tpu.memory_space<vmem>>, vector<1x2048xf32>
    %c0_44 = arith.constant 0 : index
    %c0_45 = arith.constant 0 : index
    %122 = vector.load %arg8[%c0_44, %c0_45] : memref<128x2048xbf16, #tpu.memory_space<vmem>>, vector<128x2048xbf16>
    %123 = arith.extf %122 : vector<128x2048xbf16> to vector<128x2048xf32>
    %cst_46 = arith.constant dense<0.000000e+00> : vector<64x2048xf32>
    %124 = tpu.matmul %120, %123, %cst_46 {dimension_numbers = #tpu.dot_dimension_numbers<[1], [0], [0], [1], [0, 0, 1, 1], [], []>} : vector<64x128xf32>, vector<128x2048xf32>, vector<64x2048xf32> -> vector<64x2048xf32>
    %125 = vector.broadcast %121 : vector<1x2048xf32> to vector<64x2048xf32>
    %126 = arith.addf %124, %125 : vector<64x2048xf32>
    %cst_47 = arith.constant 0.000000e+00 : f32
    %127 = vector.broadcast %cst_47 : f32 to vector<64x2048xf32>
    %128 = arith.maximumf %126, %127 : vector<64x2048xf32>
    %c0_48 = arith.constant 0 : index
    %c3328 = arith.constant 3328 : index
    %129 = vector.load %arg1[%c0_48, %c3328] : memref<1x6912xf32, #tpu.memory_space<vmem>>, vector<1x128xf32>
    %c0_49 = arith.constant 0 : index
    %c0_50 = arith.constant 0 : index
    %130 = vector.load %arg9[%c0_49, %c0_50] : memref<2048x128xbf16, #tpu.memory_space<vmem>>, vector<2048x128xbf16>
    %131 = arith.extf %130 : vector<2048x128xbf16> to vector<2048x128xf32>
    %cst_51 = arith.constant dense<0.000000e+00> : vector<64x128xf32>
    %132 = tpu.matmul %128, %131, %cst_51 {dimension_numbers = #tpu.dot_dimension_numbers<[1], [0], [0], [1], [0, 0, 1, 1], [], []>} : vector<64x2048xf32>, vector<2048x128xf32>, vector<64x128xf32> -> vector<64x128xf32>
    %133 = vector.broadcast %129 : vector<1x128xf32> to vector<64x128xf32>
    %134 = arith.addf %132, %133 : vector<64x128xf32>
    %135 = arith.addf %120, %134 : vector<64x128xf32>
    %c0_52 = arith.constant 0 : index
    %c3456 = arith.constant 3456 : index
    %136 = vector.load %arg1[%c0_52, %c3456] : memref<1x6912xf32, #tpu.memory_space<vmem>>, vector<1x128xf32>
    %c0_53 = arith.constant 0 : index
    %c3584 = arith.constant 3584 : index
    %137 = vector.load %arg1[%c0_53, %c3584] : memref<1x6912xf32, #tpu.memory_space<vmem>>, vector<1x128xf32>
    %cst_54 = arith.constant dense<0.000000e+00> : vector<64xf32>
    %138 = vector.multi_reduction <add>, %135, %cst_54 [1] : vector<64x128xf32> to vector<64xf32>
    %139 = vector.shape_cast %138 : vector<64xf32> to vector<64x1xf32>
    %cst_55 = arith.constant 1.280000e+02 : f32
    %140 = vector.broadcast %cst_55 : f32 to vector<64x1xf32>
    %141 = arith.divf %139, %140 : vector<64x1xf32>
    %142 = vector.broadcast %141 : vector<64x1xf32> to vector<64x128xf32>
    %143 = arith.subf %135, %142 : vector<64x128xf32>
    %144 = arith.mulf %143, %143 : vector<64x128xf32>
    %cst_56 = arith.constant dense<0.000000e+00> : vector<64xf32>
    %145 = vector.multi_reduction <add>, %144, %cst_56 [1] : vector<64x128xf32> to vector<64xf32>
    %146 = vector.shape_cast %145 : vector<64xf32> to vector<64x1xf32>
    %cst_57 = arith.constant 1.280000e+02 : f32
    %147 = vector.broadcast %cst_57 : f32 to vector<64x1xf32>
    %148 = arith.divf %146, %147 : vector<64x1xf32>
    %149 = vector.broadcast %141 : vector<64x1xf32> to vector<64x128xf32>
    %150 = arith.subf %135, %149 : vector<64x128xf32>
    %cst_58 = arith.constant 9.99999974E-6 : f32
    %151 = vector.broadcast %cst_58 : f32 to vector<64x1xf32>
    %152 = arith.addf %148, %151 : vector<64x1xf32>
    %153 = math.rsqrt %152 : vector<64x1xf32>
    %154 = vector.broadcast %153 : vector<64x1xf32> to vector<64x128xf32>
    %155 = arith.mulf %150, %154 : vector<64x128xf32>
    %156 = vector.broadcast %136 : vector<1x128xf32> to vector<64x128xf32>
    %157 = arith.mulf %155, %156 : vector<64x128xf32>
    %158 = vector.broadcast %137 : vector<1x128xf32> to vector<64x128xf32>
    %159 = arith.addf %157, %158 : vector<64x128xf32>
    %c0_59 = arith.constant 0 : index
    %c3712 = arith.constant 3712 : index
    %160 = vector.load %arg1[%c0_59, %c3712] : memref<1x6912xf32, #tpu.memory_space<vmem>>, vector<1x384xf32>
    %c0_60 = arith.constant 0 : index
    %c0_61 = arith.constant 0 : index
    %161 = vector.load %arg10[%c0_60, %c0_61] : memref<128x384xbf16, #tpu.memory_space<vmem>>, vector<128x384xbf16>
    %162 = arith.extf %161 : vector<128x384xbf16> to vector<128x384xf32>
    %cst_62 = arith.constant dense<0.000000e+00> : vector<64x384xf32>
    %163 = tpu.matmul %159, %162, %cst_62 {dimension_numbers = #tpu.dot_dimension_numbers<[1], [0], [0], [1], [0, 0, 1, 1], [], []>} : vector<64x128xf32>, vector<128x384xf32>, vector<64x384xf32> -> vector<64x384xf32>
    %164 = vector.broadcast %160 : vector<1x384xf32> to vector<64x384xf32>
    %165 = arith.addf %163, %164 : vector<64x384xf32>
    %166 = vector.shape_cast %165 : vector<64x384xf32> to vector<8x8x384xf32>
    %167 = vector.extract_strided_slice %166 {offsets = [0, 0, 0], sizes = [8, 8, 128], strides = [1, 1, 1]} : vector<8x8x384xf32> to vector<8x8x128xf32>
    %168 = vector.extract_strided_slice %166 {offsets = [0, 0, 128], sizes = [8, 8, 128], strides = [1, 1, 1]} : vector<8x8x384xf32> to vector<8x8x128xf32>
    %169 = vector.extract_strided_slice %166 {offsets = [0, 0, 256], sizes = [8, 8, 128], strides = [1, 1, 1]} : vector<8x8x384xf32> to vector<8x8x128xf32>
    %170 = vector.extract_strided_slice %167 {offsets = [0, 0, 0], sizes = [8, 8, 32], strides = [1, 1, 1]} : vector<8x8x128xf32> to vector<8x8x32xf32>
    %171 = vector.extract_strided_slice %168 {offsets = [0, 0, 0], sizes = [8, 8, 32], strides = [1, 1, 1]} : vector<8x8x128xf32> to vector<8x8x32xf32>
    %172 = vector.extract_strided_slice %169 {offsets = [0, 0, 0], sizes = [8, 8, 32], strides = [1, 1, 1]} : vector<8x8x128xf32> to vector<8x8x32xf32>
    "tpu.trace_start"() <{level = 10 : i32, message = "bqd,bkd->bqk"}> : () -> ()
    %cst_63 = arith.constant dense<0.000000e+00> : vector<8x8x8xf32>
    %173 = tpu.matmul %170, %171, %cst_63 {dimension_numbers = #tpu.dot_dimension_numbers<[2], [2], [1], [1], [0, 0, 0, 1, 1, 1], [0], [0]>} : vector<8x8x32xf32>, vector<8x8x32xf32>, vector<8x8x8xf32> -> vector<8x8x8xf32>
    "tpu.trace_stop"() : () -> ()
    %cst_64 = arith.constant dense<0xFF800000> : vector<8x8xf32>
    %174 = vector.multi_reduction <maximumf>, %173, %cst_64 [2] : vector<8x8x8xf32> to vector<8x8xf32>
    %175 = vector.shape_cast %174 : vector<8x8xf32> to vector<8x8x1xf32>
    %176 = vector.broadcast %175 : vector<8x8x1xf32> to vector<8x8x8xf32>
    %177 = arith.subf %173, %176 : vector<8x8x8xf32>
    %178 = math.exp %177 : vector<8x8x8xf32>
    %cst_65 = arith.constant dense<0.000000e+00> : vector<8x8xf32>
    %179 = vector.multi_reduction <add>, %178, %cst_65 [2] : vector<8x8x8xf32> to vector<8x8xf32>
    %180 = vector.shape_cast %179 : vector<8x8xf32> to vector<8x8x1xf32>
    %181 = tpu.reciprocal %180 : vector<8x8x1xf32> -> vector<8x8x1xf32>
    %182 = vector.broadcast %181 : vector<8x8x1xf32> to vector<8x8x8xf32>
    %183 = arith.mulf %178, %182 : vector<8x8x8xf32>
    "tpu.trace_start"() <{level = 10 : i32, message = "bqk,bkd->bqd"}> : () -> ()
    %cst_66 = arith.constant dense<0.000000e+00> : vector<8x8x32xf32>
    %184 = tpu.matmul %183, %172, %cst_66 {dimension_numbers = #tpu.dot_dimension_numbers<[2], [1], [1], [2], [0, 0, 0, 1, 1, 2], [0], [0]>} : vector<8x8x8xf32>, vector<8x8x32xf32>, vector<8x8x32xf32> -> vector<8x8x32xf32>
    "tpu.trace_stop"() : () -> ()
    %185 = vector.extract_strided_slice %167 {offsets = [0, 0, 32], sizes = [8, 8, 32], strides = [1, 1, 1]} : vector<8x8x128xf32> to vector<8x8x32xf32>
    %186 = vector.extract_strided_slice %168 {offsets = [0, 0, 32], sizes = [8, 8, 32], strides = [1, 1, 1]} : vector<8x8x128xf32> to vector<8x8x32xf32>
    %187 = vector.extract_strided_slice %169 {offsets = [0, 0, 32], sizes = [8, 8, 32], strides = [1, 1, 1]} : vector<8x8x128xf32> to vector<8x8x32xf32>
    "tpu.trace_start"() <{level = 10 : i32, message = "bqd,bkd->bqk"}> : () -> ()
    %cst_67 = arith.constant dense<0.000000e+00> : vector<8x8x8xf32>
    %188 = tpu.matmul %185, %186, %cst_67 {dimension_numbers = #tpu.dot_dimension_numbers<[2], [2], [1], [1], [0, 0, 0, 1, 1, 1], [0], [0]>} : vector<8x8x32xf32>, vector<8x8x32xf32>, vector<8x8x8xf32> -> vector<8x8x8xf32>
    "tpu.trace_stop"() : () -> ()
    %cst_68 = arith.constant dense<0xFF800000> : vector<8x8xf32>
    %189 = vector.multi_reduction <maximumf>, %188, %cst_68 [2] : vector<8x8x8xf32> to vector<8x8xf32>
    %190 = vector.shape_cast %189 : vector<8x8xf32> to vector<8x8x1xf32>
    %191 = vector.broadcast %190 : vector<8x8x1xf32> to vector<8x8x8xf32>
    %192 = arith.subf %188, %191 : vector<8x8x8xf32>
    %193 = math.exp %192 : vector<8x8x8xf32>
    %cst_69 = arith.constant dense<0.000000e+00> : vector<8x8xf32>
    %194 = vector.multi_reduction <add>, %193, %cst_69 [2] : vector<8x8x8xf32> to vector<8x8xf32>
    %195 = vector.shape_cast %194 : vector<8x8xf32> to vector<8x8x1xf32>
    %196 = tpu.reciprocal %195 : vector<8x8x1xf32> -> vector<8x8x1xf32>
    %197 = vector.broadcast %196 : vector<8x8x1xf32> to vector<8x8x8xf32>
    %198 = arith.mulf %193, %197 : vector<8x8x8xf32>
    "tpu.trace_start"() <{level = 10 : i32, message = "bqk,bkd->bqd"}> : () -> ()
    %cst_70 = arith.constant dense<0.000000e+00> : vector<8x8x32xf32>
    %199 = tpu.matmul %198, %187, %cst_70 {dimension_numbers = #tpu.dot_dimension_numbers<[2], [1], [1], [2], [0, 0, 0, 1, 1, 2], [0], [0]>} : vector<8x8x8xf32>, vector<8x8x32xf32>, vector<8x8x32xf32> -> vector<8x8x32xf32>
    "tpu.trace_stop"() : () -> ()
    %200 = vector.extract_strided_slice %167 {offsets = [0, 0, 64], sizes = [8, 8, 32], strides = [1, 1, 1]} : vector<8x8x128xf32> to vector<8x8x32xf32>
    %201 = vector.extract_strided_slice %168 {offsets = [0, 0, 64], sizes = [8, 8, 32], strides = [1, 1, 1]} : vector<8x8x128xf32> to vector<8x8x32xf32>
    %202 = vector.extract_strided_slice %169 {offsets = [0, 0, 64], sizes = [8, 8, 32], strides = [1, 1, 1]} : vector<8x8x128xf32> to vector<8x8x32xf32>
    "tpu.trace_start"() <{level = 10 : i32, message = "bqd,bkd->bqk"}> : () -> ()
    %cst_71 = arith.constant dense<0.000000e+00> : vector<8x8x8xf32>
    %203 = tpu.matmul %200, %201, %cst_71 {dimension_numbers = #tpu.dot_dimension_numbers<[2], [2], [1], [1], [0, 0, 0, 1, 1, 1], [0], [0]>} : vector<8x8x32xf32>, vector<8x8x32xf32>, vector<8x8x8xf32> -> vector<8x8x8xf32>
    "tpu.trace_stop"() : () -> ()
    %cst_72 = arith.constant dense<0xFF800000> : vector<8x8xf32>
    %204 = vector.multi_reduction <maximumf>, %203, %cst_72 [2] : vector<8x8x8xf32> to vector<8x8xf32>
    %205 = vector.shape_cast %204 : vector<8x8xf32> to vector<8x8x1xf32>
    %206 = vector.broadcast %205 : vector<8x8x1xf32> to vector<8x8x8xf32>
    %207 = arith.subf %203, %206 : vector<8x8x8xf32>
    %208 = math.exp %207 : vector<8x8x8xf32>
    %cst_73 = arith.constant dense<0.000000e+00> : vector<8x8xf32>
    %209 = vector.multi_reduction <add>, %208, %cst_73 [2] : vector<8x8x8xf32> to vector<8x8xf32>
    %210 = vector.shape_cast %209 : vector<8x8xf32> to vector<8x8x1xf32>
    %211 = tpu.reciprocal %210 : vector<8x8x1xf32> -> vector<8x8x1xf32>
    %212 = vector.broadcast %211 : vector<8x8x1xf32> to vector<8x8x8xf32>
    %213 = arith.mulf %208, %212 : vector<8x8x8xf32>
    "tpu.trace_start"() <{level = 10 : i32, message = "bqk,bkd->bqd"}> : () -> ()
    %cst_74 = arith.constant dense<0.000000e+00> : vector<8x8x32xf32>
    %214 = tpu.matmul %213, %202, %cst_74 {dimension_numbers = #tpu.dot_dimension_numbers<[2], [1], [1], [2], [0, 0, 0, 1, 1, 2], [0], [0]>} : vector<8x8x8xf32>, vector<8x8x32xf32>, vector<8x8x32xf32> -> vector<8x8x32xf32>
    "tpu.trace_stop"() : () -> ()
    %215 = vector.extract_strided_slice %167 {offsets = [0, 0, 96], sizes = [8, 8, 32], strides = [1, 1, 1]} : vector<8x8x128xf32> to vector<8x8x32xf32>
    %216 = vector.extract_strided_slice %168 {offsets = [0, 0, 96], sizes = [8, 8, 32], strides = [1, 1, 1]} : vector<8x8x128xf32> to vector<8x8x32xf32>
    %217 = vector.extract_strided_slice %169 {offsets = [0, 0, 96], sizes = [8, 8, 32], strides = [1, 1, 1]} : vector<8x8x128xf32> to vector<8x8x32xf32>
    "tpu.trace_start"() <{level = 10 : i32, message = "bqd,bkd->bqk"}> : () -> ()
    %cst_75 = arith.constant dense<0.000000e+00> : vector<8x8x8xf32>
    %218 = tpu.matmul %215, %216, %cst_75 {dimension_numbers = #tpu.dot_dimension_numbers<[2], [2], [1], [1], [0, 0, 0, 1, 1, 1], [0], [0]>} : vector<8x8x32xf32>, vector<8x8x32xf32>, vector<8x8x8xf32> -> vector<8x8x8xf32>
    "tpu.trace_stop"() : () -> ()
    %cst_76 = arith.constant dense<0xFF800000> : vector<8x8xf32>
    %219 = vector.multi_reduction <maximumf>, %218, %cst_76 [2] : vector<8x8x8xf32> to vector<8x8xf32>
    %220 = vector.shape_cast %219 : vector<8x8xf32> to vector<8x8x1xf32>
    %221 = vector.broadcast %220 : vector<8x8x1xf32> to vector<8x8x8xf32>
    %222 = arith.subf %218, %221 : vector<8x8x8xf32>
    %223 = math.exp %222 : vector<8x8x8xf32>
    %cst_77 = arith.constant dense<0.000000e+00> : vector<8x8xf32>
    %224 = vector.multi_reduction <add>, %223, %cst_77 [2] : vector<8x8x8xf32> to vector<8x8xf32>
    %225 = vector.shape_cast %224 : vector<8x8xf32> to vector<8x8x1xf32>
    %226 = tpu.reciprocal %225 : vector<8x8x1xf32> -> vector<8x8x1xf32>
    %227 = vector.broadcast %226 : vector<8x8x1xf32> to vector<8x8x8xf32>
    %228 = arith.mulf %223, %227 : vector<8x8x8xf32>
    "tpu.trace_start"() <{level = 10 : i32, message = "bqk,bkd->bqd"}> : () -> ()
    %cst_78 = arith.constant dense<0.000000e+00> : vector<8x8x32xf32>
    %229 = tpu.matmul %228, %217, %cst_78 {dimension_numbers = #tpu.dot_dimension_numbers<[2], [1], [1], [2], [0, 0, 0, 1, 1, 2], [0], [0]>} : vector<8x8x8xf32>, vector<8x8x32xf32>, vector<8x8x32xf32> -> vector<8x8x32xf32>
    "tpu.trace_stop"() : () -> ()
    %230 = tpu.concatenate %184, %199, %214, %229 in 2 : vector<8x8x32xf32>, vector<8x8x32xf32>, vector<8x8x32xf32>, vector<8x8x32xf32> -> vector<8x8x128xf32>
    %231 = vector.shape_cast %230 : vector<8x8x128xf32> to vector<64x128xf32>
    %c0_79 = arith.constant 0 : index
    %c4096 = arith.constant 4096 : index
    %232 = vector.load %arg1[%c0_79, %c4096] : memref<1x6912xf32, #tpu.memory_space<vmem>>, vector<1x128xf32>
    %c0_80 = arith.constant 0 : index
    %c0_81 = arith.constant 0 : index
    %233 = vector.load %arg11[%c0_80, %c0_81] : memref<128x128xbf16, #tpu.memory_space<vmem>>, vector<128x128xbf16>
    %234 = arith.extf %233 : vector<128x128xbf16> to vector<128x128xf32>
    %cst_82 = arith.constant dense<0.000000e+00> : vector<64x128xf32>
    %235 = tpu.matmul %231, %234, %cst_82 {dimension_numbers = #tpu.dot_dimension_numbers<[1], [0], [0], [1], [0, 0, 1, 1], [], []>} : vector<64x128xf32>, vector<128x128xf32>, vector<64x128xf32> -> vector<64x128xf32>
    %236 = vector.broadcast %232 : vector<1x128xf32> to vector<64x128xf32>
    %237 = arith.addf %235, %236 : vector<64x128xf32>
    %238 = arith.addf %159, %237 : vector<64x128xf32>
    %c0_83 = arith.constant 0 : index
    %c4224 = arith.constant 4224 : index
    %239 = vector.load %arg1[%c0_83, %c4224] : memref<1x6912xf32, #tpu.memory_space<vmem>>, vector<1x128xf32>
    %c0_84 = arith.constant 0 : index
    %c4352 = arith.constant 4352 : index
    %240 = vector.load %arg1[%c0_84, %c4352] : memref<1x6912xf32, #tpu.memory_space<vmem>>, vector<1x128xf32>
    %cst_85 = arith.constant dense<0.000000e+00> : vector<64xf32>
    %241 = vector.multi_reduction <add>, %238, %cst_85 [1] : vector<64x128xf32> to vector<64xf32>
    %242 = vector.shape_cast %241 : vector<64xf32> to vector<64x1xf32>
    %cst_86 = arith.constant 1.280000e+02 : f32
    %243 = vector.broadcast %cst_86 : f32 to vector<64x1xf32>
    %244 = arith.divf %242, %243 : vector<64x1xf32>
    %245 = vector.broadcast %244 : vector<64x1xf32> to vector<64x128xf32>
    %246 = arith.subf %238, %245 : vector<64x128xf32>
    %247 = arith.mulf %246, %246 : vector<64x128xf32>
    %cst_87 = arith.constant dense<0.000000e+00> : vector<64xf32>
    %248 = vector.multi_reduction <add>, %247, %cst_87 [1] : vector<64x128xf32> to vector<64xf32>
    %249 = vector.shape_cast %248 : vector<64xf32> to vector<64x1xf32>
    %cst_88 = arith.constant 1.280000e+02 : f32
    %250 = vector.broadcast %cst_88 : f32 to vector<64x1xf32>
    %251 = arith.divf %249, %250 : vector<64x1xf32>
    %252 = vector.broadcast %244 : vector<64x1xf32> to vector<64x128xf32>
    %253 = arith.subf %238, %252 : vector<64x128xf32>
    %cst_89 = arith.constant 9.99999974E-6 : f32
    %254 = vector.broadcast %cst_89 : f32 to vector<64x1xf32>
    %255 = arith.addf %251, %254 : vector<64x1xf32>
    %256 = math.rsqrt %255 : vector<64x1xf32>
    %257 = vector.broadcast %256 : vector<64x1xf32> to vector<64x128xf32>
    %258 = arith.mulf %253, %257 : vector<64x128xf32>
    %259 = vector.broadcast %239 : vector<1x128xf32> to vector<64x128xf32>
    %260 = arith.mulf %258, %259 : vector<64x128xf32>
    %261 = vector.broadcast %240 : vector<1x128xf32> to vector<64x128xf32>
    %262 = arith.addf %260, %261 : vector<64x128xf32>
    %c0_90 = arith.constant 0 : index
    %c4480 = arith.constant 4480 : index
    %263 = vector.load %arg1[%c0_90, %c4480] : memref<1x6912xf32, #tpu.memory_space<vmem>>, vector<1x2048xf32>
    %c0_91 = arith.constant 0 : index
    %c0_92 = arith.constant 0 : index
    %264 = vector.load %arg12[%c0_91, %c0_92] : memref<128x2048xbf16, #tpu.memory_space<vmem>>, vector<128x2048xbf16>
    %265 = arith.extf %264 : vector<128x2048xbf16> to vector<128x2048xf32>
    %cst_93 = arith.constant dense<0.000000e+00> : vector<64x2048xf32>
    %266 = tpu.matmul %262, %265, %cst_93 {dimension_numbers = #tpu.dot_dimension_numbers<[1], [0], [0], [1], [0, 0, 1, 1], [], []>} : vector<64x128xf32>, vector<128x2048xf32>, vector<64x2048xf32> -> vector<64x2048xf32>
    %267 = vector.broadcast %263 : vector<1x2048xf32> to vector<64x2048xf32>
    %268 = arith.addf %266, %267 : vector<64x2048xf32>
    %cst_94 = arith.constant 0.000000e+00 : f32
    %269 = vector.broadcast %cst_94 : f32 to vector<64x2048xf32>
    %270 = arith.maximumf %268, %269 : vector<64x2048xf32>
    %c0_95 = arith.constant 0 : index
    %c6528 = arith.constant 6528 : index
    %271 = vector.load %arg1[%c0_95, %c6528] : memref<1x6912xf32, #tpu.memory_space<vmem>>, vector<1x128xf32>
    %c0_96 = arith.constant 0 : index
    %c0_97 = arith.constant 0 : index
    %272 = vector.load %arg13[%c0_96, %c0_97] : memref<2048x128xbf16, #tpu.memory_space<vmem>>, vector<2048x128xbf16>
    %273 = arith.extf %272 : vector<2048x128xbf16> to vector<2048x128xf32>
    %cst_98 = arith.constant dense<0.000000e+00> : vector<64x128xf32>
    %274 = tpu.matmul %270, %273, %cst_98 {dimension_numbers = #tpu.dot_dimension_numbers<[1], [0], [0], [1], [0, 0, 1, 1], [], []>} : vector<64x2048xf32>, vector<2048x128xf32>, vector<64x128xf32> -> vector<64x128xf32>
    %275 = vector.broadcast %271 : vector<1x128xf32> to vector<64x128xf32>
    %276 = arith.addf %274, %275 : vector<64x128xf32>
    %277 = arith.addf %262, %276 : vector<64x128xf32>
    %c0_99 = arith.constant 0 : index
    %c6656 = arith.constant 6656 : index
    %278 = vector.load %arg1[%c0_99, %c6656] : memref<1x6912xf32, #tpu.memory_space<vmem>>, vector<1x128xf32>
    %c0_100 = arith.constant 0 : index
    %c6784 = arith.constant 6784 : index
    %279 = vector.load %arg1[%c0_100, %c6784] : memref<1x6912xf32, #tpu.memory_space<vmem>>, vector<1x128xf32>
    %cst_101 = arith.constant dense<0.000000e+00> : vector<64xf32>
    %280 = vector.multi_reduction <add>, %277, %cst_101 [1] : vector<64x128xf32> to vector<64xf32>
    %281 = vector.shape_cast %280 : vector<64xf32> to vector<64x1xf32>
    %cst_102 = arith.constant 1.280000e+02 : f32
    %282 = vector.broadcast %cst_102 : f32 to vector<64x1xf32>
    %283 = arith.divf %281, %282 : vector<64x1xf32>
    %284 = vector.broadcast %283 : vector<64x1xf32> to vector<64x128xf32>
    %285 = arith.subf %277, %284 : vector<64x128xf32>
    %286 = arith.mulf %285, %285 : vector<64x128xf32>
    %cst_103 = arith.constant dense<0.000000e+00> : vector<64xf32>
    %287 = vector.multi_reduction <add>, %286, %cst_103 [1] : vector<64x128xf32> to vector<64xf32>
    %288 = vector.shape_cast %287 : vector<64xf32> to vector<64x1xf32>
    %cst_104 = arith.constant 1.280000e+02 : f32
    %289 = vector.broadcast %cst_104 : f32 to vector<64x1xf32>
    %290 = arith.divf %288, %289 : vector<64x1xf32>
    %291 = vector.broadcast %283 : vector<64x1xf32> to vector<64x128xf32>
    %292 = arith.subf %277, %291 : vector<64x128xf32>
    %cst_105 = arith.constant 9.99999974E-6 : f32
    %293 = vector.broadcast %cst_105 : f32 to vector<64x1xf32>
    %294 = arith.addf %290, %293 : vector<64x1xf32>
    %295 = math.rsqrt %294 : vector<64x1xf32>
    %296 = vector.broadcast %295 : vector<64x1xf32> to vector<64x128xf32>
    %297 = arith.mulf %292, %296 : vector<64x128xf32>
    %298 = vector.broadcast %278 : vector<1x128xf32> to vector<64x128xf32>
    %299 = arith.mulf %297, %298 : vector<64x128xf32>
    %300 = vector.broadcast %279 : vector<1x128xf32> to vector<64x128xf32>
    %301 = arith.addf %299, %300 : vector<64x128xf32>
    %302 = vector.shape_cast %301 : vector<64x128xf32> to vector<8x8x128xf32>
    %cst_106 = arith.constant dense<0.000000e+00> : vector<8x128xf32>
    %303 = vector.multi_reduction <add>, %302, %cst_106 [0] : vector<8x8x128xf32> to vector<8x128xf32>
    %c0_107 = arith.constant 0 : index
    %c256 = arith.constant 256 : index
    %304 = vector.load %arg1[%c0_107, %c256] : memref<1x6912xf32, #tpu.memory_space<vmem>>, vector<1x64xf32>
    %c0_108 = arith.constant 0 : index
    %c0_109 = arith.constant 0 : index
    %305 = vector.load %arg4[%c0_108, %c0_109] : memref<128x64xbf16, #tpu.memory_space<vmem>>, vector<128x64xbf16>
    %306 = arith.extf %305 : vector<128x64xbf16> to vector<128x64xf32>
    %cst_110 = arith.constant dense<0.000000e+00> : vector<8x64xf32>
    %307 = tpu.matmul %303, %306, %cst_110 {dimension_numbers = #tpu.dot_dimension_numbers<[1], [0], [0], [1], [0, 0, 1, 1], [], []>} : vector<8x128xf32>, vector<128x64xf32>, vector<8x64xf32> -> vector<8x64xf32>
    %308 = vector.broadcast %304 : vector<1x64xf32> to vector<8x64xf32>
    %309 = arith.addf %307, %308 : vector<8x64xf32>
    %cst_111 = arith.constant 0.000000e+00 : f32
    %310 = vector.broadcast %cst_111 : f32 to vector<8x64xf32>
    %311 = arith.maximumf %309, %310 : vector<8x64xf32>
    %c0_112 = arith.constant 0 : index
    %c384 = arith.constant 384 : index
    %312 = vector.load %arg1[%c0_112, %c384] : memref<1x6912xf32, #tpu.memory_space<vmem>>, vector<1x10xf32>
    %c0_113 = arith.constant 0 : index
    %c0_114 = arith.constant 0 : index
    %313 = vector.load %arg5[%c0_113, %c0_114] : memref<64x10xbf16, #tpu.memory_space<vmem>>, vector<64x10xbf16>
    %314 = arith.extf %313 : vector<64x10xbf16> to vector<64x10xf32>
    %cst_115 = arith.constant dense<0.000000e+00> : vector<8x10xf32>
    %315 = tpu.matmul %311, %314, %cst_115 {dimension_numbers = #tpu.dot_dimension_numbers<[1], [0], [0], [1], [0, 0, 1, 1], [], []>} : vector<8x64xf32>, vector<64x10xf32>, vector<8x10xf32> -> vector<8x10xf32>
    %316 = vector.broadcast %312 : vector<1x10xf32> to vector<8x10xf32>
    %317 = arith.addf %315, %316 : vector<8x10xf32>
    %cst_116 = arith.constant dense<0xFF800000> : vector<8xf32>
    %318 = vector.multi_reduction <maximumf>, %317, %cst_116 [1] : vector<8x10xf32> to vector<8xf32>
    %319 = vector.shape_cast %318 : vector<8xf32> to vector<8x1xf32>
    %320 = vector.broadcast %319 : vector<8x1xf32> to vector<8x10xf32>
    %321 = arith.subf %317, %320 : vector<8x10xf32>
    %322 = math.exp %321 : vector<8x10xf32>
    %cst_117 = arith.constant dense<0.000000e+00> : vector<8xf32>
    %323 = vector.multi_reduction <add>, %322, %cst_117 [1] : vector<8x10xf32> to vector<8xf32>
    %324 = vector.shape_cast %323 : vector<8xf32> to vector<8x1xf32>
    %325 = math.log %324 : vector<8x1xf32>
    %326 = arith.addf %325, %319 : vector<8x1xf32>
    %327 = vector.broadcast %326 : vector<8x1xf32> to vector<8x10xf32>
    %328 = arith.subf %317, %327 : vector<8x10xf32>
    %c0_118 = arith.constant 0 : index
    %c0_119 = arith.constant 0 : index
    %329 = vector.load %arg14[%c0_118, %c0_119] : memref<8x10xf32, #tpu.memory_space<vmem>>, vector<8x10xf32>
    tpu.vector_store %arg14[%c0_118, %c0_119], %328 {strides = array<i32>} : memref<8x10xf32, #tpu.memory_space<vmem>>, vector<8x10xf32>,
    return
  }
}

</mosaic_0001>

<bundles_post_ra>
// kernel: tpu_custom_call.1
= control target key start
LH: loop header
LB: loop body
LE: loop exit
PB: predicated region body
PF: predicated region fallthrough
CT: control target
= control target key end

     0   :  { %19 = vsyncpa [#allocation3], 0  ;;  %s28366_s0 = inlined_call_operand.vmem [shape: f32[8,8,16], index: 0, kind: input, shape index: {}]   ;;  %s28367_s1 = inlined_call_operand.hbm [shape: f32[1,6912], index: 1, kind: input, shape index: {}]   ;;  %s28368_s2 = inlined_call_operand.vmem [shape: bf16[16,128], index: 2, kind: input, shape index: {}]   ;;  %s28369_s3 = inlined_call_operand.vmem [shape: bf16[128,128], index: 3, kind: input, shape index: {}]   ;;  %s28370_s4 = inlined_call_operand.vmem [shape: bf16[128,64], index: 4, kind: input, shape index: {}]   ;;  %s28371_s5 = inlined_call_operand.vmem [shape: bf16[64,10], index: 5, kind: input, shape index: {}]   ;;  %s28372_s6 = inlined_call_operand.hbm [shape: bf16[128,384], index: 6, kind: input, shape index: {}]   ;;  %s28373_s7 = inlined_call_operand.hbm [shape: bf16[128,128], index: 7, kind: input, shape index: {}]   ;;  %s28374_s8 = inlined_call_operand.hbm [shape: bf16[128,2048], index: 8, kind: input, shape index: {}]   ;;  %s28375_s9 = inlined_call_operand.hbm [shape: bf16[2048,128], index: 9, kind: input, shape index: {}]   ;;  %s28376_s10 = inlined_call_operand.hbm [shape: bf16[128,384], index: 10, kind: input, shape index: {}]   ;;  %s28377_s11 = inlined_call_operand.hbm [shape: bf16[128,128], index: 11, kind: input, shape index: {}]   ;;  %s28378_s12 = inlined_call_operand.hbm [shape: bf16[128,2048], index: 12, kind: input, shape index: {}]   ;;  %s28379_s13 = inlined_call_operand.hbm [shape: bf16[2048,128], index: 13, kind: input, shape index: {}]   ;;  %s28380_s14 = inlined_call_operand.hbm [shape: f32[8,10], index: 14, kind: output, shape index: {}]  }
   0x1   :  { %20 = vsyncpa [#allocation6], 0 }
   0x2   :  { %21 = vsyncpa [#allocation9], 0 }
   0x3   :  { %22 = vsyncpa [#allocation12], 0 }
   0x4   :  { %23 = vsyncpa [#allocation15], 0 }
   0x5   :  { %24 = vsyncpa [#allocation4], 0  ;;  %s24901_s29 = smov [#allocation5]   ;;  %s24669_s17 = scalar_lea.hbm %s28372_s6, 3072 }
   0x6   :  { %s50_s30 = sshll.u32 %s24901_s29, 4  ;;  %p24670_p0 = scmp.ne.s32.totalorder %s28372_s6, %s24669_s17  ;;  %s51_s30 = int_to_ptr.vmem [resolvable:$true] %s50_s30 }
   0x7   :  { %p24673_p1 = scmp.lt.u32.totalorder %s24669_s17, %s28372_s6 }
   0x9   :  { %p24675_p2 = pnand %p24673_p1, %p24670_p0 }
   0xb   :  { %24678 = shalt.err (!%p24675_p2)
}
   0xc   :  { %s24679_s22 = scalar_lea.vmem %s51_s30, 3072  ;;  %p24684_p4 = scmp.lt.s32.totalorder %s51_s30, %s51_s30 }
   0xd   :  { %p24680_p3 = scmp.ne.s32.totalorder %s51_s30, %s24679_s22  ;;  %p24685_p5 = scmp.lt.s32.totalorder %s24679_s22, %s24679_s22 }
   0xf   :  { %p24686_p6 = por %p24685_p5, %p24684_p4 }
  0x11   :  { %p24687_p7 = pnand %p24686_p6, %p24680_p3 }
  0x13   :  { %24690 = shalt.err (!%p24687_p7)
}
  0x14   :  { %s24902_s23 = smov 192   ;;  %s24903_s24 = smov 12  }
  0x15   :  { %56 = dma.hbm_to_vmem [thread:$0]  %s28372_s6, 3072, %s51_s30, [#allocation6], %s24902_s23, %s24902_s23, %s24903_s24  }
  0x16   :  { %s24904_s27 = smov [#allocation8]   ;;  %s24905_s29 = smov [#allocation11]  }
  0x17   :  { %s74_s28 = sshll.u32 %s24904_s27, 4  ;;  %s98_s15 = sshll.u32 %s24905_s29, 4  ;;  %s75_s28 = int_to_ptr.vmem [resolvable:$true] %s74_s28  ;;  %s99_s15 = int_to_ptr.vmem [resolvable:$true] %s98_s15 }
  0x18   :  { %s24691_s18 = scalar_lea.hbm %s28374_s8, 16384 }
  0x19   :  { %p24692_p8 = scmp.ne.s32.totalorder %s28374_s8, %s24691_s18  ;;  %p24695_p9 = scmp.lt.u32.totalorder %s24691_s18, %s28374_s8 }
  0x1b   :  { %p24697_p10 = pnand %p24695_p9, %p24692_p8 }
  0x1d   :  { %24700 = shalt.err (!%p24697_p10)
}
  0x1e   :  { %s24701_s6 = scalar_lea.vmem %s75_s28, 16384  ;;  %p24706_p12 = scmp.lt.s32.totalorder %s75_s28, %s75_s28 }
  0x1f   :  { %p24702_p11 = scmp.ne.s32.totalorder %s75_s28, %s24701_s6  ;;  %p24707_p13 = scmp.lt.s32.totalorder %s24701_s6, %s24701_s6 }
  0x21   :  { %p24708_p0 = por %p24707_p13, %p24706_p12 }
  0x23   :  { %p24709_p1 = pnand %p24708_p0, %p24702_p11 }
  0x25   :  { %24712 = shalt.err (!%p24709_p1)
}
  0x26   :  { %s24906_s30 = smov 1024   ;;  %s24907_s25 = smov 64  }
  0x27   :  { %80 = dma.hbm_to_vmem [thread:$0]  %s28374_s8, 16384, %s75_s28, [#allocation9], %s24906_s30, %s24906_s30, %s24907_s25  }
  0x28   :  { %s24713_s17 = scalar_lea.hbm %s28376_s10, 3072 }
  0x29   :  { %p24714_p2 = scmp.ne.s32.totalorder %s28376_s10, %s24713_s17  ;;  %p24717_p3 = scmp.lt.u32.totalorder %s24713_s17, %s28376_s10 }
  0x2b   :  { %p24719_p4 = pnand %p24717_p3, %p24714_p2 }
  0x2d   :  { %24722 = shalt.err (!%p24719_p4)
}
  0x2e   :  { %s24723_s22 = scalar_lea.vmem %s99_s15, 3072  ;;  %p24728_p6 = scmp.lt.s32.totalorder %s99_s15, %s99_s15 }
  0x2f   :  { %p24724_p5 = scmp.ne.s32.totalorder %s99_s15, %s24723_s22  ;;  %p24729_p7 = scmp.lt.s32.totalorder %s24723_s22, %s24723_s22 }
  0x31   :  { %p24730_p8 = por %p24729_p7, %p24728_p6 }
  0x33   :  { %p24731_p9 = pnand %p24730_p8, %p24724_p5 }
  0x35   :  { %24734 = shalt.err (!%p24731_p9)
}
  0x36   :  { %104 = dma.hbm_to_vmem [thread:$0]  %s28376_s10, 3072, %s99_s15, [#allocation12], %s24902_s23, %s24902_s23, %s24903_s24  }
  0x37   :  { %s24908_s6 = smov [#allocation14]   ;;  %s24909_s27 = smov [#allocation2]  }
  0x38   :  { %s122_s26 = sshll.u32 %s24908_s6, 4  ;;  %s33_s29 = sshll.u32 %s24909_s27, 4  ;;  %s123_s26 = int_to_ptr.vmem [resolvable:$true] %s122_s26  ;;  %s34_s29 = int_to_ptr.vmem [resolvable:$true] %s33_s29 }
  0x39   :  { %s24735_s18 = scalar_lea.hbm %s28378_s12, 16384 }
  0x3a   :  { %p24736_p10 = scmp.ne.s32.totalorder %s28378_s12, %s24735_s18  ;;  %p24739_p11 = scmp.lt.u32.totalorder %s24735_s18, %s28378_s12 }
  0x3c   :  { %p24741_p12 = pnand %p24739_p11, %p24736_p10 }
  0x3e   :  { %24744 = shalt.err (!%p24741_p12)
}
  0x3f   :  { %s24745_s10 = scalar_lea.vmem %s123_s26, 16384  ;;  %p24750_p0 = scmp.lt.s32.totalorder %s123_s26, %s123_s26 }
  0x40   :  { %p24746_p13 = scmp.ne.s32.totalorder %s123_s26, %s24745_s10  ;;  %p24751_p1 = scmp.lt.s32.totalorder %s24745_s10, %s24745_s10 }
  0x42   :  { %p24752_p2 = por %p24751_p1, %p24750_p0 }
  0x44   :  { %p24753_p3 = pnand %p24752_p2, %p24746_p13 }
  0x46   :  { %24756 = shalt.err (!%p24753_p3)
}
  0x47   :  { %128 = dma.hbm_to_vmem [thread:$0]  %s28378_s12, 16384, %s123_s26, [#allocation15], %s24906_s30, %s24906_s30, %s24907_s25  }
  0x48   :  { %s24757_s28 = scalar_lea.hbm %s28367_s1, 864 }
  0x49   :  { %p24758_p4 = scmp.ne.s32.totalorder %s28367_s1, %s24757_s28  ;;  %p24761_p5 = scmp.lt.u32.totalorder %s24757_s28, %s28367_s1 }
  0x4b   :  { %p24763_p6 = pnand %p24761_p5, %p24758_p4 }
  0x4d   :  { %24766 = shalt.err (!%p24763_p6)
}
  0x4e   :  { %s24767_s18 = scalar_lea.vmem %s34_s29, 864  ;;  %p24772_p8 = scmp.lt.s32.totalorder %s34_s29, %s34_s29 }
  0x4f   :  { %p24768_p7 = scmp.ne.s32.totalorder %s34_s29, %s24767_s18  ;;  %p24773_p9 = scmp.lt.s32.totalorder %s24767_s18, %s24767_s18 }
  0x51   :  { %p24774_p10 = por %p24773_p9, %p24772_p8 }
  0x53   :  { %p24775_p11 = pnand %p24774_p10, %p24768_p7 }
  0x55   :  { %24778 = shalt.err (!%p24775_p11)
}
  0x56   :  { %36 = dma.hbm_to_vmem [thread:$0]  %s28367_s1, 864, %s34_s29, [#allocation3]  }
  0x57   :  { %s24910_s26 = smov [#allocation7]   ;;  %s24779_s22 = scalar_lea.hbm %s28373_s7, 1024 }
  0x58   :  { %s62_s19 = sshll.u32 %s24910_s26, 4  ;;  %p24780_p12 = scmp.ne.s32.totalorder %s28373_s7, %s24779_s22  ;;  %s63_s19 = int_to_ptr.vmem [resolvable:$true] %s62_s19 }
  0x59   :  { %p24783_p13 = scmp.lt.u32.totalorder %s24779_s22, %s28373_s7 }
  0x5b   :  { %p24785_p0 = pnand %p24783_p13, %p24780_p12 }
  0x5d   :  { %24788 = shalt.err (!%p24785_p0)
}
  0x5e   :  { %s24789_s8 = scalar_lea.vmem %s63_s19, 1024  ;;  %p24794_p2 = scmp.lt.s32.totalorder %s63_s19, %s63_s19 }
  0x5f   :  { %p24790_p1 = scmp.ne.s32.totalorder %s63_s19, %s24789_s8  ;;  %p24795_p3 = scmp.lt.s32.totalorder %s24789_s8, %s24789_s8 }
  0x61   :  { %p24796_p4 = por %p24795_p3, %p24794_p2 }
  0x63   :  { %p24797_p5 = pnand %p24796_p4, %p24790_p1 }
  0x65   :  { %24800 = shalt.err (!%p24797_p5)
}
  0x66   :  { %s24911_s1 = smov 4   ;;  %s24912_s6 = smov [#allocation10]  }
  0x67   :  { %68 = dma.hbm_to_vmem [thread:$0]  %s28373_s7, 1024, %s63_s19, [#allocation6], %s24907_s25, %s24907_s25, %s24911_s1  }
  0x68   :  { %s86_s27 = sshll.u32 %s24912_s6, 4  ;;  %s24913_s16 = smov [#allocation13]   ;;  %s87_s27 = int_to_ptr.vmem [resolvable:$true] %s86_s27 }
  0x69   :  { %s110_s17 = sshll.u32 %s24913_s16, 4  ;;  %s24801_s30 = scalar_lea.hbm %s28375_s9, 16384  ;;  %s111_s17 = int_to_ptr.vmem [resolvable:$true] %s110_s17 }
  0x6a   :  { %p24802_p6 = scmp.ne.s32.totalorder %s28375_s9, %s24801_s30  ;;  %p24805_p7 = scmp.lt.u32.totalorder %s24801_s30, %s28375_s9 }
  0x6c   :  { %p24807_p8 = pnand %p24805_p7, %p24802_p6 }
  0x6e   :  { %24810 = shalt.err (!%p24807_p8)
}
  0x6f   :  { %s24811_s7 = scalar_lea.vmem %s87_s27, 16384  ;;  %p24816_p10 = scmp.lt.s32.totalorder %s87_s27, %s87_s27 }
  0x70   :  { %p24812_p9 = scmp.ne.s32.totalorder %s87_s27, %s24811_s7  ;;  %p24817_p11 = scmp.lt.s32.totalorder %s24811_s7, %s24811_s7 }
  0x72   :  { %p24818_p12 = por %p24817_p11, %p24816_p10 }
  0x74   :  { %p24819_p13 = pnand %p24818_p12, %p24812_p9 }
  0x76   :  { %24822 = shalt.err (!%p24819_p13)
}
  0x77   :  { %92 = dma.hbm_to_vmem [thread:$0]  %s28375_s9, 16384, %s87_s27, [#allocation9], %s24907_s25, %s24907_s25, %s24911_s1  }
  0x78   :  { %s24823_s15 = scalar_lea.hbm %s28377_s11, 1024 }
  0x79   :  { %p24824_p0 = scmp.ne.s32.totalorder %s28377_s11, %s24823_s15  ;;  %p24827_p1 = scmp.lt.u32.totalorder %s24823_s15, %s28377_s11 }
  0x7b   :  { %p24829_p2 = pnand %p24827_p1, %p24824_p0 }
  0x7d   :  { %24832 = shalt.err (!%p24829_p2)
}
  0x7e   :  { %s24833_s16 = scalar_lea.vmem %s111_s17, 1024  ;;  %p24838_p4 = scmp.lt.s32.totalorder %s111_s17, %s111_s17 }
  0x7f   :  { %p24834_p3 = scmp.ne.s32.totalorder %s111_s17, %s24833_s16  ;;  %p24839_p5 = scmp.lt.s32.totalorder %s24833_s16, %s24833_s16 }
  0x81   :  { %p24840_p6 = por %p24839_p5, %p24838_p4 }
  0x83   :  { %p24841_p7 = pnand %p24840_p6, %p24834_p3 }
  0x85   :  { %24844 = shalt.err (!%p24841_p7)
}
  0x86   :  { %116 = dma.hbm_to_vmem [thread:$0]  %s28377_s11, 1024, %s111_s17, [#allocation12], %s24907_s25, %s24907_s25, %s24911_s1  }
  0x87   :  { %s24914_s18 = smov [#allocation16]   ;;  %s24845_s20 = scalar_lea.hbm %s28379_s13, 16384 }
  0x88   :  { %s134_s12 = sshll.u32 %s24914_s18, 4  ;;  %p24846_p8 = scmp.ne.s32.totalorder %s28379_s13, %s24845_s20  ;;  %s135_s12 = int_to_ptr.vmem [resolvable:$true] %s134_s12 }
  0x89   :  { %p24849_p9 = scmp.lt.u32.totalorder %s24845_s20, %s28379_s13 }
  0x8b   :  { %p24851_p10 = pnand %p24849_p9, %p24846_p8 }
  0x8d   :  { %24854 = shalt.err (!%p24851_p10)
}
  0x8e   :  { %s24855_s10 = scalar_lea.vmem %s135_s12, 16384  ;;  %p24860_p12 = scmp.lt.s32.totalorder %s135_s12, %s135_s12 }
  0x8f   :  { %p24856_p11 = scmp.ne.s32.totalorder %s135_s12, %s24855_s10  ;;  %p24861_p13 = scmp.lt.s32.totalorder %s24855_s10, %s24855_s10 }
  0x91   :  { %p24862_p0 = por %p24861_p13, %p24860_p12 }
  0x93   :  { %p24863_p1 = pnand %p24862_p0, %p24856_p11 }
  0x95   :  { %24866 = shalt.err (!%p24863_p1)
}
  0x96   :  { %140 = dma.hbm_to_vmem [thread:$0]  %s28379_s13, 16384, %s135_s12, [#allocation15], %s24907_s25, %s24907_s25, %s24911_s1  }
  0x97   :  { %24889 = dma.done.wait [#allocation3], 864  }
  0x98   :  { %24890 = vsyncadd [#allocation3], 4294966432 }
  0x99   :  { %24891 = dma.done.wait [#allocation6], 4096  }
  0x9a   :  { %24892 = vsyncadd [#allocation6], 4294963200 }
  0x9b   :  { %24893 = dma.done.wait [#allocation9], 32768  }
  0x9c   :  { %24894 = vsyncadd [#allocation9], 4294934528 }
  0x9d   :  { %24895 = dma.done.wait [#allocation12], 4096  }
  0x9e   :  { %24896 = vsyncadd [#allocation12], 4294963200 }
  0x9f   :  { %24897 = dma.done.wait [#allocation15], 32768  }
  0xa0   :  { %24898 = vsyncadd [#allocation15], 4294934528  ;;  %vm187_vm0 = vcmask 130048   ;;  %v18823_v0 = vld [vmem:[%s28368_s2] sm:$0xff]   ;;  %v169_v2 = vld [vmem:[%s28366_s0 + $0x8] sm:$0xff]  ;;  %vm24916_vm1 = vmmov 0  }
  0xa1   :  { %v168_v1 = vld [vmem:[%s28366_s0] sm:$0xff]  ;;  %22518 = vmatprep.subr.bf16.mxu0 %v18823_v0  ;;  %v170_v3 = vld [vmem:[%s28366_s0 + $0x10] sm:$0xff]  ;;  %v19994_v5 = vld [vmem:[%s28369_s3 + $0x8] sm:$0xff]   ;;  %vm792_vm2 = vcmask 261120   ;;  %vm1401_vm3 = vcmask 64512   ;;  %s24918_s6 = smov 32  }
  0xa2   :  { %21591 = vmatprep.mubr.msk.f32.mxu0 %vm187_vm0, %v168_v1  ;;  %22520 = vmatpush3.bf16.msra.mxu0 %v18823_v0  ;;  %v18827_v4 = vld [vmem:[%s28369_s3] sm:$0xff]   ;;  %v171_v6 = vld [vmem:[%s28366_s0 + $0x18] sm:$0xff]  ;;  %v19995_v8 = vld [vmem:[%s28369_s3 + $0x10] sm:$0xff]   ;;  %v28381_v1 = vmov 0.0   ;;  %vm6146_vm4 = vcmask 523264   ;;  %vm6155_vm5 = vcmask 785408  }
  0xa3   :  { %22522 = vmatprep.subr.bf16.mxu1 %v18827_v4  ;;  %v172_v7 = vld [vmem:[%s28366_s0 + $0x20] sm:$0xff]  ;;  %v173_v9 = vld [vmem:[%s28366_s0 + $0x28] sm:$0xff]  ;;  %v174_v10 = vld [vmem:[%s28366_s0 + $0x30] sm:$0xff]  ;;  %vm18571_vm6 = vcmask 80896  }
  0xa4   :  { %22524 = vmatpush3.bf16.msra.mxu1 %v18827_v4  ;;  %v19996_v11 = vld [vmem:[%s28369_s3 + $0x18] sm:$0xff]   ;;  %v19997_v13 = vld [vmem:[%s28369_s3 + $0x20] sm:$0xff]   ;;  %v19998_v14 = vld [vmem:[%s28369_s3 + $0x28] sm:$0xff]  }
  0xa5   :  { %21592 = vmatmul.mubr.msk.f32.vlgmr.msra.gmra.mrb[0].mxu0 %vm187_vm0, %v169_v2  ;;  %22526 = vmatprep.subr.bf16.mxu1 %v19994_v5  ;;  %v175_v12 = vld [vmem:[%s28366_s0 + $0x38] sm:$0xff]  ;;  %v19999_v15 = vld [vmem:[%s28369_s3 + $0x30] sm:$0xff]   ;;  %v18605_v32 = vld [vmem:[#allocation2] ss:$0 sm:$0xff] }
  0xa6   :  { %21594 = vmatprep.mubr.msk.f32.mxu0 %vm187_vm0, %v170_v3  ;;  %v20000_v16 = vld [vmem:[%s28369_s3 + $0x38] sm:$0xff]   ;;  %v24290_v23 = vld [vmem:[#allocation5 + $0x30] ss:$12 sps:$4 sm:$0xff]   ;;  %v24292_v24 = vld [vmem:[#allocation5 + $0x4c] ss:$12 sps:$4 sm:$0xff]   ;;  %s24917_s3 = smov 96  }
  0xa7   :  { %v24281_v17 = vld [vmem:[#allocation5 + $0x4] ss:$12 sps:$4 sm:$0xff]   ;;  %v24283_v18 = vld [vmem:[#allocation5] ss:$12 sps:$4 sm:$0xff]   ;;  %v24284_v19 = vld [vmem:[#allocation5 + $0x1c] ss:$12 sps:$4 sm:$0xff]  }
  0xa8   :  { %22528 = vmatpush3.bf16.msra.mxu1 %v19994_v5  ;;  %v25187_v20 = vld [vmem:[#allocation5 + $0x8] ss:$12 sps:$4 sm:$0xff]   ;;  %22554 = vmatprep.subr.bf16.mxu0 %v24281_v17  ;;  %v24286_v21 = vld [vmem:[#allocation5 + $0x18] ss:$12 sps:$4 sm:$0xff]   ;;  %v24298_v27 = vld [vmem:[#allocation5 + $0x60] ss:$12 sps:$4 sm:$0xff]  }
  0xa9   :  { %21595 = vmatmul.mubr.msk.f32.gmra.mrb[2].mxu0 %vm187_vm0, %v171_v6  ;;  %22530 = vmatprep.subr.bf16.mxu1 %v19995_v8  ;;  %v24288_v22 = vld [vmem:[#allocation5 + $0x34] ss:$12 sps:$4 sm:$0xff]   ;;  %v24296_v26 = vld [vmem:[#allocation5 + $0x64] ss:$12 sps:$4 sm:$0xff]   ;;  %v24300_v28 = vld [vmem:[#allocation5 + $0x7c] ss:$12 sps:$4 sm:$0xff]  }
  0xaa   :  { %21597 = vmatprep.mubr.msk.f32.mxu0 %vm187_vm0, %v172_v7  ;;  %22556 = vmatpush1.bf16.msra.mxu0 %v24283_v18  ;;  %v24294_v25 = vld [vmem:[#allocation5 + $0x48] ss:$12 sps:$4 sm:$0xff]   ;;  %v24302_v29 = vld [vmem:[#allocation5 + $0x78] ss:$12 sps:$4 sm:$0xff]   ;;  %v24306_v31 = vld [vmem:[#allocation5 + $0x90] ss:$12 sps:$4 sm:$0xff]  }
  0xab   :  { %22558 = vmatprep.subr.bf16.mxu0 %v24284_v19  ;;  %v24304_v30 = vld [vmem:[#allocation5 + $0x94] ss:$12 sps:$4 sm:$0xff]   ;;  %v25194_v49 = vld [vmem:[#allocation5 + $0x38] ss:$12 sps:$4 sm:$0xff]   ;;  %v25198_v56 = vld [vmem:[#allocation5 + $0x50] ss:$12 sps:$4 sm:$0xff]  }
  0xac   :  { %22532 = vmatpush3.bf16.msra.mxu1 %v19995_v8  ;;  %v25190_v42 = vld [vmem:[#allocation5 + $0x20] ss:$12 sps:$4 sm:$0xff]   ;;  %v25202_v60 = vld [vmem:[#allocation5 + $0x68] ss:$12 sps:$4 sm:$0xff]   ;;  %v25211_v0 = vld [vmem:[#allocation5 + $0x98] ss:$12 sps:$4 sm:$0xff]  }
  0xad   :  { %21598 = vmatmul.mubr.msk.f32.gmra.mrb[4].mxu0 %vm187_vm0, %v173_v9  ;;  %22534 = vmatprep.subr.bf16.mxu1 %v19996_v11  ;;  %v25206_v61 = vld [vmem:[#allocation5 + $0x80] ss:$12 sps:$4 sm:$0xff]   ;;  %v24310_v63 = vld [vmem:[#allocation5 + $0xa8] ss:$12 sps:$4 sm:$0xff]   ;;  %v25217_v2 = vld [vmem:[#allocation5 + $0xb0] ss:$12 sps:$4 sm:$0xff]  }
  0xae   :  { %21600 = vmatprep.mubr.msk.f32.mxu0 %vm187_vm0, %v174_v10  ;;  %22560 = vmatpush1.bf16.msra.mxu0 %v24286_v21  ;;  %v24308_v62 = vld [vmem:[#allocation5 + $0xac] ss:$12 sps:$4 sm:$0xff]   ;;  %v18614_v3 = vld [vmem:[#allocation2 + $0x1] ss:$0 sm:$0xff] }
  0xaf   :  { %22562 = vmatprep.subr.bf16.mxu0 %v24288_v22 }
  0xb0   :  { %22536 = vmatpush3.bf16.msra.mxu1 %v19996_v11 }
  0xb1   :  { %21601 = vmatmul.mubr.msk.f32.gmra.mrb[6].mxu0 %vm187_vm0, %v175_v12  ;;  %22538 = vmatprep.subr.bf16.mxu1 %v19997_v13 }
  0xb2   :  { %22564 = vmatpush1.bf16.msra.mxu0 %v24290_v23  ;;  %638 = vmatprep.mubr.f32.mxu0 %v28381_v1 }
  0xb3   :  { %22566 = vmatprep.subr.bf16.mxu0 %v24292_v24 }
  0xb4   :  { %22540 = vmatpush3.bf16.msra.mxu1 %v19997_v13 }
  0xb5   :  { %22542 = vmatprep.subr.bf16.mxu1 %v19998_v14 }
  0xb6   :  { %22568 = vmatpush1.bf16.msra.mxu0 %v24294_v25 }
  0xb7   :  { %22570 = vmatprep.subr.bf16.mxu0 %v24296_v26 }
  0xb8   :  { %22544 = vmatpush3.bf16.msra.mxu1 %v19998_v14 }
  0xb9   :  { %22546 = vmatprep.subr.bf16.mxu1 %v19999_v15 }
  0xba   :  { %22572 = vmatpush1.bf16.msra.mxu0 %v24298_v27 }
  0xbb   :  { %22574 = vmatprep.subr.bf16.mxu0 %v24300_v28  ;;  %v559_v28 = vlaneseq }
  0xbc   :  { %22548 = vmatpush3.bf16.msra.mxu1 %v19999_v15 }
  0xbd   :  { %22550 = vmatprep.subr.bf16.mxu1 %v20000_v16 }
  0xbe   :  { %22576 = vmatpush1.bf16.msra.mxu0 %v24302_v29  ;;  %v25281_v29 = vshrl.u32 %v559_v28, 7 }
  0xbf   :  { %22578 = vmatprep.subr.bf16.mxu0 %v24304_v30 }
  0xc0   :  { %22552 = vmatpush3.bf16.msra.mxu1 %v20000_v16  ;;  %28428 = vst [vmem:[#allocation32_spill] sm:$0xff] %v25281_v29  ;;  %v25284_v30 = vsub.s32 1, %v25281_v29 }
  0xc1   :  { %23805 = vmatprep.subr.bf16.mxu1 %v25187_v20 }
  0xc2   :  { %22580 = vmatpush1.bf16.msra.mxu0 %v24306_v31  ;;  %28429 = vst [vmem:[#allocation33_spill] sm:$0xff] %v25284_v30  ;;  %v477_v31 = vld [vmem:[#allocation2 + $0x4] sm:$0x7] }
  0xc3   :  { %22582 = vmatprep.subr.bf16.mxu0 %v24308_v62 }
  0xc6   :  { %22584 = vmatpush1.bf16.msra.mxu0 %v24310_v63 }
  0xc7   :  { %22586 = vmatprep.subr.bf16.mxu0 %v25187_v20 }
 0x178   :  { %v21593_v33 = vpop.f32.mrb[0].mxu0 }
 0x179   :  { %v284_v34 = vadd.f32 %v21593_v33, %v18605_v32  ;;  %v278_v35 = vpop.f32.mrb[1].mxu0  ;;  %v25290_v33 = vrot.slane %v477_v31, %v25284_v30 }
 0x17a   :  { %v279_v36 = vadd.f32 %v18605_v32, %v278_v35 }
 0x17b   :  { %v318_v41 = vmax.f32 %v284_v34, 0.0  ;;  %v25293_v34 = vsub.s32 2, %v25281_v29 }
 0x17c   :  { %v21596_v37 = vpop.f32.mrb[2].mxu0  ;;  %v317_v38 = vmax.f32 %v279_v36, 0.0 }
 0x17d   :  { %v294_v39 = vadd.f32 %v21596_v37, %v18605_v32  ;;  %v288_v40 = vpop.f32.mrb[3].mxu0  ;;  %28431 = vst [vmem:[#allocation35_spill] sm:$0xff] %v25293_v34 }
 0x17e   :  { %v289_v43 = vadd.f32 %v18605_v32, %v288_v40  ;;  %21635 = vmatprep.mubr.f32.mxu1 %v317_v38 }
 0x17f   :  { %21636 = vmatmul.mubr.f32.vlgmr.msra.gmra.mrb[0].mxu1 %v318_v41  ;;  %v320_v44 = vmax.f32 %v294_v39, 0.0  ;;  %v25302_v39 = vrot.slane %v477_v31, %v25293_v34 }
 0x180   :  { %v319_v45 = vmax.f32 %v289_v43, 0.0  ;;  %v21599_v46 = vpop.f32.mrb[4].mxu0  ;;  %23813 = vmatpush3.bf16.msra.mxu1 %v25187_v20 }
 0x181   :  { %v304_v47 = vadd.f32 %v21599_v46, %v18605_v32  ;;  %v298_v48 = vpop.f32.mrb[5].mxu0  ;;  %23806 = vmatprep.subr.bf16.mxu1 %v25190_v42 }
 0x182   :  { %21638 = vmatprep.mubr.f32.mxu1 %v319_v45  ;;  %v299_v50 = vadd.f32 %v18605_v32, %v298_v48 }
 0x183   :  { %21639 = vmatmul.mubr.f32.gmra.mrb[2].mxu1 %v320_v44  ;;  %v322_v51 = vmax.f32 %v304_v47, 0.0 }
 0x184   :  { %v321_v52 = vmax.f32 %v299_v50, 0.0  ;;  %v21602_v53 = vpop.f32.mrb[6].mxu0  ;;  %23814 = vmatpush3.bf16.msra.mxu1 %v25190_v42 }
 0x185   :  { %v314_v54 = vadd.f32 %v21602_v53, %v18605_v32  ;;  %v308_v55 = vpop.f32.mrb[7].mxu0  ;;  %23807 = vmatprep.subr.bf16.mxu1 %v25194_v49 }
 0x186   :  { %21641 = vmatprep.mubr.f32.mxu1 %v321_v52  ;;  %v309_v57 = vadd.f32 %v18605_v32, %v308_v55  ;;  %v25287_v32 = vsub.s32 0, %v25281_v29 }
 0x187   :  { %21642 = vmatmul.mubr.f32.gmra.mrb[4].mxu1 %v322_v51  ;;  %v324_v58 = vmax.f32 %v314_v54, 0.0 }
 0x188   :  { %v323_v59 = vmax.f32 %v309_v57, 0.0  ;;  %23815 = vmatpush3.bf16.msra.mxu1 %v25194_v49  ;;  %28430 = vst [vmem:[#allocation34_spill] sm:$0xff] %v25287_v32  ;;  %v25296_v36 = vrot.slane %v477_v31, %v25287_v32 }
 0x189   :  { %23808 = vmatprep.subr.bf16.mxu1 %v25198_v56 }
 0x18a   :  { %21644 = vmatprep.mubr.f32.mxu1 %v323_v59 }
 0x18b   :  { %21645 = vmatmul.mubr.f32.gmra.mrb[6].mxu1 %v324_v58 }
 0x18c   :  { %23816 = vmatpush3.bf16.msra.mxu1 %v25198_v56 }
 0x18d   :  { %23809 = vmatprep.subr.bf16.mxu1 %v25202_v60 }
 0x190   :  { %23817 = vmatpush3.bf16.msra.mxu1 %v25202_v60 }
 0x191   :  { %23810 = vmatprep.subr.bf16.mxu1 %v25206_v61 }
 0x194   :  { %23818 = vmatpush3.bf16.msra.mxu1 %v25206_v61 }
 0x195   :  { %23811 = vmatprep.subr.bf16.mxu1 %v25211_v0 }
 0x198   :  { %23819 = vmatpush3.bf16.msra.mxu1 %v25211_v0 }
 0x199   :  { %23812 = vmatprep.subr.bf16.mxu1 %v25217_v2 }
 0x19c   :  { %23820 = vmatpush3.bf16.msra.mxu1 %v25217_v2 }
 0x19d   :  { %21711 = vmatprep.subr.mxu1 %v28381_v1 }
 0x252   :  { %v21637_v4 = vpop.f32.mrb[0].mxu1 }
 0x253   :  { %v430_v5 = vpop.f32.mrb[1].mxu1  ;;  %v436_v7 = vadd.f32 %v21637_v4, %v18614_v3 }
 0x254   :  { %v431_v6 = vadd.f32 %v18614_v3, %v430_v5 }
 0x255   :  { %v25229_v14 = vmax.f32 %v436_v7, 0.0 }
 0x256   :  { %v25222_v8 = vmax.f32 %v431_v6, 0.0  ;;  %v21640_v9 = vpop.f32.mrb[2].mxu1 }
 0x257   :  { %v446_v10 = vadd.f32 %v21640_v9, %v18614_v3  ;;  %v440_v11 = vpop.f32.mrb[3].mxu1  ;;  %28422 = vst [vmem:[#allocation26_spill] sm:$0xff] %v25229_v14 }
 0x258   :  { %28420 = vst [vmem:[#allocation24_spill] sm:$0xff] %v25222_v8  ;;  %v441_v12 = vadd.f32 %v18614_v3, %v440_v11  ;;  %639 = vmatmul.mubr.f32.vlgmr.msra.gmra.mrb[8].mxu0 %v25222_v8 }
 0x259   :  { %v25225_v13 = vmax.f32 %v446_v10, 0.0  ;;  %22588 = vmatpush3.bf16.msra.mxu0 %v25187_v20  ;;  %644 = vmatprep.mubr.f32.mxu0 %v28381_v1 }
 0x25a   :  { %22590 = vmatprep.subr.bf16.mxu0 %v25190_v42  ;;  %v25232_v15 = vmax.f32 %v441_v12, 0.0  ;;  %v21643_v16 = vpop.f32.mrb[4].mxu1 }
 0x25b   :  { %28421 = vst [vmem:[#allocation25_spill] sm:$0xff] %v25225_v13  ;;  %v456_v17 = vadd.f32 %v21643_v16, %v18614_v3  ;;  %v450_v18 = vpop.f32.mrb[5].mxu1 }
 0x25c   :  { %28423 = vst [vmem:[#allocation27_spill] sm:$0xff] %v25232_v15  ;;  %645 = vmatmul.mubr.f32.gmra.mrb[10].mxu0 %v25229_v14  ;;  %21682 = vmatprep.mubr.f32.mxu1 %v25232_v15  ;;  %v451_v19 = vadd.f32 %v18614_v3, %v450_v18 }
 0x25d   :  { %22592 = vmatpush3.bf16.msra.mxu0 %v25190_v42  ;;  %21683 = vmatmul.mubr.f32.vlgmr.msra.gmra.mrb[8].mxu1 %v25225_v13  ;;  %v25242_v21 = vmax.f32 %v456_v17, 0.0 }
 0x25e   :  { %650 = vmatprep.mubr.f32.mxu0 %v28381_v1  ;;  %22594 = vmatprep.subr.bf16.mxu0 %v25194_v49  ;;  %v25240_v20 = vmax.f32 %v451_v19, 0.0  ;;  %v21646_v22 = vpop.f32.mrb[6].mxu1 }
 0x25f   :  { %28425 = vst [vmem:[#allocation29_spill] sm:$0xff] %v25242_v21  ;;  %v460_v23 = vpop.f32.mrb[7].mxu1  ;;  %v466_v24 = vadd.f32 %v21646_v22, %v18614_v3 }
 0x260   :  { %28424 = vst [vmem:[#allocation28_spill] sm:$0xff] %v25240_v20  ;;  %651 = vmatmul.mubr.f32.gmra.mrb[12].mxu0 %v25232_v15  ;;  %21685 = vmatprep.mubr.f32.mxu1 %v25240_v20  ;;  %v461_v25 = vadd.f32 %v18614_v3, %v460_v23 }
 0x261   :  { %22596 = vmatpush3.bf16.msra.mxu0 %v25194_v49  ;;  %656 = vmatprep.mubr.f32.mxu0 %v28381_v1  ;;  %v25253_v27 = vmax.f32 %v466_v24, 0.0 }
 0x262   :  { %22598 = vmatprep.subr.bf16.mxu0 %v25198_v56  ;;  %21686 = vmatmul.mubr.f32.gmra.mrb[10].mxu1 %v25242_v21  ;;  %v25250_v26 = vmax.f32 %v461_v25, 0.0 }
 0x263   :  { %28427 = vst [vmem:[#allocation31_spill] sm:$0xff] %v25253_v27 }
 0x264   :  { %28426 = vst [vmem:[#allocation30_spill] sm:$0xff] %v25250_v26  ;;  %657 = vmatmul.mubr.f32.gmra.mrb[14].mxu0 %v25225_v13  ;;  %21688 = vmatprep.mubr.f32.mxu1 %v25250_v26 }
 0x265   :  { %22600 = vmatpush3.bf16.msra.mxu0 %v25198_v56  ;;  %662 = vmatprep.mubr.f32.mxu0 %v28381_v1 }
 0x266   :  { %22602 = vmatprep.subr.bf16.mxu0 %v25202_v60  ;;  %21689 = vmatmul.mubr.f32.gmra.mrb[12].mxu1 %v25253_v27 }
 0x267   :  { %21713 = vmatprep.mubr.msk.f32.mxu1 %vm24916_vm1, %v28381_v1 }
 0x268   :  { %663 = vmatmul.mubr.f32.gmra.mrb[16].mxu0 %v25240_v20 }
 0x269   :  { %22604 = vmatpush3.bf16.msra.mxu0 %v25202_v60  ;;  %668 = vmatprep.mubr.f32.mxu0 %v28381_v1 }
 0x26a   :  { %22606 = vmatprep.subr.bf16.mxu0 %v25206_v61 }
 0x26c   :  { %669 = vmatmul.mubr.f32.gmra.mrb[18].mxu0 %v25242_v21 }
 0x26d   :  { %22608 = vmatpush3.bf16.msra.mxu0 %v25206_v61  ;;  %674 = vmatprep.mubr.f32.mxu0 %v28381_v1 }
 0x26e   :  { %22610 = vmatprep.subr.bf16.mxu0 %v25211_v0 }
 0x270   :  { %675 = vmatmul.mubr.f32.gmra.mrb[20].mxu0 %v25250_v26 }
 0x271   :  { %22612 = vmatpush3.bf16.msra.mxu0 %v25211_v0  ;;  %680 = vmatprep.mubr.f32.mxu0 %v28381_v1 }
 0x272   :  { %22614 = vmatprep.subr.bf16.mxu0 %v25217_v2 }
 0x274   :  { %681 = vmatmul.mubr.f32.gmra.mrb[22].mxu0 %v25253_v27 }
 0x275   :  { %22616 = vmatpush3.bf16.msra.mxu0 %v25217_v2  ;;  %21679 = vmatprep.mubr.f32.mxu0 %v25222_v8 }
 0x276   :  { %21691 = vmatprep.subr.mxu0 %v28381_v1 }
 0x278   :  { %21680 = vmatmul.mubr.f32.vlgmr.msra.gmra.mrb[24].mxu0 %v25229_v14 }
 0x279   :  { %21693 = vmatprep.mubr.msk.f32.mxu0 %vm24916_vm1, %v28381_v1 }
 0x32b   :  { %v640_v35 = vpop.f32.mrb[8].mxu0 }
 0x32c   :  { %v642_v37 = vpop.f32.mrb[9].mxu0  ;;  %v25307_v41 = vadd.f32 %v640_v35, %v25296_v36 }
 0x32d   :  { %v25299_v38 = vadd.f32 %v642_v37, %v25290_v33 }
 0x32f   :  { %v646_v40 = vpop.f32.mrb[10].mxu0  ;;  %21692 = vmatpush3.xpose.msk.msra.mxu0 %vm792_vm2, %v25299_v38 }
 0x330   :  { %v648_v42 = vpop.f32.mrb[11].mxu0  ;;  %v21684_v43 = vpop.f32.mrb[8].mxu1  ;;  %21696 = vmatprep.subr.mxu0 %v28381_v1  ;;  %v25326_v49 = vadd.f32 %v646_v40, %v25296_v36 }
 0x331   :  { %v25311_v44 = vadd.f32 %v648_v42, %v25290_v33  ;;  %v25314_v45 = vadd.f32 %v21684_v43, %v25302_v39  ;;  %v763_v46 = vpop.f32.mrb[9].mxu1 }
 0x332   :  { %v25317_v47 = vadd.f32 %v763_v46, %v25302_v39  ;;  %21694 = vmatmul.mubr.msk.f32.vlgmr.msra.gmra.mrb[26].mxu0 %vm792_vm2, %v25307_v41 }
 0x333   :  { %v652_v48 = vpop.f32.mrb[12].mxu0  ;;  %21697 = vmatpush3.xpose.msk.msra.mxu0 %vm792_vm2, %v25311_v44  ;;  %21698 = vmatprep.mubr.msk.f32.mxu0 %vm24916_vm1, %v28381_v1 }
 0x334   :  { %v654_v50 = vpop.f32.mrb[13].mxu0  ;;  %21701 = vmatprep.subr.mxu0 %v28381_v1  ;;  %v25345_v57 = vadd.f32 %v652_v48, %v25296_v36 }
 0x335   :  { %v25330_v51 = vadd.f32 %v654_v50, %v25290_v33  ;;  %v21687_v52 = vpop.f32.mrb[10].mxu1 }
 0x336   :  { %21699 = vmatmul.mubr.msk.f32.vlgmr.msra.gmra.mrb[28].mxu0 %vm792_vm2, %v25326_v49  ;;  %v25335_v53 = vadd.f32 %v21687_v52, %v25302_v39  ;;  %v773_v54 = vpop.f32.mrb[11].mxu1 }
 0x337   :  { %v658_v55 = vpop.f32.mrb[14].mxu0  ;;  %21702 = vmatpush3.xpose.msk.msra.mxu0 %vm792_vm2, %v25330_v51  ;;  %v25340_v56 = vadd.f32 %v773_v54, %v25302_v39  ;;  %21703 = vmatprep.mubr.msk.f32.mxu0 %vm24916_vm1, %v28381_v1 }
 0x338   :  { %v660_v58 = vpop.f32.mrb[15].mxu0  ;;  %21706 = vmatprep.subr.mxu0 %v28381_v1  ;;  %v25364_v2 = vadd.f32 %v658_v55, %v25296_v36 }
 0x339   :  { %v25349_v59 = vadd.f32 %v660_v58, %v25290_v33  ;;  %v21690_v60 = vpop.f32.mrb[12].mxu1 }
 0x33a   :  { %21704 = vmatmul.mubr.msk.f32.vlgmr.msra.gmra.mrb[30].mxu0 %vm792_vm2, %v25345_v57  ;;  %v25354_v61 = vadd.f32 %v21690_v60, %v25302_v39  ;;  %v783_v62 = vpop.f32.mrb[13].mxu1 }
 0x33b   :  { %v664_v63 = vpop.f32.mrb[16].mxu0  ;;  %21707 = vmatpush3.xpose.msk.msra.mxu0 %vm792_vm2, %v25349_v59  ;;  %21708 = vmatprep.mubr.msk.f32.mxu0 %vm24916_vm1, %v28381_v1  ;;  %v25361_v0 = vadd.f32 %v783_v62, %v25302_v39 }
 0x33c   :  { %v666_v3 = vpop.f32.mrb[17].mxu0  ;;  %21716 = vmatprep.subr.mxu0 %v28381_v1  ;;  %v25377_v6 = vadd.f32 %v664_v63, %v25296_v36 }
 0x33d   :  { %v25368_v4 = vadd.f32 %v666_v3, %v25290_v33 }
 0x33e   :  { %21709 = vmatmul.mubr.msk.f32.vlgmr.msra.gmra.mrb[32].mxu0 %vm792_vm2, %v25364_v2 }
 0x33f   :  { %v670_v5 = vpop.f32.mrb[18].mxu0  ;;  %21712 = vmatpush3.xpose.msk.msra.mxu1 %vm792_vm2, %v25368_v4  ;;  %21718 = vmatprep.mubr.msk.f32.mxu0 %vm24916_vm1, %v28381_v1 }
 0x340   :  { %v672_v7 = vpop.f32.mrb[19].mxu0  ;;  %21721 = vmatprep.subr.mxu1 %v28381_v1  ;;  %v25390_v11 = vadd.f32 %v670_v5, %v25296_v36 }
 0x341   :  { %v25381_v9 = vadd.f32 %v672_v7, %v25290_v33 }
 0x342   :  { %21714 = vmatmul.mubr.msk.f32.vlgmr.msra.gmra.mrb[14].mxu1 %vm792_vm2, %v25377_v6 }
 0x343   :  { %v676_v10 = vpop.f32.mrb[20].mxu0  ;;  %21717 = vmatpush3.xpose.msk.msra.mxu0 %vm792_vm2, %v25381_v9  ;;  %21723 = vmatprep.mubr.msk.f32.mxu1 %vm24916_vm1, %v28381_v1 }
 0x344   :  { %v678_v12 = vpop.f32.mrb[21].mxu0  ;;  %21726 = vmatprep.subr.mxu0 %v28381_v1  ;;  %v25397_v17 = vadd.f32 %v676_v10, %v25296_v36 }
 0x345   :  { %v25394_v16 = vadd.f32 %v678_v12, %v25290_v33 }
 0x346   :  { %21719 = vmatmul.mubr.msk.f32.vlgmr.msra.gmra.mrb[34].mxu0 %vm792_vm2, %v25390_v11 }
 0x347   :  { %v682_v18 = vpop.f32.mrb[22].mxu0  ;;  %21722 = vmatpush3.xpose.msk.msra.mxu1 %vm792_vm2, %v25394_v16  ;;  %21728 = vmatprep.mubr.msk.f32.mxu0 %vm24916_vm1, %v28381_v1 }
 0x348   :  { %v684_v19 = vpop.f32.mrb[23].mxu0  ;;  %21731 = vmatprep.subr.mxu1 %v28381_v1  ;;  %v25410_v23 = vadd.f32 %v682_v18, %v25296_v36 }
 0x349   :  { %v25407_v22 = vadd.f32 %v684_v19, %v25290_v33 }
 0x34a   :  { %21724 = vmatmul.mubr.msk.f32.vlgmr.msra.gmra.mrb[16].mxu1 %vm792_vm2, %v25397_v17 }
 0x34b   :  { %v21681_v24 = vpop.f32.mrb[24].mxu0  ;;  %21727 = vmatpush3.xpose.msk.msra.mxu0 %vm792_vm2, %v25407_v22  ;;  %21733 = vmatprep.mubr.msk.f32.mxu1 %vm24916_vm1, %v28381_v1 }
 0x34c   :  { %v25419_v25 = vadd.f32 %v21681_v24, %v25302_v39  ;;  %v753_v28 = vpop.f32.mrb[25].mxu0  ;;  %21736 = vmatprep.subr.mxu0 %v28381_v1 }
 0x34d   :  { %v25423_v31 = vadd.f32 %v753_v28, %v25302_v39 }
 0x34e   :  { %21729 = vmatmul.mubr.msk.f32.vlgmr.msra.gmra.mrb[36].mxu0 %vm792_vm2, %v25410_v23 }
 0x34f   :  { %21732 = vmatpush3.msra.mxu1 %v25423_v31  ;;  %21737 = vmatpush3.msra.mxu0 %v25419_v25 }
 0x350   :  { %21741 = vmatprep.subr.mxu1 %v28381_v1  ;;  %21738 = vmatprep.mubr.msk.f32.mxu0 %vm24916_vm1, %v28381_v1 }
 0x351   :  { %21746 = vmatprep.subr.mxu0 %v28381_v1 }
 0x405   :  { %v865_v33 = vpop.f32.mrb[26].mxu0 }
 0x406   :  { %v21695_v35 = vpop.f32.mrb[27].mxu0  ;;  %v1402_v36 = vsel %vm1401_vm3, %v865_v33, -inf }
 0x407   :  { %1403 = vmax.xlane.f32.xlu0 %v1402_v36 }
 0x409   :  { %v941_v37 = vpop.f32.mrb[28].mxu0 }
 0x40a   :  { %v21700_v39 = vpop.f32.mrb[29].mxu0  ;;  %v1405_v40 = vsel %vm1401_vm3, %v941_v37, -inf }
 0x40b   :  { %1406 = vmax.xlane.f32.xlu0 %v1405_v40 }
 0x40d   :  { %v1017_v42 = vpop.f32.mrb[30].mxu0 }
 0x40e   :  { %v21705_v43 = vpop.f32.mrb[31].mxu0  ;;  %v1408_v46 = vsel %vm1401_vm3, %v1017_v42, -inf }
 0x40f   :  { %1409 = vmax.xlane.f32.xlu1 %v1408_v46 }
 0x411   :  { %v1093_v48 = vpop.f32.mrb[32].mxu0 }
 0x412   :  { %v21710_v50 = vpop.f32.mrb[33].mxu0  ;;  %v1411_v52 = vsel %vm1401_vm3, %v1093_v48, -inf }
 0x413   :  { %1412 = vmax.xlane.f32.xlu1 %v1411_v52 }
 0x415   :  { %v1169_v54 = vpop.f32.mrb[14].mxu1 }
 0x416   :  { %v21715_v55 = vpop.f32.mrb[15].mxu1  ;;  %v1414_v58 = vsel %vm1401_vm3, %v1169_v54, -inf }
 0x417   :  { %1415 = vmax.xlane.f32.xlu0 %v1414_v58 }
 0x419   :  { %v1245_v60 = vpop.f32.mrb[34].mxu0 }
 0x41a   :  { %v21720_v62 = vpop.f32.mrb[35].mxu0  ;;  %v1417_v63 = vsel %vm1401_vm3, %v1245_v60, -inf }
 0x41b   :  { %1418 = vmax.xlane.f32.xlu1 %v1417_v63 }
 0x41d   :  { %v1321_v3 = vpop.f32.mrb[16].mxu1 }
 0x41e   :  { %v1420_v5 = vsel %vm1401_vm3, %v1321_v3, -inf  ;;  %v21725_v7 = vpop.f32.mrb[17].mxu1 }
 0x41f   :  { %1421 = vmax.xlane.f32.xlu0 %v1420_v5 }
 0x421   :  { %v25440_v10 = vpop.f32.mrb[36].mxu0 }
 0x422   :  { %v21730_v12 = vpop.f32.mrb[37].mxu0  ;;  %v1423_v18 = vsel %vm1401_vm3, %v25440_v10, -inf }
 0x42c   :  { %2154 = vrot.lane.b32.xlu1 %v25311_v44, %s24917_s3 }
 0x430   :  { %2074 = vrot.lane.b32.xlu1 %v25307_v41, %s24917_s3 }
 0x434   :  { %2152 = vrot.lane.b32.xlu1 %v25326_v49, %s24917_s3 }
 0x435   :  { %2076 = vrot.lane.b32.xlu0 %v25299_v38, %s24917_s3 }
 0x439   :  { %2232 = vrot.lane.b32.xlu0 %v25330_v51, %s24917_s3 }
 0x458   :  { %1424 = vmax.xlane.f32.xlu1 %v1423_v18 }
 0x469   :  { %2310 = vrot.lane.b32.xlu1 %v25349_v59, %s24917_s3 }
 0x494   :  { %v1404_v19 = vpop.xlane.xlu0 %1403 }
 0x495   :  { %v1426_v24 = vsub.f32 %v865_v33, %v1404_v19 }
 0x497   :  { %v1434_v28 = vmul.f32 1.442695, %v1426_v24 }
 0x498   :  { %v1407_v35 = vpop.xlane.xlu0 %1406 }
 0x499   :  { %24345 = vpow2.f32 %v1434_v28  ;;  %v1427_v36 = vsub.f32 %v941_v37, %v1407_v35 }
 0x49b   :  { %v1436_v39 = vmul.f32 1.442695, %v1427_v36 }
 0x49c   :  { %v1410_v40 = vpop.xlane.xlu1 %1409 }
 0x49d   :  { %24347 = vpow2.f32 %v1436_v39  ;;  %v1428_v43 = vsub.f32 %v1017_v42, %v1410_v40 }
 0x49f   :  { %v1438_v46 = vmul.f32 1.442695, %v1428_v43 }
 0x4a0   :  { %v1413_v50 = vpop.xlane.xlu1 %1412 }
 0x4a1   :  { %24349 = vpow2.f32 %v1438_v46  ;;  %v1429_v52 = vsub.f32 %v1093_v48, %v1413_v50 }
 0x4a3   :  { %v25456_v55 = vpop.eup %24345  ;;  %v1440_v58 = vmul.f32 1.442695, %v1429_v52 }
 0x4a4   :  { %v1416_v62 = vpop.xlane.xlu0 %1415  ;;  %v1450_v63 = vsel %vm1401_vm3, %v25456_v55, 0.0 }
 0x4a5   :  { %24351 = vpow2.f32 %v1440_v58  ;;  %v1430_v33 = vsub.f32 %v1169_v54, %v1416_v62  ;;  %1451 = vadd.xlane.f32.xlu0 %v1450_v63 }
 0x4a7   :  { %v25460_v5 = vpop.eup %24347  ;;  %v1442_v37 = vmul.f32 1.442695, %v1430_v33 }
 0x4a8   :  { %v1419_v7 = vpop.xlane.xlu1 %1418  ;;  %v1453_v42 = vsel %vm1401_vm3, %v25460_v5, 0.0 }
 0x4a9   :  { %24353 = vpow2.f32 %v1442_v37  ;;  %v1431_v12 = vsub.f32 %v1245_v60, %v1419_v7  ;;  %1454 = vadd.xlane.f32.xlu1 %v1453_v42 }
 0x4ab   :  { %v25464_v48 = vpop.eup %24349  ;;  %v1444_v18 = vmul.f32 1.442695, %v1431_v12 }
 0x4ac   :  { %v1422_v19 = vpop.xlane.xlu0 %1421  ;;  %v1456_v24 = vsel %vm1401_vm3, %v25464_v48, 0.0  ;;  %v25488_v50 = vpop.permute.xlu1 %2154 }
 0x4ad   :  { %24355 = vpow2.f32 %v1444_v18  ;;  %v1432_v54 = vsub.f32 %v1321_v3, %v1422_v19  ;;  %1457 = vadd.xlane.f32.xlu0 %v1456_v24 }
 0x4af   :  { %v25468_v28 = vpop.eup %24351  ;;  %v1446_v35 = vmul.f32 1.442695, %v1432_v54 }
 0x4b0   :  { %v1459_v36 = vsel %vm1401_vm3, %v25468_v28, 0.0  ;;  %v25492_v52 = vpop.permute.xlu1 %2074 }
 0x4b1   :  { %24357 = vpow2.f32 %v1446_v35  ;;  %1460 = vadd.xlane.f32.xlu1 %v1459_v36 }
 0x4b3   :  { %v25472_v60 = vpop.eup %24353 }
 0x4b4   :  { %v1462_v39 = vsel %vm1401_vm3, %v25472_v60, 0.0  ;;  %v25498_v58 = vpop.permute.xlu1 %2152 }
 0x4b5   :  { %1463 = vadd.xlane.f32.xlu0 %v1462_v39 }
 0x4b7   :  { %v25476_v40 = vpop.eup %24355 }
 0x4b8   :  { %v1465_v3 = vsel %vm1401_vm3, %v25476_v40, 0.0 }
 0x4b9   :  { %1466 = vadd.xlane.f32.xlu1 %v1465_v3 }
 0x4bb   :  { %v25480_v43 = vpop.eup %24357 }
 0x4bc   :  { %v1468_v46 = vsel %vm1401_vm3, %v25480_v43, 0.0 }
 0x4bd   :  { %1469 = vadd.xlane.f32.xlu0 %v1468_v46 }
 0x4ca   :  { %2308 = vrot.lane.b32.xlu1 %v25364_v2, %s24917_s3 }
 0x4d3   :  { %2230 = vrot.lane.b32.xlu0 %v25345_v57, %s24917_s3 }
 0x4d7   :  { %2388 = vrot.lane.b32.xlu0 %v25368_v4, %s24917_s3 }
 0x4db   :  { %2386 = vrot.lane.b32.xlu0 %v25377_v6, %s24917_s3 }
 0x4df   :  { %2544 = vrot.lane.b32.xlu0 %v25394_v16, %s24917_s3 }
 0x4e3   :  { %2542 = vrot.lane.b32.xlu0 %v25397_v17, %s24917_s3 }
 0x4e5   :  { %v1425_v62 = vpop.xlane.xlu1 %1424 }
 0x4e6   :  { %v1433_v63 = vsub.f32 %v25440_v10, %v1425_v62  ;;  %v2077_v10 = vpop.permute.xlu0 %2076 }
 0x4e8   :  { %v1448_v33 = vmul.f32 1.442695, %v1433_v63 }
 0x4e9   :  { %v25515_v12 = vpop.permute.xlu1 %2310 }
 0x4ea   :  { %24359 = vpow2.f32 %v1448_v33  ;;  %v2233_v42 = vpop.permute.xlu0 %2232 }
 0x4f4   :  { %v25503_v37 = vpop.eup %24359 }
 0x4f5   :  { %v1471_v7 = vsel %vm1401_vm3, %v25503_v37, 0.0 }
 0x4f6   :  { %1472 = vadd.xlane.f32.xlu1 %v1471_v7 }
 0x507   :  { %2466 = vrot.lane.b32.xlu1 %v25381_v9, %s24917_s3 }
 0x50b   :  { %2464 = vrot.lane.b32.xlu1 %v25390_v11, %s24917_s3 }
 0x50f   :  { %2622 = vrot.lane.b32.xlu1 %v25407_v22, %s24917_s3 }
 0x513   :  { %2620 = vrot.lane.b32.xlu1 %v25410_v23, %s24917_s3 }
 0x532   :  { %v1452_v18 = vpop.xlane.xlu0 %1451 }
 0x533   :  { %24361 = vrcp.f32 %v1452_v18 }
 0x536   :  { %v1455_v19 = vpop.xlane.xlu1 %1454 }
 0x537   :  { %24363 = vrcp.f32 %v1455_v19 }
 0x53a   :  { %v1458_v24 = vpop.xlane.xlu0 %1457 }
 0x53b   :  { %24365 = vrcp.f32 %v1458_v24 }
 0x53d   :  { %v24362_v54 = vpop.eup %24361 }
 0x53e   :  { %v1461_v35 = vpop.xlane.xlu1 %1460  ;;  %v1482_v36 = vmul.f32 %v24362_v54, %v25456_v55 }
 0x53f   :  { %24367 = vrcp.f32 %v1461_v35 }
 0x540   :  { %21734 = vmatmul.mubr.msk.f32.vlgmr.msra.gmra.mrb[18].mxu1 %vm1401_vm3, %v1482_v36 }
 0x541   :  { %v24364_v39 = vpop.eup %24363  ;;  %21742 = vmatpush3.msra.mxu1 %v25317_v47  ;;  %21743 = vmatprep.mubr.msk.f32.mxu1 %vm24916_vm1, %v28381_v1 }
 0x542   :  { %v1464_v3 = vpop.xlane.xlu0 %1463  ;;  %v1483_v46 = vmul.f32 %v24364_v39, %v25460_v5  ;;  %21751 = vmatprep.subr.mxu1 %v28381_v1 }
 0x543   :  { %24369 = vrcp.f32 %v1464_v3 }
 0x544   :  { %21739 = vmatmul.mubr.msk.f32.vlgmr.msra.gmra.mrb[38].mxu0 %vm1401_vm3, %v1483_v46 }
 0x545   :  { %v24366_v62 = vpop.eup %24365  ;;  %21747 = vmatpush3.msra.mxu0 %v25314_v45  ;;  %21748 = vmatprep.mubr.msk.f32.mxu0 %vm24916_vm1, %v28381_v1 }
 0x546   :  { %v1467_v55 = vpop.xlane.xlu1 %1466  ;;  %v1484_v63 = vmul.f32 %v24366_v62, %v25464_v48  ;;  %21756 = vmatprep.subr.mxu0 %v28381_v1 }
 0x547   :  { %24371 = vrcp.f32 %v1467_v55 }
 0x548   :  { %21744 = vmatmul.mubr.msk.f32.vlgmr.msra.gmra.mrb[20].mxu1 %vm1401_vm3, %v1484_v63 }
 0x549   :  { %v24368_v5 = vpop.eup %24367  ;;  %21752 = vmatpush3.msra.mxu1 %v25340_v56  ;;  %21753 = vmatprep.mubr.msk.f32.mxu1 %vm24916_vm1, %v28381_v1 }
 0x54a   :  { %v1470_v33 = vpop.xlane.xlu0 %1469  ;;  %v1485_v7 = vmul.f32 %v24368_v5, %v25468_v28  ;;  %21761 = vmatprep.subr.mxu1 %v28381_v1 }
 0x54b   :  { %24373 = vrcp.f32 %v1470_v33 }
 0x54c   :  { %21749 = vmatmul.mubr.msk.f32.vlgmr.msra.gmra.mrb[40].mxu0 %vm1401_vm3, %v1485_v7 }
 0x54d   :  { %v24370_v48 = vpop.eup %24369  ;;  %21757 = vmatpush3.msra.mxu0 %v25335_v53  ;;  %21758 = vmatprep.mubr.msk.f32.mxu0 %vm24916_vm1, %v28381_v1 }
 0x54e   :  { %v1486_v18 = vmul.f32 %v24370_v48, %v25472_v60  ;;  %21766 = vmatprep.subr.mxu0 %v28381_v1  ;;  %v2231_v19 = vpop.permute.xlu0 %2230 }
 0x550   :  { %21754 = vmatmul.mubr.msk.f32.vlgmr.msra.gmra.mrb[22].mxu1 %vm1401_vm3, %v1486_v18 }
 0x551   :  { %v24372_v24 = vpop.eup %24371  ;;  %21762 = vmatpush3.msra.mxu1 %v25361_v0  ;;  %21763 = vmatprep.mubr.msk.f32.mxu1 %vm24916_vm1, %v28381_v1 }
 0x552   :  { %v1487_v28 = vmul.f32 %v24372_v24, %v25476_v40  ;;  %21771 = vmatprep.subr.mxu1 %v28381_v1  ;;  %v2389_v35 = vpop.permute.xlu0 %2388 }
 0x554   :  { %21759 = vmatmul.mubr.msk.f32.vlgmr.msra.gmra.mrb[42].mxu0 %vm1401_vm3, %v1487_v28 }
 0x555   :  { %v24374_v54 = vpop.eup %24373  ;;  %21767 = vmatpush3.msra.mxu0 %v25354_v61  ;;  %21768 = vmatprep.mubr.msk.f32.mxu0 %vm24916_vm1, %v28381_v1 }
 0x556   :  { %v1488_v60 = vmul.f32 %v24374_v54, %v25480_v43  ;;  %21776 = vmatprep.subr.mxu0 %v28381_v1  ;;  %v2387_v40 = vpop.permute.xlu0 %2386 }
 0x558   :  { %21764 = vmatmul.mubr.msk.f32.vlgmr.msra.gmra.mrb[24].mxu1 %vm1401_vm3, %v1488_v60 }
 0x559   :  { %21772 = vmatpush3.xpose.msk.msra.mxu1 %vm792_vm2, %v2077_v10  ;;  %21773 = vmatprep.mubr.msk.f32.mxu1 %vm24916_vm1, %v28381_v1  ;;  %v2309_v10 = vpop.permute.xlu1 %2308 }
 0x55a   :  { %21781 = vmatprep.subr.mxu1 %v28381_v1  ;;  %v2545_v43 = vpop.permute.xlu0 %2544 }
 0x55c   :  { %21774 = vmatmul.mubr.msk.f32.vlgmr.msra.gmra.mrb[26].mxu1 %vm792_vm2, %v25492_v52 }
 0x55d   :  { %21782 = vmatpush3.xpose.msk.msra.mxu1 %vm792_vm2, %v2233_v42  ;;  %21783 = vmatprep.mubr.msk.f32.mxu1 %vm24916_vm1, %v28381_v1 }
 0x55e   :  { %21791 = vmatprep.subr.mxu1 %v28381_v1  ;;  %v2543_v52 = vpop.permute.xlu0 %2542 }
 0x560   :  { %21784 = vmatmul.mubr.msk.f32.vlgmr.msra.gmra.mrb[28].mxu1 %vm792_vm2, %v2231_v19 }
 0x561   :  { %21792 = vmatpush3.xpose.msk.msra.mxu1 %vm792_vm2, %v2389_v35  ;;  %21793 = vmatprep.mubr.msk.f32.mxu1 %vm24916_vm1, %v28381_v1 }
 0x562   :  { %21801 = vmatprep.subr.mxu1 %v28381_v1 }
 0x564   :  { %21794 = vmatmul.mubr.msk.f32.vlgmr.msra.gmra.mrb[30].mxu1 %vm792_vm2, %v2387_v40 }
 0x565   :  { %21802 = vmatpush3.xpose.msk.msra.mxu1 %vm792_vm2, %v2545_v43  ;;  %21803 = vmatprep.mubr.msk.f32.mxu1 %vm24916_vm1, %v28381_v1 }
 0x566   :  { %21811 = vmatprep.subr.mxu1 %v28381_v1 }
 0x568   :  { %21804 = vmatmul.mubr.msk.f32.vlgmr.msra.gmra.mrb[32].mxu1 %vm792_vm2, %v2543_v52 }
 0x569   :  { %21813 = vmatprep.mubr.msk.f32.mxu1 %vm24916_vm1, %v28381_v1 }
 0x583   :  { %v1473_v42 = vpop.xlane.xlu1 %1472 }
 0x584   :  { %24375 = vrcp.f32 %v1473_v42 }
 0x587   :  { %v2467_v39 = vpop.permute.xlu1 %2466 }
 0x58b   :  { %v2465_v46 = vpop.permute.xlu1 %2464 }
 0x58e   :  { %v24376_v36 = vpop.eup %24375 }
 0x58f   :  { %v1489_v3 = vmul.f32 %v24376_v36, %v25503_v37 }
 0x591   :  { %21769 = vmatmul.mubr.msk.f32.vlgmr.msra.gmra.mrb[44].mxu0 %vm1401_vm3, %v1489_v3 }
 0x592   :  { %21777 = vmatpush3.xpose.msk.msra.mxu0 %vm792_vm2, %v25488_v50  ;;  %21778 = vmatprep.mubr.msk.f32.mxu0 %vm24916_vm1, %v28381_v1  ;;  %v2623_v50 = vpop.permute.xlu1 %2622 }
 0x593   :  { %21786 = vmatprep.subr.mxu0 %v28381_v1 }
 0x595   :  { %21779 = vmatmul.mubr.msk.f32.vlgmr.msra.gmra.mrb[46].mxu0 %vm792_vm2, %v25498_v58 }
 0x596   :  { %21787 = vmatpush3.xpose.msk.msra.mxu0 %vm792_vm2, %v25515_v12  ;;  %21788 = vmatprep.mubr.msk.f32.mxu0 %vm24916_vm1, %v28381_v1  ;;  %v2621_v58 = vpop.permute.xlu1 %2620 }
 0x597   :  { %21796 = vmatprep.subr.mxu0 %v28381_v1 }
 0x599   :  { %21789 = vmatmul.mubr.msk.f32.vlgmr.msra.gmra.mrb[48].mxu0 %vm792_vm2, %v2309_v10 }
 0x59a   :  { %21797 = vmatpush3.xpose.msk.msra.mxu0 %vm792_vm2, %v2467_v39  ;;  %21798 = vmatprep.mubr.msk.f32.mxu0 %vm24916_vm1, %v28381_v1 }
 0x59b   :  { %21806 = vmatprep.subr.mxu0 %v28381_v1 }
 0x59d   :  { %21799 = vmatmul.mubr.msk.f32.vlgmr.msra.gmra.mrb[50].mxu0 %vm792_vm2, %v2465_v46 }
 0x59e   :  { %21807 = vmatpush3.xpose.msk.msra.mxu0 %vm792_vm2, %v2623_v50  ;;  %21808 = vmatprep.mubr.msk.f32.mxu0 %vm24916_vm1, %v28381_v1 }
 0x59f   :  { %21816 = vmatprep.subr.mxu0 %v28381_v1 }
 0x5a1   :  { %21809 = vmatmul.mubr.msk.f32.vlgmr.msra.gmra.mrb[52].mxu0 %vm792_vm2, %v2621_v58 }
 0x5a2   :  { %21818 = vmatprep.mubr.msk.f32.mxu0 %vm24916_vm1, %v28381_v1 }
 0x613   :  { %v25605_v37 = vpop.f32.mrb[18].mxu1 }
 0x614   :  { %v21735_v12 = vpop.f32.mrb[19].mxu1 }
 0x617   :  { %v25607_v62 = vpop.f32.mrb[38].mxu0 }
 0x618   :  { %v21740_v55 = vpop.f32.mrb[39].mxu0 }
 0x61b   :  { %v25609_v63 = vpop.f32.mrb[20].mxu1 }
 0x61c   :  { %v21745_v5 = vpop.f32.mrb[21].mxu1 }
 0x61f   :  { %v25611_v33 = vpop.f32.mrb[40].mxu0 }
 0x620   :  { %v21750_v7 = vpop.f32.mrb[41].mxu0 }
 0x623   :  { %v25613_v48 = vpop.f32.mrb[22].mxu1 }
 0x624   :  { %v21755_v18 = vpop.f32.mrb[23].mxu1 }
 0x627   :  { %v25615_v19 = vpop.f32.mrb[42].mxu0 }
 0x628   :  { %v21760_v24 = vpop.f32.mrb[43].mxu0 }
 0x62b   :  { %v25617_v28 = vpop.f32.mrb[24].mxu1 }
 0x62c   :  { %v21765_v54 = vpop.f32.mrb[25].mxu1 }
 0x62f   :  { %v2148_v35 = vpop.f32.mrb[26].mxu1 }
 0x630   :  { %v21775_v60 = vpop.f32.mrb[27].mxu1  ;;  %v2698_v40 = vsel %vm1401_vm3, %v2148_v35, -inf }
 0x631   :  { %2699 = vmax.xlane.f32.xlu0 %v2698_v40 }
 0x633   :  { %v2304_v43 = vpop.f32.mrb[28].mxu1 }
 0x634   :  { %v21785_v52 = vpop.f32.mrb[29].mxu1  ;;  %v2704_v10 = vsel %vm1401_vm3, %v2304_v43, -inf }
 0x635   :  { %2705 = vmax.xlane.f32.xlu0 %v2704_v10 }
 0x637   :  { %v25621_v42 = vpop.f32.mrb[30].mxu1 }
 0x638   :  { %v21795_v36 = vpop.f32.mrb[31].mxu1  ;;  %v2710_v60 = vsel %vm1401_vm3, %v25621_v42, -inf }
 0x63b   :  { %v25623_v39 = vpop.f32.mrb[32].mxu1 }
 0x63c   :  { %v21805_v3 = vpop.f32.mrb[33].mxu1  ;;  %v2716_v36 = vsel %vm1401_vm3, %v25623_v39, -inf }
 0x664   :  { %v25625_v46 = vpop.f32.mrb[44].mxu0 }
 0x665   :  { %28432 = vst [vmem:[#allocation36_spill] sm:$0xff] %v25625_v46  ;;  %v21770_v50 = vpop.f32.mrb[45].mxu0 }
 0x668   :  { %v2226_v58 = vpop.f32.mrb[46].mxu0 }
 0x669   :  { %v21780_v12 = vpop.f32.mrb[47].mxu0  ;;  %v2701_v55 = vsel %vm1401_vm3, %v2226_v58, -inf }
 0x66a   :  { %2702 = vmax.xlane.f32.xlu1 %v2701_v55 }
 0x66c   :  { %v2382_v5 = vpop.f32.mrb[48].mxu0 }
 0x66d   :  { %v21790_v7 = vpop.f32.mrb[49].mxu0  ;;  %v2707_v18 = vsel %vm1401_vm3, %v2382_v5, -inf }
 0x66e   :  { %2708 = vmax.xlane.f32.xlu0 %v2707_v18 }
 0x670   :  { %v2538_v24 = vpop.f32.mrb[50].mxu0 }
 0x671   :  { %v21800_v54 = vpop.f32.mrb[51].mxu0  ;;  %v2713_v40 = vsel %vm1401_vm3, %v2538_v24, -inf }
 0x672   :  { %2711 = vmax.xlane.f32.xlu0 %v2710_v60  ;;  %2714 = vmax.xlane.f32.xlu1 %v2713_v40 }
 0x674   :  { %v25632_v52 = vpop.f32.mrb[52].mxu0 }
 0x675   :  { %v21810_v10 = vpop.f32.mrb[53].mxu0  ;;  %v2719_v50 = vsel %vm1401_vm3, %v25632_v52, -inf }
 0x676   :  { %2717 = vmax.xlane.f32.xlu0 %v2716_v36 }
 0x683   :  { %2864 = vrot.lane.b32.xlu1 %v25419_v25, %s24917_s3 }
 0x687   :  { %2941 = vrot.lane.b32.xlu1 %v25317_v47, %s24917_s3 }
 0x68b   :  { %3018 = vrot.lane.b32.xlu1 %v25314_v45, %s24917_s3 }
 0x68c   :  { %2787 = vrot.lane.b32.xlu0 %v25423_v31, %s24917_s3 }
 0x68f   :  { %3172 = vrot.lane.b32.xlu1 %v25335_v53, %s24917_s3 }
 0x690   :  { %3095 = vrot.lane.b32.xlu0 %v25340_v56, %s24917_s3 }
 0x693   :  { %3326 = vrot.lane.b32.xlu1 %v25354_v61, %s24917_s3 }
 0x694   :  { %3249 = vrot.lane.b32.xlu0 %v25361_v0, %s24917_s3 }
 0x697   :  { %3482 = vrot.lane.b32.xlu1 %v25311_v44, %s24907_s25 }
 0x698   :  { %3404 = vrot.lane.b32.xlu0 %v25299_v38, %s24907_s25 }
 0x69b   :  { %3480 = vrot.lane.b32.xlu1 %v25326_v49, %s24907_s25 }
 0x69c   :  { %3402 = vrot.lane.b32.xlu0 %v25307_v41, %s24907_s25 }
 0x6a0   :  { %3560 = vrot.lane.b32.xlu0 %v25330_v51, %s24907_s25 }
 0x6be   :  { %v2700_v3 = vpop.xlane.xlu0 %2699 }
 0x6bf   :  { %v2722_v12 = vsub.f32 %v2148_v35, %v2700_v3  ;;  %2720 = vmax.xlane.f32.xlu1 %v2719_v50 }
 0x6c1   :  { %v2730_v55 = vmul.f32 1.442695, %v2722_v12 }
 0x6c2   :  { %v2706_v7 = vpop.xlane.xlu0 %2705 }
 0x6c3   :  { %24377 = vpow2.f32 %v2730_v55  ;;  %v2724_v18 = vsub.f32 %v2304_v43, %v2706_v7 }
 0x6c5   :  { %v2734_v54 = vmul.f32 1.442695, %v2724_v18 }
 0x6c7   :  { %24379 = vpow2.f32 %v2734_v54 }
 0x6cd   :  { %v25664_v60 = vpop.eup %24377 }
 0x6ce   :  { %v2746_v40 = vsel %vm1401_vm3, %v25664_v60, 0.0 }
 0x6cf   :  { %2747 = vadd.xlane.f32.xlu0 %v2746_v40 }
 0x6d0   :  { %3638 = vrot.lane.b32.xlu1 %v25349_v59, %s24907_s25 }
 0x6d1   :  { %v25670_v10 = vpop.eup %24379 }
 0x6d2   :  { %v2752_v35 = vsel %vm1401_vm3, %v25670_v10, 0.0 }
 0x6d3   :  { %2753 = vadd.xlane.f32.xlu0 %v2752_v35 }
 0x6f7   :  { %v2703_v36 = vpop.xlane.xlu1 %2702 }
 0x6f8   :  { %v2723_v3 = vsub.f32 %v2226_v58, %v2703_v36  ;;  %v28433_v58 = vmov 0.0  }
 0x6fa   :  { %v2732_v43 = vmul.f32 1.442695, %v2723_v3 }
 0x6fb   :  { %v2709_v50 = vpop.xlane.xlu0 %2708 }
 0x6fc   :  { %24381 = vpow2.f32 %v2732_v43  ;;  %v2725_v12 = vsub.f32 %v2382_v5, %v2709_v50 }
 0x6fe   :  { %v2736_v55 = vmul.f32 1.442695, %v2725_v12 }
 0x6ff   :  { %v2712_v7 = vpop.xlane.xlu0 %2711  ;;  %v2715_v18 = vpop.xlane.xlu1 %2714 }
 0x700   :  { %24383 = vpow2.f32 %v2736_v55  ;;  %v2726_v54 = vsub.f32 %v25621_v42, %v2712_v7  ;;  %v2727_v40 = vsub.f32 %v2538_v24, %v2715_v18 }
 0x702   :  { %v2738_v1 = vmul.f32 1.442695, %v2726_v54  ;;  %v2740_v30 = vmul.f32 1.442695, %v2727_v40 }
 0x703   :  { %v2718_v34 = vpop.xlane.xlu0 %2717  ;;  %v2865_v32 = vpop.permute.xlu1 %2864 }
 0x704   :  { %24385 = vpow2.f32 %v2738_v1  ;;  %v2728_v35 = vsub.f32 %v25623_v39, %v2718_v34  ;;  %21817 = vmatpush3.msra.mxu0 %v2865_v32 }
 0x705   :  { %24387 = vpow2.f32 %v2740_v30  ;;  %21826 = vmatprep.subr.mxu0 %v28433_v58 }
 0x706   :  { %v25677_v36 = vpop.eup %24381  ;;  %v2742_v5 = vmul.f32 1.442695, %v2728_v35 }
 0x707   :  { %v2788_v3 = vpop.permute.xlu0 %2787  ;;  %v2749_v43 = vsel %vm1401_vm3, %v25677_v36, 0.0  ;;  %v2942_v12 = vpop.permute.xlu1 %2941 }
 0x708   :  { %24389 = vpow2.f32 %v2742_v5  ;;  %21812 = vmatpush3.msra.mxu1 %v2788_v3  ;;  %2750 = vadd.xlane.f32.xlu1 %v2749_v43 }
 0x709   :  { %21821 = vmatprep.subr.mxu1 %v28433_v58 }
 0x70a   :  { %v25682_v42 = vpop.eup %24383 }
 0x70b   :  { %v2755_v1 = vsel %vm1401_vm3, %v25682_v42, 0.0  ;;  %v3019_v55 = vpop.permute.xlu1 %3018  ;;  %v3096_v54 = vpop.permute.xlu0 %3095 }
 0x70c   :  { %2756 = vadd.xlane.f32.xlu1 %v2755_v1 }
 0x70e   :  { %v25686_v30 = vpop.eup %24385 }
 0x70f   :  { %v25688_v32 = vpop.eup %24387  ;;  %v2758_v34 = vsel %vm1401_vm3, %v25686_v30, 0.0  ;;  %v25706_v7 = vpop.permute.xlu1 %3172 }
 0x710   :  { %2759 = vadd.xlane.f32.xlu0 %v2758_v34  ;;  %v2761_v39 = vsel %vm1401_vm3, %v25688_v32, 0.0  ;;  %v25720_v35 = vpop.permute.xlu0 %3249 }
 0x711   :  { %2762 = vadd.xlane.f32.xlu1 %v2761_v39 }
 0x712   :  { %v25694_v24 = vpop.eup %24389 }
 0x713   :  { %v2764_v50 = vsel %vm1401_vm3, %v25694_v24, 0.0  ;;  %v25712_v18 = vpop.permute.xlu1 %3326 }
 0x714   :  { %2765 = vadd.xlane.f32.xlu0 %v2764_v50  ;;  %v25724_v3 = vpop.permute.xlu0 %3404 }
 0x717   :  { %v25716_v40 = vpop.permute.xlu1 %3482 }
 0x718   :  { %v25727_v39 = vpop.permute.xlu0 %3402 }
 0x71b   :  { %v25722_v5 = vpop.permute.xlu1 %3480 }
 0x71c   :  { %v25729_v50 = vpop.permute.xlu0 %3560 }
 0x722   :  { %3636 = vrot.lane.b32.xlu1 %v25364_v2, %s24907_s25 }
 0x72a   :  { %3558 = vrot.lane.b32.xlu0 %v25345_v57, %s24907_s25 }
 0x72e   :  { %3716 = vrot.lane.b32.xlu0 %v25368_v4, %s24907_s25 }
 0x732   :  { %3714 = vrot.lane.b32.xlu0 %v25377_v6, %s24907_s25 }
 0x736   :  { %3872 = vrot.lane.b32.xlu0 %v25394_v16, %s24907_s25 }
 0x73a   :  { %3870 = vrot.lane.b32.xlu0 %v25397_v17, %s24907_s25 }
 0x73e   :  { %4114 = vrot.lane.b32.xlu0 %v25423_v31, %s24907_s25 }
 0x742   :  { %4418 = vrot.lane.b32.xlu0 %v25340_v56, %s24907_s25 }
 0x74c   :  { %v2721_v43 = vpop.xlane.xlu1 %2720 }
 0x74d   :  { %v2729_v1 = vsub.f32 %v25632_v52, %v2721_v43 }
 0x74f   :  { %v2744_v34 = vmul.f32 1.442695, %v2729_v1 }
 0x751   :  { %24391 = vpow2.f32 %v2744_v34 }
 0x75b   :  { %v25731_v29 = vpop.eup %24391 }
 0x75c   :  { %v2748_v26 = vpop.xlane.xlu0 %2747  ;;  %v2767_v27 = vsel %vm1401_vm3, %v25731_v29, 0.0 }
 0x75d   :  { %24393 = vrcp.f32 %v2748_v26  ;;  %2768 = vadd.xlane.f32.xlu1 %v2767_v27 }
 0x760   :  { %v2754_v20 = vpop.xlane.xlu0 %2753 }
 0x761   :  { %24395 = vrcp.f32 %v2754_v20 }
 0x767   :  { %v24394_v21 = vpop.eup %24393 }
 0x768   :  { %v2778_v13 = vmul.f32 %v24394_v21, %v25664_v60 }
 0x76a   :  { %21814 = vmatmul.mubr.msk.f32.vlgmr.msra.gmra.mrb[34].mxu1 %vm1401_vm3, %v2778_v13  ;;  %v25761_v13 = vpop.permute.xlu1 %3638 }
 0x76b   :  { %v24396_v52 = vpop.eup %24395  ;;  %21822 = vmatpush3.msra.mxu1 %v2942_v12  ;;  %21823 = vmatprep.mubr.msk.f32.mxu1 %vm24916_vm1, %v28433_v58 }
 0x76c   :  { %21831 = vmatprep.subr.mxu1 %v28433_v58  ;;  %v2780_v43 = vmul.f32 %v24396_v52, %v25670_v10 }
 0x76e   :  { %21824 = vmatmul.mubr.msk.f32.vlgmr.msra.gmra.mrb[36].mxu1 %vm1401_vm3, %v2780_v43  ;;  %3794 = vrot.lane.b32.xlu1 %v25381_v9, %s24907_s25 }
 0x76f   :  { %21832 = vmatpush3.msra.mxu1 %v3096_v54  ;;  %21833 = vmatprep.mubr.msk.f32.mxu1 %vm24916_vm1, %v28433_v58 }
 0x770   :  { %21841 = vmatprep.subr.mxu1 %v28433_v58 }
 0x772   :  { %3792 = vrot.lane.b32.xlu1 %v25390_v11, %s24907_s25 }
 0x776   :  { %3950 = vrot.lane.b32.xlu1 %v25407_v22, %s24907_s25 }
 0x77a   :  { %3948 = vrot.lane.b32.xlu1 %v25410_v23, %s24907_s25 }
 0x77e   :  { %4190 = vrot.lane.b32.xlu1 %v25419_v25, %s24907_s25 }
 0x782   :  { %4266 = vrot.lane.b32.xlu1 %v25317_v47, %s24907_s25 }
 0x786   :  { %4342 = vrot.lane.b32.xlu1 %v25314_v45, %s24907_s25 }
 0x78a   :  { %4494 = vrot.lane.b32.xlu1 %v25335_v53, %s24907_s25 }
 0x795   :  { %v2751_v20 = vpop.xlane.xlu1 %2750 }
 0x796   :  { %24397 = vrcp.f32 %v2751_v20 }
 0x799   :  { %v2757_v21 = vpop.xlane.xlu1 %2756 }
 0x79a   :  { %24399 = vrcp.f32 %v2757_v21 }
 0x79d   :  { %v2760_v26 = vpop.xlane.xlu0 %2759 }
 0x79e   :  { %24401 = vrcp.f32 %v2760_v26  ;;  %v2763_v27 = vpop.xlane.xlu1 %2762 }
 0x79f   :  { %24403 = vrcp.f32 %v2763_v27 }
 0x7a0   :  { %v24398_v60 = vpop.eup %24397 }
 0x7a1   :  { %v2766_v10 = vpop.xlane.xlu0 %2765  ;;  %v2779_v12 = vmul.f32 %v24398_v60, %v25677_v36 }
 0x7a2   :  { %24405 = vrcp.f32 %v2766_v10 }
 0x7a3   :  { %21819 = vmatmul.mubr.msk.f32.vlgmr.msra.gmra.mrb[54].mxu0 %vm1401_vm3, %v2779_v12 }
 0x7a4   :  { %v24400_v54 = vpop.eup %24399  ;;  %21827 = vmatpush3.msra.mxu0 %v3019_v55  ;;  %21828 = vmatprep.mubr.msk.f32.mxu0 %vm24916_vm1, %v28433_v58 }
 0x7a5   :  { %v3559_v1 = vpop.permute.xlu0 %3558  ;;  %21836 = vmatprep.subr.mxu0 %v28433_v58  ;;  %v2781_v34 = vmul.f32 %v24400_v54, %v25682_v42 }
 0x7a7   :  { %21829 = vmatmul.mubr.msk.f32.vlgmr.msra.gmra.mrb[56].mxu0 %vm1401_vm3, %v2781_v34 }
 0x7a8   :  { %v24402_v52 = vpop.eup %24401  ;;  %21837 = vmatpush3.msra.mxu0 %v25706_v7  ;;  %21838 = vmatprep.mubr.msk.f32.mxu0 %vm24916_vm1, %v28433_v58 }
 0x7a9   :  { %v24404_v36 = vpop.eup %24403  ;;  %21846 = vmatprep.subr.mxu0 %v28433_v58  ;;  %v2782_v55 = vmul.f32 %v24402_v52, %v25686_v30  ;;  %v3717_v43 = vpop.permute.xlu0 %3716 }
 0x7aa   :  { %v2783_v20 = vmul.f32 %v24404_v36, %v25688_v32 }
 0x7ab   :  { %21834 = vmatmul.mubr.msk.f32.vlgmr.msra.gmra.mrb[38].mxu1 %vm1401_vm3, %v2782_v55 }
 0x7ac   :  { %v24406_v21 = vpop.eup %24405  ;;  %21839 = vmatmul.mubr.msk.f32.vlgmr.msra.gmra.mrb[58].mxu0 %vm1401_vm3, %v2783_v20  ;;  %21842 = vmatpush3.msra.mxu1 %v25720_v35 }
 0x7ad   :  { %21847 = vmatpush3.msra.mxu0 %v25712_v18  ;;  %21843 = vmatprep.mubr.msk.f32.mxu1 %vm24916_vm1, %v28433_v58  ;;  %v2784_v42 = vmul.f32 %v24406_v21, %v25694_v24  ;;  %v3715_v30 = vpop.permute.xlu0 %3714  ;;  %v3637_v18 = vpop.permute.xlu1 %3636 }
 0x7ae   :  { %21851 = vmatprep.subr.mxu1 %v28433_v58  ;;  %21848 = vmatprep.mubr.msk.f32.mxu0 %vm24916_vm1, %v28433_v58 }
 0x7af   :  { %21844 = vmatmul.mubr.msk.f32.vlgmr.msra.gmra.mrb[40].mxu1 %vm1401_vm3, %v2784_v42  ;;  %21856 = vmatprep.subr.mxu0 %v28433_v58 }
 0x7b0   :  { %21853 = vmatprep.mubr.msk.f32.mxu1 %vm24916_vm1, %v28433_v58 }
 0x7b1   :  { %v3873_v32 = vpop.permute.xlu0 %3872 }
 0x7b3   :  { %21852 = vmatpush3.xpose.msk.msra.mxu1 %vm792_vm2, %v25724_v3 }
 0x7b4   :  { %21861 = vmatprep.subr.mxu1 %v28433_v58 }
 0x7b5   :  { %v3871_v24 = vpop.permute.xlu0 %3870 }
 0x7b6   :  { %21854 = vmatmul.mubr.msk.f32.vlgmr.msra.gmra.mrb[42].mxu1 %vm792_vm2, %v25727_v39 }
 0x7b7   :  { %21862 = vmatpush3.xpose.msk.msra.mxu1 %vm792_vm2, %v25729_v50  ;;  %21863 = vmatprep.mubr.msk.f32.mxu1 %vm24916_vm1, %v28433_v58 }
 0x7b8   :  { %21871 = vmatprep.subr.mxu1 %v28433_v58 }
 0x7b9   :  { %v4115_v7 = vpop.permute.xlu0 %4114 }
 0x7ba   :  { %21864 = vmatmul.mubr.msk.f32.vlgmr.msra.gmra.mrb[44].mxu1 %vm792_vm2, %v3559_v1 }
 0x7bb   :  { %21872 = vmatpush3.xpose.msk.msra.mxu1 %vm792_vm2, %v3717_v43  ;;  %21873 = vmatprep.mubr.msk.f32.mxu1 %vm24916_vm1, %v28433_v58 }
 0x7bc   :  { %21881 = vmatprep.subr.mxu1 %v28433_v58 }
 0x7be   :  { %21874 = vmatmul.mubr.msk.f32.vlgmr.msra.gmra.mrb[46].mxu1 %vm792_vm2, %v3715_v30 }
 0x7bf   :  { %21882 = vmatpush3.xpose.msk.msra.mxu1 %vm792_vm2, %v3873_v32  ;;  %21883 = vmatprep.mubr.msk.f32.mxu1 %vm24916_vm1, %v28433_v58 }
 0x7c0   :  { %21891 = vmatprep.subr.mxu1 %v28433_v58 }
 0x7c2   :  { %21884 = vmatmul.mubr.msk.f32.vlgmr.msra.gmra.mrb[48].mxu1 %vm792_vm2, %v3871_v24 }
 0x7c3   :  { %21892 = vmatpush3.msra.mxu1 %v4115_v7  ;;  %21893 = vmatprep.mubr.msk.f32.mxu1 %vm24916_vm1, %v28433_v58 }
 0x7c4   :  { %21901 = vmatprep.subr.mxu1 %v28433_v58 }
 0x7ea   :  { %v2769_v35 = vpop.xlane.xlu1 %2768 }
 0x7eb   :  { %24407 = vrcp.f32 %v2769_v35 }
 0x7ee   :  { %v3795_v3 = vpop.permute.xlu1 %3794 }
 0x7f2   :  { %v3793_v50 = vpop.permute.xlu1 %3792 }
 0x7f5   :  { %v24408_v39 = vpop.eup %24407 }
 0x7f6   :  { %v2785_v26 = vmul.f32 %v24408_v39, %v25731_v29  ;;  %v3951_v27 = vpop.permute.xlu1 %3950 }
 0x7f8   :  { %21849 = vmatmul.mubr.msk.f32.vlgmr.msra.gmra.mrb[60].mxu0 %vm1401_vm3, %v2785_v26 }
 0x7f9   :  { %21857 = vmatpush3.xpose.msk.msra.mxu0 %vm792_vm2, %v25716_v40  ;;  %21858 = vmatprep.mubr.msk.f32.mxu0 %vm24916_vm1, %v28433_v58 }
 0x7fa   :  { %21866 = vmatprep.subr.mxu0 %v28433_v58  ;;  %v3949_v29 = vpop.permute.xlu1 %3948 }
 0x7fc   :  { %21859 = vmatmul.mubr.msk.f32.vlgmr.msra.gmra.mrb[62].mxu0 %vm792_vm2, %v25722_v5 }
 0x7fd   :  { %21867 = vmatpush3.xpose.msk.msra.mxu0 %vm792_vm2, %v25761_v13  ;;  %21868 = vmatprep.mubr.msk.f32.mxu0 %vm24916_vm1, %v28433_v58 }
 0x7fe   :  { %21876 = vmatprep.subr.mxu0 %v28433_v58  ;;  %v4191_v40 = vpop.permute.xlu1 %4190 }
 0x800   :  { %21869 = vmatmul.mubr.msk.f32.vlgmr.msra.gmra.mrb[64].mxu0 %vm792_vm2, %v3637_v18 }
 0x801   :  { %21877 = vmatpush3.xpose.msk.msra.mxu0 %vm792_vm2, %v3795_v3  ;;  %21878 = vmatprep.mubr.msk.f32.mxu0 %vm24916_vm1, %v28433_v58 }
 0x802   :  { %21886 = vmatprep.subr.mxu0 %v28433_v58  ;;  %v4267_v15 = vpop.permute.xlu1 %4266 }
 0x804   :  { %21879 = vmatmul.mubr.msk.f32.vlgmr.msra.gmra.mrb[66].mxu0 %vm792_vm2, %v3793_v50 }
 0x805   :  { %21887 = vmatpush3.xpose.msk.msra.mxu0 %vm792_vm2, %v3951_v27  ;;  %21888 = vmatprep.mubr.msk.f32.mxu0 %vm24916_vm1, %v28433_v58 }
 0x806   :  { %21896 = vmatprep.subr.mxu0 %v28433_v58 }
 0x808   :  { %21889 = vmatmul.mubr.msk.f32.vlgmr.msra.gmra.mrb[68].mxu0 %vm792_vm2, %v3949_v29 }
 0x809   :  { %21897 = vmatpush3.msra.mxu0 %v4191_v40  ;;  %21898 = vmatprep.mubr.msk.f32.mxu0 %vm24916_vm1, %v28433_v58 }
 0x80a   :  { %21906 = vmatprep.subr.mxu0 %v28433_v58 }
 0x83d   :  { %v25842_v5 = vpop.f32.mrb[34].mxu1 }
 0x83e   :  { %v21815_v13 = vpop.f32.mrb[35].mxu1 }
 0x841   :  { %v25844_v60 = vpop.f32.mrb[36].mxu1 }
 0x842   :  { %v21825_v10 = vpop.f32.mrb[37].mxu1 }
 0x876   :  { %v25846_v12 = vpop.f32.mrb[54].mxu0 }
 0x877   :  { %v21820_v1 = vpop.f32.mrb[55].mxu0 }
 0x87a   :  { %v25850_v34 = vpop.f32.mrb[56].mxu0 }
 0x87b   :  { %v21830_v36 = vpop.f32.mrb[57].mxu0 }
 0x87e   :  { %v25854_v55 = vpop.f32.mrb[38].mxu1 }
 0x87f   :  { %v25856_v43 = vpop.f32.mrb[58].mxu0  ;;  %v21835_v20 = vpop.f32.mrb[39].mxu1 }
 0x880   :  { %v21840_v42 = vpop.f32.mrb[59].mxu0 }
 0x882   :  { %v25860_v30 = vpop.f32.mrb[40].mxu1 }
 0x883   :  { %v21845_v32 = vpop.f32.mrb[41].mxu1 }
 0x889   :  { %v3476_v24 = vpop.f32.mrb[42].mxu1 }
 0x88a   :  { %v21855_v7 = vpop.f32.mrb[43].mxu1  ;;  %v4026_v18 = vsel %vm1401_vm3, %v3476_v24, -inf }
 0x88b   :  { %4027 = vmax.xlane.f32.xlu0 %v4026_v18 }
 0x88d   :  { %v3632_v35 = vpop.f32.mrb[44].mxu1 }
 0x88e   :  { %v21865_v3 = vpop.f32.mrb[45].mxu1  ;;  %v4032_v39 = vsel %vm1401_vm3, %v3632_v35, -inf }
 0x88f   :  { %4033 = vmax.xlane.f32.xlu0 %v4032_v39 }
 0x891   :  { %v3788_v50 = vpop.f32.mrb[46].mxu1 }
 0x892   :  { %v21875_v26 = vpop.f32.mrb[47].mxu1  ;;  %v4038_v39 = vsel %vm1401_vm3, %v3788_v50, -inf }
 0x895   :  { %v25864_v27 = vpop.f32.mrb[48].mxu1 }
 0x896   :  { %v21885_v29 = vpop.f32.mrb[49].mxu1 }
 0x8cb   :  { %v25866_v40 = vpop.f32.mrb[60].mxu0 }
 0x8cc   :  { %v21850_v10 = vpop.f32.mrb[61].mxu0 }
 0x8cf   :  { %v3554_v1 = vpop.f32.mrb[62].mxu0 }
 0x8d0   :  { %v21860_v36 = vpop.f32.mrb[63].mxu0  ;;  %v4029_v20 = vsel %vm1401_vm3, %v3554_v1, -inf }
 0x8d1   :  { %4030 = vmax.xlane.f32.xlu1 %v4029_v20  ;;  %v4044_v36 = vsel %vm1401_vm3, %v25864_v27, -inf }
 0x8d3   :  { %v3710_v42 = vpop.f32.mrb[64].mxu0 }
 0x8d4   :  { %v21870_v32 = vpop.f32.mrb[65].mxu0  ;;  %v4035_v7 = vsel %vm1401_vm3, %v3710_v42, -inf }
 0x8d5   :  { %4036 = vmax.xlane.f32.xlu0 %v4035_v7  ;;  %v25884_v32 = vpop.permute.xlu0 %4418 }
 0x8d7   :  { %v3866_v18 = vpop.f32.mrb[66].mxu0 }
 0x8d8   :  { %v21880_v3 = vpop.f32.mrb[67].mxu0  ;;  %v4041_v26 = vsel %vm1401_vm3, %v3866_v18, -inf }
 0x8d9   :  { %4039 = vmax.xlane.f32.xlu0 %v4038_v39  ;;  %4042 = vmax.xlane.f32.xlu1 %v4041_v26 }
 0x8db   :  { %v25874_v29 = vpop.f32.mrb[68].mxu0 }
 0x8dc   :  { %v21890_v10 = vpop.f32.mrb[69].mxu0  ;;  %v4047_v20 = vsel %vm1401_vm3, %v25874_v29, -inf }
 0x8dd   :  { %4045 = vmax.xlane.f32.xlu0 %v4044_v36 }
 0x8ea   :  { %4646 = vrot.lane.b32.xlu1 %v25354_v61, %s24907_s25 }
 0x8f3   :  { %4570 = vrot.lane.b32.xlu0 %v25361_v0, %s24907_s25 }
 0x90e   :  { %4048 = vmax.xlane.f32.xlu1 %v4047_v20  ;;  %v25888_v20 = vpop.permute.xlu1 %4342 }
 0x912   :  { %v25890_v8 = vpop.permute.xlu1 %4494 }
 0x918   :  { %v4028_v7 = vpop.xlane.xlu0 %4027 }
 0x919   :  { %v4050_v3 = vsub.f32 %v3476_v24, %v4028_v7 }
 0x91b   :  { %v4058_v39 = vmul.f32 1.442695, %v4050_v3 }
 0x91c   :  { %v4034_v26 = vpop.xlane.xlu0 %4033 }
 0x91d   :  { %24409 = vpow2.f32 %v4058_v39  ;;  %v4052_v10 = vsub.f32 %v3632_v35, %v4034_v26 }
 0x91f   :  { %v4062_v13 = vmul.f32 1.442695, %v4052_v10 }
 0x921   :  { %24411 = vpow2.f32 %v4062_v13 }
 0x927   :  { %v24410_v36 = vpop.eup %24409 }
 0x928   :  { %v4074_v21 = vsel %vm1401_vm3, %v24410_v36, 0.0 }
 0x929   :  { %4075 = vadd.xlane.f32.xlu0 %v4074_v21 }
 0x92b   :  { %v24412_v52 = vpop.eup %24411 }
 0x92c   :  { %v4080_v54 = vsel %vm1401_vm3, %v24412_v52, 0.0 }
 0x92d   :  { %4081 = vadd.xlane.f32.xlu0 %v4080_v54 }
 0x95e   :  { %v4031_v24 = vpop.xlane.xlu1 %4030 }
 0x95f   :  { %v4051_v7 = vsub.f32 %v3554_v1, %v4031_v24 }
 0x961   :  { %v4060_v3 = vmul.f32 1.442695, %v4051_v7 }
 0x962   :  { %v4037_v39 = vpop.xlane.xlu0 %4036 }
 0x963   :  { %24413 = vpow2.f32 %v4060_v3  ;;  %v4053_v35 = vsub.f32 %v3710_v42, %v4037_v39 }
 0x965   :  { %v4064_v13 = vmul.f32 1.442695, %v4053_v35 }
 0x966   :  { %v4040_v26 = vpop.xlane.xlu0 %4039 }
 0x967   :  { %24415 = vpow2.f32 %v4064_v13  ;;  %v4054_v10 = vsub.f32 %v3788_v50, %v4040_v26  ;;  %v4043_v50 = vpop.xlane.xlu1 %4042 }
 0x968   :  { %v4055_v7 = vsub.f32 %v3866_v18, %v4043_v50 }
 0x969   :  { %v4066_v21 = vmul.f32 1.442695, %v4054_v10 }
 0x96a   :  { %v4046_v3 = vpop.xlane.xlu0 %4045  ;;  %v4068_v39 = vmul.f32 1.442695, %v4055_v7 }
 0x96b   :  { %24417 = vpow2.f32 %v4066_v21  ;;  %v4056_v35 = vsub.f32 %v25864_v27, %v4046_v3 }
 0x96c   :  { %24419 = vpow2.f32 %v4068_v39 }
 0x96d   :  { %v25892_v14 = vpop.eup %24413  ;;  %v4070_v13 = vmul.f32 1.442695, %v4056_v35 }
 0x96e   :  { %v4077_v54 = vsel %vm1401_vm3, %v25892_v14, 0.0 }
 0x96f   :  { %4078 = vadd.xlane.f32.xlu1 %v4077_v54  ;;  %24421 = vpow2.f32 %v4070_v13  ;;  %v25919_v54 = vpop.permute.xlu1 %4646 }
 0x971   :  { %v25896_v46 = vpop.eup %24415 }
 0x972   :  { %v4083_v1 = vsel %vm1401_vm3, %v25896_v46, 0.0 }
 0x973   :  { %4084 = vadd.xlane.f32.xlu1 %v4083_v1 }
 0x975   :  { %v25900_v24 = vpop.eup %24417 }
 0x976   :  { %v4086_v42 = vsel %vm1401_vm3, %v25900_v24, 0.0  ;;  %v25909_v26 = vpop.eup %24419 }
 0x977   :  { %4087 = vadd.xlane.f32.xlu0 %v4086_v42  ;;  %v4089_v10 = vsel %vm1401_vm3, %v25909_v26, 0.0 }
 0x979   :  { %v25913_v21 = vpop.eup %24421 }
 0x984   :  { %4802 = vrot.lane.b32.xlu1 %v25311_v44, %s24918_s6  ;;  %v4571_v44 = vpop.permute.xlu0 %4570 }
 0x98d   :  { %4724 = vrot.lane.b32.xlu0 %v25299_v38, %s24918_s6  ;;  %v4092_v38 = vsel %vm1401_vm3, %v25913_v21, 0.0 }
 0x99b   :  { %v4049_v50 = vpop.xlane.xlu1 %4048 }
 0x99c   :  { %v4057_v3 = vsub.f32 %v25874_v29, %v4049_v50 }
 0x9a8   :  { %4090 = vadd.xlane.f32.xlu1 %v4089_v10 }
 0x9ac   :  { %4093 = vadd.xlane.f32.xlu0 %v4092_v38 }
 0x9b6   :  { %v4076_v18 = vpop.xlane.xlu0 %4075 }
 0x9b7   :  { %24423 = vrcp.f32 %v4076_v18 }
 0x9b9   :  { %4800 = vrot.lane.b32.xlu1 %v25326_v49, %s24918_s6 }
 0x9ba   :  { %v4082_v27 = vpop.xlane.xlu0 %4081 }
 0x9bb   :  { %24425 = vrcp.f32 %v4082_v27 }
 0x9c1   :  { %v24424_v1 = vpop.eup %24423 }
 0x9c2   :  { %4722 = vrot.lane.b32.xlu0 %v25307_v41, %s24918_s6  ;;  %v4106_v42 = vmul.f32 %v24424_v1, %v24410_v36 }
 0x9c4   :  { %21894 = vmatmul.mubr.msk.f32.vlgmr.msra.gmra.mrb[50].mxu1 %vm1401_vm3, %v4106_v42 }
 0x9c5   :  { %v24426_v7 = vpop.eup %24425  ;;  %21902 = vmatpush3.msra.mxu1 %v4267_v15  ;;  %21903 = vmatprep.mubr.msk.f32.mxu1 %vm24916_vm1, %v28433_v58  ;;  %v4072_v15 = vmul.f32 1.442695, %v4057_v3 }
 0x9c6   :  { %4880 = vrot.lane.b32.xlu0 %v25330_v51, %s24918_s6  ;;  %21911 = vmatprep.subr.mxu1 %v28433_v58  ;;  %v4108_v49 = vmul.f32 %v24426_v7, %v24412_v52 }
 0x9c7   :  { %24427 = vpow2.f32 %v4072_v15 }
 0x9c8   :  { %21904 = vmatmul.mubr.msk.f32.vlgmr.msra.gmra.mrb[52].mxu1 %vm1401_vm3, %v4108_v49 }
 0x9c9   :  { %21912 = vmatpush3.msra.mxu1 %v25884_v32  ;;  %21913 = vmatprep.mubr.msk.f32.mxu1 %vm24916_vm1, %v28433_v58 }
 0x9ca   :  { %4878 = vrot.lane.b32.xlu0 %v25345_v57, %s24918_s6  ;;  %21921 = vmatprep.subr.mxu1 %v28433_v58 }
 0x9ce   :  { %5036 = vrot.lane.b32.xlu0 %v25368_v4, %s24918_s6 }
 0x9d1   :  { %v25943_v41 = vpop.eup %24427 }
 0x9d2   :  { %5034 = vrot.lane.b32.xlu0 %v25377_v6, %s24918_s6  ;;  %v4095_v51 = vsel %vm1401_vm3, %v25943_v41, 0.0 }
 0x9d6   :  { %5192 = vrot.lane.b32.xlu0 %v25394_v16, %s24918_s6 }
 0x9da   :  { %5190 = vrot.lane.b32.xlu0 %v25397_v17, %s24918_s6 }
 0x9dd   :  { %4096 = vadd.xlane.f32.xlu1 %v4095_v51 }
 0x9ee   :  { %4958 = vrot.lane.b32.xlu1 %v25349_v59, %s24918_s6 }
 0x9f2   :  { %4956 = vrot.lane.b32.xlu1 %v25364_v2, %s24918_s6 }
 0x9f6   :  { %5114 = vrot.lane.b32.xlu1 %v25381_v9, %s24918_s6 }
 0x9fa   :  { %5112 = vrot.lane.b32.xlu1 %v25390_v11, %s24918_s6 }
 0x9fc   :  { %v4079_v57 = vpop.xlane.xlu1 %4078 }
 0x9fd   :  { %24429 = vrcp.f32 %v4079_v57 }
 0x9fe   :  { %5270 = vrot.lane.b32.xlu1 %v25407_v22, %s24918_s6 }
 0xa00   :  { %v4085_v4 = vpop.xlane.xlu1 %4084 }
 0xa01   :  { %24431 = vrcp.f32 %v4085_v4 }
 0xa02   :  { %5268 = vrot.lane.b32.xlu1 %v25410_v23, %s24918_s6 }
 0xa04   :  { %v4088_v59 = vpop.xlane.xlu0 %4087  ;;  %v4803_v17 = vpop.permute.xlu1 %4802 }
 0xa05   :  { %24433 = vrcp.f32 %v4088_v59 }
 0xa07   :  { %v24430_v6 = vpop.eup %24429 }
 0xa08   :  { %v4107_v2 = vmul.f32 %v24430_v6, %v25892_v14  ;;  %v4725_v22 = vpop.permute.xlu0 %4724 }
 0xa0a   :  { %21899 = vmatmul.mubr.msk.f32.vlgmr.msra.gmra.mrb[70].mxu0 %vm1401_vm3, %v4107_v2 }
 0xa0b   :  { %v24432_v9 = vpop.eup %24431  ;;  %21907 = vmatpush3.msra.mxu0 %v25888_v20  ;;  %21908 = vmatprep.mubr.msk.f32.mxu0 %vm24916_vm1, %v28433_v58 }
 0xa0c   :  { %21916 = vmatprep.subr.mxu0 %v28433_v58  ;;  %v4109_v11 = vmul.f32 %v24432_v9, %v25896_v46 }
 0xa0e   :  { %21909 = vmatmul.mubr.msk.f32.vlgmr.msra.gmra.mrb[72].mxu0 %vm1401_vm3, %v4109_v11 }
 0xa0f   :  { %v24434_v16 = vpop.eup %24433  ;;  %21917 = vmatpush3.msra.mxu0 %v25890_v8  ;;  %21918 = vmatprep.mubr.msk.f32.mxu0 %vm24916_vm1, %v28433_v58 }
 0xa10   :  { %v4110_v14 = vmul.f32 %v24434_v16, %v25900_v24  ;;  %21926 = vmatprep.subr.mxu0 %v28433_v58 }
 0xa12   :  { %21914 = vmatmul.mubr.msk.f32.vlgmr.msra.gmra.mrb[54].mxu1 %vm1401_vm3, %v4110_v14 }
 0xa13   :  { %21922 = vmatpush3.msra.mxu1 %v4571_v44  ;;  %21923 = vmatprep.mubr.msk.f32.mxu1 %vm24916_vm1, %v28433_v58 }
 0xa14   :  { %21931 = vmatprep.subr.mxu1 %v28433_v58 }
 0xa35   :  { %v4091_v23 = vpop.xlane.xlu1 %4090 }
 0xa36   :  { %24435 = vrcp.f32 %v4091_v23 }
 0xa39   :  { %v4094_v8 = vpop.xlane.xlu0 %4093  ;;  %v4801_v10 = vpop.permute.xlu1 %4800 }
 0xa3a   :  { %24437 = vrcp.f32 %v4094_v8 }
 0xa3d   :  { %v4723_v46 = vpop.permute.xlu0 %4722 }
 0xa40   :  { %v24436_v52 = vpop.eup %24435 }
 0xa41   :  { %v4881_v29 = vpop.permute.xlu0 %4880  ;;  %v4111_v32 = vmul.f32 %v24436_v52, %v25909_v26 }
 0xa43   :  { %21919 = vmatmul.mubr.msk.f32.vlgmr.msra.gmra.mrb[74].mxu0 %vm1401_vm3, %v4111_v32 }
 0xa44   :  { %v24438_v36 = vpop.eup %24437  ;;  %21927 = vmatpush3.msra.mxu0 %v25919_v54  ;;  %21928 = vmatprep.mubr.msk.f32.mxu0 %vm24916_vm1, %v28433_v58 }
 0xa45   :  { %v4879_v20 = vpop.permute.xlu0 %4878  ;;  %v4112_v24 = vmul.f32 %v24438_v36, %v25913_v21  ;;  %21936 = vmatprep.subr.mxu0 %v28433_v58 }
 0xa47   :  { %21924 = vmatmul.mubr.msk.f32.vlgmr.msra.gmra.mrb[56].mxu1 %vm1401_vm3, %v4112_v24 }
 0xa48   :  { %21932 = vmatpush3.xpose.msk.msra.mxu1 %vm792_vm2, %v4725_v22  ;;  %21933 = vmatprep.mubr.msk.f32.mxu1 %vm24916_vm1, %v28433_v58 }
 0xa49   :  { %v5037_v39 = vpop.permute.xlu0 %5036  ;;  %21941 = vmatprep.subr.mxu1 %v28433_v58 }
 0xa4b   :  { %21934 = vmatmul.mubr.msk.f32.vlgmr.msra.gmra.mrb[58].mxu1 %vm792_vm2, %v4723_v46 }
 0xa4c   :  { %21942 = vmatpush3.xpose.msk.msra.mxu1 %vm792_vm2, %v4881_v29  ;;  %21943 = vmatprep.mubr.msk.f32.mxu1 %vm24916_vm1, %v28433_v58 }
 0xa4d   :  { %v5035_v35 = vpop.permute.xlu0 %5034  ;;  %21951 = vmatprep.subr.mxu1 %v28433_v58 }
 0xa4f   :  { %21944 = vmatmul.mubr.msk.f32.vlgmr.msra.gmra.mrb[60].mxu1 %vm792_vm2, %v4879_v20 }
 0xa50   :  { %21952 = vmatpush3.xpose.msk.msra.mxu1 %vm792_vm2, %v5037_v39  ;;  %21953 = vmatprep.mubr.msk.f32.mxu1 %vm24916_vm1, %v28433_v58 }
 0xa51   :  { %v5193_v13 = vpop.permute.xlu0 %5192  ;;  %21961 = vmatprep.subr.mxu1 %v28433_v58 }
 0xa53   :  { %21954 = vmatmul.mubr.msk.f32.vlgmr.msra.gmra.mrb[62].mxu1 %vm792_vm2, %v5035_v35 }
 0xa54   :  { %21962 = vmatpush3.xpose.msk.msra.mxu1 %vm792_vm2, %v5193_v13  ;;  %21963 = vmatprep.mubr.msk.f32.mxu1 %vm24916_vm1, %v28433_v58 }
 0xa55   :  { %v5191_v26 = vpop.permute.xlu0 %5190  ;;  %21971 = vmatprep.subr.mxu1 %v28433_v58 }
 0xa57   :  { %21964 = vmatmul.mubr.msk.f32.vlgmr.msra.gmra.mrb[64].mxu1 %vm792_vm2, %v5191_v26 }
 0xa58   :  { %21973 = vmatprep.mubr.msk.f32.mxu1 %vm24916_vm1, %v28433_v58 }
 0xa6a   :  { %v4097_v21 = vpop.xlane.xlu1 %4096 }
 0xa6b   :  { %24439 = vrcp.f32 %v4097_v21 }
 0xa6e   :  { %v4959_v38 = vpop.permute.xlu1 %4958 }
 0xa72   :  { %v4957_v44 = vpop.permute.xlu1 %4956 }
 0xa75   :  { %v24440_v18 = vpop.eup %24439 }
 0xa76   :  { %v5115_v27 = vpop.permute.xlu1 %5114  ;;  %v4113_v54 = vmul.f32 %v24440_v18, %v25943_v41 }
 0xa78   :  { %21929 = vmatmul.mubr.msk.f32.vlgmr.msra.gmra.mrb[76].mxu0 %vm1401_vm3, %v4113_v54 }
 0xa79   :  { %21937 = vmatpush3.xpose.msk.msra.mxu0 %vm792_vm2, %v4803_v17  ;;  %21938 = vmatprep.mubr.msk.f32.mxu0 %vm24916_vm1, %v28433_v58 }
 0xa7a   :  { %21946 = vmatprep.subr.mxu0 %v28433_v58  ;;  %v5113_v1 = vpop.permute.xlu1 %5112 }
 0xa7c   :  { %21939 = vmatmul.mubr.msk.f32.vlgmr.msra.gmra.mrb[78].mxu0 %vm792_vm2, %v4801_v10 }
 0xa7d   :  { %21947 = vmatpush3.xpose.msk.msra.mxu0 %vm792_vm2, %v4959_v38  ;;  %21948 = vmatprep.mubr.msk.f32.mxu0 %vm24916_vm1, %v28433_v58 }
 0xa7e   :  { %21956 = vmatprep.subr.mxu0 %v28433_v58  ;;  %v5271_v42 = vpop.permute.xlu1 %5270 }
 0xa80   :  { %21949 = vmatmul.mubr.msk.f32.vlgmr.msra.gmra.mrb[80].mxu0 %vm792_vm2, %v4957_v44 }
 0xa81   :  { %21957 = vmatpush3.xpose.msk.msra.mxu0 %vm792_vm2, %v5115_v27  ;;  %21958 = vmatprep.mubr.msk.f32.mxu0 %vm24916_vm1, %v28433_v58 }
 0xa82   :  { %21966 = vmatprep.subr.mxu0 %v28433_v58  ;;  %v5269_v50 = vpop.permute.xlu1 %5268 }
 0xa84   :  { %21959 = vmatmul.mubr.msk.f32.vlgmr.msra.gmra.mrb[82].mxu0 %vm792_vm2, %v5113_v1 }
 0xa85   :  { %21967 = vmatpush3.xpose.msk.msra.mxu0 %vm792_vm2, %v5271_v42  ;;  %21968 = vmatprep.mubr.msk.f32.mxu0 %vm24916_vm1, %v28433_v58 }
 0xa86   :  { %21976 = vmatprep.subr.mxu0 %v28433_v58 }
 0xa88   :  { %21969 = vmatmul.mubr.msk.f32.vlgmr.msra.gmra.mrb[84].mxu0 %vm792_vm2, %v5269_v50 }
 0xa89   :  { %21978 = vmatprep.mubr.msk.f32.mxu0 %vm24916_vm1, %v28433_v58 }
 0xa97   :  { %v26032_v7 = vpop.f32.mrb[50].mxu1 }
 0xa98   :  { %v21895_v49 = vpop.f32.mrb[51].mxu1 }
 0xa9b   :  { %v26034_v3 = vpop.f32.mrb[52].mxu1 }
 0xa9c   :  { %v21905_v15 = vpop.f32.mrb[53].mxu1 }
 0xadd   :  { %v26036_v41 = vpop.f32.mrb[70].mxu0 }
 0xade   :  { %v24166_v51 = vpack.i.bf16 %v26036_v41, %v26032_v7  ;;  %v21900_v57 = vpop.f32.mrb[71].mxu0 }
 0xae1   :  { %v26040_v4 = vpop.f32.mrb[72].mxu0 }
 0xae2   :  { %v24181_v59 = vpack.i.bf16 %v26040_v4, %v26034_v3  ;;  %v21910_v6 = vpop.f32.mrb[73].mxu0 }
 0xae5   :  { %v26044_v2 = vpop.f32.mrb[54].mxu1 }
 0xae6   :  { %v21915_v9 = vpop.f32.mrb[55].mxu1 }
 0xb16   :  { %v26046_v11 = vpop.f32.mrb[74].mxu0 }
 0xb17   :  { %v24196_v16 = vpack.i.bf16 %v26046_v11, %v26044_v2  ;;  %v21920_v14 = vpop.f32.mrb[75].mxu0 }
 0xb1a   :  { %v26050_v17 = vpop.f32.mrb[56].mxu1 }
 0xb1b   :  { %v21925_v22 = vpop.f32.mrb[57].mxu1 }
 0xb1e   :  { %v4796_v23 = vpop.f32.mrb[58].mxu1 }
 0xb1f   :  { %v21935_v8 = vpop.f32.mrb[59].mxu1  ;;  %v5346_v46 = vsel %vm1401_vm3, %v4796_v23, -inf }
 0xb20   :  { %5347 = vmax.xlane.f32.xlu0 %v5346_v46 }
 0xb22   :  { %v4952_v52 = vpop.f32.mrb[60].mxu1 }
 0xb23   :  { %v21945_v29 = vpop.f32.mrb[61].mxu1  ;;  %v5352_v32 = vsel %vm1401_vm3, %v4952_v52, -inf }
 0xb24   :  { %5353 = vmax.xlane.f32.xlu0 %v5352_v32 }
 0xb26   :  { %v5108_v36 = vpop.f32.mrb[62].mxu1 }
 0xb27   :  { %v21955_v20 = vpop.f32.mrb[63].mxu1  ;;  %v5358_v42 = vsel %vm1401_vm3, %v5108_v36, -inf }
 0xb2a   :  { %v5264_v24 = vpop.f32.mrb[64].mxu1 }
 0xb2b   :  { %v21965_v39 = vpop.f32.mrb[65].mxu1  ;;  %v5364_v57 = vsel %vm1401_vm3, %v5264_v24, -inf }
 0xb4b   :  { %v26054_v35 = vpop.f32.mrb[76].mxu0 }
 0xb4c   :  { %v24211_v13 = vpack.i.bf16 %v26054_v35, %v26050_v17  ;;  %v21930_v26 = vpop.f32.mrb[77].mxu0 }
 0xb4f   :  { %v4874_v10 = vpop.f32.mrb[78].mxu0 }
 0xb50   :  { %v21940_v21 = vpop.f32.mrb[79].mxu0  ;;  %v5349_v38 = vsel %vm1401_vm3, %v4874_v10, -inf }
 0xb51   :  { %5350 = vmax.xlane.f32.xlu1 %v5349_v38 }
 0xb53   :  { %v26059_v44 = vpop.f32.mrb[80].mxu0 }
 0xb54   :  { %v21950_v18 = vpop.f32.mrb[81].mxu0  ;;  %v5355_v27 = vsel %vm1401_vm3, %v26059_v44, -inf }
 0xb55   :  { %5356 = vmax.xlane.f32.xlu0 %v5355_v27 }
 0xb57   :  { %v26063_v54 = vpop.f32.mrb[82].mxu0 }
 0xb58   :  { %v21960_v1 = vpop.f32.mrb[83].mxu0  ;;  %v5361_v50 = vsel %vm1401_vm3, %v26063_v54, -inf }
 0xb59   :  { %5359 = vmax.xlane.f32.xlu0 %v5358_v42  ;;  %5362 = vmax.xlane.f32.xlu1 %v5361_v50 }
 0xb5b   :  { %v26068_v49 = vpop.f32.mrb[84].mxu0 }
 0xb5c   :  { %v21970_v15 = vpop.f32.mrb[85].mxu0  ;;  %v5367_v6 = vsel %vm1401_vm3, %v26068_v49, -inf }
 0xb5d   :  { %5365 = vmax.xlane.f32.xlu0 %v5364_v57 }
 0xb6a   :  { %5510 = vrot.lane.b32.xlu1 %v25419_v25, %s24918_s6 }
 0xb6e   :  { %5586 = vrot.lane.b32.xlu1 %v25317_v47, %s24918_s6 }
 0xb73   :  { %5434 = vrot.lane.b32.xlu0 %v25423_v31, %s24918_s6 }
 0xb92   :  { %5368 = vmax.xlane.f32.xlu1 %v5367_v6 }
 0xba3   :  { %5662 = vrot.lane.b32.xlu1 %v25314_v45, %s24918_s6 }
 0xbad   :  { %v5348_v9 = vpop.xlane.xlu0 %5347 }
 0xbae   :  { %v5370_v14 = vsub.f32 %v4796_v23, %v5348_v9 }
 0xbb0   :  { %v5378_v22 = vmul.f32 1.442695, %v5370_v14 }
 0xbb1   :  { %v5354_v8 = vpop.xlane.xlu0 %5353 }
 0xbb2   :  { %24441 = vpow2.f32 %v5378_v22  ;;  %v5372_v46 = vsub.f32 %v4952_v52, %v5354_v8  ;;  %v28434_v22 = vpack.i.bf16 %v25846_v12, %v25842_v5 }
 0xbb4   :  { %v5382_v25 = vmul.f32 1.442695, %v5372_v46 }
 0xbb6   :  { %24443 = vpow2.f32 %v5382_v25 }
 0xbbc   :  { %v26081_v29 = vpop.eup %24441 }
 0xbbd   :  { %v5394_v47 = vsel %vm1401_vm3, %v26081_v29, 0.0 }
 0xbbe   :  { %5395 = vadd.xlane.f32.xlu0 %v5394_v47 }
 0xbc0   :  { %v26085_v31 = vpop.eup %24443 }
 0xbc1   :  { %v5400_v32 = vsel %vm1401_vm3, %v26085_v31, 0.0 }
 0xbc2   :  { %5401 = vadd.xlane.f32.xlu0 %v5400_v32 }
 0xbd8   :  { %5738 = vrot.lane.b32.xlu0 %v25340_v56, %s24918_s6 }
 0xbde   :  { %v5351_v45 = vpop.xlane.xlu1 %5350 }
 0xbdf   :  { %v5371_v23 = vsub.f32 %v4874_v10, %v5351_v45 }
 0xbe1   :  { %v5380_v52 = vmul.f32 1.442695, %v5371_v23 }
 0xbe2   :  { %v5357_v20 = vpop.xlane.xlu0 %5356 }
 0xbe3   :  { %24445 = vpow2.f32 %v5380_v52  ;;  %v5373_v6 = vsub.f32 %v26059_v44, %v5357_v20 }
 0xbe5   :  { %v5384_v9 = vmul.f32 1.442695, %v5373_v6 }
 0xbe6   :  { %v5360_v39 = vpop.xlane.xlu0 %5359  ;;  %v5363_v26 = vpop.xlane.xlu1 %5362 }
 0xbe7   :  { %v5374_v21 = vsub.f32 %v5108_v36, %v5360_v39  ;;  %v5375_v14 = vsub.f32 %v26063_v54, %v5363_v26 }
 0xbe9   :  { %v5386_v38 = vmul.f32 1.442695, %v5374_v21  ;;  %v5388_v8 = vmul.f32 1.442695, %v5375_v14  ;;  %v18859_v14 = vld [vmem:[#allocation7] sm:$0xff]  }
 0xbea   :  { %v5366_v18 = vpop.xlane.xlu0 %5365  ;;  %v5511_v27 = vpop.permute.xlu1 %5510 }
 0xbeb   :  { %24447 = vpow2.f32 %v5386_v38  ;;  %v5376_v1 = vsub.f32 %v5264_v24, %v5366_v18  ;;  %21977 = vmatpush3.msra.mxu0 %v5511_v27 }
 0xbec   :  { %21986 = vmatprep.subr.mxu0 %v28433_v58 }
 0xbed   :  { %v26092_v42 = vpop.eup %24445  ;;  %v5390_v50 = vmul.f32 1.442695, %v5376_v1 }
 0xbee   :  { %v5435_v56 = vpop.permute.xlu0 %5434  ;;  %v5397_v10 = vsel %vm1401_vm3, %v26092_v42, 0.0  ;;  %v5587_v46 = vpop.permute.xlu1 %5586 }
 0xbef   :  { %24449 = vpow2.f32 %v5390_v50  ;;  %21972 = vmatpush3.msra.mxu1 %v5435_v56  ;;  %5398 = vadd.xlane.f32.xlu1 %v5397_v10 }
 0xbf0   :  { %21981 = vmatprep.subr.mxu1 %v28433_v58  ;;  %24451 = vpow2.f32 %v5384_v9 }
 0xbf1   :  { %24453 = vpow2.f32 %v5388_v8  ;;  %v20002_v8 = vld [vmem:[#allocation7 + $0x10] sm:$0xff]  }
 0xbf5   :  { %v26097_v36 = vpop.eup %24447 }
 0xbf6   :  { %v5406_v24 = vsel %vm1401_vm3, %v26097_v36, 0.0 }
 0xbf7   :  { %5407 = vadd.xlane.f32.xlu0 %v5406_v24 }
 0xbf9   :  { %v26101_v15 = vpop.eup %24449 }
 0xbfa   :  { %v5412_v57 = vsel %vm1401_vm3, %v26101_v15, 0.0  ;;  %v24452_v47 = vpop.eup %24451 }
 0xbfb   :  { %5413 = vadd.xlane.f32.xlu0 %v5412_v57  ;;  %v5403_v32 = vsel %vm1401_vm3, %v24452_v47, 0.0 }
 0xc00   :  { %5814 = vrot.lane.b32.xlu1 %v25335_v53, %s24918_s6 }
 0xc11   :  { %5890 = vrot.lane.b32.xlu0 %v25361_v0, %s24918_s6  ;;  %v26117_v0 = vpop.eup %24453 }
 0xc12   :  { %v5409_v54 = vsel %vm1401_vm3, %v26117_v0, 0.0 }
 0xc15   :  { %24162 = vrot.lane.b32.xlu0 %v28434_v22, %s24918_s6  ;;  %v20001_v22 = vld [vmem:[#allocation7 + $0x8] sm:$0xff]  }
 0xc1f   :  { %v5369_v25 = vpop.xlane.xlu1 %5368 }
 0xc20   :  { %v5377_v53 = vsub.f32 %v26068_v49, %v5369_v25  ;;  %v28435_v49 = vpack.i.bf16 %v25850_v34, %v25844_v60 }
 0xc22   :  { %v5392_v44 = vmul.f32 1.442695, %v5377_v53  ;;  %v20004_v53 = vld [vmem:[#allocation7 + $0x20] sm:$0xff]  }
 0xc23   :  { %v5663_v34 = vpop.permute.xlu1 %5662 }
 0xc24   :  { %24455 = vpow2.f32 %v5392_v44  ;;  %5404 = vadd.xlane.f32.xlu1 %v5403_v32 }
 0xc28   :  { %5410 = vadd.xlane.f32.xlu1 %v5409_v54  ;;  %v20006_v54 = vld [vmem:[#allocation7 + $0x30] sm:$0xff]  }
 0xc2e   :  { %v26121_v5 = vpop.eup %24455 }
 0xc2f   :  { %v5415_v12 = vsel %vm1401_vm3, %v26121_v5, 0.0 }
 0xc30   :  { %5416 = vadd.xlane.f32.xlu1 %v5415_v12 }
 0xc41   :  { %5966 = vrot.lane.b32.xlu1 %v25354_v61, %s24918_s6 }
 0xc45   :  { %24167 = vrot.lane.b32.xlu1 %v24166_v51, %s24907_s25 }
 0xc49   :  { %24177 = vrot.lane.b32.xlu1 %v28435_v49, %s24918_s6 }
 0xc4b   :  { %v5396_v45 = vpop.xlane.xlu0 %5395 }
 0xc4c   :  { %24457 = vrcp.f32 %v5396_v45 }
 0xc4f   :  { %v5402_v23 = vpop.xlane.xlu0 %5401 }
 0xc50   :  { %24459 = vrcp.f32 %v5402_v23 }
 0xc53   :  { %v5739_v60 = vpop.permute.xlu0 %5738 }
 0xc56   :  { %v24458_v52 = vpop.eup %24457 }
 0xc57   :  { %v5426_v20 = vmul.f32 %v24458_v52, %v26081_v29 }
 0xc59   :  { %21974 = vmatmul.mubr.msk.f32.vlgmr.msra.gmra.mrb[66].mxu1 %vm1401_vm3, %v5426_v20  ;;  %v28436_v20 = vpack.i.bf16 %v25856_v43, %v25854_v55  ;;  %v28437_v55 = vpack.i.bf16 %v25866_v40, %v25860_v30 }
 0xc5a   :  { %v24460_v61 = vpop.eup %24459  ;;  %21982 = vmatpush3.msra.mxu1 %v5587_v46  ;;  %21983 = vmatprep.mubr.msk.f32.mxu1 %vm24916_vm1, %v28433_v58  ;;  %v20003_v46 = vld [vmem:[#allocation7 + $0x18] sm:$0xff]  }
 0xc5b   :  { %21991 = vmatprep.subr.mxu1 %v28433_v58  ;;  %v5428_v7 = vmul.f32 %v24460_v61, %v26085_v31 }
 0xc5d   :  { %21984 = vmatmul.mubr.msk.f32.vlgmr.msra.gmra.mrb[68].mxu1 %vm1401_vm3, %v5428_v7 }
 0xc5e   :  { %21992 = vmatpush3.msra.mxu1 %v5739_v60  ;;  %21993 = vmatprep.mubr.msk.f32.mxu1 %vm24916_vm1, %v28433_v58 }
 0xc5f   :  { %22001 = vmatprep.subr.mxu1 %v28433_v58 }
 0xc7c   :  { %v5399_v41 = vpop.xlane.xlu1 %5398 }
 0xc7d   :  { %24461 = vrcp.f32 %v5399_v41 }
 0xc80   :  { %v5815_v1 = vpop.permute.xlu1 %5814 }
 0xc84   :  { %v5408_v51 = vpop.xlane.xlu0 %5407 }
 0xc85   :  { %24463 = vrcp.f32 %v5408_v51 }
 0xc87   :  { %v24462_v29 = vpop.eup %24461 }
 0xc88   :  { %v5414_v39 = vpop.xlane.xlu0 %5413  ;;  %v5427_v26 = vmul.f32 %v24462_v29, %v26092_v42 }
 0xc89   :  { %24465 = vrcp.f32 %v5414_v39 }
 0xc8a   :  { %21979 = vmatmul.mubr.msk.f32.vlgmr.msra.gmra.mrb[86].mxu0 %vm1401_vm3, %v5427_v26 }
 0xc8b   :  { %21987 = vmatpush3.msra.mxu0 %v5663_v34  ;;  %21988 = vmatprep.mubr.msk.f32.mxu0 %vm24916_vm1, %v28433_v58 }
 0xc8c   :  { %21996 = vmatprep.subr.mxu0 %v28433_v58  ;;  %v5891_v38 = vpop.permute.xlu0 %5890 }
 0xc8f   :  { %v24464_v31 = vpop.eup %24463 }
 0xc90   :  { %v5430_v21 = vmul.f32 %v24464_v31, %v26097_v36 }
 0xc92   :  { %21994 = vmatmul.mubr.msk.f32.vlgmr.msra.gmra.mrb[70].mxu1 %vm1401_vm3, %v5430_v21 }
 0xc93   :  { %v24466_v18 = vpop.eup %24465  ;;  %22002 = vmatpush3.msra.mxu1 %v5891_v38  ;;  %22003 = vmatprep.mubr.msk.f32.mxu1 %vm24916_vm1, %v28433_v58 }
 0xc94   :  { %v5432_v27 = vmul.f32 %v24466_v18, %v26101_v15  ;;  %22618 = vmatprep.subr.bf16.mxu1 %v18859_v14 }
 0xc96   :  { %22004 = vmatmul.mubr.msk.f32.vlgmr.msra.gmra.mrb[72].mxu1 %vm1401_vm3, %v5432_v27 }
 0xc97   :  { %22620 = vmatpush3.bf16.msra.mxu1 %v18859_v14 }
 0xc98   :  { %22622 = vmatprep.subr.bf16.mxu1 %v20001_v22 }
 0xc9b   :  { %22624 = vmatpush3.bf16.msra.mxu1 %v20001_v22 }
 0xc9c   :  { %22626 = vmatprep.subr.bf16.mxu1 %v20002_v8 }
 0xc9f   :  { %22628 = vmatpush3.bf16.msra.mxu1 %v20002_v8 }
 0xca0   :  { %22630 = vmatprep.subr.bf16.mxu1 %v20003_v46 }
 0xca3   :  { %22632 = vmatpush3.bf16.msra.mxu1 %v20003_v46 }
 0xca4   :  { %22634 = vmatprep.subr.bf16.mxu1 %v20004_v53 }
 0xca7   :  { %22636 = vmatpush3.bf16.msra.mxu1 %v20004_v53 }
 0xcb1   :  { %v5405_v42 = vpop.xlane.xlu1 %5404 }
 0xcb2   :  { %24467 = vrcp.f32 %v5405_v42 }
 0xcb5   :  { %v5411_v50 = vpop.xlane.xlu1 %5410 }
 0xcb6   :  { %24469 = vrcp.f32 %v5411_v50 }
 0xcbc   :  { %v24468_v56 = vpop.eup %24467 }
 0xcbd   :  { %v5417_v10 = vpop.xlane.xlu1 %5416  ;;  %v5429_v36 = vmul.f32 %v24468_v56, %v24452_v47 }
 0xcbe   :  { %24471 = vrcp.f32 %v5417_v10 }
 0xcbf   :  { %21989 = vmatmul.mubr.msk.f32.vlgmr.msra.gmra.mrb[88].mxu0 %vm1401_vm3, %v5429_v36 }
 0xcc0   :  { %v24470_v24 = vpop.eup %24469  ;;  %21997 = vmatpush3.msra.mxu0 %v5815_v1  ;;  %21998 = vmatprep.mubr.msk.f32.mxu0 %vm24916_vm1, %v28433_v58 }
 0xcc1   :  { %v5967_v57 = vpop.permute.xlu1 %5966  ;;  %22006 = vmatprep.subr.mxu0 %v28433_v58  ;;  %v5431_v15 = vmul.f32 %v24470_v24, %v26117_v0  ;;  %v20005_v0 = vld [vmem:[#allocation7 + $0x28] sm:$0xff]  }
 0xcc2   :  { %22638 = vmatprep.subr.bf16.mxu1 %v20005_v0 }
 0xcc3   :  { %21999 = vmatmul.mubr.msk.f32.vlgmr.msra.gmra.mrb[90].mxu0 %vm1401_vm3, %v5431_v15  ;;  %22640 = vmatpush3.bf16.msra.mxu1 %v20005_v0 }
 0xcc4   :  { %22007 = vmatpush3.msra.mxu0 %v5967_v57  ;;  %22008 = vmatprep.mubr.msk.f32.mxu0 %vm24916_vm1, %v28433_v58 }
 0xcc5   :  { %22642 = vmatprep.subr.bf16.mxu1 %v20006_v54  ;;  %v24168_v2 = vpop.permute.xlu1 %24167 }
 0xcc6   :  { %v24170_v26 = vunpack.i.h.bf16 %v24168_v2  ;;  %v24169_v31 = vunpack.i.l.bf16 %v24168_v2 }
 0xcc7   :  { %22644 = vmatpush3.bf16.msra.mxu1 %v20006_v54 }
 0xcc8   :  { %v24472_v6 = vpop.eup %24471 }
 0xcc9   :  { %v5433_v9 = vmul.f32 %v24472_v6, %v26121_v5  ;;  %v20007_v5 = vld [vmem:[#allocation7 + $0x38] sm:$0xff]   ;;  %v24178_v42 = vpop.permute.xlu1 %24177 }
 0xcca   :  { %22646 = vmatprep.subr.bf16.mxu1 %v20007_v5  ;;  %v24180_v50 = vunpack.i.h.bf16 %v24178_v42  ;;  %v24179_v56 = vunpack.i.l.bf16 %v24178_v42 }
 0xccb   :  { %22009 = vmatmul.mubr.msk.f32.vlgmr.msra.gmra.mrb[92].mxu0 %vm1401_vm3, %v5433_v9  ;;  %22648 = vmatpush3.bf16.msra.mxu1 %v20007_v5 }
 0xccc   :  { %6967 = vmatprep.mubr.f32.mxu0 %v28433_v58  ;;  %v6140_v15 = vsel %vm792_vm2, %v25609_v63, %v24179_v56  ;;  %v6141_v6 = vsel %vm792_vm2, %v25611_v33, %v24180_v50  ;;  %v28442_v50 = vld [vmem:[#allocation25_spill] sm:$0xff] }
 0xd2c   :  { %v5506_v25 = vpop.f32.mrb[66].mxu1 }
 0xd2d   :  { %v21975_v47 = vpop.f32.mrb[67].mxu1 }
 0xd30   :  { %v5658_v44 = vpop.f32.mrb[68].mxu1 }
 0xd31   :  { %v21985_v32 = vpop.f32.mrb[69].mxu1 }
 0xd5d   :  { %v5582_v12 = vpop.f32.mrb[86].mxu0 }
 0xd5e   :  { %v24171_v49 = vpack.i.bf16 %v5582_v12, %v5506_v25  ;;  %v21980_v45 = vpop.f32.mrb[87].mxu0 }
 0xd60   :  { %24172 = vrot.lane.b32.xlu0 %v24171_v49, %s24917_s3 }
 0xd64   :  { %24182 = vrot.lane.b32.xlu0 %v24181_v59, %s24907_s25  ;;  %v24163_v59 = vpop.permute.xlu0 %24162 }
 0xd65   :  { %v5810_v23 = vpop.f32.mrb[70].mxu1  ;;  %v24165_v11 = vunpack.i.h.bf16 %v24163_v59 }
 0xd66   :  { %v21995_v52 = vpop.f32.mrb[71].mxu1 }
 0xd67   :  { %v6139_v35 = vsel %vm792_vm2, %v25607_v62, %v24165_v11 }
 0xd68   :  { %24192 = vrot.lane.b32.xlu0 %v28436_v20, %s24918_s6  ;;  %v6148_v38 = vsel %vm6146_vm4, %v6139_v35, %v24170_v26 }
 0xd69   :  { %v5962_v61 = vpop.f32.mrb[72].mxu1 }
 0xd6a   :  { %v22005_v7 = vpop.f32.mrb[73].mxu1 }
 0xd92   :  { %v5734_v60 = vpop.f32.mrb[88].mxu0 }
 0xd93   :  { %v24186_v34 = vpack.i.bf16 %v5734_v60, %v5658_v44  ;;  %v21990_v41 = vpop.f32.mrb[89].mxu0 }
 0xd95   :  { %24187 = vrot.lane.b32.xlu1 %v24186_v34, %s24917_s3 }
 0xd96   :  { %v5886_v51 = vpop.f32.mrb[90].mxu0 }
 0xd97   :  { %v24201_v29 = vpack.i.bf16 %v5886_v51, %v5810_v23  ;;  %v22000_v39 = vpop.f32.mrb[91].mxu0 }
 0xd99   :  { %24197 = vrot.lane.b32.xlu1 %v24196_v16, %s24907_s25  ;;  %24202 = vrot.lane.b32.xlu0 %v24201_v29, %s24917_s3  ;;  %v24164_v16 = vunpack.i.l.bf16 %v24163_v59 }
 0xd9b   :  { %v6138_v17 = vsel %vm792_vm2, %v25605_v37, %v24164_v16  ;;  %v28439_v16 = vld [vmem:[#allocation26_spill] sm:$0xff] }
 0xd9d   :  { %24207 = vrot.lane.b32.xlu1 %v28437_v55, %s24918_s6  ;;  %24212 = vrot.lane.b32.xlu0 %v24211_v13, %s24907_s25  ;;  %v6147_v13 = vsel %vm6146_vm4, %v6138_v17, %v24169_v31  ;;  %v28440_v31 = vld [vmem:[#allocation24_spill] sm:$0xff] }
 0xd9e   :  { %v6038_v43 = vpop.f32.mrb[92].mxu0 }
 0xd9f   :  { %v24216_v3 = vpack.i.bf16 %v6038_v43, %v5962_v61  ;;  %v22010_v4 = vpop.f32.mrb[93].mxu0 }
 0xda0   :  { %v18711_v4 = vld [vmem:[#allocation2 + $0x7] ss:$0 sm:$0xff] }
 0xda1   :  { %24217 = vrot.lane.b32.xlu1 %v24216_v3, %s24917_s3 }
 0xdd2   :  { %v24173_v21 = vpop.permute.xlu0 %24172 }
 0xdd3   :  { %v24175_v30 = vunpack.i.h.bf16 %v24173_v21  ;;  %v24174_v40 = vunpack.i.l.bf16 %v24173_v21 }
 0xdd5   :  { %v6156_v18 = vsel %vm6155_vm5, %v6147_v13, %v24174_v40  ;;  %v6157_v27 = vsel %vm6155_vm5, %v6148_v38, %v24175_v30  ;;  %v28441_v13 = vld [vmem:[#allocation27_spill] sm:$0xff] }
 0xdd6   :  { %22043 = vmatprep.mubr.f32.mxu1 %v6156_v18  ;;  %v24183_v1 = vpop.permute.xlu0 %24182 }
 0xdd7   :  { %22044 = vmatmul.mubr.f32.vlgmr.msra.gmra.mrb[74].mxu1 %v6157_v27  ;;  %v24185_v10 = vunpack.i.h.bf16 %v24183_v1  ;;  %v24184_v36 = vunpack.i.l.bf16 %v24183_v1 }
 0xdd9   :  { %v6149_v22 = vsel %vm6146_vm4, %v6140_v15, %v24184_v36  ;;  %v6150_v8 = vsel %vm6146_vm4, %v6141_v6, %v24185_v10  ;;  %v28443_v10 = vld [vmem:[#allocation29_spill] sm:$0xff] }
 0xdda   :  { %v24193_v37 = vpop.permute.xlu0 %24192 }
 0xddb   :  { %v24195_v9 = vunpack.i.h.bf16 %v24193_v37  ;;  %v24194_v14 = vunpack.i.l.bf16 %v24193_v37 }
 0xddd   :  { %v6142_v33 = vsel %vm792_vm2, %v25613_v48, %v24194_v14  ;;  %v6143_v54 = vsel %vm792_vm2, %v25615_v19, %v24195_v9  ;;  %v28438_v19 = vld [vmem:[#allocation36_spill] sm:$0xff]  ;;  %v28445_v9 = vld [vmem:[#allocation31_spill] sm:$0xff] }
 0xe07   :  { %v24188_v24 = vpop.permute.xlu1 %24187 }
 0xe08   :  { %v24190_v57 = vunpack.i.h.bf16 %v24188_v24  ;;  %v24189_v62 = vunpack.i.l.bf16 %v24188_v24  ;;  %v28444_v24 = vld [vmem:[#allocation28_spill] sm:$0xff] }
 0xe0a   :  { %v6158_v46 = vsel %vm6155_vm5, %v6149_v22, %v24189_v62  ;;  %v6159_v25 = vsel %vm6155_vm5, %v6150_v8, %v24190_v57  ;;  %v28446_v22 = vld [vmem:[#allocation30_spill] sm:$0xff] }
 0xe0b   :  { %v24198_v47 = vpop.permute.xlu1 %24197  ;;  %22046 = vmatprep.mubr.f32.mxu1 %v6158_v46  ;;  %v24203_v53 = vpop.permute.xlu0 %24202  ;;  %v6437_v46 = vld [vmem:[#allocation8] sm:$0xff] }
 0xe0c   :  { %v24200_v44 = vunpack.i.h.bf16 %v24198_v47  ;;  %v24199_v32 = vunpack.i.l.bf16 %v24198_v47  ;;  %v24205_v0 = vunpack.i.h.bf16 %v24203_v53  ;;  %v24204_v63 = vunpack.i.l.bf16 %v24203_v53  ;;  %22047 = vmatmul.mubr.f32.gmra.mrb[76].mxu1 %v6159_v25  ;;  %v6445_v25 = vld [vmem:[#allocation8 + $0x40] sm:$0xff]  ;;  %v6438_v47 = vld [vmem:[#allocation8 + $0x8] sm:$0xff] }
 0xe0d   :  { %v23853_v53 = vcombine.high %v6437_v46, %v6445_v25 }
 0xe0e   :  { %v6151_v5 = vsel %vm6146_vm4, %v6142_v33, %v24199_v32  ;;  %v6152_v12 = vsel %vm6146_vm4, %v6143_v54, %v24200_v44  ;;  %v23854_v44 = vcombine.low %v6437_v46, %v6445_v25  ;;  %v6446_v32 = vld [vmem:[#allocation8 + $0x48] sm:$0xff]  ;;  %v6541_v46 = vld [vmem:[#allocation8 + $0x340] sm:$0xff] }
 0xe0f   :  { %v24208_v49 = vpop.permute.xlu1 %24207  ;;  %v24213_v45 = vpop.permute.xlu0 %24212  ;;  %v6160_v23 = vsel %vm6155_vm5, %v6151_v5, %v24204_v63  ;;  %v6161_v52 = vsel %vm6155_vm5, %v6152_v12, %v24205_v0  ;;  %v6453_v0 = vld [vmem:[#allocation8 + $0x80] sm:$0xff]  ;;  %v23869_v33 = vcombine.high %v6438_v47, %v6446_v32  ;;  %v23870_v54 = vcombine.low %v6438_v47, %v6446_v32  ;;  %v6454_v12 = vld [vmem:[#allocation8 + $0x88] sm:$0xff]  ;;  %22650 = vmatprep.subr.bf16.mxu0 %v23853_v53 }
 0xe10   :  { %v24210_v20 = vunpack.i.h.bf16 %v24208_v49  ;;  %v24209_v61 = vunpack.i.l.bf16 %v24208_v49  ;;  %22049 = vmatprep.mubr.f32.mxu1 %v6160_v23  ;;  %v24215_v7 = vunpack.i.h.bf16 %v24213_v45  ;;  %v24214_v60 = vunpack.i.l.bf16 %v24213_v45  ;;  %v6461_v63 = vld [vmem:[#allocation8 + $0xc0] sm:$0xff]  ;;  %v6462_v49 = vld [vmem:[#allocation8 + $0xc8] sm:$0xff]  ;;  %22652 = vmatpush1.bf16.msra.mxu0 %v23854_v44 }
 0xe11   :  { %22050 = vmatmul.mubr.f32.gmra.mrb[78].mxu1 %v6161_v52  ;;  %v23855_v5 = vcombine.high %v6453_v0, %v6461_v63  ;;  %v6469_v45 = vld [vmem:[#allocation8 + $0x100] sm:$0xff]  ;;  %v23871_v23 = vcombine.high %v6454_v12, %v6462_v49  ;;  %22682 = vmatprep.subr.bf16.mxu1 %v23869_v33  ;;  %v6534_v25 = vld [vmem:[#allocation8 + $0x308] sm:$0xff] }
 0xe12   :  { %v6144_v48 = vsel %vm792_vm2, %v25617_v28, %v24209_v61  ;;  %v6145_v34 = vsel %vm792_vm2, %v28438_v19, %v24210_v20  ;;  %v6477_v52 = vld [vmem:[#allocation8 + $0x140] sm:$0xff]  ;;  %v6470_v20 = vld [vmem:[#allocation8 + $0x108] sm:$0xff]  ;;  %22684 = vmatpush1.bf16.msra.mxu1 %v23870_v54 }
 0xe13   :  { %v24218_v41 = vpop.permute.xlu1 %24217  ;;  %v6153_v39 = vsel %vm6146_vm4, %v6144_v48, %v24214_v60  ;;  %v6154_v55 = vsel %vm6146_vm4, %v6145_v34, %v24215_v7  ;;  %v6478_v61 = vld [vmem:[#allocation8 + $0x148] sm:$0xff]  ;;  %v23856_v7 = vcombine.low %v6453_v0, %v6461_v63  ;;  %22654 = vmatprep.subr.bf16.mxu0 %v23855_v5  ;;  %v23872_v60 = vcombine.low %v6454_v12, %v6462_v49  ;;  %v6549_v63 = vld [vmem:[#allocation8 + $0x380] sm:$0xff] }
 0xe14   :  { %v24220_v51 = vunpack.i.h.bf16 %v24218_v41  ;;  %v24219_v29 = vunpack.i.l.bf16 %v24218_v41  ;;  %v23857_v48 = vcombine.high %v6469_v45, %v6477_v52  ;;  %22686 = vmatprep.subr.bf16.mxu1 %v23871_v23  ;;  %v23873_v19 = vcombine.high %v6470_v20, %v6478_v61  ;;  %v6542_v53 = vld [vmem:[#allocation8 + $0x348] sm:$0xff]  ;;  %v6557_v33 = vld [vmem:[#allocation8 + $0x3c0] sm:$0xff] }
 0xe15   :  { %22656 = vmatpush1.bf16.msra.mxu0 %v23856_v7  ;;  %v23858_v34 = vcombine.low %v6469_v45, %v6477_v52  ;;  %v23874_v41 = vcombine.low %v6470_v20, %v6478_v61  ;;  %v23881_v32 = vcombine.high %v6534_v25, %v6542_v53  ;;  %v23882_v0 = vcombine.low %v6534_v25, %v6542_v53  ;;  %v6550_v54 = vld [vmem:[#allocation8 + $0x388] sm:$0xff]  ;;  %v6456_v25 = vld [vmem:[#allocation8 + $0x98] sm:$0xff] }
 0xe16   :  { %v6162_v43 = vsel %vm6155_vm5, %v6153_v39, %v24219_v29  ;;  %v6163_v3 = vsel %vm6155_vm5, %v6154_v55, %v24220_v51  ;;  %22688 = vmatpush1.bf16.msra.mxu1 %v23872_v60  ;;  %22658 = vmatprep.subr.bf16.mxu0 %v23857_v48  ;;  %v23867_v5 = vcombine.high %v6549_v63, %v6557_v33  ;;  %v6558_v12 = vld [vmem:[#allocation8 + $0x3c8] sm:$0xff] }
 0xe17   :  { %22052 = vmatprep.mubr.f32.mxu1 %v6162_v43  ;;  %22690 = vmatprep.subr.bf16.mxu1 %v23873_v19  ;;  %v23868_v49 = vcombine.low %v6549_v63, %v6557_v33  ;;  %v23883_v45 = vcombine.high %v6550_v54, %v6558_v12  ;;  %v23884_v23 = vcombine.low %v6550_v54, %v6558_v12  ;;  %v6471_v63 = vld [vmem:[#allocation8 + $0x110] sm:$0xff]  ;;  %v6480_v33 = vld [vmem:[#allocation8 + $0x158] sm:$0xff] }
 0xe18   :  { %22053 = vmatmul.mubr.f32.gmra.mrb[80].mxu1 %v6163_v3 }
 0xe19   :  { %7080 = vmatprep.mubr.f32.mxu1 %v28433_v58  ;;  %22660 = vmatpush1.bf16.msra.mxu0 %v23858_v34 }
 0xe1a   :  { %22692 = vmatpush1.bf16.msra.mxu1 %v23874_v41 }
 0xeaa   :  { %v22045_v28 = vpop.f32.mrb[74].mxu1 }
 0xeab   :  { %v6275_v59 = vadd.f32 %v22045_v28, %v18711_v4  ;;  %v6269_v2 = vpop.f32.mrb[75].mxu1 }
 0xeac   :  { %v6270_v11 = vadd.f32 %v18711_v4, %v6269_v2  ;;  %v6493_v2 = vld [vmem:[#allocation8 + $0x1c0] sm:$0xff] }
 0xead   :  { %v26225_v26 = vadd.f32 %v6275_v59, %v28439_v16  ;;  %v6485_v59 = vld [vmem:[#allocation8 + $0x180] sm:$0xff] }
 0xeae   :  { %v26228_v21 = vadd.f32 %v6270_v11, %v28440_v31  ;;  %v6486_v11 = vld [vmem:[#allocation8 + $0x188] sm:$0xff]  ;;  %v23859_v16 = vcombine.high %v6485_v59, %v6493_v2 }
 0xeaf   :  { %6320 = vadd.xlane.f32.xlu1 %v26225_v26  ;;  %v6494_v31 = vld [vmem:[#allocation8 + $0x1c8] sm:$0xff] }
 0xeb0   :  { %6318 = vadd.xlane.f32.xlu0 %v26228_v21  ;;  %22662 = vmatprep.subr.bf16.mxu0 %v23859_v16 }
 0xedf   :  { %v22048_v30 = vpop.f32.mrb[76].mxu1 }
 0xee0   :  { %v6279_v40 = vpop.f32.mrb[77].mxu1  ;;  %v6285_v35 = vadd.f32 %v22048_v30, %v18711_v4  ;;  %v23860_v30 = vcombine.low %v6485_v59, %v6493_v2 }
 0xee1   :  { %v6280_v17 = vadd.f32 %v18711_v4, %v6279_v40  ;;  %v23875_v40 = vcombine.high %v6486_v11, %v6494_v31 }
 0xee2   :  { %v26237_v56 = vadd.f32 %v6285_v35, %v28442_v50  ;;  %22664 = vmatpush1.bf16.msra.mxu0 %v23860_v30  ;;  %v6502_v35 = vld [vmem:[#allocation8 + $0x208] sm:$0xff]  ;;  %v6517_v50 = vld [vmem:[#allocation8 + $0x280] sm:$0xff]  ;;  %v6439_v30 = vld [vmem:[#allocation8 + $0x10] sm:$0xff] }
 0xee3   :  { %v26233_v38 = vadd.f32 %v6280_v17, %v28441_v13  ;;  %22694 = vmatprep.subr.bf16.mxu1 %v23875_v40  ;;  %v6509_v17 = vld [vmem:[#allocation8 + $0x240] sm:$0xff]  ;;  %v6447_v40 = vld [vmem:[#allocation8 + $0x50] sm:$0xff] }
 0xee4   :  { %v22051_v18 = vpop.f32.mrb[78].mxu1 }
 0xee5   :  { %v6295_v27 = vadd.f32 %v22051_v18, %v18711_v4  ;;  %6322 = vadd.xlane.f32.xlu0 %v26233_v38  ;;  %v6289_v1 = vpop.f32.mrb[79].mxu1  ;;  %v6510_v18 = vld [vmem:[#allocation8 + $0x248] sm:$0xff] }
 0xee6   :  { %v6290_v42 = vadd.f32 %v18711_v4, %v6289_v1  ;;  %v23877_v1 = vcombine.high %v6502_v35, %v6510_v18 }
 0xee7   :  { %v26240_v36 = vadd.f32 %v6295_v27, %v28443_v10  ;;  %v6525_v10 = vld [vmem:[#allocation8 + $0x2c0] sm:$0xff] }
 0xee8   :  { %v26245_v57 = vadd.f32 %v6290_v42, %v28444_v24  ;;  %v23878_v42 = vcombine.low %v6502_v35, %v6510_v18  ;;  %v23863_v24 = vcombine.high %v6517_v50, %v6525_v10 }
 0xee9   :  { %6324 = vadd.xlane.f32.xlu0 %v26237_v56  ;;  %6328 = vadd.xlane.f32.xlu1 %v26240_v36 }
 0xeeb   :  { %v22054_v37 = vpop.f32.mrb[80].mxu1 }
 0xeec   :  { %v6305_v62 = vadd.f32 %v22054_v37, %v18711_v4  ;;  %v6299_v15 = vpop.f32.mrb[81].mxu1  ;;  %v6518_v37 = vld [vmem:[#allocation8 + $0x288] sm:$0xff] }
 0xeed   :  { %v6300_v6 = vadd.f32 %v18711_v4, %v6299_v15  ;;  %6326 = vadd.xlane.f32.xlu0 %v26245_v57  ;;  %v23864_v15 = vcombine.low %v6517_v50, %v6525_v10 }
 0xeee   :  { %v26249_v14 = vadd.f32 %v6305_v62, %v28445_v9  ;;  %v6526_v62 = vld [vmem:[#allocation8 + $0x2c8] sm:$0xff] }
 0xeef   :  { %v26252_v8 = vadd.f32 %v6300_v6, %v28446_v22  ;;  %v23879_v6 = vcombine.high %v6518_v37, %v6526_v62  ;;  %v23880_v9 = vcombine.low %v6518_v37, %v6526_v62  ;;  %v6533_v22 = vld [vmem:[#allocation8 + $0x300] sm:$0xff] }
 0xef0   :  { %6332 = vadd.xlane.f32.xlu1 %v26249_v14  ;;  %v23865_v47 = vcombine.high %v6533_v22, %v6541_v46  ;;  %v23866_v44 = vcombine.low %v6533_v22, %v6541_v46  ;;  %v6463_v46 = vld [vmem:[#allocation8 + $0xd0] sm:$0xff] }
 0xef1   :  { %6330 = vadd.xlane.f32.xlu0 %v26252_v8 }
 0xf3c   :  { %v6321_v51 = vpop.xlane.xlu1 %6320 }
 0xf3d   :  { %v6336_v29 = vmul.f32 0.0078125, %v6321_v51  ;;  %v6319_v39 = vpop.xlane.xlu0 %6318 }
 0xf3e   :  { %v6335_v55 = vmul.f32 0.0078125, %v6319_v39 }
 0xf3f   :  { %v26257_v43 = vsub.f32 %v26225_v26, %v6336_v29  ;;  %v23876_v26 = vcombine.low %v6486_v11, %v6494_v31 }
 0xf40   :  { %v26260_v3 = vsub.f32 %v26228_v21, %v6335_v55  ;;  %v6501_v21 = vld [vmem:[#allocation8 + $0x200] sm:$0xff] }
 0xf41   :  { %v6352_v4 = vmul.f32 %v26257_v43, %v26257_v43  ;;  %22696 = vmatpush1.bf16.msra.mxu1 %v23876_v26  ;;  %v23861_v13 = vcombine.high %v6501_v21, %v6509_v17  ;;  %v23862_v27 = vcombine.low %v6501_v21, %v6509_v17  ;;  %v6440_v26 = vld [vmem:[#allocation8 + $0x18] sm:$0xff]  ;;  %v23885_v21 = vcombine.high %v6439_v30, %v6447_v40 }
 0xf42   :  { %v6351_v28 = vmul.f32 %v26260_v3, %v26260_v3  ;;  %22698 = vmatprep.subr.bf16.mxu1 %v23877_v1  ;;  %v6448_v17 = vld [vmem:[#allocation8 + $0x58] sm:$0xff] }
 0xf43   :  { %6361 = vadd.xlane.f32.xlu1 %v6352_v4  ;;  %22666 = vmatprep.subr.bf16.mxu0 %v23861_v13  ;;  %v23901_v35 = vcombine.high %v6440_v26, %v6448_v17  ;;  %v23902_v13 = vcombine.low %v6440_v26, %v6448_v17 }
 0xf44   :  { %6359 = vadd.xlane.f32.xlu0 %v6351_v28  ;;  %22668 = vmatpush1.bf16.msra.mxu0 %v23862_v27 }
 0xf45   :  { %22700 = vmatpush1.bf16.msra.mxu1 %v23878_v42  ;;  %22670 = vmatprep.subr.bf16.mxu0 %v23863_v24  ;;  %v26296_v24 = vld [vmem:[#allocation2 + $0x8] ss:$0 sm:$0xff] }
 0xf46   :  { %22702 = vmatprep.subr.bf16.mxu1 %v23879_v6  ;;  %v26300_v6 = vld [vmem:[#allocation2 + $0x9] ss:$0 sm:$0xff] }
 0xf48   :  { %22672 = vmatpush1.bf16.msra.mxu0 %v23864_v15 }
 0xf49   :  { %22704 = vmatpush1.bf16.msra.mxu1 %v23880_v9  ;;  %22674 = vmatprep.subr.bf16.mxu0 %v23865_v47  ;;  %v6455_v9 = vld [vmem:[#allocation8 + $0x90] sm:$0xff]  ;;  %v6464_v47 = vld [vmem:[#allocation8 + $0xd8] sm:$0xff] }
 0xf4a   :  { %22706 = vmatprep.subr.bf16.mxu1 %v23881_v32  ;;  %v23887_v32 = vcombine.high %v6455_v9, %v6463_v46  ;;  %v23904_v12 = vcombine.low %v6456_v25, %v6464_v47 }
 0xf4c   :  { %22676 = vmatpush1.bf16.msra.mxu0 %v23866_v44 }
 0xf4d   :  { %22708 = vmatpush1.bf16.msra.mxu1 %v23882_v0  ;;  %22678 = vmatprep.subr.bf16.mxu0 %v23867_v5  ;;  %v23903_v0 = vcombine.high %v6456_v25, %v6464_v47  ;;  %v23888_v5 = vcombine.low %v6455_v9, %v6463_v46  ;;  %v26318_v25 = vld [vmem:[#allocation8 + $0x20] sm:$0xff] }
 0xf4e   :  { %22710 = vmatprep.subr.bf16.mxu1 %v23883_v45  ;;  %v26320_v47 = vld [vmem:[#allocation8 + $0x60] sm:$0xff] }
 0xf50   :  { %22680 = vmatpush1.bf16.msra.mxu0 %v23868_v49 }
 0xf51   :  { %22712 = vmatpush1.bf16.msra.mxu1 %v23884_v23  ;;  %22714 = vmatprep.subr.bf16.mxu0 %v23885_v21  ;;  %v6487_v23 = vld [vmem:[#allocation8 + $0x190] sm:$0xff] }
 0xf52   :  { %22746 = vmatprep.subr.bf16.mxu1 %v23901_v35  ;;  %v6543_v35 = vld [vmem:[#allocation8 + $0x350] sm:$0xff] }
 0xf72   :  { %v6323_v52 = vpop.xlane.xlu0 %6322 }
 0xf73   :  { %v6337_v20 = vmul.f32 0.0078125, %v6323_v52  ;;  %v6495_v52 = vld [vmem:[#allocation8 + $0x1d0] sm:$0xff] }
 0xf75   :  { %v26267_v61 = vsub.f32 %v26233_v38, %v6337_v20  ;;  %v6488_v20 = vld [vmem:[#allocation8 + $0x198] sm:$0xff] }
 0xf76   :  { %v6325_v7 = vpop.xlane.xlu0 %6324  ;;  %v6329_v60 = vpop.xlane.xlu1 %6328 }
 0xf77   :  { %v6338_v48 = vmul.f32 0.0078125, %v6325_v7  ;;  %v6340_v19 = vmul.f32 0.0078125, %v6329_v60  ;;  %v6353_v34 = vmul.f32 %v26267_v61, %v26267_v61  ;;  %v6496_v7 = vld [vmem:[#allocation8 + $0x1d8] sm:$0xff] }
 0xf79   :  { %v26272_v41 = vsub.f32 %v26237_v56, %v6338_v48  ;;  %6363 = vadd.xlane.f32.xlu0 %v6353_v34  ;;  %v26275_v29 = vsub.f32 %v26240_v36, %v6340_v19  ;;  %v23891_v19 = vcombine.high %v6487_v23, %v6495_v52  ;;  %v23907_v34 = vcombine.high %v6488_v20, %v6496_v7 }
 0xf7a   :  { %v6327_v51 = vpop.xlane.xlu0 %6326 }
 0xf7b   :  { %v6339_v39 = vmul.f32 0.0078125, %v6327_v51  ;;  %v6354_v38 = vmul.f32 %v26272_v41, %v26272_v41  ;;  %v6356_v56 = vmul.f32 %v26275_v29, %v26275_v29  ;;  %v6503_v51 = vld [vmem:[#allocation8 + $0x210] sm:$0xff] }
 0xf7d   :  { %v26280_v55 = vsub.f32 %v26245_v57, %v6339_v39  ;;  %6365 = vadd.xlane.f32.xlu1 %v6354_v38  ;;  %v6333_v4 = vpop.xlane.xlu1 %6332  ;;  %v6511_v39 = vld [vmem:[#allocation8 + $0x250] sm:$0xff]  ;;  %v6504_v38 = vld [vmem:[#allocation8 + $0x218] sm:$0xff] }
 0xf7e   :  { %v6342_v28 = vmul.f32 0.0078125, %v6333_v4  ;;  %v6331_v59 = vpop.xlane.xlu0 %6330  ;;  %v6512_v4 = vld [vmem:[#allocation8 + $0x258] sm:$0xff] }
 0xf7f   :  { %v6341_v2 = vmul.f32 0.0078125, %v6331_v59  ;;  %v6355_v11 = vmul.f32 %v26280_v55, %v26280_v55  ;;  %v23908_v59 = vcombine.low %v6488_v20, %v6496_v7  ;;  %v23910_v26 = vcombine.low %v6504_v38, %v6512_v4 }
 0xf80   :  { %v26287_v36 = vsub.f32 %v26249_v14, %v6342_v28  ;;  %v23886_v14 = vcombine.low %v6439_v30, %v6447_v40  ;;  %v23892_v28 = vcombine.low %v6487_v23, %v6495_v52  ;;  %v6528_v30 = vld [vmem:[#allocation8 + $0x2d8] sm:$0xff]  ;;  %v23894_v40 = vcombine.low %v6503_v51, %v6511_v39 }
 0xf81   :  { %v26290_v16 = vsub.f32 %v26252_v8, %v6341_v2  ;;  %6369 = vadd.xlane.f32.xlu1 %v6356_v56  ;;  %6367 = vadd.xlane.f32.xlu0 %v6355_v11  ;;  %v23893_v2 = vcombine.high %v6503_v51, %v6511_v39  ;;  %v23909_v56 = vcombine.high %v6504_v38, %v6512_v4  ;;  %v6519_v11 = vld [vmem:[#allocation8 + $0x290] sm:$0xff] }
 0xf82   :  { %v6358_v57 = vmul.f32 %v26287_v36, %v26287_v36 }
 0xf83   :  { %v6357_v31 = vmul.f32 %v26290_v16, %v26290_v16 }
 0xf85   :  { %6373 = vadd.xlane.f32.xlu1 %v6358_v57  ;;  %6371 = vadd.xlane.f32.xlu0 %v6357_v31  ;;  %v6527_v57 = vld [vmem:[#allocation8 + $0x2d0] sm:$0xff]  ;;  %v6520_v31 = vld [vmem:[#allocation8 + $0x298] sm:$0xff] }
 0xf86   :  { %v23895_v21 = vcombine.high %v6519_v11, %v6527_v57  ;;  %v23911_v17 = vcombine.high %v6520_v31, %v6528_v30 }
 0xfd0   :  { %v6362_v8 = vpop.xlane.xlu1 %6361 }
 0xfd1   :  { %v6376_v18 = vmul.f32 0.0078125, %v6362_v8  ;;  %v6360_v27 = vpop.xlane.xlu0 %6359  ;;  %v6544_v8 = vld [vmem:[#allocation8 + $0x358] sm:$0xff] }
 0xfd2   :  { %v6375_v1 = vmul.f32 0.0078125, %v6360_v27  ;;  %v23912_v27 = vcombine.low %v6520_v31, %v6528_v30 }
 0xfd3   :  { %v6384_v42 = vadd.f32 1e-05, %v6376_v18  ;;  %v23896_v18 = vcombine.low %v6519_v11, %v6527_v57 }
 0xfd4   :  { %v6383_v50 = vadd.f32 1e-05, %v6375_v1 }
 0xfd5   :  { %24473 = vrsqrt.f32 %v6384_v42 }
 0xfd6   :  { %24475 = vrsqrt.f32 %v6383_v50  ;;  %v6551_v50 = vld [vmem:[#allocation8 + $0x390] sm:$0xff] }
 0xfdf   :  { %v24474_v10 = vpop.eup %24473 }
 0xfe0   :  { %v24476_v37 = vpop.eup %24475  ;;  %v6400_v62 = vmul.f32 %v24474_v10, %v26257_v43  ;;  %v6479_v43 = vld [vmem:[#allocation8 + $0x150] sm:$0xff] }
 0xfe1   :  { %v6399_v15 = vmul.f32 %v24476_v37, %v26260_v3  ;;  %v6472_v3 = vld [vmem:[#allocation8 + $0x118] sm:$0xff]  ;;  %v23889_v49 = vcombine.high %v6471_v63, %v6479_v43  ;;  %v23890_v60 = vcombine.low %v6471_v63, %v6479_v43  ;;  %v6559_v10 = vld [vmem:[#allocation8 + $0x3d0] sm:$0xff]  ;;  %v23917_v43 = vcombine.high %v26318_v25, %v26320_v47 }
 0xfe2   :  { %v6414_v53 = vmul.f32 %v26296_v24, %v6400_v62  ;;  %v23905_v45 = vcombine.high %v6472_v3, %v6480_v33  ;;  %v23906_v48 = vcombine.low %v6472_v3, %v6480_v33  ;;  %v6552_v37 = vld [vmem:[#allocation8 + $0x398] sm:$0xff] }
 0xfe3   :  { %v6413_v22 = vmul.f32 %v26296_v24, %v6399_v15  ;;  %v6560_v62 = vld [vmem:[#allocation8 + $0x3d8] sm:$0xff] }
 0xfe4   :  { %v26312_v54 = vadd.f32 %v26300_v6, %v6414_v53  ;;  %v23915_v46 = vcombine.high %v6552_v37, %v6560_v62  ;;  %v26322_v53 = vld [vmem:[#allocation8 + $0x28] sm:$0xff]  ;;  %v23916_v63 = vcombine.low %v6552_v37, %v6560_v62  ;;  %v23918_v37 = vcombine.low %v26318_v25, %v26320_v47 }
 0xfe5   :  { %v26305_v44 = vadd.f32 %v26300_v6, %v6413_v22  ;;  %v23899_v22 = vcombine.high %v6551_v50, %v6559_v10 }
 0xfe7   :  { %6968 = vmatmul.mubr.f32.vlgmr.msra.gmra.mrb[94].mxu0 %v26305_v44  ;;  %7081 = vmatmul.mubr.f32.vlgmr.msra.gmra.mrb[82].mxu1 %v26305_v44 }
 0xfe8   :  { %6973 = vmatprep.mubr.f32.mxu0 %v28433_v58  ;;  %7086 = vmatprep.mubr.f32.mxu1 %v28433_v58 }
 0xfe9   :  { %22716 = vmatpush1.bf16.msra.mxu0 %v23886_v14  ;;  %22748 = vmatpush1.bf16.msra.mxu1 %v23902_v13  ;;  %v6535_v14 = vld [vmem:[#allocation8 + $0x310] sm:$0xff]  ;;  %v6536_v13 = vld [vmem:[#allocation8 + $0x318] sm:$0xff] }
 0xfea   :  { %22718 = vmatprep.subr.bf16.mxu0 %v23887_v32  ;;  %22750 = vmatprep.subr.bf16.mxu1 %v23903_v0  ;;  %v23897_v1 = vcombine.high %v6535_v14, %v6543_v35  ;;  %v23913_v42 = vcombine.high %v6536_v13, %v6544_v8  ;;  %v23898_v15 = vcombine.low %v6535_v14, %v6543_v35  ;;  %v26324_v32 = vld [vmem:[#allocation8 + $0x68] sm:$0xff] }
 0xfeb   :  { %6974 = vmatmul.mubr.f32.gmra.mrb[96].mxu0 %v26312_v54  ;;  %7087 = vmatmul.mubr.f32.gmra.mrb[84].mxu1 %v26312_v54  ;;  %v23914_v9 = vcombine.low %v6536_v13, %v6544_v8  ;;  %v23900_v0 = vcombine.low %v6551_v50, %v6559_v10  ;;  %v23933_v3 = vcombine.high %v26322_v53, %v26324_v32  ;;  %v6458_v50 = vld [vmem:[#allocation8 + $0xa8] sm:$0xff] }
 0xfec   :  { %6979 = vmatprep.mubr.f32.mxu0 %v28433_v58  ;;  %7092 = vmatprep.mubr.f32.mxu1 %v28433_v58  ;;  %v6466_v10 = vld [vmem:[#allocation8 + $0xe8] sm:$0xff]  ;;  %v23934_v62 = vcombine.low %v26322_v53, %v26324_v32  ;;  %v6489_v53 = vld [vmem:[#allocation8 + $0x1a0] sm:$0xff] }
 0xfed   :  { %22720 = vmatpush1.bf16.msra.mxu0 %v23888_v5  ;;  %22752 = vmatpush1.bf16.msra.mxu1 %v23904_v12  ;;  %v6497_v32 = vld [vmem:[#allocation8 + $0x1e0] sm:$0xff] }
 0xfee   :  { %22722 = vmatprep.subr.bf16.mxu0 %v23889_v49  ;;  %22754 = vmatprep.subr.bf16.mxu1 %v23905_v45 }
 0xff1   :  { %22724 = vmatpush1.bf16.msra.mxu0 %v23890_v60  ;;  %22756 = vmatpush1.bf16.msra.mxu1 %v23906_v48 }
 0xff2   :  { %22726 = vmatprep.subr.bf16.mxu0 %v23891_v19  ;;  %22758 = vmatprep.subr.bf16.mxu1 %v23907_v34 }
 0xff5   :  { %22728 = vmatpush1.bf16.msra.mxu0 %v23892_v28  ;;  %22760 = vmatpush1.bf16.msra.mxu1 %v23908_v59 }
 0xff6   :  { %22730 = vmatprep.subr.bf16.mxu0 %v23893_v2  ;;  %22762 = vmatprep.subr.bf16.mxu1 %v23909_v56 }
 0xff9   :  { %22732 = vmatpush1.bf16.msra.mxu0 %v23894_v40  ;;  %22764 = vmatpush1.bf16.msra.mxu1 %v23910_v26 }
 0xffa   :  { %22734 = vmatprep.subr.bf16.mxu0 %v23895_v21  ;;  %22766 = vmatprep.subr.bf16.mxu1 %v23911_v17 }
 0xffd   :  { %22736 = vmatpush1.bf16.msra.mxu0 %v23896_v18  ;;  %22768 = vmatpush1.bf16.msra.mxu1 %v23912_v27 }
 0xffe   :  { %22738 = vmatprep.subr.bf16.mxu0 %v23897_v1  ;;  %22770 = vmatprep.subr.bf16.mxu1 %v23913_v42  ;;  %v6457_v42 = vld [vmem:[#allocation8 + $0xa0] sm:$0xff] }
0x1001   :  { %22740 = vmatpush1.bf16.msra.mxu0 %v23898_v15  ;;  %22772 = vmatpush1.bf16.msra.mxu1 %v23914_v9  ;;  %v23935_v15 = vcombine.high %v6458_v50, %v6466_v10  ;;  %v6473_v9 = vld [vmem:[#allocation8 + $0x120] sm:$0xff] }
0x1002   :  { %22742 = vmatprep.subr.bf16.mxu0 %v23899_v22  ;;  %22774 = vmatprep.subr.bf16.mxu1 %v23915_v46  ;;  %v6481_v22 = vld [vmem:[#allocation8 + $0x160] sm:$0xff]  ;;  %v6474_v46 = vld [vmem:[#allocation8 + $0x128] sm:$0xff] }
0x1003   :  { %v23921_v25 = vcombine.high %v6473_v9, %v6481_v22 }
0x1005   :  { %22744 = vmatpush1.bf16.msra.mxu0 %v23900_v0  ;;  %22776 = vmatpush1.bf16.msra.mxu1 %v23916_v63  ;;  %v6482_v0 = vld [vmem:[#allocation8 + $0x168] sm:$0xff] }
0x1006   :  { %v6364_v33 = vpop.xlane.xlu0 %6363  ;;  %22778 = vmatprep.subr.bf16.mxu0 %v23917_v43  ;;  %22810 = vmatprep.subr.bf16.mxu1 %v23933_v3  ;;  %v23936_v43 = vcombine.low %v6458_v50, %v6466_v10  ;;  %v23937_v47 = vcombine.high %v6474_v46, %v6482_v0  ;;  %v6490_v3 = vld [vmem:[#allocation8 + $0x1a8] sm:$0xff]  ;;  %v6451_v50 = vld [vmem:[#allocation8 + $0x70] sm:$0xff]  ;;  %v6444_v10 = vld [vmem:[#allocation8 + $0x38] sm:$0xff] }
0x1007   :  { %v6377_v5 = vmul.f32 0.0078125, %v6364_v33  ;;  %v6498_v33 = vld [vmem:[#allocation8 + $0x1e8] sm:$0xff] }
0x1009   :  { %v6385_v12 = vadd.f32 1e-05, %v6377_v5  ;;  %v23922_v5 = vcombine.low %v6473_v9, %v6481_v22  ;;  %v6459_v22 = vld [vmem:[#allocation8 + $0xb0] sm:$0xff] }
0x100a   :  { %v6366_v49 = vpop.xlane.xlu1 %6365 }
0x100b   :  { %24477 = vrsqrt.f32 %v6385_v12  ;;  %v6378_v45 = vmul.f32 0.0078125, %v6366_v49  ;;  %v23938_v12 = vcombine.low %v6474_v46, %v6482_v0  ;;  %v23923_v49 = vcombine.high %v6489_v53, %v6497_v32  ;;  %v6467_v46 = vld [vmem:[#allocation8 + $0xf0] sm:$0xff]  ;;  %v6460_v0 = vld [vmem:[#allocation8 + $0xb8] sm:$0xff] }
0x100d   :  { %v6386_v23 = vadd.f32 1e-05, %v6378_v45  ;;  %v23939_v45 = vcombine.high %v6490_v3, %v6498_v33 }
0x100e   :  { %v6370_v52 = vpop.xlane.xlu1 %6369  ;;  %v6368_v20 = vpop.xlane.xlu0 %6367 }
0x100f   :  { %24479 = vrsqrt.f32 %v6386_v23  ;;  %v6380_v7 = vmul.f32 0.0078125, %v6370_v52  ;;  %v6379_v60 = vmul.f32 0.0078125, %v6368_v20  ;;  %v6505_v23 = vld [vmem:[#allocation8 + $0x220] sm:$0xff]  ;;  %v6506_v20 = vld [vmem:[#allocation8 + $0x228] sm:$0xff] }
0x1010   :  { %v6513_v52 = vld [vmem:[#allocation8 + $0x260] sm:$0xff] }
0x1011   :  { %v6388_v48 = vadd.f32 1e-05, %v6380_v7  ;;  %v6387_v19 = vadd.f32 1e-05, %v6379_v60  ;;  %v6514_v7 = vld [vmem:[#allocation8 + $0x268] sm:$0xff]  ;;  %v23924_v60 = vcombine.low %v6489_v53, %v6497_v32  ;;  %v6475_v32 = vld [vmem:[#allocation8 + $0x130] sm:$0xff] }
0x1012   :  { %v6374_v34 = vpop.xlane.xlu1 %6373  ;;  %v6372_v51 = vpop.xlane.xlu0 %6371 }
0x1013   :  { %24481 = vrsqrt.f32 %v6388_v48  ;;  %v6382_v39 = vmul.f32 0.0078125, %v6374_v34  ;;  %v6381_v38 = vmul.f32 0.0078125, %v6372_v51  ;;  %v23940_v48 = vcombine.low %v6490_v3, %v6498_v33  ;;  %v6521_v51 = vld [vmem:[#allocation8 + $0x2a0] sm:$0xff]  ;;  %v6483_v3 = vld [vmem:[#allocation8 + $0x170] sm:$0xff]  ;;  %v6476_v33 = vld [vmem:[#allocation8 + $0x138] sm:$0xff] }
0x1014   :  { %24483 = vrsqrt.f32 %v6387_v19  ;;  %v23925_v19 = vcombine.high %v6505_v23, %v6513_v52  ;;  %v23941_v34 = vcombine.high %v6506_v20, %v6514_v7 }
0x1015   :  { %v24478_v4 = vpop.eup %24477  ;;  %v6389_v28 = vadd.f32 1e-05, %v6381_v38  ;;  %v6390_v2 = vadd.f32 1e-05, %v6382_v39  ;;  %v6529_v39 = vld [vmem:[#allocation8 + $0x2e0] sm:$0xff]  ;;  %v6522_v38 = vld [vmem:[#allocation8 + $0x2a8] sm:$0xff] }
0x1016   :  { %v6401_v59 = vmul.f32 %v24478_v4, %v26267_v61  ;;  %v6530_v4 = vld [vmem:[#allocation8 + $0x2e8] sm:$0xff] }
0x1017   :  { %24485 = vrsqrt.f32 %v6389_v28  ;;  %v23926_v28 = vcombine.low %v6505_v23, %v6513_v52  ;;  %v6491_v52 = vld [vmem:[#allocation8 + $0x1b0] sm:$0xff] }
0x1018   :  { %v6415_v56 = vmul.f32 %v26296_v24, %v6401_v59  ;;  %24487 = vrsqrt.f32 %v6390_v2  ;;  %v23942_v59 = vcombine.low %v6506_v20, %v6514_v7  ;;  %v23927_v2 = vcombine.high %v6521_v51, %v6529_v39  ;;  %v6499_v20 = vld [vmem:[#allocation8 + $0x1f0] sm:$0xff]  ;;  %v6492_v7 = vld [vmem:[#allocation8 + $0x1b8] sm:$0xff] }
0x1019   :  { %v24480_v11 = vpop.eup %24479 }
0x101a   :  { %v26333_v57 = vadd.f32 %v26300_v6, %v6415_v56  ;;  %v6402_v31 = vmul.f32 %v24480_v11, %v26272_v41  ;;  %v23943_v56 = vcombine.high %v6522_v38, %v6530_v4  ;;  %v6537_v11 = vld [vmem:[#allocation8 + $0x320] sm:$0xff] }
0x101c   :  { %v6416_v30 = vmul.f32 %v26296_v24, %v6402_v31  ;;  %6980 = vmatmul.mubr.f32.gmra.mrb[98].mxu0 %v26333_v57  ;;  %7093 = vmatmul.mubr.f32.gmra.mrb[86].mxu1 %v26333_v57  ;;  %v6545_v31 = vld [vmem:[#allocation8 + $0x360] sm:$0xff] }
0x101d   :  { %v24482_v40 = vpop.eup %24481  ;;  %6985 = vmatprep.mubr.f32.mxu0 %v28433_v58  ;;  %7098 = vmatprep.mubr.f32.mxu1 %v28433_v58 }
0x101e   :  { %v24484_v61 = vpop.eup %24483  ;;  %v26342_v26 = vadd.f32 %v26300_v6, %v6416_v30  ;;  %v6404_v21 = vmul.f32 %v24482_v40, %v26275_v29  ;;  %v6538_v30 = vld [vmem:[#allocation8 + $0x328] sm:$0xff] }
0x101f   :  { %v6403_v41 = vmul.f32 %v24484_v61, %v26280_v55  ;;  %v6546_v40 = vld [vmem:[#allocation8 + $0x368] sm:$0xff]  ;;  %v23928_v61 = vcombine.low %v6521_v51, %v6529_v39  ;;  %v6507_v39 = vld [vmem:[#allocation8 + $0x230] sm:$0xff] }
0x1020   :  { %6986 = vmatmul.mubr.f32.gmra.mrb[100].mxu0 %v26342_v26  ;;  %7099 = vmatmul.mubr.f32.gmra.mrb[88].mxu1 %v26342_v26  ;;  %v6418_v35 = vmul.f32 %v26296_v24, %v6404_v21  ;;  %v23944_v21 = vcombine.low %v6522_v38, %v6530_v4  ;;  %v6515_v38 = vld [vmem:[#allocation8 + $0x270] sm:$0xff]  ;;  %v6508_v4 = vld [vmem:[#allocation8 + $0x238] sm:$0xff] }
0x1021   :  { %v6417_v17 = vmul.f32 %v26296_v24, %v6403_v41  ;;  %6991 = vmatprep.mubr.f32.mxu0 %v28433_v58  ;;  %7104 = vmatprep.mubr.f32.mxu1 %v28433_v58  ;;  %v24486_v14 = vpop.eup %24485  ;;  %v23929_v41 = vcombine.high %v6537_v11, %v6545_v31 }
0x1022   :  { %v6405_v29 = vmul.f32 %v24486_v14, %v26290_v16  ;;  %v24488_v8 = vpop.eup %24487  ;;  %v26361_v55 = vadd.f32 %v26300_v6, %v6418_v35  ;;  %v6553_v14 = vld [vmem:[#allocation8 + $0x3a0] sm:$0xff] }
0x1023   :  { %v26353_v13 = vadd.f32 %v26300_v6, %v6417_v17  ;;  %v6406_v18 = vmul.f32 %v24488_v8, %v26287_v36  ;;  %v23945_v17 = vcombine.high %v6538_v30, %v6546_v40  ;;  %v6561_v35 = vld [vmem:[#allocation8 + $0x3e0] sm:$0xff]  ;;  %v6562_v8 = vld [vmem:[#allocation8 + $0x3e8] sm:$0xff] }
0x1024   :  { %v6419_v27 = vmul.f32 %v26296_v24, %v6405_v29  ;;  %v6554_v29 = vld [vmem:[#allocation8 + $0x3a8] sm:$0xff] }
0x1025   :  { %6992 = vmatmul.mubr.f32.gmra.mrb[102].mxu0 %v26353_v13  ;;  %7105 = vmatmul.mubr.f32.gmra.mrb[90].mxu1 %v26353_v13  ;;  %v6420_v16 = vmul.f32 %v26296_v24, %v6406_v18  ;;  %v6465_v24 = vld [vmem:[#allocation8 + $0xe0] sm:$0xff]  ;;  %v23930_v18 = vcombine.low %v6537_v11, %v6545_v31  ;;  %v6523_v31 = vld [vmem:[#allocation8 + $0x2b0] sm:$0xff] }
0x1026   :  { %6997 = vmatprep.mubr.f32.mxu0 %v28433_v58  ;;  %7110 = vmatprep.mubr.f32.mxu1 %v28433_v58  ;;  %v26371_v1 = vadd.f32 %v26300_v6, %v6419_v27  ;;  %v23920_v63 = vcombine.low %v6457_v42, %v6465_v24  ;;  %v23946_v27 = vcombine.low %v6538_v30, %v6546_v40  ;;  %v6531_v30 = vld [vmem:[#allocation8 + $0x2f0] sm:$0xff]  ;;  %v6524_v40 = vld [vmem:[#allocation8 + $0x2b8] sm:$0xff] }
0x1027   :  { %v26378_v36 = vadd.f32 %v26300_v6, %v6420_v16  ;;  %v23919_v6 = vcombine.high %v6457_v42, %v6465_v24  ;;  %v23931_v16 = vcombine.high %v6553_v14, %v6561_v35  ;;  %v23947_v42 = vcombine.high %v6554_v29, %v6562_v8  ;;  %v6443_v24 = vld [vmem:[#allocation8 + $0x30] sm:$0xff] }
0x1029   :  { %6998 = vmatmul.mubr.f32.gmra.mrb[104].mxu0 %v26361_v55  ;;  %7111 = vmatmul.mubr.f32.gmra.mrb[92].mxu1 %v26361_v55 }
0x102a   :  { %7003 = vmatprep.mubr.f32.mxu0 %v28433_v58  ;;  %7116 = vmatprep.mubr.f32.mxu1 %v28433_v58 }
0x102d   :  { %7004 = vmatmul.mubr.f32.gmra.mrb[106].mxu0 %v26371_v1  ;;  %7117 = vmatmul.mubr.f32.gmra.mrb[94].mxu1 %v26371_v1 }
0x102e   :  { %7009 = vmatprep.mubr.f32.mxu0 %v28433_v58  ;;  %7122 = vmatprep.mubr.f32.mxu1 %v28433_v58 }
0x1031   :  { %7010 = vmatmul.mubr.f32.gmra.mrb[108].mxu0 %v26378_v36  ;;  %7123 = vmatmul.mubr.f32.gmra.mrb[96].mxu1 %v26378_v36 }
0x1032   :  { %7193 = vmatprep.mubr.f32.mxu0 %v28433_v58  ;;  %7306 = vmatprep.mubr.f32.mxu1 %v28433_v58 }
0x1035   :  { %7194 = vmatmul.mubr.f32.vlgmr.msra.gmra.mrb[110].mxu0 %v26305_v44  ;;  %7307 = vmatmul.mubr.f32.vlgmr.msra.gmra.mrb[98].mxu1 %v26305_v44 }
0x1036   :  { %22780 = vmatpush1.bf16.msra.mxu0 %v23918_v37  ;;  %22812 = vmatpush1.bf16.msra.mxu1 %v23934_v62  ;;  %v6452_v37 = vld [vmem:[#allocation8 + $0x78] sm:$0xff]  ;;  %v23932_v62 = vcombine.low %v6553_v14, %v6561_v35  ;;  %v6539_v35 = vld [vmem:[#allocation8 + $0x330] sm:$0xff] }
0x1037   :  { %7199 = vmatprep.mubr.f32.mxu0 %v28433_v58  ;;  %7312 = vmatprep.mubr.f32.mxu1 %v28433_v58  ;;  %v23965_v9 = vcombine.high %v6444_v10, %v6452_v37 }
0x1038   :  { %22782 = vmatprep.subr.bf16.mxu0 %v23919_v6  ;;  %22814 = vmatprep.subr.bf16.mxu1 %v23935_v15  ;;  %v23948_v6 = vcombine.low %v6554_v29, %v6562_v8  ;;  %v23949_v15 = vcombine.high %v6443_v24, %v6451_v50  ;;  %v6547_v29 = vld [vmem:[#allocation8 + $0x370] sm:$0xff]  ;;  %v6540_v8 = vld [vmem:[#allocation8 + $0x338] sm:$0xff] }
0x1039   :  { %7200 = vmatmul.mubr.f32.gmra.mrb[112].mxu0 %v26312_v54  ;;  %7313 = vmatmul.mubr.f32.gmra.mrb[100].mxu1 %v26312_v54 }
0x103a   :  { %22784 = vmatpush1.bf16.msra.mxu0 %v23920_v63  ;;  %22816 = vmatpush1.bf16.msra.mxu1 %v23936_v43  ;;  %v6468_v63 = vld [vmem:[#allocation8 + $0xf8] sm:$0xff]  ;;  %v23950_v43 = vcombine.low %v6443_v24, %v6451_v50  ;;  %v6555_v50 = vld [vmem:[#allocation8 + $0x3b0] sm:$0xff] }
0x103b   :  { %7205 = vmatprep.mubr.f32.mxu0 %v28433_v58  ;;  %7318 = vmatprep.mubr.f32.mxu1 %v28433_v58  ;;  %v23967_v53 = vcombine.high %v6460_v0, %v6468_v63 }
0x103c   :  { %22786 = vmatprep.subr.bf16.mxu0 %v23921_v25  ;;  %22818 = vmatprep.subr.bf16.mxu1 %v23937_v47  ;;  %v23966_v25 = vcombine.low %v6444_v10, %v6452_v37  ;;  %v23951_v47 = vcombine.high %v6459_v22, %v6467_v46  ;;  %v6563_v10 = vld [vmem:[#allocation8 + $0x3f0] sm:$0xff]  ;;  %v6556_v37 = vld [vmem:[#allocation8 + $0x3b8] sm:$0xff] }
0x103d   :  { %7206 = vmatmul.mubr.f32.gmra.mrb[114].mxu0 %v26333_v57  ;;  %7319 = vmatmul.mubr.f32.gmra.mrb[102].mxu1 %v26333_v57 }
0x103e   :  { %22788 = vmatpush1.bf16.msra.mxu0 %v23922_v5  ;;  %22820 = vmatpush1.bf16.msra.mxu1 %v23938_v12  ;;  %v6484_v5 = vld [vmem:[#allocation8 + $0x178] sm:$0xff]  ;;  %v23952_v12 = vcombine.low %v6459_v22, %v6467_v46  ;;  %v23964_v46 = vcombine.low %v6555_v50, %v6563_v10 }
0x103f   :  { %7211 = vmatprep.mubr.f32.mxu0 %v28433_v58  ;;  %7324 = vmatprep.mubr.f32.mxu1 %v28433_v58  ;;  %v23969_v23 = vcombine.high %v6476_v33, %v6484_v5 }
0x1040   :  { %22790 = vmatprep.subr.bf16.mxu0 %v23923_v49  ;;  %22822 = vmatprep.subr.bf16.mxu1 %v23939_v45  ;;  %v23968_v49 = vcombine.low %v6460_v0, %v6468_v63  ;;  %v23953_v45 = vcombine.high %v6475_v32, %v6483_v3  ;;  %v20015_v63 = vld [vmem:[#allocation10 + $0x40] sm:$0xff]  }
0x1041   :  { %7212 = vmatmul.mubr.f32.gmra.mrb[116].mxu0 %v26342_v26  ;;  %7325 = vmatmul.mubr.f32.gmra.mrb[104].mxu1 %v26342_v26 }
0x1042   :  { %22792 = vmatpush1.bf16.msra.mxu0 %v23924_v60  ;;  %22824 = vmatpush1.bf16.msra.mxu1 %v23940_v48  ;;  %v6500_v60 = vld [vmem:[#allocation8 + $0x1f8] sm:$0xff]  ;;  %v23954_v48 = vcombine.low %v6475_v32, %v6483_v3  ;;  %v20032_v32 = vld [vmem:[#allocation10 + $0xc8] sm:$0xff]  }
0x1043   :  { %7217 = vmatprep.mubr.f32.mxu0 %v28433_v58  ;;  %7330 = vmatprep.mubr.f32.mxu1 %v28433_v58  ;;  %v23971_v51 = vcombine.high %v6492_v7, %v6500_v60  ;;  %v20008_v3 = vld [vmem:[#allocation10 + $0x8] sm:$0xff]  }
0x1044   :  { %22794 = vmatprep.subr.bf16.mxu0 %v23925_v19  ;;  %22826 = vmatprep.subr.bf16.mxu1 %v23941_v34  ;;  %v23970_v19 = vcombine.low %v6476_v33, %v6484_v5  ;;  %v23955_v34 = vcombine.high %v6491_v52, %v6499_v20  ;;  %v20024_v33 = vld [vmem:[#allocation10 + $0x88] sm:$0xff]   ;;  %v20017_v5 = vld [vmem:[#allocation10 + $0x50] sm:$0xff]  }
0x1045   :  { %7218 = vmatmul.mubr.f32.gmra.mrb[118].mxu0 %v26353_v13  ;;  %7331 = vmatmul.mubr.f32.gmra.mrb[106].mxu1 %v26353_v13 }
0x1046   :  { %22796 = vmatpush1.bf16.msra.mxu0 %v23926_v28  ;;  %22828 = vmatpush1.bf16.msra.mxu1 %v23942_v59  ;;  %v6516_v28 = vld [vmem:[#allocation8 + $0x278] sm:$0xff]  ;;  %v23956_v59 = vcombine.low %v6491_v52, %v6499_v20 }
0x1047   :  { %7223 = vmatprep.mubr.f32.mxu0 %v28433_v58  ;;  %7336 = vmatprep.mubr.f32.mxu1 %v28433_v58  ;;  %v23973_v11 = vcombine.high %v6508_v4, %v6516_v28  ;;  %v20034_v52 = vld [vmem:[#allocation10 + $0xd8] sm:$0xff]  }
0x1048   :  { %22798 = vmatprep.subr.bf16.mxu0 %v23927_v2  ;;  %22830 = vmatprep.subr.bf16.mxu1 %v23943_v56  ;;  %v23972_v2 = vcombine.low %v6492_v7, %v6500_v60  ;;  %v23957_v56 = vcombine.high %v6507_v39, %v6515_v38  ;;  %v20010_v20 = vld [vmem:[#allocation10 + $0x18] sm:$0xff]   ;;  %v20019_v60 = vld [vmem:[#allocation10 + $0x60] sm:$0xff]  }
0x1049   :  { %7224 = vmatmul.mubr.f32.gmra.mrb[120].mxu0 %v26361_v55  ;;  %7337 = vmatmul.mubr.f32.gmra.mrb[108].mxu1 %v26361_v55  ;;  %v20026_v7 = vld [vmem:[#allocation10 + $0x98] sm:$0xff]  }
0x104a   :  { %22800 = vmatpush1.bf16.msra.mxu0 %v23928_v61  ;;  %22832 = vmatpush1.bf16.msra.mxu1 %v23944_v21  ;;  %v6532_v61 = vld [vmem:[#allocation8 + $0x2f8] sm:$0xff]  ;;  %v23958_v21 = vcombine.low %v6507_v39, %v6515_v38  ;;  %v20036_v39 = vld [vmem:[#allocation10 + $0xe8] sm:$0xff]  }
0x104b   :  { %7229 = vmatprep.mubr.f32.mxu0 %v28433_v58  ;;  %7342 = vmatprep.mubr.f32.mxu1 %v28433_v58  ;;  %v23975_v14 = vcombine.high %v6524_v40, %v6532_v61  ;;  %v20012_v38 = vld [vmem:[#allocation10 + $0x28] sm:$0xff]  }
0x104c   :  { %22802 = vmatprep.subr.bf16.mxu0 %v23929_v41  ;;  %22834 = vmatprep.subr.bf16.mxu1 %v23945_v17  ;;  %v23974_v41 = vcombine.low %v6508_v4, %v6516_v28  ;;  %v23959_v17 = vcombine.high %v6523_v31, %v6531_v30  ;;  %v20028_v4 = vld [vmem:[#allocation10 + $0xa8] sm:$0xff]   ;;  %v20021_v28 = vld [vmem:[#allocation10 + $0x70] sm:$0xff]  }
0x104d   :  { %7230 = vmatmul.mubr.f32.gmra.mrb[122].mxu0 %v26371_v1  ;;  %7343 = vmatmul.mubr.f32.gmra.mrb[110].mxu1 %v26371_v1 }
0x104e   :  { %22804 = vmatpush1.bf16.msra.mxu0 %v23930_v18  ;;  %22836 = vmatpush1.bf16.msra.mxu1 %v23946_v27  ;;  %v6548_v18 = vld [vmem:[#allocation8 + $0x378] sm:$0xff]  ;;  %v23960_v27 = vcombine.low %v6523_v31, %v6531_v30 }
0x104f   :  { %7235 = vmatprep.mubr.f32.mxu0 %v28433_v58  ;;  %7348 = vmatprep.mubr.f32.mxu1 %v28433_v58  ;;  %v23977_v24 = vcombine.high %v6540_v8, %v6548_v18  ;;  %v20038_v31 = vld [vmem:[#allocation10 + $0xf8] sm:$0xff]  }
0x1050   :  { %22806 = vmatprep.subr.bf16.mxu0 %v23931_v16  ;;  %22838 = vmatprep.subr.bf16.mxu1 %v23947_v42  ;;  %v23976_v16 = vcombine.low %v6524_v40, %v6532_v61  ;;  %v23961_v42 = vcombine.high %v6539_v35, %v6547_v29  ;;  %v20014_v30 = vld [vmem:[#allocation10 + $0x38] sm:$0xff]   ;;  %v20047_v61 = vld [vmem:[#allocation10 + $0x140] sm:$0xff]  }
0x1051   :  { %7236 = vmatmul.mubr.f32.gmra.mrb[124].mxu0 %v26378_v36  ;;  %7349 = vmatmul.mubr.f32.gmra.mrb[112].mxu1 %v26378_v36  ;;  %v20030_v40 = vld [vmem:[#allocation10 + $0xb8] sm:$0xff]  }
0x1052   :  { %22808 = vmatpush1.bf16.msra.mxu0 %v23932_v62  ;;  %22840 = vmatpush1.bf16.msra.mxu1 %v23948_v6  ;;  %v6564_v62 = vld [vmem:[#allocation8 + $0x3f8] sm:$0xff]  ;;  %v23962_v6 = vcombine.low %v6539_v35, %v6547_v29 }
0x1053   :  { %7419 = vmatprep.mubr.f32.mxu0 %v28433_v58  ;;  %7532 = vmatprep.mubr.f32.mxu1 %v28433_v58  ;;  %v23979_v22 = vcombine.high %v6556_v37, %v6564_v62  ;;  %v23980_v0 = vcombine.low %v6556_v37, %v6564_v62  ;;  %v28449_v35 = vld [vmem:[#allocation34_spill] sm:$0xff] }
0x1054   :  { %22842 = vmatprep.subr.bf16.mxu0 %v23949_v15  ;;  %22874 = vmatprep.subr.bf16.mxu1 %v23965_v9  ;;  %v23978_v15 = vcombine.low %v6540_v8, %v6548_v18  ;;  %v23963_v9 = vcombine.high %v6555_v50, %v6563_v10  ;;  %v28450_v8 = vld [vmem:[#allocation35_spill] sm:$0xff] }
0x1055   :  { %7420 = vmatmul.mubr.f32.vlgmr.msra.gmra.mrb[126].mxu0 %v26305_v44  ;;  %7533 = vmatmul.mubr.f32.vlgmr.msra.gmra.mrb[114].mxu1 %v26305_v44 }
0x1056   :  { %22844 = vmatpush1.bf16.msra.mxu0 %v23950_v43  ;;  %22876 = vmatpush1.bf16.msra.mxu1 %v23966_v25  ;;  %v20031_v43 = vld [vmem:[#allocation10 + $0xc0] sm:$0xff]  }
0x1057   :  { %7425 = vmatprep.mubr.f32.mxu0 %v28433_v58  ;;  %7538 = vmatprep.mubr.f32.mxu1 %v28433_v58  ;;  %v18891_v25 = vld [vmem:[#allocation10] sm:$0xff]  }
0x1058   :  { %22846 = vmatprep.subr.bf16.mxu0 %v23951_v47  ;;  %22878 = vmatprep.subr.bf16.mxu1 %v23967_v53  ;;  %v20023_v47 = vld [vmem:[#allocation10 + $0x80] sm:$0xff]   ;;  %v20016_v53 = vld [vmem:[#allocation10 + $0x48] sm:$0xff]  }
0x1059   :  { %7426 = vmatmul.mubr.f32.gmra.mrb[128].mxu0 %v26312_v54  ;;  %7539 = vmatmul.mubr.f32.gmra.mrb[116].mxu1 %v26312_v54 }
0x105a   :  { %22848 = vmatpush1.bf16.msra.mxu0 %v23952_v12  ;;  %22880 = vmatpush1.bf16.msra.mxu1 %v23968_v49  ;;  %v20033_v12 = vld [vmem:[#allocation10 + $0xd0] sm:$0xff]  }
0x105b   :  { %7431 = vmatprep.mubr.f32.mxu0 %v28433_v58  ;;  %7544 = vmatprep.mubr.f32.mxu1 %v28433_v58  ;;  %v20009_v49 = vld [vmem:[#allocation10 + $0x10] sm:$0xff]  }
0x105c   :  { %22850 = vmatprep.subr.bf16.mxu0 %v23953_v45  ;;  %22882 = vmatprep.subr.bf16.mxu1 %v23969_v23  ;;  %v20025_v45 = vld [vmem:[#allocation10 + $0x90] sm:$0xff]   ;;  %v20018_v23 = vld [vmem:[#allocation10 + $0x58] sm:$0xff]  }
0x105d   :  { %7432 = vmatmul.mubr.f32.gmra.mrb[130].mxu0 %v26333_v57  ;;  %7545 = vmatmul.mubr.f32.gmra.mrb[118].mxu1 %v26333_v57 }
0x105e   :  { %22852 = vmatpush1.bf16.msra.mxu0 %v23954_v48  ;;  %22884 = vmatpush1.bf16.msra.mxu1 %v23970_v19  ;;  %v20035_v48 = vld [vmem:[#allocation10 + $0xe0] sm:$0xff]  }
0x105f   :  { %7437 = vmatprep.mubr.f32.mxu0 %v28433_v58  ;;  %7550 = vmatprep.mubr.f32.mxu1 %v28433_v58  ;;  %v20011_v19 = vld [vmem:[#allocation10 + $0x20] sm:$0xff]  }
0x1060   :  { %22854 = vmatprep.subr.bf16.mxu0 %v23955_v34  ;;  %22886 = vmatprep.subr.bf16.mxu1 %v23971_v51  ;;  %v20027_v34 = vld [vmem:[#allocation10 + $0xa0] sm:$0xff]   ;;  %v20020_v51 = vld [vmem:[#allocation10 + $0x68] sm:$0xff]  }
0x1061   :  { %7438 = vmatmul.mubr.f32.gmra.mrb[132].mxu0 %v26342_v26  ;;  %7551 = vmatmul.mubr.f32.gmra.mrb[120].mxu1 %v26342_v26 }
0x1062   :  { %22856 = vmatpush1.bf16.msra.mxu0 %v23956_v59  ;;  %22888 = vmatpush1.bf16.msra.mxu1 %v23972_v2  ;;  %v20037_v59 = vld [vmem:[#allocation10 + $0xf0] sm:$0xff]  }
0x1063   :  { %7443 = vmatprep.mubr.f32.mxu0 %v28433_v58  ;;  %7556 = vmatprep.mubr.f32.mxu1 %v28433_v58  ;;  %v20013_v2 = vld [vmem:[#allocation10 + $0x30] sm:$0xff]  }
0x1064   :  { %22858 = vmatprep.subr.bf16.mxu0 %v23957_v56  ;;  %22890 = vmatprep.subr.bf16.mxu1 %v23973_v11  ;;  %v20029_v56 = vld [vmem:[#allocation10 + $0xb0] sm:$0xff]   ;;  %v20022_v11 = vld [vmem:[#allocation10 + $0x78] sm:$0xff]  }
0x1065   :  { %7444 = vmatmul.mubr.f32.gmra.mrb[134].mxu0 %v26353_v13  ;;  %7557 = vmatmul.mubr.f32.gmra.mrb[122].mxu1 %v26353_v13 }
0x1066   :  { %22860 = vmatpush1.bf16.msra.mxu0 %v23958_v21  ;;  %22892 = vmatpush1.bf16.msra.mxu1 %v23974_v41  ;;  %v20063_v21 = vld [vmem:[#allocation10 + $0x1c0] sm:$0xff]   ;;  %v26482_v41 = vld [vmem:[#allocation2 + $0xa] sm:$0xff] }
0x1067   :  { %7449 = vmatprep.mubr.f32.mxu0 %v28433_v58  ;;  %7562 = vmatprep.mubr.f32.mxu1 %v28433_v58  ;;  %v26489_v29 = vrot.slane %v26482_v41, %v28449_v35  ;;  %v26493_v18 = vrot.slane %v26482_v41, %v28450_v8 }
0x1068   :  { %22862 = vmatprep.subr.bf16.mxu0 %v23959_v17  ;;  %22894 = vmatprep.subr.bf16.mxu1 %v23975_v14  ;;  %v28447_v17 = vld [vmem:[#allocation32_spill] sm:$0xff] }
0x1069   :  { %7450 = vmatmul.mubr.f32.gmra.mrb[136].mxu0 %v26361_v55  ;;  %7563 = vmatmul.mubr.f32.gmra.mrb[124].mxu1 %v26361_v55  ;;  %v26485_v14 = vsub.s32 3, %v28447_v17 }
0x106a   :  { %22864 = vmatpush1.bf16.msra.mxu0 %v23960_v27  ;;  %22896 = vmatpush1.bf16.msra.mxu1 %v23976_v16  ;;  %v28451_v27 = vld [vmem:[#allocation33_spill] sm:$0xff] }
0x106b   :  { %7455 = vmatprep.mubr.f32.mxu0 %v28433_v58  ;;  %7568 = vmatprep.mubr.f32.mxu1 %v28433_v58  ;;  %28448 = vst [vmem:[#allocation36_spill] sm:$0xff] %v26485_v14  ;;  %v26497_v16 = vrot.slane %v26482_v41, %v28451_v27 }
0x106c   :  { %22866 = vmatprep.subr.bf16.mxu0 %v23961_v42  ;;  %22898 = vmatprep.subr.bf16.mxu1 %v23977_v24  ;;  %v26501_v42 = vrot.slane %v26482_v41, %v26485_v14 }
0x106d   :  { %7456 = vmatmul.mubr.f32.gmra.mrb[138].mxu0 %v26371_v1  ;;  %7569 = vmatmul.mubr.f32.gmra.mrb[126].mxu1 %v26371_v1 }
0x106e   :  { %22868 = vmatpush1.bf16.msra.mxu0 %v23962_v6  ;;  %22900 = vmatpush1.bf16.msra.mxu1 %v23978_v15 }
0x106f   :  { %7461 = vmatprep.mubr.f32.mxu0 %v28433_v58  ;;  %7574 = vmatprep.mubr.f32.mxu1 %v28433_v58 }
0x1070   :  { %22870 = vmatprep.subr.bf16.mxu0 %v23963_v9  ;;  %22902 = vmatprep.subr.bf16.mxu1 %v23979_v22 }
0x1071   :  { %7462 = vmatmul.mubr.f32.gmra.mrb[140].mxu0 %v26378_v36  ;;  %7575 = vmatmul.mubr.f32.gmra.mrb[128].mxu1 %v26378_v36 }
0x1072   :  { %22872 = vmatpush1.bf16.msra.mxu0 %v23964_v46  ;;  %22904 = vmatpush1.bf16.msra.mxu1 %v23980_v0 }
0x1073   :  { %7645 = vmatprep.mubr.f32.mxu0 %v28433_v58  ;;  %7758 = vmatprep.mubr.f32.mxu1 %v28433_v58 }
0x1074   :  { %22906 = vmatprep.subr.bf16.mxu0 %v20015_v63  ;;  %22938 = vmatprep.subr.bf16.mxu1 %v20031_v43 }
0x1075   :  { %7646 = vmatmul.mubr.f32.vlgmr.msra.gmra.mrb[142].mxu0 %v26305_v44  ;;  %7759 = vmatmul.mubr.f32.vlgmr.msra.gmra.mrb[130].mxu1 %v26305_v44 }
0x1076   :  { %7651 = vmatprep.mubr.f32.mxu0 %v28433_v58  ;;  %7764 = vmatprep.mubr.f32.mxu1 %v28433_v58 }
0x1077   :  { %22908 = vmatpush3.bf16.msra.mxu0 %v18891_v25  ;;  %22940 = vmatpush3.bf16.msra.mxu1 %v20023_v47 }
0x1078   :  { %22910 = vmatprep.subr.bf16.mxu0 %v20016_v53  ;;  %22942 = vmatprep.subr.bf16.mxu1 %v20032_v32 }
0x1079   :  { %7652 = vmatmul.mubr.f32.gmra.mrb[144].mxu0 %v26312_v54  ;;  %7765 = vmatmul.mubr.f32.gmra.mrb[132].mxu1 %v26312_v54 }
0x107a   :  { %7657 = vmatprep.mubr.f32.mxu0 %v28433_v58  ;;  %7770 = vmatprep.mubr.f32.mxu1 %v28433_v58 }
0x107b   :  { %22912 = vmatpush3.bf16.msra.mxu0 %v20008_v3  ;;  %22944 = vmatpush3.bf16.msra.mxu1 %v20024_v33  ;;  %v20039_v33 = vld [vmem:[#allocation10 + $0x100] sm:$0xff]  }
0x107c   :  { %22914 = vmatprep.subr.bf16.mxu0 %v20017_v5  ;;  %22946 = vmatprep.subr.bf16.mxu1 %v20033_v12  ;;  %v20055_v5 = vld [vmem:[#allocation10 + $0x180] sm:$0xff]  }
0x107d   :  { %7658 = vmatmul.mubr.f32.gmra.mrb[146].mxu0 %v26333_v57  ;;  %7771 = vmatmul.mubr.f32.gmra.mrb[134].mxu1 %v26333_v57 }
0x107e   :  { %7663 = vmatprep.mubr.f32.mxu0 %v28433_v58  ;;  %7776 = vmatprep.mubr.f32.mxu1 %v28433_v58 }
0x107f   :  { %22916 = vmatpush3.bf16.msra.mxu0 %v20009_v49  ;;  %22948 = vmatpush3.bf16.msra.mxu1 %v20025_v45  ;;  %v20048_v45 = vld [vmem:[#allocation10 + $0x148] sm:$0xff]  }
0x1080   :  { %22918 = vmatprep.subr.bf16.mxu0 %v20018_v23  ;;  %22950 = vmatprep.subr.bf16.mxu1 %v20034_v52  ;;  %v20064_v23 = vld [vmem:[#allocation10 + $0x1c8] sm:$0xff]  }
0x1081   :  { %7664 = vmatmul.mubr.f32.gmra.mrb[148].mxu0 %v26342_v26  ;;  %7777 = vmatmul.mubr.f32.gmra.mrb[136].mxu1 %v26342_v26 }
0x1082   :  { %7669 = vmatprep.mubr.f32.mxu0 %v28433_v58  ;;  %7782 = vmatprep.mubr.f32.mxu1 %v28433_v58 }
0x1083   :  { %22920 = vmatpush3.bf16.msra.mxu0 %v20010_v20  ;;  %22952 = vmatpush3.bf16.msra.mxu1 %v20026_v7 }
0x1084   :  { %22922 = vmatprep.subr.bf16.mxu0 %v20019_v60  ;;  %22954 = vmatprep.subr.bf16.mxu1 %v20035_v48  ;;  %v20040_v48 = vld [vmem:[#allocation10 + $0x108] sm:$0xff]  }
0x1085   :  { %7670 = vmatmul.mubr.f32.gmra.mrb[150].mxu0 %v26353_v13  ;;  %7783 = vmatmul.mubr.f32.gmra.mrb[138].mxu1 %v26353_v13 }
0x1086   :  { %7675 = vmatprep.mubr.f32.mxu0 %v28433_v58  ;;  %7788 = vmatprep.mubr.f32.mxu1 %v28433_v58 }
0x1087   :  { %22924 = vmatpush3.bf16.msra.mxu0 %v20011_v19  ;;  %22956 = vmatpush3.bf16.msra.mxu1 %v20027_v34  ;;  %v20056_v19 = vld [vmem:[#allocation10 + $0x188] sm:$0xff]   ;;  %v20049_v34 = vld [vmem:[#allocation10 + $0x150] sm:$0xff]  }
0x1088   :  { %22926 = vmatprep.subr.bf16.mxu0 %v20020_v51  ;;  %22958 = vmatprep.subr.bf16.mxu1 %v20036_v39  ;;  %v20065_v51 = vld [vmem:[#allocation10 + $0x1d0] sm:$0xff]  }
0x1089   :  { %7676 = vmatmul.mubr.f32.gmra.mrb[152].mxu0 %v26361_v55  ;;  %7789 = vmatmul.mubr.f32.gmra.mrb[140].mxu1 %v26361_v55  ;;  %v20041_v39 = vld [vmem:[#allocation10 + $0x110] sm:$0xff]  }
0x108a   :  { %7681 = vmatprep.mubr.f32.mxu0 %v28433_v58  ;;  %7794 = vmatprep.mubr.f32.mxu1 %v28433_v58 }
0x108b   :  { %22928 = vmatpush3.bf16.msra.mxu0 %v20012_v38  ;;  %22960 = vmatpush3.bf16.msra.mxu1 %v20028_v4  ;;  %v20057_v38 = vld [vmem:[#allocation10 + $0x190] sm:$0xff]   ;;  %v20050_v4 = vld [vmem:[#allocation10 + $0x158] sm:$0xff]  }
0x108c   :  { %22930 = vmatprep.subr.bf16.mxu0 %v20021_v28  ;;  %22962 = vmatprep.subr.bf16.mxu1 %v20037_v59  ;;  %v20066_v28 = vld [vmem:[#allocation10 + $0x1d8] sm:$0xff]  }
0x108d   :  { %7682 = vmatmul.mubr.f32.gmra.mrb[154].mxu0 %v26371_v1  ;;  %7795 = vmatmul.mubr.f32.gmra.mrb[142].mxu1 %v26371_v1  ;;  %v20042_v59 = vld [vmem:[#allocation10 + $0x118] sm:$0xff]  }
0x108e   :  { %7687 = vmatprep.mubr.f32.mxu0 %v28433_v58  ;;  %7800 = vmatprep.mubr.f32.mxu1 %v28433_v58 }
0x108f   :  { %22932 = vmatpush3.bf16.msra.mxu0 %v20013_v2  ;;  %22964 = vmatpush3.bf16.msra.mxu1 %v20029_v56  ;;  %v20058_v2 = vld [vmem:[#allocation10 + $0x198] sm:$0xff]   ;;  %v20051_v56 = vld [vmem:[#allocation10 + $0x160] sm:$0xff]  }
0x1090   :  { %22934 = vmatprep.subr.bf16.mxu0 %v20022_v11  ;;  %22966 = vmatprep.subr.bf16.mxu1 %v20038_v31  ;;  %v20067_v11 = vld [vmem:[#allocation10 + $0x1e0] sm:$0xff]  }
0x1091   :  { %7688 = vmatmul.mubr.f32.gmra.mrb[156].mxu0 %v26378_v36  ;;  %7801 = vmatmul.mubr.f32.gmra.mrb[144].mxu1 %v26378_v36  ;;  %v20043_v31 = vld [vmem:[#allocation10 + $0x120] sm:$0xff]  }
0x1093   :  { %22936 = vmatpush3.bf16.msra.mxu0 %v20014_v30  ;;  %22968 = vmatpush3.bf16.msra.mxu1 %v20030_v40  ;;  %v20059_v30 = vld [vmem:[#allocation10 + $0x1a0] sm:$0xff]   ;;  %v20052_v40 = vld [vmem:[#allocation10 + $0x168] sm:$0xff]  }
0x1094   :  { %22970 = vmatprep.subr.bf16.mxu0 %v20047_v61  ;;  %23002 = vmatprep.subr.bf16.mxu1 %v20063_v21  ;;  %v20068_v61 = vld [vmem:[#allocation10 + $0x1e8] sm:$0xff]  }
0x1095   :  { %v20044_v21 = vld [vmem:[#allocation10 + $0x128] sm:$0xff]  }
0x10ba   :  { %v6969_v24 = vpop.f32.mrb[94].mxu0  ;;  %v7082_v50 = vpop.f32.mrb[82].mxu1 }
0x10bb   :  { %v6970_v10 = vadd.f32 %v6969_v24, %v26489_v29  ;;  %v7083_v37 = vadd.f32 %v7082_v50, %v26493_v18  ;;  %v6971_v62 = vpop.f32.mrb[95].mxu0  ;;  %v7084_v6 = vpop.f32.mrb[83].mxu1  ;;  %v20060_v24 = vld [vmem:[#allocation10 + $0x1a8] sm:$0xff]   ;;  %v20053_v50 = vld [vmem:[#allocation10 + $0x170] sm:$0xff]  }
0x10bc   :  { %v6972_v15 = vadd.f32 %v6971_v62, %v26497_v16  ;;  %v7085_v9 = vadd.f32 %v7084_v6, %v26501_v42  ;;  %v20061_v62 = vld [vmem:[#allocation10 + $0x1b0] sm:$0xff]   ;;  %v20054_v6 = vld [vmem:[#allocation10 + $0x178] sm:$0xff]  }
0x10bd   :  { %v7807_v43 = vmax.f32 %v6970_v10, 0.0  ;;  %v7809_v25 = vmax.f32 %v7083_v37, 0.0  ;;  %v20069_v10 = vld [vmem:[#allocation10 + $0x1f0] sm:$0xff]  }
0x10be   :  { %v6975_v22 = vpop.f32.mrb[96].mxu0  ;;  %v7088_v46 = vpop.f32.mrb[84].mxu1  ;;  %v7808_v0 = vmax.f32 %v6972_v15, 0.0  ;;  %v7810_v63 = vmax.f32 %v7085_v9, 0.0  ;;  %v20045_v37 = vld [vmem:[#allocation10 + $0x130] sm:$0xff]   ;;  %v20070_v15 = vld [vmem:[#allocation10 + $0x1f8] sm:$0xff]  }
0x10bf   :  { %v6976_v47 = vadd.f32 %v6975_v22, %v26489_v29  ;;  %v7089_v53 = vadd.f32 %v7088_v46, %v26493_v18  ;;  %v6977_v32 = vpop.f32.mrb[97].mxu0  ;;  %v7090_v3 = vpop.f32.mrb[85].mxu1  ;;  %v20046_v9 = vld [vmem:[#allocation10 + $0x138] sm:$0xff]   ;;  %v20079_v46 = vld [vmem:[#allocation10 + $0x240] sm:$0xff]  }
0x10c0   :  { %v6978_v12 = vadd.f32 %v6977_v32, %v26497_v16  ;;  %v7091_v49 = vadd.f32 %v7090_v3, %v26501_v42  ;;  %8518 = vmatprep.mubr.f32.mxu0 %v7808_v0  ;;  %8623 = vmatprep.mubr.f32.mxu1 %v7810_v63  ;;  %v20062_v22 = vld [vmem:[#allocation10 + $0x1b8] sm:$0xff]   ;;  %v20095_v0 = vld [vmem:[#allocation10 + $0x2c0] sm:$0xff]  }
0x10c1   :  { %8519 = vmatmul.mubr.f32.vlgmr.msra.gmra.mrb[158].mxu0 %v7807_v43  ;;  %8624 = vmatmul.mubr.f32.vlgmr.msra.gmra.mrb[146].mxu1 %v7809_v25  ;;  %v7823_v7 = vmax.f32 %v6976_v47, 0.0  ;;  %v7825_v60 = vmax.f32 %v7089_v53, 0.0 }
0x10c2   :  { %v7824_v52 = vmax.f32 %v6978_v12, 0.0  ;;  %v7826_v20 = vmax.f32 %v7091_v49, 0.0  ;;  %22972 = vmatpush3.bf16.msra.mxu0 %v20039_v33  ;;  %23004 = vmatpush3.bf16.msra.mxu1 %v20055_v5 }
0x10c3   :  { %22974 = vmatprep.subr.bf16.mxu0 %v20048_v45  ;;  %23006 = vmatprep.subr.bf16.mxu1 %v20064_v23 }
0x10c4   :  { %8523 = vmatprep.mubr.f32.mxu0 %v7824_v52  ;;  %8628 = vmatprep.mubr.f32.mxu1 %v7826_v20 }
0x10c5   :  { %8524 = vmatmul.mubr.f32.gmra.mrb[160].mxu0 %v7823_v7  ;;  %8629 = vmatmul.mubr.f32.gmra.mrb[148].mxu1 %v7825_v60 }
0x10c6   :  { %22976 = vmatpush3.bf16.msra.mxu0 %v20040_v48  ;;  %23008 = vmatpush3.bf16.msra.mxu1 %v20056_v19 }
0x10c7   :  { %22978 = vmatprep.subr.bf16.mxu0 %v20049_v34  ;;  %23010 = vmatprep.subr.bf16.mxu1 %v20065_v51 }
0x10ca   :  { %22980 = vmatpush3.bf16.msra.mxu0 %v20041_v39  ;;  %23012 = vmatpush3.bf16.msra.mxu1 %v20057_v38 }
0x10cb   :  { %22982 = vmatprep.subr.bf16.mxu0 %v20050_v4  ;;  %23014 = vmatprep.subr.bf16.mxu1 %v20066_v28 }
0x10ce   :  { %22984 = vmatpush3.bf16.msra.mxu0 %v20042_v59  ;;  %23016 = vmatpush3.bf16.msra.mxu1 %v20058_v2 }
0x10cf   :  { %22986 = vmatprep.subr.bf16.mxu0 %v20051_v56  ;;  %23018 = vmatprep.subr.bf16.mxu1 %v20067_v11 }
0x10d2   :  { %22988 = vmatpush3.bf16.msra.mxu0 %v20043_v31  ;;  %23020 = vmatpush3.bf16.msra.mxu1 %v20059_v30 }
0x10d3   :  { %22990 = vmatprep.subr.bf16.mxu0 %v20052_v40  ;;  %23022 = vmatprep.subr.bf16.mxu1 %v20068_v61 }
0x10d6   :  { %22992 = vmatpush3.bf16.msra.mxu0 %v20044_v21  ;;  %23024 = vmatpush3.bf16.msra.mxu1 %v20060_v24 }
0x10d7   :  { %22994 = vmatprep.subr.bf16.mxu0 %v20053_v50  ;;  %23026 = vmatprep.subr.bf16.mxu1 %v20069_v10 }
0x10da   :  { %22996 = vmatpush3.bf16.msra.mxu0 %v20045_v37  ;;  %23028 = vmatpush3.bf16.msra.mxu1 %v20061_v62 }
0x10db   :  { %22998 = vmatprep.subr.bf16.mxu0 %v20054_v6  ;;  %23030 = vmatprep.subr.bf16.mxu1 %v20070_v15 }
0x10de   :  { %23000 = vmatpush3.bf16.msra.mxu0 %v20046_v9  ;;  %23032 = vmatpush3.bf16.msra.mxu1 %v20062_v22 }
0x10df   :  { %23034 = vmatprep.subr.bf16.mxu0 %v20079_v46  ;;  %23066 = vmatprep.subr.bf16.mxu1 %v20095_v0  ;;  %v26528_v0 = vsub.s32 4, %v28447_v17 }
0x10e1   :  { %28452 = vst [vmem:[#allocation26_spill] sm:$0xff] %v26528_v0 }
0x10ef   :  { %v6981_v63 = vpop.f32.mrb[98].mxu0  ;;  %v7094_v43 = vpop.f32.mrb[86].mxu1 }
0x10f0   :  { %v6982_v25 = vadd.f32 %v6981_v63, %v26489_v29  ;;  %v7095_v47 = vadd.f32 %v7094_v43, %v26493_v18  ;;  %v6983_v53 = vpop.f32.mrb[99].mxu0  ;;  %v7096_v32 = vpop.f32.mrb[87].mxu1 }
0x10f1   :  { %v6984_v3 = vadd.f32 %v6983_v53, %v26497_v16  ;;  %v7097_v33 = vadd.f32 %v7096_v32, %v26501_v42  ;;  %v26531_v53 = vsub.s32 6, %v28447_v17  ;;  %v26534_v32 = vsub.s32 5, %v28447_v17 }
0x10f2   :  { %v7839_v60 = vmax.f32 %v6982_v25, 0.0  ;;  %v7841_v48 = vmax.f32 %v7095_v47, 0.0 }
0x10f3   :  { %v6987_v5 = vpop.f32.mrb[100].mxu0  ;;  %v7100_v12 = vpop.f32.mrb[88].mxu1  ;;  %v7840_v49 = vmax.f32 %v6984_v3, 0.0  ;;  %v7842_v45 = vmax.f32 %v7097_v33, 0.0  ;;  %28453 = vst [vmem:[#allocation24_spill] sm:$0xff] %v26531_v53  ;;  %28454 = vst [vmem:[#allocation27_spill] sm:$0xff] %v26534_v32 }
0x10f4   :  { %v6988_v23 = vadd.f32 %v6987_v5, %v26489_v29  ;;  %v7101_v52 = vadd.f32 %v7100_v12, %v26493_v18  ;;  %v6989_v20 = vpop.f32.mrb[101].mxu0  ;;  %v7102_v7 = vpop.f32.mrb[89].mxu1 }
0x10f5   :  { %v6990_v19 = vadd.f32 %v6989_v20, %v26497_v16  ;;  %v7103_v34 = vadd.f32 %v7102_v7, %v26501_v42  ;;  %8528 = vmatprep.mubr.f32.mxu0 %v7840_v49  ;;  %8633 = vmatprep.mubr.f32.mxu1 %v7842_v45  ;;  %v26541_v20 = vsub.s32 7, %v28447_v17  ;;  %v26545_v7 = vrot.slane %v26482_v41, %v26528_v0 }
0x10f6   :  { %8529 = vmatmul.mubr.f32.gmra.mrb[162].mxu0 %v7839_v60  ;;  %8634 = vmatmul.mubr.f32.gmra.mrb[150].mxu1 %v7841_v48  ;;  %v7855_v28 = vmax.f32 %v6988_v23, 0.0  ;;  %v7857_v59 = vmax.f32 %v7101_v52, 0.0 }
0x10f7   :  { %v7856_v51 = vmax.f32 %v6990_v19, 0.0  ;;  %v7858_v39 = vmax.f32 %v7103_v34, 0.0  ;;  %28455 = vst [vmem:[#allocation25_spill] sm:$0xff] %v26541_v20 }
0x10f8   :  { %v6993_v38 = vpop.f32.mrb[102].mxu0  ;;  %v7106_v4 = vpop.f32.mrb[90].mxu1 }
0x10f9   :  { %v6994_v2 = vadd.f32 %v6993_v38, %v26489_v29  ;;  %v7107_v56 = vadd.f32 %v7106_v4, %v26493_v18  ;;  %v6995_v11 = vpop.f32.mrb[103].mxu0  ;;  %v7108_v31 = vpop.f32.mrb[91].mxu1  ;;  %8533 = vmatprep.mubr.f32.mxu0 %v7856_v51  ;;  %8638 = vmatprep.mubr.f32.mxu1 %v7858_v39  ;;  %v26549_v51 = vrot.slane %v26482_v41, %v26531_v53 }
0x10fa   :  { %v6996_v30 = vadd.f32 %v6995_v11, %v26497_v16  ;;  %v7109_v40 = vadd.f32 %v7108_v31, %v26501_v42  ;;  %8534 = vmatmul.mubr.f32.gmra.mrb[164].mxu0 %v7855_v28  ;;  %8639 = vmatmul.mubr.f32.gmra.mrb[152].mxu1 %v7857_v59  ;;  %v26553_v39 = vrot.slane %v26482_v41, %v26534_v32 }
0x10fb   :  { %v7871_v15 = vmax.f32 %v6994_v2, 0.0  ;;  %v7873_v9 = vmax.f32 %v7107_v56, 0.0  ;;  %v26561_v31 = vrot.slane %v26482_v41, %v26541_v20 }
0x10fc   :  { %v6999_v61 = vpop.f32.mrb[104].mxu0  ;;  %v7112_v21 = vpop.f32.mrb[92].mxu1  ;;  %v7872_v24 = vmax.f32 %v6996_v30, 0.0  ;;  %v7874_v50 = vmax.f32 %v7109_v40, 0.0 }
0x10fd   :  { %v7000_v10 = vadd.f32 %v6999_v61, %v26489_v29  ;;  %v7113_v37 = vadd.f32 %v7112_v21, %v26493_v18  ;;  %v7001_v62 = vpop.f32.mrb[105].mxu0  ;;  %v7114_v6 = vpop.f32.mrb[93].mxu1 }
0x10fe   :  { %v7002_v22 = vadd.f32 %v7001_v62, %v26497_v16  ;;  %v7115_v46 = vadd.f32 %v7114_v6, %v26501_v42  ;;  %8538 = vmatprep.mubr.f32.mxu0 %v7872_v24  ;;  %8643 = vmatprep.mubr.f32.mxu1 %v7874_v50 }
0x10ff   :  { %8539 = vmatmul.mubr.f32.gmra.mrb[166].mxu0 %v7871_v15  ;;  %8644 = vmatmul.mubr.f32.gmra.mrb[154].mxu1 %v7873_v9  ;;  %v7887_v49 = vmax.f32 %v7000_v10, 0.0  ;;  %v7889_v45 = vmax.f32 %v7113_v37, 0.0 }
0x1100   :  { %v7005_v63 = vpop.f32.mrb[106].mxu0  ;;  %v7118_v43 = vpop.f32.mrb[94].mxu1  ;;  %v7888_v25 = vmax.f32 %v7002_v22, 0.0  ;;  %v7890_v47 = vmax.f32 %v7115_v46, 0.0 }
0x1101   :  { %v7006_v3 = vadd.f32 %v7005_v63, %v26489_v29  ;;  %v7119_v33 = vadd.f32 %v7118_v43, %v26493_v18  ;;  %v7007_v5 = vpop.f32.mrb[107].mxu0  ;;  %v7120_v12 = vpop.f32.mrb[95].mxu1 }
0x1102   :  { %v7008_v23 = vadd.f32 %v7007_v5, %v26497_v16  ;;  %v7121_v52 = vadd.f32 %v7120_v12, %v26501_v42  ;;  %8543 = vmatprep.mubr.f32.mxu0 %v7888_v25  ;;  %8648 = vmatprep.mubr.f32.mxu1 %v7890_v47  ;;  %v20071_v47 = vld [vmem:[#allocation10 + $0x200] sm:$0xff]   ;;  %v20080_v12 = vld [vmem:[#allocation10 + $0x248] sm:$0xff]  }
0x1103   :  { %8544 = vmatmul.mubr.f32.gmra.mrb[168].mxu0 %v7887_v49  ;;  %8649 = vmatmul.mubr.f32.gmra.mrb[156].mxu1 %v7889_v45  ;;  %v7903_v59 = vmax.f32 %v7006_v3, 0.0  ;;  %v7905_v2 = vmax.f32 %v7119_v33, 0.0  ;;  %v20087_v3 = vld [vmem:[#allocation10 + $0x280] sm:$0xff]   ;;  %v20096_v49 = vld [vmem:[#allocation10 + $0x2c8] sm:$0xff]  }
0x1104   :  { %v7011_v60 = vpop.f32.mrb[108].mxu0  ;;  %v7124_v48 = vpop.f32.mrb[96].mxu1  ;;  %v7904_v19 = vmax.f32 %v7008_v23, 0.0  ;;  %v7906_v34 = vmax.f32 %v7121_v52, 0.0 }
0x1105   :  { %v7012_v17 = vadd.f32 %v7011_v60, %v26489_v29  ;;  %v7125_v38 = vadd.f32 %v7124_v48, %v26493_v18  ;;  %v7013_v4 = vpop.f32.mrb[109].mxu0  ;;  %v7126_v28 = vpop.f32.mrb[97].mxu1 }
0x1106   :  { %v7014_v56 = vadd.f32 %v7013_v4, %v26497_v16  ;;  %v7127_v11 = vadd.f32 %v7126_v28, %v26501_v42  ;;  %8548 = vmatprep.mubr.f32.mxu0 %v7904_v19  ;;  %8653 = vmatprep.mubr.f32.mxu1 %v7906_v34  ;;  %v20072_v28 = vld [vmem:[#allocation10 + $0x208] sm:$0xff]  }
0x1107   :  { %8549 = vmatmul.mubr.f32.gmra.mrb[170].mxu0 %v7903_v59  ;;  %8654 = vmatmul.mubr.f32.gmra.mrb[158].mxu1 %v7905_v2  ;;  %v7919_v50 = vmax.f32 %v7012_v17, 0.0  ;;  %v7921_v42 = vmax.f32 %v7125_v38, 0.0  ;;  %v20088_v59 = vld [vmem:[#allocation10 + $0x288] sm:$0xff]  }
0x1108   :  { %v7195_v30 = vpop.f32.mrb[110].mxu0  ;;  %v7308_v29 = vpop.f32.mrb[98].mxu1  ;;  %v7920_v40 = vmax.f32 %v7014_v56, 0.0  ;;  %v7922_v18 = vmax.f32 %v7127_v11, 0.0  ;;  %v20081_v11 = vld [vmem:[#allocation10 + $0x250] sm:$0xff]  }
0x1109   :  { %v7196_v61 = vadd.f32 %v7195_v30, %v26545_v7  ;;  %v7309_v21 = vadd.f32 %v7308_v29, %v26549_v51  ;;  %v7197_v24 = vpop.f32.mrb[111].mxu0  ;;  %v7310_v16 = vpop.f32.mrb[99].mxu1  ;;  %v20097_v30 = vld [vmem:[#allocation10 + $0x2d0] sm:$0xff]  }
0x110a   :  { %v7198_v10 = vadd.f32 %v7197_v24, %v26553_v39  ;;  %v7311_v37 = vadd.f32 %v7310_v16, %v26561_v31  ;;  %8553 = vmatprep.mubr.f32.mxu0 %v7920_v40  ;;  %8658 = vmatprep.mubr.f32.mxu1 %v7922_v18 }
0x110b   :  { %8554 = vmatmul.mubr.f32.gmra.mrb[172].mxu0 %v7919_v50  ;;  %8659 = vmatmul.mubr.f32.gmra.mrb[160].mxu1 %v7921_v42  ;;  %v7811_v9 = vmax.f32 %v7196_v61, 0.0  ;;  %v7813_v22 = vmax.f32 %v7309_v21, 0.0 }
0x110c   :  { %v7201_v41 = vpop.f32.mrb[112].mxu0  ;;  %v7314_v62 = vpop.f32.mrb[100].mxu1  ;;  %v7812_v6 = vmax.f32 %v7198_v10, 0.0  ;;  %v7814_v15 = vmax.f32 %v7311_v37, 0.0  ;;  %v20073_v37 = vld [vmem:[#allocation10 + $0x210] sm:$0xff]  }
0x110d   :  { %v7202_v46 = vadd.f32 %v7201_v41, %v26545_v7  ;;  %v7315_v63 = vadd.f32 %v7314_v62, %v26549_v51  ;;  %v7203_v43 = vpop.f32.mrb[113].mxu0  ;;  %v7316_v25 = vpop.f32.mrb[101].mxu1  ;;  %v20089_v41 = vld [vmem:[#allocation10 + $0x290] sm:$0xff]  }
0x110e   :  { %v7204_v33 = vadd.f32 %v7203_v43, %v26553_v39  ;;  %v7317_v5 = vadd.f32 %v7316_v25, %v26561_v31  ;;  %8728 = vmatprep.mubr.f32.mxu0 %v7812_v6  ;;  %8833 = vmatprep.mubr.f32.mxu1 %v7814_v15  ;;  %v20082_v15 = vld [vmem:[#allocation10 + $0x258] sm:$0xff]  }
0x110f   :  { %8729 = vmatmul.mubr.f32.vlgmr.msra.gmra.mrb[174].mxu0 %v7811_v9  ;;  %8834 = vmatmul.mubr.f32.vlgmr.msra.gmra.mrb[162].mxu1 %v7813_v22  ;;  %v7827_v38 = vmax.f32 %v7202_v46, 0.0  ;;  %v7829_v4 = vmax.f32 %v7315_v63, 0.0  ;;  %v20098_v9 = vld [vmem:[#allocation10 + $0x2d8] sm:$0xff]  }
0x1110   :  { %v7207_v45 = vpop.f32.mrb[114].mxu0  ;;  %v7320_v23 = vpop.f32.mrb[102].mxu1  ;;  %23036 = vmatpush3.bf16.msra.mxu0 %v20071_v47  ;;  %23068 = vmatpush3.bf16.msra.mxu1 %v20087_v3  ;;  %v7828_v52 = vmax.f32 %v7204_v33, 0.0  ;;  %v7830_v60 = vmax.f32 %v7317_v5, 0.0 }
0x1111   :  { %v7208_v48 = vadd.f32 %v7207_v45, %v26545_v7  ;;  %v7321_v19 = vadd.f32 %v7320_v23, %v26549_v51  ;;  %v7209_v34 = vpop.f32.mrb[115].mxu0  ;;  %v7322_v17 = vpop.f32.mrb[103].mxu1  ;;  %23038 = vmatprep.subr.bf16.mxu0 %v20080_v12  ;;  %23070 = vmatprep.subr.bf16.mxu1 %v20096_v49  ;;  %v20074_v49 = vld [vmem:[#allocation10 + $0x218] sm:$0xff]  }
0x1112   :  { %v7210_v2 = vadd.f32 %v7209_v34, %v26553_v39  ;;  %v7323_v56 = vadd.f32 %v7322_v17, %v26561_v31  ;;  %8733 = vmatprep.mubr.f32.mxu0 %v7828_v52  ;;  %8838 = vmatprep.mubr.f32.mxu1 %v7830_v60  ;;  %v20090_v45 = vld [vmem:[#allocation10 + $0x298] sm:$0xff]   ;;  %v20083_v60 = vld [vmem:[#allocation10 + $0x260] sm:$0xff]  }
0x1113   :  { %8734 = vmatmul.mubr.f32.gmra.mrb[176].mxu0 %v7827_v38  ;;  %8839 = vmatmul.mubr.f32.gmra.mrb[164].mxu1 %v7829_v4  ;;  %v7843_v42 = vmax.f32 %v7208_v48, 0.0  ;;  %v7845_v10 = vmax.f32 %v7321_v19, 0.0  ;;  %v20099_v48 = vld [vmem:[#allocation10 + $0x2e0] sm:$0xff]  }
0x1114   :  { %v7213_v29 = vpop.f32.mrb[116].mxu0  ;;  %v7326_v40 = vpop.f32.mrb[104].mxu1  ;;  %23040 = vmatpush3.bf16.msra.mxu0 %v20072_v28  ;;  %23072 = vmatpush3.bf16.msra.mxu1 %v20088_v59  ;;  %v7844_v18 = vmax.f32 %v7210_v2, 0.0  ;;  %v7846_v61 = vmax.f32 %v7323_v56, 0.0 }
0x1115   :  { %v7214_v21 = vadd.f32 %v7213_v29, %v26545_v7  ;;  %v7327_v24 = vadd.f32 %v7326_v40, %v26549_v51  ;;  %v7215_v16 = vpop.f32.mrb[117].mxu0  ;;  %v7328_v50 = vpop.f32.mrb[105].mxu1  ;;  %23042 = vmatprep.subr.bf16.mxu0 %v20081_v11  ;;  %23074 = vmatprep.subr.bf16.mxu1 %v20097_v30  ;;  %v20075_v30 = vld [vmem:[#allocation10 + $0x220] sm:$0xff]  }
0x1116   :  { %v7216_v62 = vadd.f32 %v7215_v16, %v26553_v39  ;;  %v7329_v6 = vadd.f32 %v7328_v50, %v26561_v31  ;;  %8738 = vmatprep.mubr.f32.mxu0 %v7844_v18  ;;  %8843 = vmatprep.mubr.f32.mxu1 %v7846_v61  ;;  %v20091_v29 = vld [vmem:[#allocation10 + $0x2a0] sm:$0xff]   ;;  %v20084_v61 = vld [vmem:[#allocation10 + $0x268] sm:$0xff]  }
0x1117   :  { %8739 = vmatmul.mubr.f32.gmra.mrb[178].mxu0 %v7843_v42  ;;  %8844 = vmatmul.mubr.f32.gmra.mrb[166].mxu1 %v7845_v10  ;;  %v7859_v5 = vmax.f32 %v7214_v21, 0.0  ;;  %v7861_v12 = vmax.f32 %v7327_v24, 0.0  ;;  %v20100_v21 = vld [vmem:[#allocation10 + $0x2e8] sm:$0xff]   ;;  %v26587_v10 = vld [vmem:[#allocation2 + $0x12] sm:$0xff] }
0x1118   :  { %v7219_v22 = vpop.f32.mrb[118].mxu0  ;;  %v7332_v46 = vpop.f32.mrb[106].mxu1  ;;  %23044 = vmatpush3.bf16.msra.mxu0 %v20073_v37  ;;  %23076 = vmatpush3.bf16.msra.mxu1 %v20089_v41  ;;  %v7860_v63 = vmax.f32 %v7216_v62, 0.0  ;;  %v7862_v43 = vmax.f32 %v7329_v6, 0.0 }
0x1119   :  { %v7220_v25 = vadd.f32 %v7219_v22, %v26545_v7  ;;  %v7333_v47 = vadd.f32 %v7332_v46, %v26549_v51  ;;  %v7221_v3 = vpop.f32.mrb[119].mxu0  ;;  %v7334_v33 = vpop.f32.mrb[107].mxu1  ;;  %23046 = vmatprep.subr.bf16.mxu0 %v20082_v15  ;;  %23078 = vmatprep.subr.bf16.mxu1 %v20098_v9  ;;  %v20076_v22 = vld [vmem:[#allocation10 + $0x228] sm:$0xff]  }
0x111a   :  { %v7222_v23 = vadd.f32 %v7221_v3, %v26553_v39  ;;  %v7335_v52 = vadd.f32 %v7334_v33, %v26561_v31  ;;  %8743 = vmatprep.mubr.f32.mxu0 %v7860_v63  ;;  %8848 = vmatprep.mubr.f32.mxu1 %v7862_v43  ;;  %v20092_v46 = vld [vmem:[#allocation10 + $0x2a8] sm:$0xff]   ;;  %v26595_v3 = vrot.slane %v26587_v10, %v28449_v35 }
0x111b   :  { %8744 = vmatmul.mubr.f32.gmra.mrb[180].mxu0 %v7859_v5  ;;  %8849 = vmatmul.mubr.f32.gmra.mrb[168].mxu1 %v7861_v12  ;;  %v7875_v56 = vmax.f32 %v7220_v25, 0.0  ;;  %v7877_v11 = vmax.f32 %v7333_v47, 0.0  ;;  %v20085_v25 = vld [vmem:[#allocation10 + $0x270] sm:$0xff]  }
0x111c   :  { %v7225_v19 = vpop.f32.mrb[120].mxu0  ;;  %v7338_v34 = vpop.f32.mrb[108].mxu1  ;;  %23048 = vmatpush3.bf16.msra.mxu0 %v20074_v49  ;;  %23080 = vmatpush3.bf16.msra.mxu1 %v20090_v45  ;;  %v7876_v17 = vmax.f32 %v7222_v23, 0.0  ;;  %v7878_v38 = vmax.f32 %v7335_v52, 0.0  ;;  %v20101_v47 = vld [vmem:[#allocation10 + $0x2f0] sm:$0xff]   ;;  %v26599_v45 = vrot.slane %v26587_v10, %v28450_v8  ;;  %v26603_v23 = vrot.slane %v26587_v10, %v28451_v27 }
0x111d   :  { %v7226_v4 = vadd.f32 %v7225_v19, %v26545_v7  ;;  %v7339_v28 = vadd.f32 %v7338_v34, %v26549_v51  ;;  %v7227_v59 = vpop.f32.mrb[121].mxu0  ;;  %v7340_v2 = vpop.f32.mrb[109].mxu1  ;;  %23050 = vmatprep.subr.bf16.mxu0 %v20083_v60  ;;  %23082 = vmatprep.subr.bf16.mxu1 %v20099_v48 }
0x111e   :  { %v7228_v40 = vadd.f32 %v7227_v59, %v26553_v39  ;;  %v7341_v18 = vadd.f32 %v7340_v2, %v26561_v31  ;;  %8748 = vmatprep.mubr.f32.mxu0 %v7876_v17  ;;  %8853 = vmatprep.mubr.f32.mxu1 %v7878_v38  ;;  %v20077_v38 = vld [vmem:[#allocation10 + $0x230] sm:$0xff]   ;;  %v26611_v2 = vrot.slane %v26587_v10, %v26485_v14 }
0x111f   :  { %8749 = vmatmul.mubr.f32.gmra.mrb[182].mxu0 %v7875_v56  ;;  %8854 = vmatmul.mubr.f32.gmra.mrb[170].mxu1 %v7877_v11  ;;  %v7891_v15 = vmax.f32 %v7226_v4, 0.0  ;;  %v7893_v9 = vmax.f32 %v7339_v28, 0.0  ;;  %v20093_v4 = vld [vmem:[#allocation10 + $0x2b0] sm:$0xff]  }
0x1120   :  { %v7231_v24 = vpop.f32.mrb[122].mxu0  ;;  %v7344_v16 = vpop.f32.mrb[110].mxu1  ;;  %23052 = vmatpush3.bf16.msra.mxu0 %v20075_v30  ;;  %23084 = vmatpush3.bf16.msra.mxu1 %v20091_v29  ;;  %v7892_v50 = vmax.f32 %v7228_v40, 0.0  ;;  %v7894_v42 = vmax.f32 %v7341_v18, 0.0 }
0x1121   :  { %v7232_v37 = vadd.f32 %v7231_v24, %v26545_v7  ;;  %v7345_v41 = vadd.f32 %v7344_v16, %v26549_v51  ;;  %v7233_v62 = vpop.f32.mrb[123].mxu0  ;;  %v7346_v6 = vpop.f32.mrb[111].mxu1  ;;  %23054 = vmatprep.subr.bf16.mxu0 %v20084_v61  ;;  %23086 = vmatprep.subr.bf16.mxu1 %v20100_v21  ;;  %v20078_v24 = vld [vmem:[#allocation10 + $0x238] sm:$0xff]  }
0x1122   :  { %v7234_v63 = vadd.f32 %v7233_v62, %v26553_v39  ;;  %v7347_v43 = vadd.f32 %v7346_v6, %v26561_v31  ;;  %8753 = vmatprep.mubr.f32.mxu0 %v7892_v50  ;;  %8858 = vmatprep.mubr.f32.mxu1 %v7894_v42  ;;  %v20094_v16 = vld [vmem:[#allocation10 + $0x2b8] sm:$0xff]  }
0x1123   :  { %8754 = vmatmul.mubr.f32.gmra.mrb[184].mxu0 %v7891_v15  ;;  %8859 = vmatmul.mubr.f32.gmra.mrb[172].mxu1 %v7893_v9  ;;  %v7907_v34 = vmax.f32 %v7232_v37, 0.0  ;;  %v7909_v17 = vmax.f32 %v7345_v41, 0.0  ;;  %v20111_v37 = vld [vmem:[#allocation10 + $0x340] sm:$0xff]  }
0x1124   :  { %v7237_v33 = vpop.f32.mrb[124].mxu0  ;;  %v7350_v5 = vpop.f32.mrb[112].mxu1  ;;  %23056 = vmatpush3.bf16.msra.mxu0 %v20076_v22  ;;  %23088 = vmatpush3.bf16.msra.mxu1 %v20092_v46  ;;  %v7908_v12 = vmax.f32 %v7234_v63, 0.0  ;;  %v7910_v49 = vmax.f32 %v7347_v43, 0.0  ;;  %v20127_v41 = vld [vmem:[#allocation10 + $0x3c0] sm:$0xff]  }
0x1125   :  { %v7238_v52 = vadd.f32 %v7237_v33, %v26545_v7  ;;  %v7351_v60 = vadd.f32 %v7350_v5, %v26549_v51  ;;  %v7239_v48 = vpop.f32.mrb[125].mxu0  ;;  %v7352_v19 = vpop.f32.mrb[113].mxu1  ;;  %23058 = vmatprep.subr.bf16.mxu0 %v20085_v25  ;;  %23090 = vmatprep.subr.bf16.mxu1 %v20101_v47  ;;  %v20086_v7 = vld [vmem:[#allocation10 + $0x278] sm:$0xff]   ;;  %v20103_v33 = vld [vmem:[#allocation10 + $0x300] sm:$0xff]  }
0x1126   :  { %v7240_v28 = vadd.f32 %v7239_v48, %v26553_v39  ;;  %v7353_v59 = vadd.f32 %v7352_v19, %v26561_v31  ;;  %8758 = vmatprep.mubr.f32.mxu0 %v7908_v12  ;;  %8863 = vmatprep.mubr.f32.mxu1 %v7910_v49  ;;  %v20102_v51 = vld [vmem:[#allocation10 + $0x2f8] sm:$0xff]   ;;  %v20119_v5 = vld [vmem:[#allocation10 + $0x380] sm:$0xff]  }
0x1127   :  { %8759 = vmatmul.mubr.f32.gmra.mrb[186].mxu0 %v7907_v34  ;;  %8864 = vmatmul.mubr.f32.gmra.mrb[174].mxu1 %v7909_v17  ;;  %v7923_v61 = vmax.f32 %v7238_v52, 0.0  ;;  %v7925_v21 = vmax.f32 %v7351_v60, 0.0  ;;  %v20112_v52 = vld [vmem:[#allocation10 + $0x348] sm:$0xff]  }
0x1128   :  { %v7421_v56 = vpop.f32.mrb[126].mxu0  ;;  %v7534_v11 = vpop.f32.mrb[114].mxu1  ;;  %23060 = vmatpush3.bf16.msra.mxu0 %v20077_v38  ;;  %23092 = vmatpush3.bf16.msra.mxu1 %v20093_v4  ;;  %v7924_v30 = vmax.f32 %v7240_v28, 0.0  ;;  %v7926_v29 = vmax.f32 %v7353_v59, 0.0  ;;  %v20128_v60 = vld [vmem:[#allocation10 + $0x3c8] sm:$0xff]  }
0x1129   :  { %v7422_v39 = vadd.f32 %v7421_v56, %v26595_v3  ;;  %v7535_v31 = vadd.f32 %v7534_v11, %v26599_v45  ;;  %v7423_v40 = vpop.f32.mrb[127].mxu0  ;;  %v7536_v18 = vpop.f32.mrb[115].mxu1  ;;  %23062 = vmatprep.subr.bf16.mxu0 %v20086_v7  ;;  %23094 = vmatprep.subr.bf16.mxu1 %v20102_v51  ;;  %v20104_v56 = vld [vmem:[#allocation10 + $0x308] sm:$0xff]  }
0x112a   :  { %v7424_v50 = vadd.f32 %v7423_v40, %v26603_v23  ;;  %v7537_v42 = vadd.f32 %v7536_v18, %v26611_v2  ;;  %8763 = vmatprep.mubr.f32.mxu0 %v7924_v30  ;;  %8868 = vmatprep.mubr.f32.mxu1 %v7926_v29  ;;  %v20120_v11 = vld [vmem:[#allocation10 + $0x388] sm:$0xff]  }
0x112b   :  { %8764 = vmatmul.mubr.f32.gmra.mrb[188].mxu0 %v7923_v61  ;;  %8869 = vmatmul.mubr.f32.gmra.mrb[176].mxu1 %v7925_v21  ;;  %v7815_v22 = vmax.f32 %v7422_v39, 0.0  ;;  %v7817_v46 = vmax.f32 %v7535_v31, 0.0  ;;  %v20113_v39 = vld [vmem:[#allocation10 + $0x350] sm:$0xff]  }
0x112c   :  { %v7427_v62 = vpop.f32.mrb[128].mxu0  ;;  %v7540_v6 = vpop.f32.mrb[116].mxu1  ;;  %23064 = vmatpush3.bf16.msra.mxu0 %v20078_v24  ;;  %23096 = vmatpush3.bf16.msra.mxu1 %v20094_v16  ;;  %v7816_v15 = vmax.f32 %v7424_v50, 0.0  ;;  %v7818_v9 = vmax.f32 %v7537_v42, 0.0  ;;  %v20129_v31 = vld [vmem:[#allocation10 + $0x3d0] sm:$0xff]  }
0x112d   :  { %v7428_v63 = vadd.f32 %v7427_v62, %v26595_v3  ;;  %v7541_v43 = vadd.f32 %v7540_v6, %v26599_v45  ;;  %v7429_v25 = vpop.f32.mrb[129].mxu0  ;;  %v7542_v47 = vpop.f32.mrb[117].mxu1  ;;  %23098 = vmatprep.subr.bf16.mxu0 %v20111_v37  ;;  %23130 = vmatprep.subr.bf16.mxu1 %v20127_v41  ;;  %v20105_v62 = vld [vmem:[#allocation10 + $0x310] sm:$0xff]  }
0x112e   :  { %v7430_v12 = vadd.f32 %v7429_v25, %v26603_v23  ;;  %v7543_v49 = vadd.f32 %v7542_v47, %v26611_v2  ;;  %8938 = vmatprep.mubr.f32.mxu0 %v7816_v15  ;;  %9043 = vmatprep.mubr.f32.mxu1 %v7818_v9  ;;  %v20121_v6 = vld [vmem:[#allocation10 + $0x390] sm:$0xff]  }
0x112f   :  { %8939 = vmatmul.mubr.f32.vlgmr.msra.gmra.mrb[190].mxu0 %v7815_v22  ;;  %9044 = vmatmul.mubr.f32.vlgmr.msra.gmra.mrb[178].mxu1 %v7817_v46  ;;  %v7831_v7 = vmax.f32 %v7428_v63, 0.0  ;;  %v7833_v51 = vmax.f32 %v7541_v43, 0.0  ;;  %v20114_v22 = vld [vmem:[#allocation10 + $0x358] sm:$0xff]  }
0x1130   :  { %v7433_v48 = vpop.f32.mrb[130].mxu0  ;;  %v7546_v19 = vpop.f32.mrb[118].mxu1  ;;  %23100 = vmatpush3.bf16.msra.mxu0 %v20103_v33  ;;  %23132 = vmatpush3.bf16.msra.mxu1 %v20119_v5  ;;  %v7832_v34 = vmax.f32 %v7430_v12, 0.0  ;;  %v7834_v17 = vmax.f32 %v7543_v49, 0.0  ;;  %v20130_v46 = vld [vmem:[#allocation10 + $0x3d8] sm:$0xff]  }
0x1131   :  { %v7434_v38 = vadd.f32 %v7433_v48, %v26595_v3  ;;  %v7547_v4 = vadd.f32 %v7546_v19, %v26599_v45  ;;  %v7435_v28 = vpop.f32.mrb[131].mxu0  ;;  %v7548_v59 = vpop.f32.mrb[119].mxu1  ;;  %23102 = vmatprep.subr.bf16.mxu0 %v20112_v52  ;;  %23134 = vmatprep.subr.bf16.mxu1 %v20128_v60  ;;  %v20106_v48 = vld [vmem:[#allocation10 + $0x318] sm:$0xff]  }
0x1132   :  { %v7436_v30 = vadd.f32 %v7435_v28, %v26603_v23  ;;  %v7549_v29 = vadd.f32 %v7548_v59, %v26611_v2  ;;  %8943 = vmatprep.mubr.f32.mxu0 %v7832_v34  ;;  %9048 = vmatprep.mubr.f32.mxu1 %v7834_v17  ;;  %v20122_v19 = vld [vmem:[#allocation10 + $0x398] sm:$0xff]  }
0x1133   :  { %8944 = vmatmul.mubr.f32.gmra.mrb[192].mxu0 %v7831_v7  ;;  %9049 = vmatmul.mubr.f32.gmra.mrb[180].mxu1 %v7833_v51  ;;  %v7847_v37 = vmax.f32 %v7434_v38, 0.0  ;;  %v7849_v41 = vmax.f32 %v7547_v4, 0.0  ;;  %v20115_v38 = vld [vmem:[#allocation10 + $0x360] sm:$0xff]  }
0x1134   :  { %v7439_v40 = vpop.f32.mrb[132].mxu0  ;;  %v7552_v18 = vpop.f32.mrb[120].mxu1  ;;  %23104 = vmatpush3.bf16.msra.mxu0 %v20104_v56  ;;  %23136 = vmatpush3.bf16.msra.mxu1 %v20120_v11  ;;  %v7848_v61 = vmax.f32 %v7436_v30, 0.0  ;;  %v7850_v21 = vmax.f32 %v7549_v29, 0.0  ;;  %v20131_v4 = vld [vmem:[#allocation10 + $0x3e0] sm:$0xff]  }
0x1135   :  { %v7440_v24 = vadd.f32 %v7439_v40, %v26595_v3  ;;  %v7553_v16 = vadd.f32 %v7552_v18, %v26599_v45  ;;  %v7441_v50 = vpop.f32.mrb[133].mxu0  ;;  %v7554_v42 = vpop.f32.mrb[121].mxu1  ;;  %23106 = vmatprep.subr.bf16.mxu0 %v20113_v39  ;;  %23138 = vmatprep.subr.bf16.mxu1 %v20129_v31  ;;  %v20107_v40 = vld [vmem:[#allocation10 + $0x320] sm:$0xff]  }
0x1136   :  { %v7442_v15 = vadd.f32 %v7441_v50, %v26603_v23  ;;  %v7555_v9 = vadd.f32 %v7554_v42, %v26611_v2  ;;  %8948 = vmatprep.mubr.f32.mxu0 %v7848_v61  ;;  %9053 = vmatprep.mubr.f32.mxu1 %v7850_v21  ;;  %v20123_v18 = vld [vmem:[#allocation10 + $0x3a0] sm:$0xff]  }
0x1137   :  { %8949 = vmatmul.mubr.f32.gmra.mrb[194].mxu0 %v7847_v37  ;;  %9054 = vmatmul.mubr.f32.gmra.mrb[182].mxu1 %v7849_v41  ;;  %v7863_v52 = vmax.f32 %v7440_v24, 0.0  ;;  %v7865_v60 = vmax.f32 %v7553_v16, 0.0  ;;  %v20116_v24 = vld [vmem:[#allocation10 + $0x368] sm:$0xff]  }
0x1138   :  { %v7445_v63 = vpop.f32.mrb[134].mxu0  ;;  %v7558_v43 = vpop.f32.mrb[122].mxu1  ;;  %23108 = vmatpush3.bf16.msra.mxu0 %v20105_v62  ;;  %23140 = vmatpush3.bf16.msra.mxu1 %v20121_v6  ;;  %v7864_v25 = vmax.f32 %v7442_v15, 0.0  ;;  %v7866_v47 = vmax.f32 %v7555_v9, 0.0  ;;  %v20132_v16 = vld [vmem:[#allocation10 + $0x3e8] sm:$0xff]  }
0x1139   :  { %v7446_v33 = vadd.f32 %v7445_v63, %v26595_v3  ;;  %v7559_v5 = vadd.f32 %v7558_v43, %v26599_v45  ;;  %v7447_v12 = vpop.f32.mrb[135].mxu0  ;;  %v7560_v49 = vpop.f32.mrb[123].mxu1  ;;  %23110 = vmatprep.subr.bf16.mxu0 %v20114_v22  ;;  %23142 = vmatprep.subr.bf16.mxu1 %v20130_v46  ;;  %v20108_v63 = vld [vmem:[#allocation10 + $0x328] sm:$0xff]  }
0x113a   :  { %v7448_v34 = vadd.f32 %v7447_v12, %v26603_v23  ;;  %v7561_v17 = vadd.f32 %v7560_v49, %v26611_v2  ;;  %8953 = vmatprep.mubr.f32.mxu0 %v7864_v25  ;;  %9058 = vmatprep.mubr.f32.mxu1 %v7866_v47  ;;  %v20124_v43 = vld [vmem:[#allocation10 + $0x3a8] sm:$0xff]   ;;  %v26643_v12 = vrot.slane %v26587_v10, %v26528_v0 }
0x113b   :  { %8954 = vmatmul.mubr.f32.gmra.mrb[196].mxu0 %v7863_v52  ;;  %9059 = vmatmul.mubr.f32.gmra.mrb[184].mxu1 %v7865_v60  ;;  %v7879_v39 = vmax.f32 %v7446_v33, 0.0  ;;  %v7881_v31 = vmax.f32 %v7559_v5, 0.0  ;;  %v20117_v33 = vld [vmem:[#allocation10 + $0x370] sm:$0xff]  }
0x113c   :  { %v7451_v28 = vpop.f32.mrb[136].mxu0  ;;  %v7564_v59 = vpop.f32.mrb[124].mxu1  ;;  %23112 = vmatpush3.bf16.msra.mxu0 %v20106_v48  ;;  %23144 = vmatpush3.bf16.msra.mxu1 %v20122_v19  ;;  %v7880_v7 = vmax.f32 %v7448_v34, 0.0  ;;  %v7882_v51 = vmax.f32 %v7561_v17, 0.0  ;;  %v20133_v5 = vld [vmem:[#allocation10 + $0x3f0] sm:$0xff]   ;;  %v26647_v19 = vrot.slane %v26587_v10, %v26531_v53  ;;  %v26651_v34 = vrot.slane %v26587_v10, %v26534_v32 }
0x113d   :  { %v7452_v56 = vadd.f32 %v7451_v28, %v26595_v3  ;;  %v7565_v11 = vadd.f32 %v7564_v59, %v26599_v45  ;;  %v7453_v30 = vpop.f32.mrb[137].mxu0  ;;  %v7566_v29 = vpop.f32.mrb[125].mxu1  ;;  %23114 = vmatprep.subr.bf16.mxu0 %v20115_v38  ;;  %23146 = vmatprep.subr.bf16.mxu1 %v20131_v4 }
0x113e   :  { %v7454_v61 = vadd.f32 %v7453_v30, %v26603_v23  ;;  %v7567_v21 = vadd.f32 %v7566_v29, %v26611_v2  ;;  %8958 = vmatprep.mubr.f32.mxu0 %v7880_v7  ;;  %9063 = vmatprep.mubr.f32.mxu1 %v7882_v51  ;;  %v20109_v51 = vld [vmem:[#allocation10 + $0x330] sm:$0xff]   ;;  %v26659_v29 = vrot.slane %v26587_v10, %v26541_v20  ;;  %v20110_v10 = vld [vmem:[#allocation10 + $0x338] sm:$0xff]  }
0x113f   :  { %8959 = vmatmul.mubr.f32.gmra.mrb[198].mxu0 %v7879_v39  ;;  %9064 = vmatmul.mubr.f32.gmra.mrb[186].mxu1 %v7881_v31  ;;  %v7895_v22 = vmax.f32 %v7452_v56, 0.0  ;;  %v7897_v46 = vmax.f32 %v7565_v11, 0.0  ;;  %v20125_v56 = vld [vmem:[#allocation10 + $0x3b0] sm:$0xff]  }
0x1140   :  { %v7457_v50 = vpop.f32.mrb[138].mxu0  ;;  %v7570_v42 = vpop.f32.mrb[126].mxu1  ;;  %23116 = vmatpush3.bf16.msra.mxu0 %v20107_v40  ;;  %23148 = vmatpush3.bf16.msra.mxu1 %v20123_v18  ;;  %v7896_v37 = vmax.f32 %v7454_v61, 0.0  ;;  %v7898_v41 = vmax.f32 %v7567_v21, 0.0 }
0x1141   :  { %v7458_v62 = vadd.f32 %v7457_v50, %v26595_v3  ;;  %v7571_v6 = vadd.f32 %v7570_v42, %v26599_v45  ;;  %v7459_v15 = vpop.f32.mrb[139].mxu0  ;;  %v7572_v9 = vpop.f32.mrb[127].mxu1  ;;  %23118 = vmatprep.subr.bf16.mxu0 %v20116_v24  ;;  %23150 = vmatprep.subr.bf16.mxu1 %v20132_v16  ;;  %v20126_v50 = vld [vmem:[#allocation10 + $0x3b8] sm:$0xff]  }
0x1142   :  { %v7460_v25 = vadd.f32 %v7459_v15, %v26603_v23  ;;  %v7573_v47 = vadd.f32 %v7572_v9, %v26611_v2  ;;  %8963 = vmatprep.mubr.f32.mxu0 %v7896_v37  ;;  %9068 = vmatprep.mubr.f32.mxu1 %v7898_v41 }
0x1143   :  { %8964 = vmatmul.mubr.f32.gmra.mrb[200].mxu0 %v7895_v22  ;;  %9069 = vmatmul.mubr.f32.gmra.mrb[188].mxu1 %v7897_v46  ;;  %v7911_v59 = vmax.f32 %v7458_v62, 0.0  ;;  %v7913_v7 = vmax.f32 %v7571_v6, 0.0 }
0x1144   :  { %v7463_v49 = vpop.f32.mrb[140].mxu0  ;;  %v7576_v52 = vpop.f32.mrb[128].mxu1  ;;  %23120 = vmatpush3.bf16.msra.mxu0 %v20108_v63  ;;  %23152 = vmatpush3.bf16.msra.mxu1 %v20124_v43  ;;  %v7912_v60 = vmax.f32 %v7460_v25, 0.0  ;;  %v7914_v48 = vmax.f32 %v7573_v47, 0.0 }
0x1145   :  { %v7464_v17 = vadd.f32 %v7463_v49, %v26595_v3  ;;  %v7577_v38 = vadd.f32 %v7576_v52, %v26599_v45  ;;  %v7465_v4 = vpop.f32.mrb[141].mxu0  ;;  %v7578_v28 = vpop.f32.mrb[129].mxu1  ;;  %23122 = vmatprep.subr.bf16.mxu0 %v20117_v33  ;;  %23154 = vmatprep.subr.bf16.mxu1 %v20133_v5  ;;  %v20118_v3 = vld [vmem:[#allocation10 + $0x378] sm:$0xff]  }
0x1146   :  { %v7466_v11 = vadd.f32 %v7465_v4, %v26603_v23  ;;  %v7579_v30 = vadd.f32 %v7578_v28, %v26611_v2  ;;  %8968 = vmatprep.mubr.f32.mxu0 %v7912_v60  ;;  %9073 = vmatprep.mubr.f32.mxu1 %v7914_v48  ;;  %v20134_v45 = vld [vmem:[#allocation10 + $0x3f8] sm:$0xff]  }
0x1147   :  { %8969 = vmatmul.mubr.f32.gmra.mrb[202].mxu0 %v7911_v59  ;;  %9074 = vmatmul.mubr.f32.gmra.mrb[190].mxu1 %v7913_v7  ;;  %v7927_v24 = vmax.f32 %v7464_v17, 0.0  ;;  %v7929_v16 = vmax.f32 %v7577_v38, 0.0 }
0x1148   :  { %v7647_v39 = vpop.f32.mrb[142].mxu0  ;;  %v7760_v31 = vpop.f32.mrb[130].mxu1  ;;  %23124 = vmatpush3.bf16.msra.mxu0 %v20109_v51  ;;  %23156 = vmatpush3.bf16.msra.mxu1 %v20125_v56  ;;  %v7928_v40 = vmax.f32 %v7466_v11, 0.0  ;;  %v7930_v18 = vmax.f32 %v7579_v30, 0.0 }
0x1149   :  { %v7648_v23 = vadd.f32 %v7647_v39, %v26643_v12  ;;  %v7761_v2 = vadd.f32 %v7760_v31, %v26647_v19  ;;  %v7649_v61 = vpop.f32.mrb[143].mxu0  ;;  %v7762_v21 = vpop.f32.mrb[131].mxu1  ;;  %23126 = vmatprep.subr.bf16.mxu0 %v20118_v3  ;;  %23158 = vmatprep.subr.bf16.mxu1 %v20134_v45 }
0x114a   :  { %v7650_v42 = vadd.f32 %v7649_v61, %v26651_v34  ;;  %v7763_v37 = vadd.f32 %v7762_v21, %v26659_v29  ;;  %8973 = vmatprep.mubr.f32.mxu0 %v7928_v40  ;;  %9078 = vmatprep.mubr.f32.mxu1 %v7930_v18 }
0x114b   :  { %8974 = vmatmul.mubr.f32.gmra.mrb[204].mxu0 %v7927_v24  ;;  %9079 = vmatmul.mubr.f32.gmra.mrb[192].mxu1 %v7929_v16  ;;  %v7819_v9 = vmax.f32 %v7648_v23, 0.0  ;;  %v7821_v22 = vmax.f32 %v7761_v2, 0.0 }
0x114c   :  { %v7653_v41 = vpop.f32.mrb[144].mxu0  ;;  %v7766_v62 = vpop.f32.mrb[132].mxu1  ;;  %23128 = vmatpush3.bf16.msra.mxu0 %v20110_v10  ;;  %23160 = vmatpush3.bf16.msra.mxu1 %v20126_v50  ;;  %v7820_v6 = vmax.f32 %v7650_v42, 0.0  ;;  %v7822_v15 = vmax.f32 %v7763_v37, 0.0 }
0x114d   :  { %v7654_v46 = vadd.f32 %v7653_v41, %v26643_v12  ;;  %v7767_v63 = vadd.f32 %v7766_v62, %v26647_v19  ;;  %v7655_v43 = vpop.f32.mrb[145].mxu0  ;;  %v7768_v25 = vpop.f32.mrb[133].mxu1 }
0x114e   :  { %v7656_v47 = vadd.f32 %v7655_v43, %v26651_v34  ;;  %v7769_v33 = vadd.f32 %v7768_v25, %v26659_v29  ;;  %9148 = vmatprep.mubr.f32.mxu0 %v7820_v6  ;;  %9253 = vmatprep.mubr.f32.mxu1 %v7822_v15 }
0x114f   :  { %9149 = vmatmul.mubr.f32.vlgmr.msra.gmra.mrb[206].mxu0 %v7819_v9  ;;  %9254 = vmatmul.mubr.f32.vlgmr.msra.gmra.mrb[194].mxu1 %v7821_v22  ;;  %v7835_v28 = vmax.f32 %v7654_v46, 0.0  ;;  %v7837_v59 = vmax.f32 %v7767_v63, 0.0 }
0x1150   :  { %v7659_v5 = vpop.f32.mrb[146].mxu0  ;;  %v7772_v49 = vpop.f32.mrb[134].mxu1  ;;  %v7836_v52 = vmax.f32 %v7656_v47, 0.0  ;;  %v7838_v60 = vmax.f32 %v7769_v33, 0.0 }
0x1151   :  { %v7660_v48 = vadd.f32 %v7659_v5, %v26643_v12  ;;  %v7773_v17 = vadd.f32 %v7772_v49, %v26647_v19  ;;  %v7661_v38 = vpop.f32.mrb[147].mxu0  ;;  %v7774_v4 = vpop.f32.mrb[135].mxu1 }
0x1152   :  { %v7662_v7 = vadd.f32 %v7661_v38, %v26651_v34  ;;  %v7775_v51 = vadd.f32 %v7774_v4, %v26659_v29  ;;  %9153 = vmatprep.mubr.f32.mxu0 %v7836_v52  ;;  %9258 = vmatprep.mubr.f32.mxu1 %v7838_v60 }
0x1153   :  { %9154 = vmatmul.mubr.f32.gmra.mrb[208].mxu0 %v7835_v28  ;;  %9259 = vmatmul.mubr.f32.gmra.mrb[196].mxu1 %v7837_v59  ;;  %v7851_v18 = vmax.f32 %v7660_v48, 0.0  ;;  %v7853_v23 = vmax.f32 %v7773_v17, 0.0 }
0x1154   :  { %v7665_v56 = vpop.f32.mrb[148].mxu0  ;;  %v7778_v11 = vpop.f32.mrb[136].mxu1  ;;  %v7852_v30 = vmax.f32 %v7662_v7, 0.0  ;;  %v7854_v3 = vmax.f32 %v7775_v51, 0.0 }
0x1155   :  { %v7666_v45 = vadd.f32 %v7665_v56, %v26643_v12  ;;  %v7779_v39 = vadd.f32 %v7778_v11, %v26647_v19  ;;  %v7667_v31 = vpop.f32.mrb[149].mxu0  ;;  %v7780_v40 = vpop.f32.mrb[137].mxu1 }
0x1156   :  { %v7668_v2 = vadd.f32 %v7667_v31, %v26651_v34  ;;  %v7781_v61 = vadd.f32 %v7780_v40, %v26659_v29  ;;  %9158 = vmatprep.mubr.f32.mxu0 %v7852_v30  ;;  %9263 = vmatprep.mubr.f32.mxu1 %v7854_v3 }
0x1157   :  { %9159 = vmatmul.mubr.f32.gmra.mrb[210].mxu0 %v7851_v18  ;;  %9264 = vmatmul.mubr.f32.gmra.mrb[198].mxu1 %v7853_v23  ;;  %v7867_v62 = vmax.f32 %v7666_v45, 0.0  ;;  %v7869_v6 = vmax.f32 %v7779_v39, 0.0 }
0x1158   :  { %v7671_v21 = vpop.f32.mrb[150].mxu0  ;;  %v7784_v24 = vpop.f32.mrb[138].mxu1  ;;  %v7868_v16 = vmax.f32 %v7668_v2, 0.0  ;;  %v7870_v10 = vmax.f32 %v7781_v61, 0.0 }
0x1159   :  { %v7672_v50 = vadd.f32 %v7671_v21, %v26643_v12  ;;  %v7785_v42 = vadd.f32 %v7784_v24, %v26647_v19  ;;  %v7673_v37 = vpop.f32.mrb[151].mxu0  ;;  %v7786_v41 = vpop.f32.mrb[139].mxu1 }
0x115a   :  { %v7674_v15 = vadd.f32 %v7673_v37, %v26651_v34  ;;  %v7787_v9 = vadd.f32 %v7786_v41, %v26659_v29  ;;  %9163 = vmatprep.mubr.f32.mxu0 %v7868_v16  ;;  %9268 = vmatprep.mubr.f32.mxu1 %v7870_v10 }
0x115b   :  { %9164 = vmatmul.mubr.f32.gmra.mrb[212].mxu0 %v7867_v62  ;;  %9269 = vmatmul.mubr.f32.gmra.mrb[200].mxu1 %v7869_v6  ;;  %v7883_v49 = vmax.f32 %v7672_v50, 0.0  ;;  %v7885_v52 = vmax.f32 %v7785_v42, 0.0  ;;  %v18714_v6 = vld [vmem:[#allocation2 + $0x1a] ss:$0 sm:$0xff] }
0x115c   :  { %v7677_v22 = vpop.f32.mrb[152].mxu0  ;;  %v7790_v46 = vpop.f32.mrb[140].mxu1  ;;  %v7884_v63 = vmax.f32 %v7674_v15, 0.0  ;;  %v7886_v43 = vmax.f32 %v7787_v9, 0.0 }
0x115d   :  { %v7678_v25 = vadd.f32 %v7677_v22, %v26643_v12  ;;  %v7791_v47 = vadd.f32 %v7790_v46, %v26647_v19  ;;  %v7679_v33 = vpop.f32.mrb[153].mxu0  ;;  %v7792_v5 = vpop.f32.mrb[141].mxu1 }
0x115e   :  { %v7680_v60 = vadd.f32 %v7679_v33, %v26651_v34  ;;  %v7793_v48 = vadd.f32 %v7792_v5, %v26659_v29  ;;  %9168 = vmatprep.mubr.f32.mxu0 %v7884_v63  ;;  %9273 = vmatprep.mubr.f32.mxu1 %v7886_v43 }
0x115f   :  { %9169 = vmatmul.mubr.f32.gmra.mrb[214].mxu0 %v7883_v49  ;;  %9274 = vmatmul.mubr.f32.gmra.mrb[202].mxu1 %v7885_v52  ;;  %v7899_v11 = vmax.f32 %v7678_v25, 0.0  ;;  %v7901_v30 = vmax.f32 %v7791_v47, 0.0 }
0x1160   :  { %v7683_v17 = vpop.f32.mrb[154].mxu0  ;;  %v7796_v38 = vpop.f32.mrb[142].mxu1  ;;  %v7900_v4 = vmax.f32 %v7680_v60, 0.0  ;;  %v7902_v28 = vmax.f32 %v7793_v48, 0.0 }
0x1161   :  { %v7684_v59 = vadd.f32 %v7683_v17, %v26643_v12  ;;  %v7797_v7 = vadd.f32 %v7796_v38, %v26647_v19  ;;  %v7685_v51 = vpop.f32.mrb[155].mxu0  ;;  %v7798_v56 = vpop.f32.mrb[143].mxu1 }
0x1162   :  { %v7686_v3 = vadd.f32 %v7685_v51, %v26651_v34  ;;  %v7799_v45 = vadd.f32 %v7798_v56, %v26659_v29  ;;  %9173 = vmatprep.mubr.f32.mxu0 %v7900_v4  ;;  %9278 = vmatprep.mubr.f32.mxu1 %v7902_v28 }
0x1163   :  { %9174 = vmatmul.mubr.f32.gmra.mrb[216].mxu0 %v7899_v11  ;;  %9279 = vmatmul.mubr.f32.gmra.mrb[204].mxu1 %v7901_v30  ;;  %v7915_v24 = vmax.f32 %v7684_v59, 0.0  ;;  %v7917_v16 = vmax.f32 %v7797_v7, 0.0 }
0x1164   :  { %v7689_v39 = vpop.f32.mrb[156].mxu0  ;;  %v7802_v31 = vpop.f32.mrb[144].mxu1  ;;  %v7916_v40 = vmax.f32 %v7686_v3, 0.0  ;;  %v7918_v18 = vmax.f32 %v7799_v45, 0.0 }
0x1165   :  { %v7690_v23 = vadd.f32 %v7689_v39, %v26643_v12  ;;  %v7803_v2 = vadd.f32 %v7802_v31, %v26647_v19  ;;  %v7691_v61 = vpop.f32.mrb[157].mxu0  ;;  %v7804_v21 = vpop.f32.mrb[145].mxu1 }
0x1166   :  { %v7692_v10 = vadd.f32 %v7691_v61, %v26651_v34  ;;  %v7805_v50 = vadd.f32 %v7804_v21, %v26659_v29  ;;  %9178 = vmatprep.mubr.f32.mxu0 %v7916_v40  ;;  %9283 = vmatprep.mubr.f32.mxu1 %v7918_v18 }
0x1167   :  { %9179 = vmatmul.mubr.f32.gmra.mrb[218].mxu0 %v7915_v24  ;;  %9284 = vmatmul.mubr.f32.gmra.mrb[206].mxu1 %v7917_v16  ;;  %v7931_v41 = vmax.f32 %v7690_v23, 0.0  ;;  %v7933_v62 = vmax.f32 %v7803_v2, 0.0 }
0x1168   :  { %v7932_v42 = vmax.f32 %v7692_v10, 0.0  ;;  %v7934_v37 = vmax.f32 %v7805_v50, 0.0 }
0x116a   :  { %9183 = vmatprep.mubr.f32.mxu0 %v7932_v42  ;;  %9288 = vmatprep.mubr.f32.mxu1 %v7934_v37 }
0x116b   :  { %9184 = vmatmul.mubr.f32.gmra.mrb[220].mxu0 %v7931_v41  ;;  %9289 = vmatmul.mubr.f32.gmra.mrb[208].mxu1 %v7933_v62 }
0x116c   :  { %9581 = vmatprep.mubr.f32.mxu0 %v28433_v58 }
0x1194   :  { %v20521_v12 = vpop.f32.mrb[158].mxu0  ;;  %v20577_v19 = vpop.f32.mrb[146].mxu1 }
0x1195   :  { %v20522_v34 = vpop.f32.mrb[159].mxu0  ;;  %v20578_v15 = vpop.f32.mrb[147].mxu1 }
0x1196   :  { %v20523_v29 = vadd.f32 %v20522_v34, %v20521_v12  ;;  %v20579_v9 = vadd.f32 %v20578_v15, %v20577_v19 }
0x1198   :  { %v8521_v22 = vadd.f32 %v20523_v29, %v18714_v6  ;;  %v20524_v46 = vpop.f32.mrb[160].mxu0  ;;  %v20580_v63 = vpop.f32.mrb[148].mxu1 }
0x1199   :  { %v20525_v43 = vpop.f32.mrb[161].mxu0  ;;  %v20581_v25 = vpop.f32.mrb[149].mxu1 }
0x119a   :  { %v8626_v47 = vadd.f32 %v20579_v9, %v8521_v22  ;;  %v20526_v33 = vadd.f32 %v20525_v43, %v20524_v46  ;;  %v20582_v5 = vadd.f32 %v20581_v25, %v20580_v63 }
0x119c   :  { %v8526_v49 = vadd.f32 %v20526_v33, %v18714_v6 }
0x119e   :  { %v26694_v52 = vadd.f32 %v20582_v5, %v8526_v49 }
0x11c9   :  { %v20527_v60 = vpop.f32.mrb[162].mxu0  ;;  %v20583_v48 = vpop.f32.mrb[150].mxu1 }
0x11ca   :  { %v20528_v17 = vpop.f32.mrb[163].mxu0  ;;  %v20584_v38 = vpop.f32.mrb[151].mxu1 }
0x11cb   :  { %v20529_v4 = vadd.f32 %v20528_v17, %v20527_v60  ;;  %v20585_v28 = vadd.f32 %v20584_v38, %v20583_v48 }
0x11cd   :  { %v8531_v59 = vadd.f32 %v20529_v4, %v18714_v6  ;;  %v20530_v7 = vpop.f32.mrb[164].mxu0  ;;  %v20586_v51 = vpop.f32.mrb[152].mxu1 }
0x11ce   :  { %v20531_v56 = vpop.f32.mrb[165].mxu0  ;;  %v20587_v11 = vpop.f32.mrb[153].mxu1 }
0x11cf   :  { %v8636_v30 = vadd.f32 %v20585_v28, %v8531_v59  ;;  %v20532_v3 = vadd.f32 %v20531_v56, %v20530_v7  ;;  %v20588_v45 = vadd.f32 %v20587_v11, %v20586_v51 }
0x11d1   :  { %v8536_v39 = vadd.f32 %v20532_v3, %v18714_v6 }
0x11d2   :  { %v20533_v31 = vpop.f32.mrb[166].mxu0  ;;  %v20589_v40 = vpop.f32.mrb[154].mxu1 }
0x11d3   :  { %v8641_v18 = vadd.f32 %v20588_v45, %v8536_v39  ;;  %v20534_v23 = vpop.f32.mrb[167].mxu0  ;;  %v20590_v2 = vpop.f32.mrb[155].mxu1 }
0x11d4   :  { %v20535_v61 = vadd.f32 %v20534_v23, %v20533_v31  ;;  %v20591_v21 = vadd.f32 %v20590_v2, %v20589_v40 }
0x11d6   :  { %v8541_v24 = vadd.f32 %v20535_v61, %v18714_v6  ;;  %v20536_v16 = vpop.f32.mrb[168].mxu0  ;;  %v20592_v10 = vpop.f32.mrb[156].mxu1 }
0x11d7   :  { %v20537_v50 = vpop.f32.mrb[169].mxu0  ;;  %v20593_v42 = vpop.f32.mrb[157].mxu1 }
0x11d8   :  { %v20538_v37 = vadd.f32 %v20537_v50, %v20536_v16  ;;  %v20594_v41 = vadd.f32 %v20593_v42, %v20592_v10  ;;  %v8646_v62 = vadd.f32 %v20591_v21, %v8541_v24 }
0x11da   :  { %v8546_v12 = vadd.f32 %v20538_v37, %v18714_v6  ;;  %v20539_v19 = vpop.f32.mrb[170].mxu0  ;;  %v20595_v34 = vpop.f32.mrb[158].mxu1 }
0x11db   :  { %v20540_v15 = vpop.f32.mrb[171].mxu0  ;;  %v20596_v29 = vpop.f32.mrb[159].mxu1 }
0x11dc   :  { %v20541_v9 = vadd.f32 %v20540_v15, %v20539_v19  ;;  %v20597_v22 = vadd.f32 %v20596_v29, %v20595_v34  ;;  %v8651_v46 = vadd.f32 %v20594_v41, %v8546_v12 }
0x11de   :  { %v8551_v63 = vadd.f32 %v20541_v9, %v18714_v6  ;;  %v20542_v43 = vpop.f32.mrb[172].mxu0  ;;  %v20598_v25 = vpop.f32.mrb[160].mxu1 }
0x11df   :  { %v20543_v33 = vpop.f32.mrb[173].mxu0  ;;  %v20599_v5 = vpop.f32.mrb[161].mxu1 }
0x11e0   :  { %v8656_v49 = vadd.f32 %v20597_v22, %v8551_v63  ;;  %v20544_v60 = vadd.f32 %v20543_v33, %v20542_v43  ;;  %v20600_v48 = vadd.f32 %v20599_v5, %v20598_v25 }
0x11e2   :  { %v8556_v17 = vadd.f32 %v20544_v60, %v18714_v6  ;;  %v20633_v38 = vpop.f32.mrb[174].mxu0  ;;  %v20689_v4 = vpop.f32.mrb[162].mxu1 }
0x11e3   :  { %v20634_v28 = vpop.f32.mrb[175].mxu0  ;;  %v20690_v59 = vpop.f32.mrb[163].mxu1 }
0x11e4   :  { %v8661_v7 = vadd.f32 %v20600_v48, %v8556_v17  ;;  %v20635_v51 = vadd.f32 %v20634_v28, %v20633_v38  ;;  %v20691_v56 = vadd.f32 %v20690_v59, %v20689_v4 }
0x11e6   :  { %v8731_v11 = vadd.f32 %v20635_v51, %v8626_v47  ;;  %v20636_v3 = vpop.f32.mrb[176].mxu0  ;;  %v20692_v45 = vpop.f32.mrb[164].mxu1 }
0x11e7   :  { %v20637_v39 = vpop.f32.mrb[177].mxu0  ;;  %v20693_v31 = vpop.f32.mrb[165].mxu1 }
0x11e8   :  { %v8836_v40 = vadd.f32 %v20691_v56, %v8731_v11  ;;  %v20638_v23 = vadd.f32 %v20637_v39, %v20636_v3  ;;  %v20694_v2 = vadd.f32 %v20693_v31, %v20692_v45 }
0x11ea   :  { %v8736_v61 = vadd.f32 %v20638_v23, %v26694_v52  ;;  %v20639_v21 = vpop.f32.mrb[178].mxu0  ;;  %v20695_v24 = vpop.f32.mrb[166].mxu1 }
0x11eb   :  { %v20640_v6 = vpop.f32.mrb[179].mxu0  ;;  %v20696_v16 = vpop.f32.mrb[167].mxu1 }
0x11ec   :  { %v8841_v10 = vadd.f32 %v20694_v2, %v8736_v61  ;;  %v20641_v50 = vadd.f32 %v20640_v6, %v20639_v21  ;;  %v20697_v42 = vadd.f32 %v20696_v16, %v20695_v24 }
0x11ee   :  { %v8741_v37 = vadd.f32 %v20641_v50, %v8636_v30  ;;  %v20642_v41 = vpop.f32.mrb[180].mxu0  ;;  %v20698_v12 = vpop.f32.mrb[168].mxu1 }
0x11ef   :  { %v20643_v47 = vpop.f32.mrb[181].mxu0  ;;  %v20699_v19 = vpop.f32.mrb[169].mxu1 }
0x11f0   :  { %v8846_v34 = vadd.f32 %v20697_v42, %v8741_v37  ;;  %v20644_v15 = vadd.f32 %v20643_v47, %v20642_v41  ;;  %v20700_v29 = vadd.f32 %v20699_v19, %v20698_v12 }
0x11f2   :  { %v8746_v9 = vadd.f32 %v20644_v15, %v8641_v18  ;;  %v20645_v22 = vpop.f32.mrb[182].mxu0  ;;  %v20701_v63 = vpop.f32.mrb[170].mxu1 }
0x11f3   :  { %v20646_v43 = vpop.f32.mrb[183].mxu0  ;;  %v20702_v52 = vpop.f32.mrb[171].mxu1 }
0x11f4   :  { %v8851_v25 = vadd.f32 %v20700_v29, %v8746_v9  ;;  %v20647_v33 = vadd.f32 %v20646_v43, %v20645_v22  ;;  %v20703_v5 = vadd.f32 %v20702_v52, %v20701_v63 }
0x11f6   :  { %v8751_v60 = vadd.f32 %v20647_v33, %v8646_v62  ;;  %v20648_v48 = vpop.f32.mrb[184].mxu0  ;;  %v20704_v17 = vpop.f32.mrb[172].mxu1 }
0x11f7   :  { %v20649_v38 = vpop.f32.mrb[185].mxu0  ;;  %v20705_v30 = vpop.f32.mrb[173].mxu1 }
0x11f8   :  { %v8856_v4 = vadd.f32 %v20703_v5, %v8751_v60  ;;  %v20650_v28 = vadd.f32 %v20649_v38, %v20648_v48  ;;  %v20706_v59 = vadd.f32 %v20705_v30, %v20704_v17 }
0x11fa   :  { %v8756_v51 = vadd.f32 %v20650_v28, %v8651_v46  ;;  %v20651_v56 = vpop.f32.mrb[186].mxu0  ;;  %v20707_v11 = vpop.f32.mrb[174].mxu1 }
0x11fb   :  { %v20652_v3 = vpop.f32.mrb[187].mxu0  ;;  %v20708_v18 = vpop.f32.mrb[175].mxu1 }
0x11fc   :  { %v8861_v45 = vadd.f32 %v20706_v59, %v8756_v51  ;;  %v20653_v39 = vadd.f32 %v20652_v3, %v20651_v56  ;;  %v20709_v31 = vadd.f32 %v20708_v18, %v20707_v11 }
0x11fe   :  { %v8761_v23 = vadd.f32 %v20653_v39, %v8656_v49  ;;  %v20654_v2 = vpop.f32.mrb[188].mxu0  ;;  %v20710_v61 = vpop.f32.mrb[176].mxu1 }
0x11ff   :  { %v20655_v21 = vpop.f32.mrb[189].mxu0  ;;  %v20711_v62 = vpop.f32.mrb[177].mxu1 }
0x1200   :  { %v8866_v24 = vadd.f32 %v20709_v31, %v8761_v23  ;;  %v20656_v6 = vadd.f32 %v20655_v21, %v20654_v2  ;;  %v20712_v16 = vadd.f32 %v20711_v62, %v20710_v61 }
0x1202   :  { %v8766_v50 = vadd.f32 %v20656_v6, %v8661_v7  ;;  %v20745_v42 = vpop.f32.mrb[190].mxu0  ;;  %v20801_v37 = vpop.f32.mrb[178].mxu1 }
0x1203   :  { %v20746_v41 = vpop.f32.mrb[191].mxu0  ;;  %v20802_v46 = vpop.f32.mrb[179].mxu1 }
0x1204   :  { %v8871_v12 = vadd.f32 %v20712_v16, %v8766_v50  ;;  %v20747_v47 = vadd.f32 %v20746_v41, %v20745_v42  ;;  %v20803_v19 = vadd.f32 %v20802_v46, %v20801_v37 }
0x1206   :  { %v8941_v15 = vadd.f32 %v20747_v47, %v8836_v40  ;;  %v20748_v29 = vpop.f32.mrb[192].mxu0  ;;  %v20804_v9 = vpop.f32.mrb[180].mxu1 }
0x1207   :  { %v20749_v22 = vpop.f32.mrb[193].mxu0  ;;  %v20805_v49 = vpop.f32.mrb[181].mxu1 }
0x1208   :  { %v9046_v63 = vadd.f32 %v20803_v19, %v8941_v15  ;;  %v20750_v43 = vadd.f32 %v20749_v22, %v20748_v29  ;;  %v20806_v52 = vadd.f32 %v20805_v49, %v20804_v9 }
0x120a   :  { %v8946_v33 = vadd.f32 %v20750_v43, %v8841_v10  ;;  %v20751_v5 = vpop.f32.mrb[194].mxu0  ;;  %v20807_v60 = vpop.f32.mrb[182].mxu1 }
0x120b   :  { %v20752_v48 = vpop.f32.mrb[195].mxu0  ;;  %v20808_v7 = vpop.f32.mrb[183].mxu1 }
0x120c   :  { %v9051_v17 = vadd.f32 %v20806_v52, %v8946_v33  ;;  %v20753_v38 = vadd.f32 %v20752_v48, %v20751_v5  ;;  %v20809_v30 = vadd.f32 %v20808_v7, %v20807_v60 }
0x120e   :  { %v8951_v28 = vadd.f32 %v20753_v38, %v8846_v34  ;;  %v20754_v59 = vpop.f32.mrb[196].mxu0  ;;  %v20810_v51 = vpop.f32.mrb[184].mxu1 }
0x120f   :  { %v20755_v56 = vpop.f32.mrb[197].mxu0  ;;  %v20811_v40 = vpop.f32.mrb[185].mxu1 }
0x1210   :  { %v9056_v11 = vadd.f32 %v20809_v30, %v8951_v28  ;;  %v20756_v3 = vadd.f32 %v20755_v56, %v20754_v59  ;;  %v20812_v18 = vadd.f32 %v20811_v40, %v20810_v51 }
0x1212   :  { %v8956_v39 = vadd.f32 %v20756_v3, %v8851_v25  ;;  %v20757_v31 = vpop.f32.mrb[198].mxu0  ;;  %v20813_v23 = vpop.f32.mrb[186].mxu1 }
0x1213   :  { %v20758_v2 = vpop.f32.mrb[199].mxu0  ;;  %v20814_v10 = vpop.f32.mrb[187].mxu1 }
0x1214   :  { %v26697_v61 = vadd.f32 %v20812_v18, %v8956_v39  ;;  %v20759_v21 = vadd.f32 %v20758_v2, %v20757_v31  ;;  %v20815_v62 = vadd.f32 %v20814_v10, %v20813_v23 }
0x1216   :  { %v8961_v6 = vadd.f32 %v20759_v21, %v8856_v4  ;;  %v20760_v16 = vpop.f32.mrb[200].mxu0  ;;  %v20816_v50 = vpop.f32.mrb[188].mxu1 }
0x1217   :  { %v20761_v34 = vpop.f32.mrb[201].mxu0  ;;  %v20817_v42 = vpop.f32.mrb[189].mxu1 }
0x1218   :  { %v26699_v37 = vadd.f32 %v20815_v62, %v8961_v6  ;;  %v20762_v41 = vadd.f32 %v20761_v34, %v20760_v16  ;;  %v20818_v46 = vadd.f32 %v20817_v42, %v20816_v50 }
0x121a   :  { %v8966_v47 = vadd.f32 %v20762_v41, %v8861_v45  ;;  %v20763_v19 = vpop.f32.mrb[202].mxu0  ;;  %v20819_v25 = vpop.f32.mrb[190].mxu1 }
0x121b   :  { %v20764_v15 = vpop.f32.mrb[203].mxu0  ;;  %v20820_v29 = vpop.f32.mrb[191].mxu1 }
0x121c   :  { %v26701_v9 = vadd.f32 %v20818_v46, %v8966_v47  ;;  %v20765_v22 = vadd.f32 %v20764_v15, %v20763_v19  ;;  %v20821_v49 = vadd.f32 %v20820_v29, %v20819_v25 }
0x121e   :  { %v8971_v43 = vadd.f32 %v20765_v22, %v8866_v24  ;;  %v20766_v52 = vpop.f32.mrb[204].mxu0  ;;  %v20822_v4 = vpop.f32.mrb[192].mxu1 }
0x121f   :  { %v20767_v33 = vpop.f32.mrb[205].mxu0  ;;  %v20823_v5 = vpop.f32.mrb[193].mxu1 }
0x1220   :  { %v26703_v60 = vadd.f32 %v20821_v49, %v8971_v43  ;;  %v20768_v48 = vadd.f32 %v20767_v33, %v20766_v52  ;;  %v20824_v7 = vadd.f32 %v20823_v5, %v20822_v4 }
0x1222   :  { %v8976_v38 = vadd.f32 %v20768_v48, %v8871_v12  ;;  %v20857_v30 = vpop.f32.mrb[206].mxu0  ;;  %v20913_v45 = vpop.f32.mrb[194].mxu1 }
0x1223   :  { %v20858_v28 = vpop.f32.mrb[207].mxu0  ;;  %v20914_v59 = vpop.f32.mrb[195].mxu1 }
0x1224   :  { %v26705_v51 = vadd.f32 %v20824_v7, %v8976_v38  ;;  %v20859_v56 = vadd.f32 %v20858_v28, %v20857_v30  ;;  %v20915_v40 = vadd.f32 %v20914_v59, %v20913_v45 }
0x1226   :  { %v9151_v3 = vadd.f32 %v20859_v56, %v9046_v63  ;;  %v20860_v18 = vpop.f32.mrb[208].mxu0  ;;  %v20916_v24 = vpop.f32.mrb[196].mxu1 }
0x1227   :  { %v20861_v39 = vpop.f32.mrb[209].mxu0  ;;  %v20917_v31 = vpop.f32.mrb[197].mxu1 }
0x1228   :  { %v9256_v23 = vadd.f32 %v20915_v40, %v9151_v3  ;;  %v20862_v2 = vadd.f32 %v20861_v39, %v20860_v18  ;;  %v20918_v10 = vadd.f32 %v20917_v31, %v20916_v24 }
0x122a   :  { %v9156_v21 = vadd.f32 %v20862_v2, %v9051_v17  ;;  %v20863_v62 = vpop.f32.mrb[210].mxu0  ;;  %v20919_v6 = vpop.f32.mrb[198].mxu1  ;;  %v26708_v12 = vadd.f32 %v9256_v23, %v26305_v44 }
0x122b   :  { %v20864_v16 = vpop.f32.mrb[211].mxu0  ;;  %v20920_v50 = vpop.f32.mrb[199].mxu1 }
0x122c   :  { %v9261_v34 = vadd.f32 %v20918_v10, %v9156_v21  ;;  %v20865_v42 = vadd.f32 %v20864_v16, %v20863_v62  ;;  %v20921_v41 = vadd.f32 %v20920_v50, %v20919_v6  ;;  %9304 = vadd.xlane.f32.xlu0 %v26708_v12 }
0x122e   :  { %v9161_v63 = vadd.f32 %v20865_v42, %v9056_v11  ;;  %v20866_v46 = vpop.f32.mrb[212].mxu0  ;;  %v20922_v47 = vpop.f32.mrb[200].mxu1  ;;  %v26712_v19 = vadd.f32 %v9261_v34, %v26312_v54 }
0x122f   :  { %v20867_v25 = vpop.f32.mrb[213].mxu0  ;;  %v20923_v17 = vpop.f32.mrb[201].mxu1 }
0x1230   :  { %v9266_v15 = vadd.f32 %v20921_v41, %v9161_v63  ;;  %v20868_v29 = vadd.f32 %v20867_v25, %v20866_v46  ;;  %v20924_v22 = vadd.f32 %v20923_v17, %v20922_v47  ;;  %9306 = vadd.xlane.f32.xlu1 %v26712_v19  ;;  %v24315_v41 = vld [vmem:[#allocation11] ss:$12 sps:$4 sm:$0xff]   ;;  %v24316_v63 = vld [vmem:[#allocation11 + $0x1c] ss:$12 sps:$4 sm:$0xff]   ;;  %v24318_v25 = vld [vmem:[#allocation11 + $0x18] ss:$12 sps:$4 sm:$0xff]  }
0x1231   :  { %v24319_v46 = vld [vmem:[#allocation11 + $0x8] ss:$12 sps:$4 sm:$0xff]   ;;  %v24323_v47 = vld [vmem:[#allocation11 + $0x20] ss:$12 sps:$4 sm:$0xff]  }
0x1232   :  { %v9166_v44 = vadd.f32 %v20868_v29, %v26697_v61  ;;  %v20869_v49 = vpop.f32.mrb[214].mxu0  ;;  %v20925_v43 = vpop.f32.mrb[202].mxu1  ;;  %v26717_v52 = vadd.f32 %v9266_v15, %v26333_v57  ;;  %23194 = vmatprep.subr.bf16.mxu1 %v24319_v46 }
0x1233   :  { %v20870_v11 = vpop.f32.mrb[215].mxu0  ;;  %v20926_v4 = vpop.f32.mrb[203].mxu1  ;;  %23196 = vmatpush3.bf16.msra.mxu1 %v24319_v46 }
0x1234   :  { %v9271_v33 = vadd.f32 %v20924_v22, %v9166_v44  ;;  %v20871_v5 = vadd.f32 %v20870_v11, %v20869_v49  ;;  %v20927_v54 = vadd.f32 %v20926_v4, %v20925_v43  ;;  %9308 = vadd.xlane.f32.xlu0 %v26717_v52  ;;  %23198 = vmatprep.subr.bf16.mxu1 %v24323_v47 }
0x1236   :  { %v9171_v48 = vadd.f32 %v20871_v5, %v26699_v37  ;;  %v20872_v7 = vpop.f32.mrb[216].mxu0  ;;  %v20928_v38 = vpop.f32.mrb[204].mxu1  ;;  %v26722_v30 = vadd.f32 %v9271_v33, %v26342_v26 }
0x1237   :  { %v20873_v61 = vpop.f32.mrb[217].mxu0  ;;  %v20929_v45 = vpop.f32.mrb[205].mxu1  ;;  %23200 = vmatpush3.bf16.msra.mxu1 %v24323_v47 }
0x1238   :  { %v9276_v28 = vadd.f32 %v20927_v54, %v9171_v48  ;;  %v20874_v59 = vadd.f32 %v20873_v61, %v20872_v7  ;;  %v20930_v57 = vadd.f32 %v20929_v45, %v20928_v38  ;;  %9310 = vadd.xlane.f32.xlu1 %v26722_v30 }
0x123a   :  { %v9176_v56 = vadd.f32 %v20874_v59, %v26701_v9  ;;  %v20875_v40 = vpop.f32.mrb[218].mxu0  ;;  %v20931_v3 = vpop.f32.mrb[206].mxu1  ;;  %v9298_v18 = vadd.f32 %v9276_v28, %v26353_v13  ;;  %v24324_v59 = vld [vmem:[#allocation11 + $0x4c] ss:$12 sps:$4 sm:$0xff]  }
0x123b   :  { %v20876_v24 = vpop.f32.mrb[219].mxu0  ;;  %v20932_v37 = vpop.f32.mrb[207].mxu1 }
0x123c   :  { %v9281_v39 = vadd.f32 %v20930_v57, %v9176_v56  ;;  %v20877_v31 = vadd.f32 %v20876_v24, %v20875_v40  ;;  %v20933_v23 = vadd.f32 %v20932_v37, %v20931_v3  ;;  %9312 = vadd.xlane.f32.xlu0 %v9298_v18  ;;  %v24327_v57 = vld [vmem:[#allocation11 + $0x38] ss:$12 sps:$4 sm:$0xff]   ;;  %v24326_v56 = vld [vmem:[#allocation11 + $0x48] ss:$12 sps:$4 sm:$0xff]   ;;  %v24331_v37 = vld [vmem:[#allocation11 + $0x50] ss:$12 sps:$4 sm:$0xff]  }
0x123d   :  { %23202 = vmatprep.subr.bf16.mxu1 %v24327_v57  ;;  %v24328_v24 = vld [vmem:[#allocation11 + $0x64] ss:$12 sps:$4 sm:$0xff]  }
0x123e   :  { %v9181_v26 = vadd.f32 %v20877_v31, %v26703_v60  ;;  %v20878_v2 = vpop.f32.mrb[220].mxu0  ;;  %v20934_v10 = vpop.f32.mrb[208].mxu1  ;;  %v9299_v21 = vadd.f32 %v9281_v39, %v26361_v55  ;;  %v24313_v55 = vld [vmem:[#allocation11 + $0x4] ss:$12 sps:$4 sm:$0xff]   ;;  %23204 = vmatpush3.bf16.msra.mxu1 %v24327_v57  ;;  %v24330_v39 = vld [vmem:[#allocation11 + $0x60] ss:$12 sps:$4 sm:$0xff]  }
0x123f   :  { %v20879_v62 = vpop.f32.mrb[221].mxu0  ;;  %v20935_v6 = vpop.f32.mrb[209].mxu1  ;;  %23162 = vmatprep.subr.bf16.mxu0 %v24313_v55  ;;  %23206 = vmatprep.subr.bf16.mxu1 %v24331_v37  ;;  %v24344_v55 = vld [vmem:[#allocation11 + $0xb0] ss:$12 sps:$4 sm:$0xff]  }
0x1240   :  { %v9286_v16 = vadd.f32 %v20933_v23, %v9181_v26  ;;  %v20880_v9 = vadd.f32 %v20879_v62, %v20878_v2  ;;  %v20936_v50 = vadd.f32 %v20935_v6, %v20934_v10  ;;  %9314 = vadd.xlane.f32.xlu1 %v9299_v21  ;;  %23164 = vmatpush1.bf16.msra.mxu0 %v24315_v41  ;;  %v24332_v10 = vld [vmem:[#allocation11 + $0x7c] ss:$12 sps:$4 sm:$0xff]   ;;  %v24334_v62 = vld [vmem:[#allocation11 + $0x78] ss:$12 sps:$4 sm:$0xff]  }
0x1241   :  { %23166 = vmatprep.subr.bf16.mxu0 %v24316_v63 }
0x1242   :  { %v9186_v13 = vadd.f32 %v20880_v9, %v26705_v51  ;;  %v26731_v34 = vadd.f32 %v9286_v16, %v26371_v1  ;;  %v24320_v1 = vld [vmem:[#allocation11 + $0x34] ss:$12 sps:$4 sm:$0xff]   ;;  %v24322_v51 = vld [vmem:[#allocation11 + $0x30] ss:$12 sps:$4 sm:$0xff]   ;;  %23208 = vmatpush3.bf16.msra.mxu1 %v24331_v37 }
0x1243   :  { %v24336_v9 = vld [vmem:[#allocation11 + $0x94] ss:$12 sps:$4 sm:$0xff]  }
0x1244   :  { %v9291_v42 = vadd.f32 %v20936_v50, %v9186_v13  ;;  %9316 = vadd.xlane.f32.xlu0 %v26731_v34  ;;  %23168 = vmatpush1.bf16.msra.mxu0 %v24318_v25  ;;  %v24339_v50 = vld [vmem:[#allocation11 + $0x80] ss:$12 sps:$4 sm:$0xff]   ;;  %v24338_v13 = vld [vmem:[#allocation11 + $0x90] ss:$12 sps:$4 sm:$0xff]  }
0x1245   :  { %23170 = vmatprep.subr.bf16.mxu0 %v24320_v1 }
0x1246   :  { %v26735_v60 = vadd.f32 %v9291_v42, %v26378_v36  ;;  %v24343_v42 = vld [vmem:[#allocation11 + $0x98] ss:$12 sps:$4 sm:$0xff]  }
0x1248   :  { %9318 = vadd.xlane.f32.xlu1 %v26735_v60  ;;  %23172 = vmatpush1.bf16.msra.mxu0 %v24322_v51 }
0x1249   :  { %23174 = vmatprep.subr.bf16.mxu0 %v24324_v59 }
0x124c   :  { %23176 = vmatpush1.bf16.msra.mxu0 %v24326_v56 }
0x124d   :  { %23178 = vmatprep.subr.bf16.mxu0 %v24328_v24 }
0x1250   :  { %23180 = vmatpush1.bf16.msra.mxu0 %v24330_v39 }
0x1251   :  { %23182 = vmatprep.subr.bf16.mxu0 %v24332_v10 }
0x1254   :  { %23184 = vmatpush1.bf16.msra.mxu0 %v24334_v62 }
0x1255   :  { %23186 = vmatprep.subr.bf16.mxu0 %v24336_v9 }
0x1258   :  { %23188 = vmatpush1.bf16.msra.mxu0 %v24338_v13 }
0x12b9   :  { %v9305_v36 = vpop.xlane.xlu0 %9304 }
0x12ba   :  { %v9320_v17 = vmul.f32 0.0078125, %v9305_v36 }
0x12bc   :  { %v26739_v15 = vsub.f32 %v26708_v12, %v9320_v17 }
0x12bd   :  { %v9307_v29 = vpop.xlane.xlu1 %9306 }
0x12be   :  { %v9321_v22 = vmul.f32 0.0078125, %v9307_v29  ;;  %v9336_v44 = vmul.f32 %v26739_v15, %v26739_v15 }
0x12c0   :  { %v26744_v49 = vsub.f32 %v26712_v19, %v9321_v22  ;;  %9344 = vadd.xlane.f32.xlu0 %v9336_v44 }
0x12c1   :  { %v9309_v43 = vpop.xlane.xlu0 %9308 }
0x12c2   :  { %v9322_v11 = vmul.f32 0.0078125, %v9309_v43  ;;  %v9337_v4 = vmul.f32 %v26744_v49, %v26744_v49 }
0x12c4   :  { %v26749_v33 = vsub.f32 %v26717_v52, %v9322_v11  ;;  %9346 = vadd.xlane.f32.xlu1 %v9337_v4  ;;  %v26778_v11 = vld [vmem:[#allocation2 + $0x1b] ss:$0 sm:$0xff] }
0x12c5   :  { %v9311_v12 = vpop.xlane.xlu1 %9310 }
0x12c6   :  { %v9323_v5 = vmul.f32 0.0078125, %v9311_v12  ;;  %v9338_v54 = vmul.f32 %v26749_v33, %v26749_v33 }
0x12c8   :  { %v26754_v48 = vsub.f32 %v26722_v30, %v9323_v5  ;;  %9348 = vadd.xlane.f32.xlu0 %v9338_v54  ;;  %v26781_v54 = vld [vmem:[#allocation2 + $0x1c] ss:$0 sm:$0xff] }
0x12c9   :  { %v9313_v19 = vpop.xlane.xlu0 %9312 }
0x12ca   :  { %v9324_v7 = vmul.f32 0.0078125, %v9313_v19  ;;  %v9339_v38 = vmul.f32 %v26754_v48, %v26754_v48 }
0x12cc   :  { %v26758_v61 = vsub.f32 %v9298_v18, %v9324_v7  ;;  %9350 = vadd.xlane.f32.xlu1 %v9339_v38 }
0x12cd   :  { %v9315_v52 = vpop.xlane.xlu1 %9314 }
0x12ce   :  { %v9325_v45 = vmul.f32 0.0078125, %v9315_v52  ;;  %v9340_v28 = vmul.f32 %v26758_v61, %v26758_v61 }
0x12d0   :  { %v26762_v40 = vsub.f32 %v9299_v21, %v9325_v45  ;;  %9352 = vadd.xlane.f32.xlu0 %v9340_v28  ;;  %v24335_v21 = vld [vmem:[#allocation11 + $0x68] ss:$12 sps:$4 sm:$0xff]  }
0x12d1   :  { %v9317_v30 = vpop.xlane.xlu0 %9316  ;;  %23210 = vmatprep.subr.bf16.mxu1 %v24335_v21 }
0x12d2   :  { %v9326_v3 = vmul.f32 0.0078125, %v9317_v30  ;;  %v9341_v18 = vmul.f32 %v26762_v40, %v26762_v40  ;;  %23212 = vmatpush3.bf16.msra.mxu1 %v24335_v21 }
0x12d3   :  { %23214 = vmatprep.subr.bf16.mxu1 %v24339_v50 }
0x12d4   :  { %v26767_v31 = vsub.f32 %v26731_v34, %v9326_v3  ;;  %9354 = vadd.xlane.f32.xlu1 %v9341_v18  ;;  %v24340_v34 = vld [vmem:[#allocation11 + $0xac] ss:$12 sps:$4 sm:$0xff]  }
0x12d5   :  { %v9319_v23 = vpop.xlane.xlu1 %9318  ;;  %23190 = vmatprep.subr.bf16.mxu0 %v24340_v34 }
0x12d6   :  { %v9327_v26 = vmul.f32 0.0078125, %v9319_v23  ;;  %v9342_v2 = vmul.f32 %v26767_v31, %v26767_v31  ;;  %23216 = vmatpush3.bf16.msra.mxu1 %v24339_v50 }
0x12d7   :  { %23218 = vmatprep.subr.bf16.mxu1 %v24343_v42 }
0x12d8   :  { %v26772_v6 = vsub.f32 %v26735_v60, %v9327_v26  ;;  %9356 = vadd.xlane.f32.xlu0 %v9342_v2  ;;  %v24342_v60 = vld [vmem:[#allocation11 + $0xa8] ss:$12 sps:$4 sm:$0xff]  }
0x12d9   :  { %23192 = vmatpush1.bf16.msra.mxu0 %v24342_v60 }
0x12da   :  { %v9343_v16 = vmul.f32 %v26772_v6, %v26772_v6  ;;  %23220 = vmatpush3.bf16.msra.mxu1 %v24343_v42  ;;  %22099 = vmatprep.subr.mxu0 %v28433_v58 }
0x12db   :  { %23222 = vmatprep.subr.bf16.mxu1 %v24344_v55 }
0x12dc   :  { %9358 = vadd.xlane.f32.xlu1 %v9343_v16 }
0x12de   :  { %23224 = vmatpush3.bf16.msra.mxu1 %v24344_v55 }
0x12df   :  { %22119 = vmatprep.subr.mxu1 %v28433_v58 }
0x134d   :  { %v9345_v41 = vpop.xlane.xlu0 %9344 }
0x134e   :  { %v9360_v63 = vmul.f32 0.0078125, %v9345_v41 }
0x1350   :  { %v9368_v46 = vadd.f32 1e-05, %v9360_v63 }
0x1351   :  { %v9347_v47 = vpop.xlane.xlu1 %9346 }
0x1352   :  { %24489 = vrsqrt.f32 %v9368_v46  ;;  %v9361_v25 = vmul.f32 0.0078125, %v9347_v47 }
0x1354   :  { %v9369_v1 = vadd.f32 1e-05, %v9361_v25 }
0x1355   :  { %v9349_v51 = vpop.xlane.xlu0 %9348 }
0x1356   :  { %24491 = vrsqrt.f32 %v9369_v1  ;;  %v9362_v36 = vmul.f32 0.0078125, %v9349_v51 }
0x1358   :  { %v9370_v17 = vadd.f32 1e-05, %v9362_v36 }
0x1359   :  { %v9351_v29 = vpop.xlane.xlu1 %9350 }
0x135a   :  { %24493 = vrsqrt.f32 %v9370_v17  ;;  %v9363_v22 = vmul.f32 0.0078125, %v9351_v29 }
0x135c   :  { %v24490_v44 = vpop.eup %24489  ;;  %v9371_v43 = vadd.f32 1e-05, %v9363_v22 }
0x135d   :  { %v9384_v4 = vmul.f32 %v24490_v44, %v26739_v15  ;;  %v9353_v12 = vpop.xlane.xlu0 %9352 }
0x135e   :  { %24495 = vrsqrt.f32 %v9371_v43  ;;  %v9364_v5 = vmul.f32 0.0078125, %v9353_v12 }
0x135f   :  { %v9398_v19 = vmul.f32 %v26778_v11, %v9384_v4 }
0x1360   :  { %v24492_v7 = vpop.eup %24491  ;;  %v9372_v38 = vadd.f32 1e-05, %v9364_v5 }
0x1361   :  { %v9355_v52 = vpop.xlane.xlu1 %9354  ;;  %v26785_v45 = vadd.f32 %v26781_v54, %v9398_v19  ;;  %v9385_v28 = vmul.f32 %v24492_v7, %v26744_v49 }
0x1362   :  { %24497 = vrsqrt.f32 %v9372_v38  ;;  %v9365_v59 = vmul.f32 0.0078125, %v9355_v52 }
0x1363   :  { %28456 = vst [vmem:[#allocation29_spill] sm:$0xff] %v26785_v45  ;;  %9582 = vmatmul.mubr.f32.vlgmr.msra.gmra.mrb[222].mxu0 %v26785_v45  ;;  %22087 = vmatprep.mubr.f32.mxu1 %v26785_v45  ;;  %v9399_v15 = vmul.f32 %v26778_v11, %v9385_v28 }
0x1364   :  { %v24494_v57 = vpop.eup %24493  ;;  %v9373_v56 = vadd.f32 1e-05, %v9365_v59  ;;  %9587 = vmatprep.mubr.f32.mxu0 %v28433_v58 }
0x1365   :  { %v9357_v30 = vpop.xlane.xlu0 %9356  ;;  %v26793_v3 = vadd.f32 %v26781_v54, %v9399_v15  ;;  %v9386_v18 = vmul.f32 %v24494_v57, %v26749_v33 }
0x1366   :  { %24499 = vrsqrt.f32 %v9373_v56  ;;  %v9366_v49 = vmul.f32 0.0078125, %v9357_v30 }
0x1367   :  { %28457 = vst [vmem:[#allocation28_spill] sm:$0xff] %v26793_v3  ;;  %9588 = vmatmul.mubr.f32.gmra.mrb[224].mxu0 %v26793_v3  ;;  %22088 = vmatmul.mubr.f32.vlgmr.msra.gmra.mrb[210].mxu1 %v26793_v3  ;;  %v9400_v24 = vmul.f32 %v26778_v11, %v9386_v18 }
0x1368   :  { %v24496_v37 = vpop.eup %24495  ;;  %v9374_v39 = vadd.f32 1e-05, %v9366_v49  ;;  %9593 = vmatprep.mubr.f32.mxu0 %v28433_v58 }
0x1369   :  { %v9359_v23 = vpop.xlane.xlu1 %9358  ;;  %v26801_v26 = vadd.f32 %v26781_v54, %v9400_v24  ;;  %v9387_v2 = vmul.f32 %v24496_v37, %v26754_v48 }
0x136a   :  { %24501 = vrsqrt.f32 %v9374_v39  ;;  %v9367_v33 = vmul.f32 0.0078125, %v9359_v23 }
0x136b   :  { %28458 = vst [vmem:[#allocation31_spill] sm:$0xff] %v26801_v26  ;;  %9594 = vmatmul.mubr.f32.gmra.mrb[226].mxu0 %v26801_v26  ;;  %22090 = vmatprep.mubr.f32.mxu1 %v26801_v26  ;;  %v9401_v10 = vmul.f32 %v26778_v11, %v9387_v2 }
0x136c   :  { %v24498_v21 = vpop.eup %24497  ;;  %v9375_v62 = vadd.f32 1e-05, %v9367_v33  ;;  %9599 = vmatprep.mubr.f32.mxu0 %v28433_v58 }
0x136d   :  { %v26809_v16 = vadd.f32 %v26781_v54, %v9401_v10  ;;  %v9388_v9 = vmul.f32 %v24498_v21, %v26758_v61 }
0x136e   :  { %24503 = vrsqrt.f32 %v9375_v62 }
0x136f   :  { %28459 = vst [vmem:[#allocation30_spill] sm:$0xff] %v26809_v16  ;;  %9600 = vmatmul.mubr.f32.gmra.mrb[228].mxu0 %v26809_v16  ;;  %22091 = vmatmul.mubr.f32.gmra.mrb[212].mxu1 %v26809_v16  ;;  %v9402_v48 = vmul.f32 %v26778_v11, %v9388_v9 }
0x1370   :  { %v24500_v50 = vpop.eup %24499  ;;  %9605 = vmatprep.mubr.f32.mxu0 %v28433_v58 }
0x1371   :  { %v26817_v13 = vadd.f32 %v26781_v54, %v9402_v48  ;;  %v9389_v34 = vmul.f32 %v24500_v50, %v26762_v40 }
0x1373   :  { %28460 = vst [vmem:[#allocation32_spill] sm:$0xff] %v26817_v13  ;;  %9606 = vmatmul.mubr.f32.gmra.mrb[230].mxu0 %v26817_v13  ;;  %22093 = vmatprep.mubr.f32.mxu1 %v26817_v13  ;;  %v9403_v61 = vmul.f32 %v26778_v11, %v9389_v34 }
0x1374   :  { %v24502_v42 = vpop.eup %24501  ;;  %9611 = vmatprep.mubr.f32.mxu0 %v28433_v58 }
0x1375   :  { %v26825_v60 = vadd.f32 %v26781_v54, %v9403_v61  ;;  %v9390_v55 = vmul.f32 %v24502_v42, %v26767_v31 }
0x1377   :  { %28461 = vst [vmem:[#allocation37_spill] sm:$0xff] %v26825_v60  ;;  %9612 = vmatmul.mubr.f32.gmra.mrb[232].mxu0 %v26825_v60  ;;  %22094 = vmatmul.mubr.f32.gmra.mrb[214].mxu1 %v26825_v60  ;;  %v9404_v40 = vmul.f32 %v26778_v11, %v9390_v55 }
0x1378   :  { %v24504_v41 = vpop.eup %24503  ;;  %9617 = vmatprep.mubr.f32.mxu0 %v28433_v58 }
0x1379   :  { %v26833_v63 = vadd.f32 %v26781_v54, %v9404_v40  ;;  %v9391_v46 = vmul.f32 %v24504_v41, %v26772_v6  ;;  %v9420_v6 = vld [vmem:[#allocation2 + $0x1d] sm:$0x7] }
0x137a   :  { %v26850_v25 = vrot.slane %v9420_v6, %v28451_v27  ;;  %v26853_v51 = vrot.slane %v9420_v6, %v28449_v35  ;;  %v9513_v7 = vrot.slane %v9420_v6, %v28450_v8 }
0x137b   :  { %28462 = vst [vmem:[#allocation38_spill] sm:$0xff] %v26833_v63  ;;  %9618 = vmatmul.mubr.f32.gmra.mrb[234].mxu0 %v26833_v63  ;;  %22096 = vmatprep.mubr.f32.mxu1 %v26833_v63  ;;  %v9405_v31 = vmul.f32 %v26778_v11, %v9391_v46 }
0x137c   :  { %9623 = vmatprep.mubr.f32.mxu0 %v28433_v58 }
0x137d   :  { %v26841_v47 = vadd.f32 %v26781_v54, %v9405_v31 }
0x137f   :  { %28463 = vst [vmem:[#allocation39_spill] sm:$0xff] %v26841_v47  ;;  %9624 = vmatmul.mubr.f32.gmra.mrb[236].mxu0 %v26841_v47  ;;  %22097 = vmatmul.mubr.f32.gmra.mrb[216].mxu1 %v26841_v47 }
0x1380   :  { %22101 = vmatprep.mubr.msk.f32.mxu0 %vm24916_vm1, %v28433_v58  ;;  %22121 = vmatprep.mubr.msk.f32.mxu1 %vm24916_vm1, %v28433_v58 }
0x1436   :  { %v9583_v1 = vpop.f32.mrb[222].mxu0 }
0x1437   :  { %v9585_v36 = vpop.f32.mrb[223].mxu0  ;;  %v26863_v44 = vadd.f32 %v9583_v1, %v26853_v51 }
0x1438   :  { %v26856_v17 = vadd.f32 %v9585_v36, %v26850_v25 }
0x143a   :  { %v9589_v29 = vpop.f32.mrb[224].mxu0  ;;  %v26858_v22 = vpop.f32.mrb[210].mxu1  ;;  %22100 = vmatpush3.xpose.msk.msra.mxu0 %vm792_vm2, %v26856_v17 }
0x143b   :  { %v9591_v43 = vpop.f32.mrb[225].mxu0  ;;  %v9696_v11 = vpop.f32.mrb[211].mxu1  ;;  %22104 = vmatprep.subr.mxu0 %v28433_v58  ;;  %v26876_v5 = vadd.f32 %v9589_v29, %v26853_v51 }
0x143c   :  { %v26867_v4 = vadd.f32 %v9591_v43, %v26850_v25  ;;  %v26955_v6 = vadd.f32 %v9696_v11, %v9513_v7 }
0x143d   :  { %22102 = vmatmul.mubr.msk.f32.vlgmr.msra.gmra.mrb[238].mxu0 %vm792_vm2, %v26863_v44 }
0x143e   :  { %v9595_v12 = vpop.f32.mrb[226].mxu0  ;;  %22105 = vmatpush3.xpose.msk.msra.mxu0 %vm792_vm2, %v26867_v4  ;;  %22106 = vmatprep.mubr.msk.f32.mxu0 %vm24916_vm1, %v28433_v58 }
0x143f   :  { %v9597_v54 = vpop.f32.mrb[227].mxu0  ;;  %22109 = vmatprep.subr.mxu0 %v28433_v58  ;;  %v26890_v28 = vadd.f32 %v9595_v12, %v26853_v51 }
0x1440   :  { %v26880_v19 = vadd.f32 %v9597_v54, %v26850_v25 }
0x1441   :  { %22107 = vmatmul.mubr.msk.f32.vlgmr.msra.gmra.mrb[240].mxu0 %vm792_vm2, %v26876_v5 }
0x1442   :  { %v9601_v38 = vpop.f32.mrb[228].mxu0  ;;  %v22092_v52 = vpop.f32.mrb[212].mxu1  ;;  %22110 = vmatpush3.xpose.msk.msra.mxu0 %vm792_vm2, %v26880_v19  ;;  %22111 = vmatprep.mubr.msk.f32.mxu0 %vm24916_vm1, %v28433_v58 }
0x1443   :  { %v26892_v59 = vadd.f32 %v22092_v52, %v9513_v7  ;;  %v9603_v15 = vpop.f32.mrb[229].mxu0  ;;  %v9706_v57 = vpop.f32.mrb[213].mxu1  ;;  %22114 = vmatprep.subr.mxu0 %v28433_v58  ;;  %v26907_v49 = vadd.f32 %v9601_v38, %v26853_v51 }
0x1444   :  { %v26896_v56 = vadd.f32 %v9603_v15, %v26850_v25  ;;  %v26898_v30 = vadd.f32 %v9706_v57, %v9513_v7 }
0x1445   :  { %22112 = vmatmul.mubr.msk.f32.vlgmr.msra.gmra.mrb[242].mxu0 %vm792_vm2, %v26890_v28 }
0x1446   :  { %v9607_v18 = vpop.f32.mrb[230].mxu0  ;;  %22115 = vmatpush3.xpose.msk.msra.mxu0 %vm792_vm2, %v26896_v56  ;;  %22116 = vmatprep.mubr.msk.f32.mxu0 %vm24916_vm1, %v28433_v58 }
0x1447   :  { %v9609_v24 = vpop.f32.mrb[231].mxu0  ;;  %22124 = vmatprep.subr.mxu0 %v28433_v58  ;;  %v26920_v2 = vadd.f32 %v9607_v18, %v26853_v51 }
0x1448   :  { %v26911_v37 = vadd.f32 %v9609_v24, %v26850_v25 }
0x1449   :  { %22117 = vmatmul.mubr.msk.f32.vlgmr.msra.gmra.mrb[244].mxu0 %vm792_vm2, %v26907_v49 }
0x144a   :  { %v9613_v39 = vpop.f32.mrb[232].mxu0  ;;  %v22095_v23 = vpop.f32.mrb[214].mxu1  ;;  %22120 = vmatpush3.xpose.msk.msra.mxu1 %vm792_vm2, %v26911_v37  ;;  %22126 = vmatprep.mubr.msk.f32.mxu0 %vm24916_vm1, %v28433_v58 }
0x144b   :  { %v26922_v33 = vadd.f32 %v22095_v23, %v9513_v7  ;;  %v9615_v10 = vpop.f32.mrb[233].mxu0  ;;  %v9716_v21 = vpop.f32.mrb[215].mxu1  ;;  %22129 = vmatprep.subr.mxu1 %v28433_v58  ;;  %v26937_v50 = vadd.f32 %v9613_v39, %v26853_v51 }
0x144c   :  { %v26926_v62 = vadd.f32 %v9615_v10, %v26850_v25  ;;  %v26928_v9 = vadd.f32 %v9716_v21, %v9513_v7 }
0x144d   :  { %22122 = vmatmul.mubr.msk.f32.vlgmr.msra.gmra.mrb[218].mxu1 %vm792_vm2, %v26920_v2 }
0x144e   :  { %v9619_v48 = vpop.f32.mrb[234].mxu0  ;;  %22125 = vmatpush3.xpose.msk.msra.mxu0 %vm792_vm2, %v26926_v62  ;;  %22131 = vmatprep.mubr.msk.f32.mxu1 %vm24916_vm1, %v28433_v58 }
0x144f   :  { %v9621_v34 = vpop.f32.mrb[235].mxu0  ;;  %22134 = vmatprep.subr.mxu0 %v28433_v58  ;;  %v26950_v40 = vadd.f32 %v9619_v48, %v26853_v51 }
0x1450   :  { %v26941_v61 = vadd.f32 %v9621_v34, %v26850_v25 }
0x1451   :  { %22127 = vmatmul.mubr.msk.f32.vlgmr.msra.gmra.mrb[246].mxu0 %vm792_vm2, %v26937_v50 }
0x1452   :  { %v9625_v42 = vpop.f32.mrb[236].mxu0  ;;  %v22098_v55 = vpop.f32.mrb[216].mxu1  ;;  %22130 = vmatpush3.xpose.msk.msra.mxu1 %vm792_vm2, %v26941_v61  ;;  %22136 = vmatprep.mubr.msk.f32.mxu0 %vm24916_vm1, %v28433_v58 }
0x1453   :  { %v26952_v41 = vadd.f32 %v22098_v55, %v9513_v7  ;;  %v9627_v46 = vpop.f32.mrb[237].mxu0  ;;  %v9726_v31 = vpop.f32.mrb[217].mxu1  ;;  %22139 = vmatprep.subr.mxu1 %v28433_v58  ;;  %v26968_v29 = vadd.f32 %v9625_v42, %v26853_v51 }
0x1454   :  { %v26958_v1 = vadd.f32 %v9627_v46, %v26850_v25  ;;  %v26960_v36 = vadd.f32 %v9726_v31, %v9513_v7  ;;  %v26974_v25 = vadd.f32 %v26858_v22, %v9513_v7 }
0x1455   :  { %22132 = vmatmul.mubr.msk.f32.vlgmr.msra.gmra.mrb[220].mxu1 %vm792_vm2, %v26950_v40 }
0x1456   :  { %22135 = vmatpush3.xpose.msk.msra.mxu0 %vm792_vm2, %v26958_v1  ;;  %22140 = vmatpush3.msra.mxu1 %v26955_v6 }
0x1457   :  { %22144 = vmatprep.subr.mxu0 %v28433_v58  ;;  %22141 = vmatprep.mubr.msk.f32.mxu1 %vm24916_vm1, %v28433_v58 }
0x1458   :  { %22149 = vmatprep.subr.mxu1 %v28433_v58 }
0x1459   :  { %22137 = vmatmul.mubr.msk.f32.vlgmr.msra.gmra.mrb[248].mxu0 %vm792_vm2, %v26968_v29 }
0x145a   :  { %22145 = vmatpush3.msra.mxu0 %v26974_v25  ;;  %22146 = vmatprep.mubr.msk.f32.mxu0 %vm24916_vm1, %v28433_v58 }
0x145b   :  { %22154 = vmatprep.subr.mxu0 %v28433_v58 }
0x1510   :  { %v9807_v51 = vpop.f32.mrb[238].mxu0 }
0x1511   :  { %v22103_v43 = vpop.f32.mrb[239].mxu0  ;;  %v10343_v11 = vsel %vm1401_vm3, %v9807_v51, -inf }
0x1512   :  { %10344 = vmax.xlane.f32.xlu0 %v10343_v11 }
0x1514   :  { %v9883_v12 = vpop.f32.mrb[240].mxu0 }
0x1515   :  { %v22108_v22 = vpop.f32.mrb[241].mxu0  ;;  %v10346_v54 = vsel %vm1401_vm3, %v9883_v12, -inf }
0x1516   :  { %10347 = vmax.xlane.f32.xlu1 %v10346_v54 }
0x1518   :  { %v9959_v7 = vpop.f32.mrb[242].mxu0 }
0x1519   :  { %v22113_v38 = vpop.f32.mrb[243].mxu0  ;;  %v10349_v52 = vsel %vm1401_vm3, %v9959_v7, -inf }
0x151a   :  { %10350 = vmax.xlane.f32.xlu0 %v10349_v52 }
0x151c   :  { %v10035_v15 = vpop.f32.mrb[244].mxu0 }
0x151d   :  { %v22118_v57 = vpop.f32.mrb[245].mxu0  ;;  %v10352_v18 = vsel %vm1401_vm3, %v10035_v15, -inf }
0x151e   :  { %10353 = vmax.xlane.f32.xlu1 %v10352_v18 }
0x1520   :  { %v10111_v24 = vpop.f32.mrb[218].mxu1 }
0x1521   :  { %v22123_v39 = vpop.f32.mrb[219].mxu1  ;;  %v10355_v23 = vsel %vm1401_vm3, %v10111_v24, -inf }
0x1522   :  { %10356 = vmax.xlane.f32.xlu0 %v10355_v23 }
0x1524   :  { %v10187_v10 = vpop.f32.mrb[246].mxu0 }
0x1525   :  { %v22128_v21 = vpop.f32.mrb[247].mxu0  ;;  %v10358_v48 = vsel %vm1401_vm3, %v10187_v10, -inf }
0x1526   :  { %10359 = vmax.xlane.f32.xlu1 %v10358_v48 }
0x1528   :  { %v10263_v34 = vpop.f32.mrb[220].mxu1 }
0x1529   :  { %v22133_v42 = vpop.f32.mrb[221].mxu1  ;;  %v10361_v55 = vsel %vm1401_vm3, %v10263_v34, -inf }
0x152a   :  { %10362 = vmax.xlane.f32.xlu0 %v10361_v55 }
0x152c   :  { %v26990_v46 = vpop.f32.mrb[248].mxu0 }
0x152d   :  { %v22138_v31 = vpop.f32.mrb[249].mxu0  ;;  %v10364_v43 = vsel %vm1401_vm3, %v26990_v46, -inf }
0x1537   :  { %11095 = vrot.lane.b32.xlu1 %v26867_v4, %s24917_s3 }
0x153b   :  { %11015 = vrot.lane.b32.xlu1 %v26863_v44, %s24917_s3 }
0x153f   :  { %11093 = vrot.lane.b32.xlu1 %v26876_v5, %s24917_s3 }
0x1540   :  { %11017 = vrot.lane.b32.xlu0 %v26856_v17, %s24917_s3 }
0x1544   :  { %11173 = vrot.lane.b32.xlu0 %v26880_v19, %s24917_s3 }
0x1563   :  { %10365 = vmax.xlane.f32.xlu1 %v10364_v43 }
0x1574   :  { %11251 = vrot.lane.b32.xlu1 %v26896_v56, %s24917_s3 }
0x159f   :  { %v10345_v11 = vpop.xlane.xlu0 %10344 }
0x15a0   :  { %v10367_v22 = vsub.f32 %v9807_v51, %v10345_v11 }
0x15a2   :  { %v10375_v54 = vmul.f32 1.442695, %v10367_v22 }
0x15a3   :  { %v10348_v38 = vpop.xlane.xlu1 %10347 }
0x15a4   :  { %24505 = vpow2.f32 %v10375_v54  ;;  %v10368_v52 = vsub.f32 %v9883_v12, %v10348_v38 }
0x15a6   :  { %v10377_v57 = vmul.f32 1.442695, %v10368_v52 }
0x15a7   :  { %v10351_v18 = vpop.xlane.xlu0 %10350 }
0x15a8   :  { %24507 = vpow2.f32 %v10377_v57  ;;  %v10369_v39 = vsub.f32 %v9959_v7, %v10351_v18 }
0x15aa   :  { %v10379_v23 = vmul.f32 1.442695, %v10369_v39 }
0x15ab   :  { %v10354_v21 = vpop.xlane.xlu1 %10353 }
0x15ac   :  { %24509 = vpow2.f32 %v10379_v23  ;;  %v10370_v48 = vsub.f32 %v10035_v15, %v10354_v21 }
0x15ae   :  { %v27006_v42 = vpop.eup %24505  ;;  %v10381_v55 = vmul.f32 1.442695, %v10370_v48 }
0x15af   :  { %v10357_v31 = vpop.xlane.xlu0 %10356  ;;  %v10391_v43 = vsel %vm1401_vm3, %v27006_v42, 0.0 }
0x15b0   :  { %24511 = vpow2.f32 %v10381_v55  ;;  %v10371_v51 = vsub.f32 %v10111_v24, %v10357_v31  ;;  %10392 = vadd.xlane.f32.xlu0 %v10391_v43 }
0x15b2   :  { %v27010_v11 = vpop.eup %24507  ;;  %v10383_v12 = vmul.f32 1.442695, %v10371_v51 }
0x15b3   :  { %v10360_v22 = vpop.xlane.xlu1 %10359  ;;  %v10394_v7 = vsel %vm1401_vm3, %v27010_v11, 0.0 }
0x15b4   :  { %24513 = vpow2.f32 %v10383_v12  ;;  %v10372_v54 = vsub.f32 %v10187_v10, %v10360_v22  ;;  %10395 = vadd.xlane.f32.xlu1 %v10394_v7 }
0x15b6   :  { %v27014_v15 = vpop.eup %24509  ;;  %v10385_v38 = vmul.f32 1.442695, %v10372_v54 }
0x15b7   :  { %v10363_v52 = vpop.xlane.xlu0 %10362  ;;  %v10397_v57 = vsel %vm1401_vm3, %v27014_v15, 0.0  ;;  %v27038_v43 = vpop.permute.xlu1 %11095 }
0x15b8   :  { %24515 = vpow2.f32 %v10385_v38  ;;  %v10373_v24 = vsub.f32 %v10263_v34, %v10363_v52  ;;  %10398 = vadd.xlane.f32.xlu0 %v10397_v57 }
0x15ba   :  { %v27018_v18 = vpop.eup %24511  ;;  %v10387_v39 = vmul.f32 1.442695, %v10373_v24 }
0x15bb   :  { %v10400_v23 = vsel %vm1401_vm3, %v27018_v18, 0.0  ;;  %v27042_v51 = vpop.permute.xlu1 %11015 }
0x15bc   :  { %24517 = vpow2.f32 %v10387_v39  ;;  %10401 = vadd.xlane.f32.xlu1 %v10400_v23 }
0x15be   :  { %v27022_v10 = vpop.eup %24513 }
0x15bf   :  { %v10403_v21 = vsel %vm1401_vm3, %v27022_v10, 0.0  ;;  %v27048_v12 = vpop.permute.xlu1 %11093 }
0x15c0   :  { %10404 = vadd.xlane.f32.xlu0 %v10403_v21 }
0x15c2   :  { %v27026_v48 = vpop.eup %24515 }
0x15c3   :  { %v10406_v34 = vsel %vm1401_vm3, %v27026_v48, 0.0 }
0x15c4   :  { %10407 = vadd.xlane.f32.xlu1 %v10406_v34 }
0x15c6   :  { %v27030_v55 = vpop.eup %24517 }
0x15c7   :  { %v10409_v31 = vsel %vm1401_vm3, %v27030_v55, 0.0 }
0x15c8   :  { %10410 = vadd.xlane.f32.xlu0 %v10409_v31 }
0x15d5   :  { %11249 = vrot.lane.b32.xlu1 %v26907_v49, %s24917_s3 }
0x15de   :  { %11171 = vrot.lane.b32.xlu0 %v26890_v28, %s24917_s3 }
0x15e2   :  { %11329 = vrot.lane.b32.xlu0 %v26911_v37, %s24917_s3 }
0x15e6   :  { %11327 = vrot.lane.b32.xlu0 %v26920_v2, %s24917_s3 }
0x15ea   :  { %11485 = vrot.lane.b32.xlu0 %v26941_v61, %s24917_s3 }
0x15ee   :  { %11483 = vrot.lane.b32.xlu0 %v26950_v40, %s24917_s3 }
0x15f0   :  { %v10366_v22 = vpop.xlane.xlu1 %10365 }
0x15f1   :  { %v10374_v7 = vsub.f32 %v26990_v46, %v10366_v22  ;;  %v11018_v46 = vpop.permute.xlu0 %11017 }
0x15f3   :  { %v10389_v54 = vmul.f32 1.442695, %v10374_v7 }
0x15f4   :  { %v27065_v24 = vpop.permute.xlu1 %11251 }
0x15f5   :  { %24519 = vpow2.f32 %v10389_v54  ;;  %v11174_v57 = vpop.permute.xlu0 %11173 }
0x15ff   :  { %v27053_v38 = vpop.eup %24519 }
0x1600   :  { %v10412_v52 = vsel %vm1401_vm3, %v27053_v38, 0.0 }
0x1601   :  { %10413 = vadd.xlane.f32.xlu1 %v10412_v52 }
0x1612   :  { %11407 = vrot.lane.b32.xlu1 %v26926_v62, %s24917_s3 }
0x1616   :  { %11405 = vrot.lane.b32.xlu1 %v26937_v50, %s24917_s3 }
0x161a   :  { %11563 = vrot.lane.b32.xlu1 %v26958_v1, %s24917_s3 }
0x161e   :  { %11561 = vrot.lane.b32.xlu1 %v26968_v29, %s24917_s3 }
0x163d   :  { %v10393_v39 = vpop.xlane.xlu0 %10392 }
0x163e   :  { %24521 = vrcp.f32 %v10393_v39 }
0x1641   :  { %v10396_v23 = vpop.xlane.xlu1 %10395 }
0x1642   :  { %24523 = vrcp.f32 %v10396_v23 }
0x1645   :  { %v10399_v21 = vpop.xlane.xlu0 %10398 }
0x1646   :  { %24525 = vrcp.f32 %v10399_v21 }
0x1648   :  { %v24522_v34 = vpop.eup %24521 }
0x1649   :  { %v10402_v31 = vpop.xlane.xlu1 %10401  ;;  %v10423_v22 = vmul.f32 %v24522_v34, %v27006_v42 }
0x164a   :  { %24527 = vrcp.f32 %v10402_v31 }
0x164b   :  { %22142 = vmatmul.mubr.msk.f32.vlgmr.msra.gmra.mrb[222].mxu1 %vm1401_vm3, %v10423_v22 }
0x164c   :  { %v24524_v7 = vpop.eup %24523  ;;  %22150 = vmatpush3.msra.mxu1 %v26898_v30  ;;  %22151 = vmatprep.mubr.msk.f32.mxu1 %vm24916_vm1, %v28433_v58 }
0x164d   :  { %v10405_v54 = vpop.xlane.xlu0 %10404  ;;  %v10424_v52 = vmul.f32 %v24524_v7, %v27010_v11  ;;  %22159 = vmatprep.subr.mxu1 %v28433_v58 }
0x164e   :  { %24529 = vrcp.f32 %v10405_v54 }
0x164f   :  { %22147 = vmatmul.mubr.msk.f32.vlgmr.msra.gmra.mrb[250].mxu0 %vm1401_vm3, %v10424_v52 }
0x1650   :  { %v24526_v39 = vpop.eup %24525  ;;  %22155 = vmatpush3.msra.mxu0 %v26892_v59  ;;  %22156 = vmatprep.mubr.msk.f32.mxu0 %vm24916_vm1, %v28433_v58 }
0x1651   :  { %v10408_v42 = vpop.xlane.xlu1 %10407  ;;  %v10425_v23 = vmul.f32 %v24526_v39, %v27014_v15  ;;  %22164 = vmatprep.subr.mxu0 %v28433_v58 }
0x1652   :  { %24531 = vrcp.f32 %v10408_v42 }
0x1653   :  { %22152 = vmatmul.mubr.msk.f32.vlgmr.msra.gmra.mrb[224].mxu1 %vm1401_vm3, %v10425_v23 }
0x1654   :  { %v24528_v11 = vpop.eup %24527  ;;  %22160 = vmatpush3.msra.mxu1 %v26928_v9  ;;  %22161 = vmatprep.mubr.msk.f32.mxu1 %vm24916_vm1, %v28433_v58 }
0x1655   :  { %v10411_v21 = vpop.xlane.xlu0 %10410  ;;  %v10426_v34 = vmul.f32 %v24528_v11, %v27018_v18  ;;  %22169 = vmatprep.subr.mxu1 %v28433_v58 }
0x1656   :  { %24533 = vrcp.f32 %v10411_v21 }
0x1657   :  { %22157 = vmatmul.mubr.msk.f32.vlgmr.msra.gmra.mrb[252].mxu0 %vm1401_vm3, %v10426_v34 }
0x1658   :  { %v24530_v15 = vpop.eup %24529  ;;  %22165 = vmatpush3.msra.mxu0 %v26922_v33  ;;  %22166 = vmatprep.mubr.msk.f32.mxu0 %vm24916_vm1, %v28433_v58 }
0x1659   :  { %v10427_v31 = vmul.f32 %v24530_v15, %v27022_v10  ;;  %22174 = vmatprep.subr.mxu0 %v28433_v58  ;;  %v11172_v22 = vpop.permute.xlu0 %11171 }
0x165b   :  { %22162 = vmatmul.mubr.msk.f32.vlgmr.msra.gmra.mrb[226].mxu1 %vm1401_vm3, %v10427_v31 }
0x165c   :  { %v24532_v7 = vpop.eup %24531  ;;  %22170 = vmatpush3.msra.mxu1 %v26960_v36  ;;  %22171 = vmatprep.mubr.msk.f32.mxu1 %vm24916_vm1, %v28433_v58 }
0x165d   :  { %v10428_v18 = vmul.f32 %v24532_v7, %v27026_v48  ;;  %22179 = vmatprep.subr.mxu1 %v28433_v58  ;;  %v11330_v52 = vpop.permute.xlu0 %11329 }
0x165f   :  { %22167 = vmatmul.mubr.msk.f32.vlgmr.msra.gmra.mrb[254].mxu0 %vm1401_vm3, %v10428_v18 }
0x1660   :  { %v24534_v54 = vpop.eup %24533  ;;  %22175 = vmatpush3.msra.mxu0 %v26952_v41  ;;  %22176 = vmatprep.mubr.msk.f32.mxu0 %vm24916_vm1, %v28433_v58 }
0x1661   :  { %v10429_v10 = vmul.f32 %v24534_v54, %v27030_v55  ;;  %22184 = vmatprep.subr.mxu0 %v28433_v58  ;;  %v11328_v48 = vpop.permute.xlu0 %11327 }
0x1663   :  { %22172 = vmatmul.mubr.msk.f32.vlgmr.msra.gmra.mrb[228].mxu1 %vm1401_vm3, %v10429_v10 }
0x1664   :  { %22180 = vmatpush3.xpose.msk.msra.mxu1 %vm792_vm2, %v11018_v46  ;;  %22181 = vmatprep.mubr.msk.f32.mxu1 %vm24916_vm1, %v28433_v58  ;;  %v11250_v46 = vpop.permute.xlu1 %11249 }
0x1665   :  { %22189 = vmatprep.subr.mxu1 %v28433_v58  ;;  %v11486_v55 = vpop.permute.xlu0 %11485 }
0x1667   :  { %22182 = vmatmul.mubr.msk.f32.vlgmr.msra.gmra.mrb[230].mxu1 %vm792_vm2, %v27042_v51 }
0x1668   :  { %22190 = vmatpush3.xpose.msk.msra.mxu1 %vm792_vm2, %v11174_v57  ;;  %22191 = vmatprep.mubr.msk.f32.mxu1 %vm24916_vm1, %v28433_v58 }
0x1669   :  { %22199 = vmatprep.subr.mxu1 %v28433_v58  ;;  %v11484_v51 = vpop.permute.xlu0 %11483 }
0x166b   :  { %22192 = vmatmul.mubr.msk.f32.vlgmr.msra.gmra.mrb[232].mxu1 %vm792_vm2, %v11172_v22 }
0x166c   :  { %22200 = vmatpush3.xpose.msk.msra.mxu1 %vm792_vm2, %v11330_v52  ;;  %22201 = vmatprep.mubr.msk.f32.mxu1 %vm24916_vm1, %v28433_v58 }
0x166d   :  { %22209 = vmatprep.subr.mxu1 %v28433_v58 }
0x166f   :  { %22202 = vmatmul.mubr.msk.f32.vlgmr.msra.gmra.mrb[234].mxu1 %vm792_vm2, %v11328_v48 }
0x1670   :  { %22210 = vmatpush3.xpose.msk.msra.mxu1 %vm792_vm2, %v11486_v55  ;;  %22211 = vmatprep.mubr.msk.f32.mxu1 %vm24916_vm1, %v28433_v58 }
0x1671   :  { %22219 = vmatprep.subr.mxu1 %v28433_v58 }
0x1673   :  { %22212 = vmatmul.mubr.msk.f32.vlgmr.msra.gmra.mrb[236].mxu1 %vm792_vm2, %v11484_v51 }
0x1674   :  { %22221 = vmatprep.mubr.msk.f32.mxu1 %vm24916_vm1, %v28433_v58 }
0x168e   :  { %v10414_v57 = vpop.xlane.xlu1 %10413 }
0x168f   :  { %24535 = vrcp.f32 %v10414_v57 }
0x1692   :  { %v11408_v42 = vpop.permute.xlu1 %11407 }
0x1696   :  { %v11406_v11 = vpop.permute.xlu1 %11405 }
0x1699   :  { %v24536_v39 = vpop.eup %24535 }
0x169a   :  { %v10430_v23 = vmul.f32 %v24536_v39, %v27053_v38 }
0x169c   :  { %22177 = vmatmul.mubr.msk.f32.vlgmr.msra.gmra.mrb[0].mxu0 %vm1401_vm3, %v10430_v23 }
0x169d   :  { %22185 = vmatpush3.xpose.msk.msra.mxu0 %vm792_vm2, %v27038_v43  ;;  %22186 = vmatprep.mubr.msk.f32.mxu0 %vm24916_vm1, %v28433_v58  ;;  %v11564_v43 = vpop.permute.xlu1 %11563 }
0x169e   :  { %22194 = vmatprep.subr.mxu0 %v28433_v58 }
0x16a0   :  { %22187 = vmatmul.mubr.msk.f32.vlgmr.msra.gmra.mrb[2].mxu0 %vm792_vm2, %v27048_v12 }
0x16a1   :  { %22195 = vmatpush3.xpose.msk.msra.mxu0 %vm792_vm2, %v27065_v24  ;;  %22196 = vmatprep.mubr.msk.f32.mxu0 %vm24916_vm1, %v28433_v58  ;;  %v11562_v12 = vpop.permute.xlu1 %11561 }
0x16a2   :  { %22204 = vmatprep.subr.mxu0 %v28433_v58 }
0x16a4   :  { %22197 = vmatmul.mubr.msk.f32.vlgmr.msra.gmra.mrb[4].mxu0 %vm792_vm2, %v11250_v46 }
0x16a5   :  { %22205 = vmatpush3.xpose.msk.msra.mxu0 %vm792_vm2, %v11408_v42  ;;  %22206 = vmatprep.mubr.msk.f32.mxu0 %vm24916_vm1, %v28433_v58 }
0x16a6   :  { %22214 = vmatprep.subr.mxu0 %v28433_v58 }
0x16a8   :  { %22207 = vmatmul.mubr.msk.f32.vlgmr.msra.gmra.mrb[6].mxu0 %vm792_vm2, %v11406_v11 }
0x16a9   :  { %22215 = vmatpush3.xpose.msk.msra.mxu0 %vm792_vm2, %v11564_v43  ;;  %22216 = vmatprep.mubr.msk.f32.mxu0 %vm24916_vm1, %v28433_v58 }
0x16aa   :  { %22224 = vmatprep.subr.mxu0 %v28433_v58 }
0x16ac   :  { %22217 = vmatmul.mubr.msk.f32.vlgmr.msra.gmra.mrb[8].mxu0 %vm792_vm2, %v11562_v12 }
0x16ad   :  { %22226 = vmatprep.mubr.msk.f32.mxu0 %vm24916_vm1, %v28433_v58 }
0x171e   :  { %v27155_v38 = vpop.f32.mrb[222].mxu1 }
0x171f   :  { %v22143_v24 = vpop.f32.mrb[223].mxu1 }
0x1722   :  { %v27157_v21 = vpop.f32.mrb[250].mxu0 }
0x1723   :  { %v22148_v34 = vpop.f32.mrb[251].mxu0 }
0x1726   :  { %v27159_v15 = vpop.f32.mrb[224].mxu1 }
0x1727   :  { %v22153_v31 = vpop.f32.mrb[225].mxu1 }
0x172a   :  { %v27161_v22 = vpop.f32.mrb[252].mxu0 }
0x172b   :  { %v22158_v7 = vpop.f32.mrb[253].mxu0 }
0x172e   :  { %v27163_v18 = vpop.f32.mrb[226].mxu1 }
0x172f   :  { %v22163_v54 = vpop.f32.mrb[227].mxu1 }
0x1732   :  { %v27165_v52 = vpop.f32.mrb[254].mxu0 }
0x1733   :  { %v22168_v10 = vpop.f32.mrb[255].mxu0 }
0x1736   :  { %v27167_v48 = vpop.f32.mrb[228].mxu1 }
0x1737   :  { %28464 = vst [vmem:[#allocation40_spill] sm:$0xff] %v27167_v48  ;;  %v22173_v55 = vpop.f32.mrb[229].mxu1 }
0x173a   :  { %v11089_v51 = vpop.f32.mrb[230].mxu1 }
0x173b   :  { %v22183_v46 = vpop.f32.mrb[231].mxu1  ;;  %v11639_v57 = vsel %vm1401_vm3, %v11089_v51, -inf }
0x173c   :  { %11640 = vmax.xlane.f32.xlu0 %v11639_v57 }
0x173e   :  { %v11245_v39 = vpop.f32.mrb[232].mxu1 }
0x173f   :  { %v22193_v42 = vpop.f32.mrb[233].mxu1  ;;  %v11645_v23 = vsel %vm1401_vm3, %v11245_v39, -inf }
0x1740   :  { %11646 = vmax.xlane.f32.xlu0 %v11645_v23 }
0x1742   :  { %v27171_v11 = vpop.f32.mrb[234].mxu1 }
0x1743   :  { %v22203_v43 = vpop.f32.mrb[235].mxu1 }
0x1746   :  { %v27173_v12 = vpop.f32.mrb[236].mxu1 }
0x1747   :  { %v22213_v24 = vpop.f32.mrb[237].mxu1 }
0x1748   :  { %v11651_v24 = vsel %vm1401_vm3, %v27171_v11, -inf }
0x176f   :  { %v27175_v34 = vpop.f32.mrb[0].mxu0 }
0x1770   :  { %v22178_v31 = vpop.f32.mrb[1].mxu0 }
0x1773   :  { %v11167_v7 = vpop.f32.mrb[2].mxu0 }
0x1774   :  { %v22188_v54 = vpop.f32.mrb[3].mxu0  ;;  %v11642_v10 = vsel %vm1401_vm3, %v11167_v7, -inf }
0x1775   :  { %11643 = vmax.xlane.f32.xlu1 %v11642_v10  ;;  %v11657_v10 = vsel %vm1401_vm3, %v27173_v12, -inf }
0x1777   :  { %v11323_v55 = vpop.f32.mrb[4].mxu0 }
0x1778   :  { %v22198_v46 = vpop.f32.mrb[5].mxu0  ;;  %v11648_v57 = vsel %vm1401_vm3, %v11323_v55, -inf }
0x1779   :  { %11649 = vmax.xlane.f32.xlu0 %v11648_v57 }
0x177b   :  { %v11479_v42 = vpop.f32.mrb[6].mxu0 }
0x177c   :  { %v22208_v23 = vpop.f32.mrb[7].mxu0  ;;  %v11654_v43 = vsel %vm1401_vm3, %v11479_v42, -inf }
0x177d   :  { %11655 = vmax.xlane.f32.xlu1 %v11654_v43  ;;  %11652 = vmax.xlane.f32.xlu0 %v11651_v24 }
0x177f   :  { %v27182_v31 = vpop.f32.mrb[8].mxu0 }
0x1780   :  { %v22218_v54 = vpop.f32.mrb[9].mxu0  ;;  %v11660_v57 = vsel %vm1401_vm3, %v27182_v31, -inf }
0x1781   :  { %11658 = vmax.xlane.f32.xlu0 %v11657_v10 }
0x178e   :  { %11805 = vrot.lane.b32.xlu1 %v26974_v25, %s24917_s3 }
0x1792   :  { %11882 = vrot.lane.b32.xlu1 %v26898_v30, %s24917_s3 }
0x1796   :  { %11959 = vrot.lane.b32.xlu1 %v26892_v59, %s24917_s3 }
0x1797   :  { %11728 = vrot.lane.b32.xlu0 %v26955_v6, %s24917_s3 }
0x179a   :  { %12113 = vrot.lane.b32.xlu1 %v26922_v33, %s24917_s3 }
0x179b   :  { %12036 = vrot.lane.b32.xlu0 %v26928_v9, %s24917_s3 }
0x179e   :  { %12267 = vrot.lane.b32.xlu1 %v26952_v41, %s24917_s3 }
0x179f   :  { %12190 = vrot.lane.b32.xlu0 %v26960_v36, %s24917_s3 }
0x17a2   :  { %12423 = vrot.lane.b32.xlu1 %v26867_v4, %s24907_s25 }
0x17a3   :  { %12345 = vrot.lane.b32.xlu0 %v26856_v17, %s24907_s25 }
0x17a6   :  { %12421 = vrot.lane.b32.xlu1 %v26876_v5, %s24907_s25 }
0x17a7   :  { %12343 = vrot.lane.b32.xlu0 %v26863_v44, %s24907_s25 }
0x17ab   :  { %12501 = vrot.lane.b32.xlu0 %v26880_v19, %s24907_s25 }
0x17c9   :  { %v11641_v46 = vpop.xlane.xlu0 %11640 }
0x17ca   :  { %v11663_v23 = vsub.f32 %v11089_v51, %v11641_v46  ;;  %11661 = vmax.xlane.f32.xlu1 %v11660_v57 }
0x17cc   :  { %v11671_v43 = vmul.f32 1.442695, %v11663_v23 }
0x17cd   :  { %v11647_v24 = vpop.xlane.xlu0 %11646 }
0x17ce   :  { %24537 = vpow2.f32 %v11671_v43  ;;  %v11665_v54 = vsub.f32 %v11245_v39, %v11647_v24 }
0x17d0   :  { %v11675_v10 = vmul.f32 1.442695, %v11665_v54 }
0x17d2   :  { %24539 = vpow2.f32 %v11675_v10 }
0x17d8   :  { %v27214_v20 = vpop.eup %24537 }
0x17d9   :  { %v11687_v32 = vsel %vm1401_vm3, %v27214_v20, 0.0 }
0x17da   :  { %11688 = vadd.xlane.f32.xlu0 %v11687_v32 }
0x17db   :  { %12579 = vrot.lane.b32.xlu1 %v26896_v56, %s24907_s25 }
0x17dc   :  { %v27220_v53 = vpop.eup %24539 }
0x17dd   :  { %v11693_v51 = vsel %vm1401_vm3, %v27220_v53, 0.0 }
0x17de   :  { %11694 = vadd.xlane.f32.xlu0 %v11693_v51 }
0x1802   :  { %v11644_v46 = vpop.xlane.xlu1 %11643 }
0x1803   :  { %v11664_v57 = vsub.f32 %v11167_v7, %v11644_v46 }
0x1805   :  { %v11673_v39 = vmul.f32 1.442695, %v11664_v57 }
0x1806   :  { %v11650_v23 = vpop.xlane.xlu0 %11649 }
0x1807   :  { %24541 = vpow2.f32 %v11673_v39  ;;  %v11666_v43 = vsub.f32 %v11323_v55, %v11650_v23 }
0x1809   :  { %v11677_v24 = vmul.f32 1.442695, %v11666_v43 }
0x180a   :  { %v11656_v54 = vpop.xlane.xlu1 %11655  ;;  %v11653_v10 = vpop.xlane.xlu0 %11652 }
0x180b   :  { %24543 = vpow2.f32 %v11677_v24  ;;  %v11668_v32 = vsub.f32 %v11479_v42, %v11656_v54  ;;  %v11667_v0 = vsub.f32 %v27171_v11, %v11653_v10 }
0x180d   :  { %v11681_v14 = vmul.f32 1.442695, %v11668_v32  ;;  %v11679_v27 = vmul.f32 1.442695, %v11667_v0 }
0x180e   :  { %v11806_v8 = vpop.permute.xlu1 %11805  ;;  %v11659_v35 = vpop.xlane.xlu0 %11658 }
0x180f   :  { %24545 = vpow2.f32 %v11681_v14  ;;  %v11669_v51 = vsub.f32 %v27173_v12, %v11659_v35  ;;  %22225 = vmatpush3.msra.mxu0 %v11806_v8 }
0x1810   :  { %24547 = vpow2.f32 %v11679_v27  ;;  %22234 = vmatprep.subr.mxu0 %v28433_v58 }
0x1811   :  { %v27227_v7 = vpop.eup %24541  ;;  %v11683_v55 = vmul.f32 1.442695, %v11669_v51 }
0x1812   :  { %v11729_v46 = vpop.permute.xlu0 %11728  ;;  %v11690_v42 = vsel %vm1401_vm3, %v27227_v7, 0.0  ;;  %v11883_v39 = vpop.permute.xlu1 %11882 }
0x1813   :  { %24549 = vpow2.f32 %v11683_v55  ;;  %11691 = vadd.xlane.f32.xlu1 %v11690_v42  ;;  %22220 = vmatpush3.msra.mxu1 %v11729_v46 }
0x1814   :  { %22229 = vmatprep.subr.mxu1 %v28433_v58 }
0x1815   :  { %v27232_v0 = vpop.eup %24543 }
0x1816   :  { %v11696_v14 = vsel %vm1401_vm3, %v27232_v0, 0.0  ;;  %v11960_v23 = vpop.permute.xlu1 %11959  ;;  %v12037_v54 = vpop.permute.xlu0 %12036 }
0x1817   :  { %11697 = vadd.xlane.f32.xlu1 %v11696_v14 }
0x1819   :  { %v27236_v35 = vpop.eup %24545 }
0x181a   :  { %v27238_v8 = vpop.eup %24547  ;;  %v11702_v27 = vsel %vm1401_vm3, %v27236_v35, 0.0  ;;  %v27256_v43 = vpop.permute.xlu1 %12113 }
0x181b   :  { %11703 = vadd.xlane.f32.xlu1 %v11702_v27  ;;  %v11699_v11 = vsel %vm1401_vm3, %v27238_v8, 0.0  ;;  %v27270_v32 = vpop.permute.xlu0 %12190 }
0x181c   :  { %11700 = vadd.xlane.f32.xlu0 %v11699_v11 }
0x181d   :  { %v27244_v12 = vpop.eup %24549 }
0x181e   :  { %v11705_v57 = vsel %vm1401_vm3, %v27244_v12, 0.0  ;;  %v27262_v24 = vpop.permute.xlu1 %12267 }
0x181f   :  { %v27274_v55 = vpop.permute.xlu0 %12345 }
0x1820   :  { %11706 = vadd.xlane.f32.xlu0 %v11705_v57 }
0x1822   :  { %v27266_v10 = vpop.permute.xlu1 %12423 }
0x1823   :  { %v27277_v27 = vpop.permute.xlu0 %12343 }
0x1826   :  { %v27272_v51 = vpop.permute.xlu1 %12421 }
0x1827   :  { %v27279_v11 = vpop.permute.xlu0 %12501 }
0x182c   :  { %12577 = vrot.lane.b32.xlu1 %v26907_v49, %s24907_s25 }
0x1836   :  { %12499 = vrot.lane.b32.xlu0 %v26890_v28, %s24907_s25 }
0x183a   :  { %12657 = vrot.lane.b32.xlu0 %v26911_v37, %s24907_s25 }
0x183e   :  { %12655 = vrot.lane.b32.xlu0 %v26920_v2, %s24907_s25 }
0x1842   :  { %12813 = vrot.lane.b32.xlu0 %v26941_v61, %s24907_s25 }
0x1846   :  { %12811 = vrot.lane.b32.xlu0 %v26950_v40, %s24907_s25 }
0x184a   :  { %13055 = vrot.lane.b32.xlu0 %v26955_v6, %s24907_s25 }
0x184e   :  { %13359 = vrot.lane.b32.xlu0 %v26928_v9, %s24907_s25 }
0x1857   :  { %v11662_v46 = vpop.xlane.xlu1 %11661 }
0x1858   :  { %v11670_v42 = vsub.f32 %v27182_v31, %v11662_v46 }
0x185a   :  { %v11685_v14 = vmul.f32 1.442695, %v11670_v42 }
0x185c   :  { %24551 = vpow2.f32 %v11685_v14 }
0x1866   :  { %v27281_v57 = vpop.eup %24551 }
0x1867   :  { %v11689_v63 = vpop.xlane.xlu0 %11688  ;;  %v11708_v47 = vsel %vm1401_vm3, %v27281_v57, 0.0 }
0x1868   :  { %24553 = vrcp.f32 %v11689_v63  ;;  %11709 = vadd.xlane.f32.xlu1 %v11708_v47 }
0x186b   :  { %v11695_v13 = vpop.xlane.xlu0 %11694 }
0x186c   :  { %24555 = vrcp.f32 %v11695_v13 }
0x1872   :  { %v24554_v60 = vpop.eup %24553 }
0x1873   :  { %v11719_v16 = vmul.f32 %v24554_v60, %v27214_v20 }
0x1875   :  { %22222 = vmatmul.mubr.msk.f32.vlgmr.msra.gmra.mrb[238].mxu1 %vm1401_vm3, %v11719_v16 }
0x1876   :  { %v24556_v31 = vpop.eup %24555  ;;  %22230 = vmatpush3.msra.mxu1 %v11883_v39  ;;  %22231 = vmatprep.mubr.msk.f32.mxu1 %vm24916_vm1, %v28433_v58 }
0x1877   :  { %22239 = vmatprep.subr.mxu1 %v28433_v58  ;;  %v11721_v46 = vmul.f32 %v24556_v31, %v27220_v53  ;;  %v27311_v53 = vpop.permute.xlu1 %12579 }
0x1879   :  { %12735 = vrot.lane.b32.xlu1 %v26926_v62, %s24907_s25  ;;  %22232 = vmatmul.mubr.msk.f32.vlgmr.msra.gmra.mrb[240].mxu1 %vm1401_vm3, %v11721_v46 }
0x187a   :  { %22240 = vmatpush3.msra.mxu1 %v12037_v54  ;;  %22241 = vmatprep.mubr.msk.f32.mxu1 %vm24916_vm1, %v28433_v58 }
0x187b   :  { %22249 = vmatprep.subr.mxu1 %v28433_v58 }
0x187d   :  { %12733 = vrot.lane.b32.xlu1 %v26937_v50, %s24907_s25 }
0x1881   :  { %12891 = vrot.lane.b32.xlu1 %v26958_v1, %s24907_s25 }
0x1885   :  { %12889 = vrot.lane.b32.xlu1 %v26968_v29, %s24907_s25 }
0x1889   :  { %13131 = vrot.lane.b32.xlu1 %v26974_v25, %s24907_s25 }
0x188d   :  { %13207 = vrot.lane.b32.xlu1 %v26898_v30, %s24907_s25 }
0x1891   :  { %13283 = vrot.lane.b32.xlu1 %v26892_v59, %s24907_s25 }
0x1895   :  { %13435 = vrot.lane.b32.xlu1 %v26922_v33, %s24907_s25 }
0x18a0   :  { %v11692_v20 = vpop.xlane.xlu1 %11691 }
0x18a1   :  { %24557 = vrcp.f32 %v11692_v20 }
0x18a4   :  { %v11698_v16 = vpop.xlane.xlu1 %11697 }
0x18a5   :  { %24559 = vrcp.f32 %v11698_v16 }
0x18a8   :  { %v11704_v13 = vpop.xlane.xlu1 %11703 }
0x18a9   :  { %24561 = vrcp.f32 %v11704_v13  ;;  %v11701_v60 = vpop.xlane.xlu0 %11700 }
0x18aa   :  { %24563 = vrcp.f32 %v11701_v60 }
0x18ab   :  { %v24558_v63 = vpop.eup %24557 }
0x18ac   :  { %v11720_v47 = vmul.f32 %v24558_v63, %v27227_v7 }
0x18ad   :  { %v11707_v39 = vpop.xlane.xlu0 %11706 }
0x18ae   :  { %24565 = vrcp.f32 %v11707_v39  ;;  %22227 = vmatmul.mubr.msk.f32.vlgmr.msra.gmra.mrb[10].mxu0 %vm1401_vm3, %v11720_v47 }
0x18af   :  { %v24560_v54 = vpop.eup %24559  ;;  %22235 = vmatpush3.msra.mxu0 %v11960_v23  ;;  %22236 = vmatprep.mubr.msk.f32.mxu0 %vm24916_vm1, %v28433_v58 }
0x18b0   :  { %v11722_v42 = vmul.f32 %v24560_v54, %v27232_v0  ;;  %22244 = vmatprep.subr.mxu0 %v28433_v58 }
0x18b1   :  { %v12500_v14 = vpop.permute.xlu0 %12499 }
0x18b2   :  { %22237 = vmatmul.mubr.msk.f32.vlgmr.msra.gmra.mrb[12].mxu0 %vm1401_vm3, %v11722_v42 }
0x18b3   :  { %v24562_v31 = vpop.eup %24561  ;;  %22245 = vmatpush3.msra.mxu0 %v27256_v43  ;;  %22246 = vmatprep.mubr.msk.f32.mxu0 %vm24916_vm1, %v28433_v58 }
0x18b4   :  { %v24564_v7 = vpop.eup %24563  ;;  %v11724_v46 = vmul.f32 %v24562_v31, %v27236_v35  ;;  %22254 = vmatprep.subr.mxu0 %v28433_v58 }
0x18b5   :  { %v11723_v23 = vmul.f32 %v24564_v7, %v27238_v8  ;;  %v12658_v20 = vpop.permute.xlu0 %12657 }
0x18b6   :  { %22247 = vmatmul.mubr.msk.f32.vlgmr.msra.gmra.mrb[14].mxu0 %vm1401_vm3, %v11724_v46 }
0x18b7   :  { %22242 = vmatmul.mubr.msk.f32.vlgmr.msra.gmra.mrb[242].mxu1 %vm1401_vm3, %v11723_v23  ;;  %22255 = vmatpush3.msra.mxu0 %v27262_v24 }
0x18b8   :  { %v24566_v0 = vpop.eup %24565  ;;  %22250 = vmatpush3.msra.mxu1 %v27270_v32  ;;  %22251 = vmatprep.mubr.msk.f32.mxu1 %vm24916_vm1, %v28433_v58  ;;  %v12578_v32 = vpop.permute.xlu1 %12577 }
0x18b9   :  { %v11725_v43 = vmul.f32 %v24566_v0, %v27244_v12  ;;  %22259 = vmatprep.subr.mxu1 %v28433_v58  ;;  %22256 = vmatprep.mubr.msk.f32.mxu0 %vm24916_vm1, %v28433_v58  ;;  %v12656_v35 = vpop.permute.xlu0 %12655 }
0x18ba   :  { %22264 = vmatprep.subr.mxu0 %v28433_v58 }
0x18bb   :  { %22252 = vmatmul.mubr.msk.f32.vlgmr.msra.gmra.mrb[244].mxu1 %vm1401_vm3, %v11725_v43 }
0x18bc   :  { %22261 = vmatprep.mubr.msk.f32.mxu1 %vm24916_vm1, %v28433_v58 }
0x18bd   :  { %v12814_v8 = vpop.permute.xlu0 %12813 }
0x18bf   :  { %22260 = vmatpush3.xpose.msk.msra.mxu1 %vm792_vm2, %v27274_v55 }
0x18c0   :  { %22269 = vmatprep.subr.mxu1 %v28433_v58 }
0x18c1   :  { %v12812_v12 = vpop.permute.xlu0 %12811 }
0x18c2   :  { %22262 = vmatmul.mubr.msk.f32.vlgmr.msra.gmra.mrb[246].mxu1 %vm792_vm2, %v27277_v27 }
0x18c3   :  { %22270 = vmatpush3.xpose.msk.msra.mxu1 %vm792_vm2, %v27279_v11  ;;  %22271 = vmatprep.mubr.msk.f32.mxu1 %vm24916_vm1, %v28433_v58 }
0x18c4   :  { %22279 = vmatprep.subr.mxu1 %v28433_v58 }
0x18c5   :  { %v13056_v24 = vpop.permute.xlu0 %13055 }
0x18c6   :  { %22272 = vmatmul.mubr.msk.f32.vlgmr.msra.gmra.mrb[248].mxu1 %vm792_vm2, %v12500_v14 }
0x18c7   :  { %22280 = vmatpush3.xpose.msk.msra.mxu1 %vm792_vm2, %v12658_v20  ;;  %22281 = vmatprep.mubr.msk.f32.mxu1 %vm24916_vm1, %v28433_v58 }
0x18c8   :  { %22289 = vmatprep.subr.mxu1 %v28433_v58 }
0x18ca   :  { %22282 = vmatmul.mubr.msk.f32.vlgmr.msra.gmra.mrb[250].mxu1 %vm792_vm2, %v12656_v35 }
0x18cb   :  { %22290 = vmatpush3.xpose.msk.msra.mxu1 %vm792_vm2, %v12814_v8  ;;  %22291 = vmatprep.mubr.msk.f32.mxu1 %vm24916_vm1, %v28433_v58 }
0x18cc   :  { %22299 = vmatprep.subr.mxu1 %v28433_v58 }
0x18ce   :  { %22292 = vmatmul.mubr.msk.f32.vlgmr.msra.gmra.mrb[252].mxu1 %vm792_vm2, %v12812_v12 }
0x18cf   :  { %22300 = vmatpush3.msra.mxu1 %v13056_v24  ;;  %22301 = vmatprep.mubr.msk.f32.mxu1 %vm24916_vm1, %v28433_v58 }
0x18d0   :  { %22309 = vmatprep.subr.mxu1 %v28433_v58 }
0x18f5   :  { %v11710_v55 = vpop.xlane.xlu1 %11709 }
0x18f6   :  { %24567 = vrcp.f32 %v11710_v55 }
0x18f9   :  { %v12736_v27 = vpop.permute.xlu1 %12735 }
0x18fd   :  { %v12734_v13 = vpop.permute.xlu1 %12733 }
0x1900   :  { %v24568_v11 = vpop.eup %24567 }
0x1901   :  { %v11726_v16 = vmul.f32 %v24568_v11, %v27281_v57  ;;  %v12892_v60 = vpop.permute.xlu1 %12891 }
0x1903   :  { %22257 = vmatmul.mubr.msk.f32.vlgmr.msra.gmra.mrb[16].mxu0 %vm1401_vm3, %v11726_v16 }
0x1904   :  { %22265 = vmatpush3.xpose.msk.msra.mxu0 %vm792_vm2, %v27266_v10  ;;  %22266 = vmatprep.mubr.msk.f32.mxu0 %vm24916_vm1, %v28433_v58 }
0x1905   :  { %22274 = vmatprep.subr.mxu0 %v28433_v58  ;;  %v12890_v10 = vpop.permute.xlu1 %12889 }
0x1907   :  { %22267 = vmatmul.mubr.msk.f32.vlgmr.msra.gmra.mrb[18].mxu0 %vm792_vm2, %v27272_v51 }
0x1908   :  { %22275 = vmatpush3.xpose.msk.msra.mxu0 %vm792_vm2, %v27311_v53  ;;  %22276 = vmatprep.mubr.msk.f32.mxu0 %vm24916_vm1, %v28433_v58 }
0x1909   :  { %22284 = vmatprep.subr.mxu0 %v28433_v58  ;;  %v13132_v51 = vpop.permute.xlu1 %13131 }
0x190b   :  { %22277 = vmatmul.mubr.msk.f32.vlgmr.msra.gmra.mrb[20].mxu0 %vm792_vm2, %v12578_v32 }
0x190c   :  { %22285 = vmatpush3.xpose.msk.msra.mxu0 %vm792_vm2, %v12736_v27  ;;  %22286 = vmatprep.mubr.msk.f32.mxu0 %vm24916_vm1, %v28433_v58 }
0x190d   :  { %22294 = vmatprep.subr.mxu0 %v28433_v58  ;;  %v13208_v26 = vpop.permute.xlu1 %13207 }
0x190f   :  { %22287 = vmatmul.mubr.msk.f32.vlgmr.msra.gmra.mrb[22].mxu0 %vm792_vm2, %v12734_v13 }
0x1910   :  { %22295 = vmatpush3.xpose.msk.msra.mxu0 %vm792_vm2, %v12892_v60  ;;  %22296 = vmatprep.mubr.msk.f32.mxu0 %vm24916_vm1, %v28433_v58 }
0x1911   :  { %22304 = vmatprep.subr.mxu0 %v28433_v58 }
0x1913   :  { %22297 = vmatmul.mubr.msk.f32.vlgmr.msra.gmra.mrb[24].mxu0 %vm792_vm2, %v12890_v10 }
0x1914   :  { %22305 = vmatpush3.msra.mxu0 %v13132_v51  ;;  %22306 = vmatprep.mubr.msk.f32.mxu0 %vm24916_vm1, %v28433_v58 }
0x1915   :  { %22314 = vmatprep.subr.mxu0 %v28433_v58 }
0x1948   :  { %v27392_v57 = vpop.f32.mrb[238].mxu1 }
0x1949   :  { %v22223_v53 = vpop.f32.mrb[239].mxu1 }
0x194c   :  { %v27394_v63 = vpop.f32.mrb[240].mxu1 }
0x194d   :  { %v22233_v47 = vpop.f32.mrb[241].mxu1 }
0x1981   :  { %v27396_v39 = vpop.f32.mrb[10].mxu0 }
0x1982   :  { %v22228_v42 = vpop.f32.mrb[11].mxu0 }
0x1985   :  { %v27400_v14 = vpop.f32.mrb[12].mxu0 }
0x1986   :  { %v22238_v7 = vpop.f32.mrb[13].mxu0 }
0x1989   :  { %v27404_v46 = vpop.f32.mrb[14].mxu0 }
0x198a   :  { %v27406_v23 = vpop.f32.mrb[242].mxu1  ;;  %v22248_v20 = vpop.f32.mrb[15].mxu0 }
0x198b   :  { %v22243_v43 = vpop.f32.mrb[243].mxu1 }
0x198e   :  { %v27410_v35 = vpop.f32.mrb[244].mxu1 }
0x198f   :  { %v22253_v8 = vpop.f32.mrb[245].mxu1 }
0x1995   :  { %v12417_v12 = vpop.f32.mrb[246].mxu1 }
0x1996   :  { %v22263_v24 = vpop.f32.mrb[247].mxu1  ;;  %v12967_v32 = vsel %vm1401_vm3, %v12417_v12, -inf }
0x1997   :  { %12968 = vmax.xlane.f32.xlu0 %v12967_v32 }
0x1999   :  { %v12573_v55 = vpop.f32.mrb[248].mxu1 }
0x199a   :  { %v22273_v27 = vpop.f32.mrb[249].mxu1  ;;  %v12973_v11 = vsel %vm1401_vm3, %v12573_v55, -inf }
0x199b   :  { %12974 = vmax.xlane.f32.xlu0 %v12973_v11 }
0x199d   :  { %v12729_v16 = vpop.f32.mrb[250].mxu1 }
0x199e   :  { %v22283_v13 = vpop.f32.mrb[251].mxu1 }
0x199f   :  { %v12979_v13 = vsel %vm1401_vm3, %v12729_v16, -inf }
0x19a1   :  { %v27414_v60 = vpop.f32.mrb[252].mxu1 }
0x19a2   :  { %v22293_v10 = vpop.f32.mrb[253].mxu1 }
0x19d6   :  { %v27416_v51 = vpop.f32.mrb[16].mxu0 }
0x19d7   :  { %v22258_v47 = vpop.f32.mrb[17].mxu0 }
0x19da   :  { %v12495_v42 = vpop.f32.mrb[18].mxu0 }
0x19db   :  { %v22268_v7 = vpop.f32.mrb[19].mxu0  ;;  %v12970_v20 = vsel %vm1401_vm3, %v12495_v42, -inf }
0x19dc   :  { %12971 = vmax.xlane.f32.xlu1 %v12970_v20  ;;  %v12985_v7 = vsel %vm1401_vm3, %v27414_v60, -inf }
0x19de   :  { %v12651_v43 = vpop.f32.mrb[20].mxu0 }
0x19df   :  { %v22278_v8 = vpop.f32.mrb[21].mxu0  ;;  %v12976_v24 = vsel %vm1401_vm3, %v12651_v43, -inf }
0x19e0   :  { %12977 = vmax.xlane.f32.xlu0 %v12976_v24  ;;  %v27434_v8 = vpop.permute.xlu0 %13359 }
0x19e2   :  { %v12807_v32 = vpop.f32.mrb[22].mxu0 }
0x19e3   :  { %v22288_v27 = vpop.f32.mrb[23].mxu0  ;;  %v12982_v11 = vsel %vm1401_vm3, %v12807_v32, -inf }
0x19e4   :  { %12983 = vmax.xlane.f32.xlu1 %v12982_v11  ;;  %12980 = vmax.xlane.f32.xlu0 %v12979_v13 }
0x19e6   :  { %v27424_v10 = vpop.f32.mrb[24].mxu0 }
0x19e7   :  { %v22298_v47 = vpop.f32.mrb[25].mxu0  ;;  %v12988_v20 = vsel %vm1401_vm3, %v27424_v10, -inf }
0x19e8   :  { %12986 = vmax.xlane.f32.xlu0 %v12985_v7 }
0x19f5   :  { %13587 = vrot.lane.b32.xlu1 %v26952_v41, %s24907_s25 }
0x19fe   :  { %13511 = vrot.lane.b32.xlu0 %v26960_v36, %s24907_s25 }
0x1a19   :  { %12989 = vmax.xlane.f32.xlu1 %v12988_v20  ;;  %v27438_v20 = vpop.permute.xlu1 %13283 }
0x1a1d   :  { %v27440_v45 = vpop.permute.xlu1 %13435 }
0x1a24   :  { %v12969_v24 = vpop.xlane.xlu0 %12968 }
0x1a25   :  { %v12991_v27 = vsub.f32 %v12417_v12, %v12969_v24 }
0x1a27   :  { %v12999_v11 = vmul.f32 1.442695, %v12991_v27 }
0x1a28   :  { %v12975_v13 = vpop.xlane.xlu0 %12974 }
0x1a29   :  { %24569 = vpow2.f32 %v12999_v11  ;;  %v12993_v47 = vsub.f32 %v12573_v55, %v12975_v13 }
0x1a2b   :  { %v13003_v53 = vmul.f32 1.442695, %v12993_v47 }
0x1a2d   :  { %24571 = vpow2.f32 %v13003_v53 }
0x1a33   :  { %v24570_v7 = vpop.eup %24569 }
0x1a34   :  { %v13015_v0 = vsel %vm1401_vm3, %v24570_v7, 0.0 }
0x1a35   :  { %13016 = vadd.xlane.f32.xlu0 %v13015_v0 }
0x1a37   :  { %v24572_v31 = vpop.eup %24571 }
0x1a38   :  { %v13021_v54 = vsel %vm1401_vm3, %v24572_v31, 0.0 }
0x1a39   :  { %13022 = vadd.xlane.f32.xlu0 %v13021_v54 }
0x1a69   :  { %v12972_v12 = vpop.xlane.xlu1 %12971 }
0x1a6a   :  { %v12992_v24 = vsub.f32 %v12495_v42, %v12972_v12 }
0x1a6c   :  { %v13001_v27 = vmul.f32 1.442695, %v12992_v24 }
0x1a6d   :  { %v12978_v11 = vpop.xlane.xlu0 %12977 }
0x1a6e   :  { %24573 = vpow2.f32 %v13001_v27  ;;  %v12994_v55 = vsub.f32 %v12651_v43, %v12978_v11 }
0x1a70   :  { %v13005_v53 = vmul.f32 1.442695, %v12994_v55 }
0x1a71   :  { %v12981_v13 = vpop.xlane.xlu0 %12980 }
0x1a72   :  { %24575 = vpow2.f32 %v13005_v53  ;;  %v12995_v47 = vsub.f32 %v12729_v16, %v12981_v13  ;;  %v12984_v16 = vpop.xlane.xlu1 %12983 }
0x1a73   :  { %v12996_v24 = vsub.f32 %v12807_v32, %v12984_v16 }
0x1a74   :  { %v13007_v0 = vmul.f32 1.442695, %v12995_v47 }
0x1a75   :  { %v12987_v27 = vpop.xlane.xlu0 %12986  ;;  %v13009_v11 = vmul.f32 1.442695, %v12996_v24 }
0x1a76   :  { %24577 = vpow2.f32 %v13007_v0  ;;  %v12997_v55 = vsub.f32 %v27414_v60, %v12987_v27 }
0x1a77   :  { %24579 = vpow2.f32 %v13009_v11 }
0x1a78   :  { %v27442_v3 = vpop.eup %24573  ;;  %v13011_v53 = vmul.f32 1.442695, %v12997_v55 }
0x1a79   :  { %v13018_v54 = vsel %vm1401_vm3, %v27442_v3, 0.0 }
0x1a7a   :  { %13019 = vadd.xlane.f32.xlu1 %v13018_v54  ;;  %24581 = vpow2.f32 %v13011_v53  ;;  %v27469_v54 = vpop.permute.xlu1 %13587 }
0x1a7c   :  { %v27446_v48 = vpop.eup %24575 }
0x1a7d   :  { %v13024_v42 = vsel %vm1401_vm3, %v27446_v48, 0.0 }
0x1a7e   :  { %13025 = vadd.xlane.f32.xlu1 %v13024_v42 }
0x1a80   :  { %v27450_v12 = vpop.eup %24577 }
0x1a81   :  { %v13027_v43 = vsel %vm1401_vm3, %v27450_v12, 0.0  ;;  %v27459_v13 = vpop.eup %24579 }
0x1a82   :  { %13028 = vadd.xlane.f32.xlu0 %v13027_v43  ;;  %v13030_v47 = vsel %vm1401_vm3, %v27459_v13, 0.0 }
0x1a84   :  { %v27463_v0 = vpop.eup %24581 }
0x1a8f   :  { %13743 = vrot.lane.b32.xlu1 %v26867_v4, %s24918_s6  ;;  %v13512_v4 = vpop.permute.xlu0 %13511 }
0x1a98   :  { %13665 = vrot.lane.b32.xlu0 %v26856_v17, %s24918_s6  ;;  %v13033_v17 = vsel %vm1401_vm3, %v27463_v0, 0.0 }
0x1aa6   :  { %v12990_v16 = vpop.xlane.xlu1 %12989 }
0x1aa7   :  { %v12998_v27 = vsub.f32 %v27424_v10, %v12990_v16 }
0x1ab3   :  { %13031 = vadd.xlane.f32.xlu1 %v13030_v47 }
0x1ab7   :  { %13034 = vadd.xlane.f32.xlu0 %v13033_v17 }
0x1ac2   :  { %v13017_v32 = vpop.xlane.xlu0 %13016 }
0x1ac3   :  { %24583 = vrcp.f32 %v13017_v32 }
0x1ac4   :  { %13741 = vrot.lane.b32.xlu1 %v26876_v5, %s24918_s6 }
0x1ac6   :  { %v13023_v60 = vpop.xlane.xlu0 %13022 }
0x1ac7   :  { %24585 = vrcp.f32 %v13023_v60 }
0x1acd   :  { %v24584_v42 = vpop.eup %24583  ;;  %13663 = vrot.lane.b32.xlu0 %v26863_v44, %s24918_s6  ;;  %v13013_v44 = vmul.f32 1.442695, %v12998_v27 }
0x1ace   :  { %v13047_v43 = vmul.f32 %v24584_v42, %v24570_v7 }
0x1acf   :  { %24587 = vpow2.f32 %v13013_v44 }
0x1ad0   :  { %22302 = vmatmul.mubr.msk.f32.vlgmr.msra.gmra.mrb[254].mxu1 %vm1401_vm3, %v13047_v43 }
0x1ad1   :  { %v24586_v24 = vpop.eup %24585  ;;  %22310 = vmatpush3.msra.mxu1 %v13208_v26  ;;  %22311 = vmatprep.mubr.msk.f32.mxu1 %vm24916_vm1, %v28433_v58 }
0x1ad2   :  { %v13049_v5 = vmul.f32 %v24586_v24, %v24572_v31  ;;  %13821 = vrot.lane.b32.xlu0 %v26880_v19, %s24918_s6  ;;  %22319 = vmatprep.subr.mxu1 %v28433_v58 }
0x1ad4   :  { %22312 = vmatmul.mubr.msk.f32.vlgmr.msra.gmra.mrb[0].mxu1 %vm1401_vm3, %v13049_v5 }
0x1ad5   :  { %22320 = vmatpush3.msra.mxu1 %v27434_v8  ;;  %22321 = vmatprep.mubr.msk.f32.mxu1 %vm24916_vm1, %v28433_v58 }
0x1ad6   :  { %13819 = vrot.lane.b32.xlu0 %v26890_v28, %s24918_s6  ;;  %22329 = vmatprep.subr.mxu1 %v28433_v58 }
0x1ad9   :  { %v27493_v26 = vpop.eup %24587 }
0x1ada   :  { %13977 = vrot.lane.b32.xlu0 %v26911_v37, %s24918_s6  ;;  %v13036_v19 = vsel %vm1401_vm3, %v27493_v26, 0.0 }
0x1ade   :  { %13975 = vrot.lane.b32.xlu0 %v26920_v2, %s24918_s6 }
0x1ae2   :  { %14133 = vrot.lane.b32.xlu0 %v26941_v61, %s24918_s6 }
0x1ae6   :  { %14131 = vrot.lane.b32.xlu0 %v26950_v40, %s24918_s6 }
0x1ae8   :  { %13037 = vadd.xlane.f32.xlu1 %v13036_v19 }
0x1af9   :  { %13899 = vrot.lane.b32.xlu1 %v26896_v56, %s24918_s6 }
0x1afd   :  { %13897 = vrot.lane.b32.xlu1 %v26907_v49, %s24918_s6 }
0x1b01   :  { %14055 = vrot.lane.b32.xlu1 %v26926_v62, %s24918_s6 }
0x1b05   :  { %14053 = vrot.lane.b32.xlu1 %v26937_v50, %s24918_s6 }
0x1b07   :  { %v13020_v28 = vpop.xlane.xlu1 %13019 }
0x1b08   :  { %24589 = vrcp.f32 %v13020_v28 }
0x1b09   :  { %14211 = vrot.lane.b32.xlu1 %v26958_v1, %s24918_s6 }
0x1b0b   :  { %v13026_v37 = vpop.xlane.xlu1 %13025 }
0x1b0c   :  { %24591 = vrcp.f32 %v13026_v37 }
0x1b0d   :  { %14209 = vrot.lane.b32.xlu1 %v26968_v29, %s24918_s6 }
0x1b0f   :  { %v13029_v56 = vpop.xlane.xlu0 %13028  ;;  %v13744_v40 = vpop.permute.xlu1 %13743 }
0x1b10   :  { %24593 = vrcp.f32 %v13029_v56 }
0x1b12   :  { %v24590_v2 = vpop.eup %24589 }
0x1b13   :  { %v13048_v49 = vmul.f32 %v24590_v2, %v27442_v3  ;;  %v13666_v29 = vpop.permute.xlu0 %13665 }
0x1b15   :  { %22307 = vmatmul.mubr.msk.f32.vlgmr.msra.gmra.mrb[26].mxu0 %vm1401_vm3, %v13048_v49 }
0x1b16   :  { %v24592_v62 = vpop.eup %24591  ;;  %22315 = vmatpush3.msra.mxu0 %v27438_v20  ;;  %22316 = vmatprep.mubr.msk.f32.mxu0 %vm24916_vm1, %v28433_v58 }
0x1b17   :  { %v13050_v50 = vmul.f32 %v24592_v62, %v27446_v48  ;;  %22324 = vmatprep.subr.mxu0 %v28433_v58 }
0x1b19   :  { %22317 = vmatmul.mubr.msk.f32.vlgmr.msra.gmra.mrb[28].mxu0 %vm1401_vm3, %v13050_v50 }
0x1b1a   :  { %22325 = vmatpush3.msra.mxu0 %v27440_v45  ;;  %22326 = vmatprep.mubr.msk.f32.mxu0 %vm24916_vm1, %v28433_v58  ;;  %v24594_v3 = vpop.eup %24593 }
0x1b1b   :  { %22334 = vmatprep.subr.mxu0 %v28433_v58  ;;  %v13051_v61 = vmul.f32 %v24594_v3, %v27450_v12 }
0x1b1d   :  { %22322 = vmatmul.mubr.msk.f32.vlgmr.msra.gmra.mrb[2].mxu1 %vm1401_vm3, %v13051_v61 }
0x1b1e   :  { %22330 = vmatpush3.msra.mxu1 %v13512_v4  ;;  %22331 = vmatprep.mubr.msk.f32.mxu1 %vm24916_vm1, %v28433_v58 }
0x1b1f   :  { %22339 = vmatprep.subr.mxu1 %v28433_v58 }
0x1b40   :  { %v13032_v1 = vpop.xlane.xlu1 %13031 }
0x1b41   :  { %24595 = vrcp.f32 %v13032_v1 }
0x1b44   :  { %v13035_v45 = vpop.xlane.xlu0 %13034  ;;  %v13742_v47 = vpop.permute.xlu1 %13741 }
0x1b45   :  { %24597 = vrcp.f32 %v13035_v45 }
0x1b48   :  { %v13664_v48 = vpop.permute.xlu0 %13663 }
0x1b4b   :  { %v24596_v31 = vpop.eup %24595 }
0x1b4c   :  { %v13052_v10 = vmul.f32 %v24596_v31, %v27459_v13  ;;  %v13822_v8 = vpop.permute.xlu0 %13821 }
0x1b4e   :  { %22327 = vmatmul.mubr.msk.f32.vlgmr.msra.gmra.mrb[30].mxu0 %vm1401_vm3, %v13052_v10 }
0x1b4f   :  { %22335 = vmatpush3.msra.mxu0 %v27469_v54  ;;  %22336 = vmatprep.mubr.msk.f32.mxu0 %vm24916_vm1, %v28433_v58  ;;  %v24598_v7 = vpop.eup %24597 }
0x1b50   :  { %22344 = vmatprep.subr.mxu0 %v28433_v58  ;;  %v13053_v20 = vmul.f32 %v24598_v7, %v27463_v0  ;;  %v13820_v12 = vpop.permute.xlu0 %13819 }
0x1b52   :  { %22332 = vmatmul.mubr.msk.f32.vlgmr.msra.gmra.mrb[4].mxu1 %vm1401_vm3, %v13053_v20 }
0x1b53   :  { %22340 = vmatpush3.xpose.msk.msra.mxu1 %vm792_vm2, %v13666_v29  ;;  %22341 = vmatprep.mubr.msk.f32.mxu1 %vm24916_vm1, %v28433_v58 }
0x1b54   :  { %v13978_v11 = vpop.permute.xlu0 %13977  ;;  %22349 = vmatprep.subr.mxu1 %v28433_v58 }
0x1b56   :  { %22342 = vmatmul.mubr.msk.f32.vlgmr.msra.gmra.mrb[6].mxu1 %vm792_vm2, %v13664_v48 }
0x1b57   :  { %22350 = vmatpush3.xpose.msk.msra.mxu1 %vm792_vm2, %v13822_v8  ;;  %22351 = vmatprep.mubr.msk.f32.mxu1 %vm24916_vm1, %v28433_v58 }
0x1b58   :  { %v13976_v55 = vpop.permute.xlu0 %13975  ;;  %22359 = vmatprep.subr.mxu1 %v28433_v58 }
0x1b5a   :  { %22352 = vmatmul.mubr.msk.f32.vlgmr.msra.gmra.mrb[8].mxu1 %vm792_vm2, %v13820_v12 }
0x1b5b   :  { %22360 = vmatpush3.xpose.msk.msra.mxu1 %vm792_vm2, %v13978_v11  ;;  %22361 = vmatprep.mubr.msk.f32.mxu1 %vm24916_vm1, %v28433_v58 }
0x1b5c   :  { %v14134_v53 = vpop.permute.xlu0 %14133  ;;  %22369 = vmatprep.subr.mxu1 %v28433_v58 }
0x1b5e   :  { %22362 = vmatmul.mubr.msk.f32.vlgmr.msra.gmra.mrb[10].mxu1 %vm792_vm2, %v13976_v55 }
0x1b5f   :  { %22370 = vmatpush3.xpose.msk.msra.mxu1 %vm792_vm2, %v14134_v53  ;;  %22371 = vmatprep.mubr.msk.f32.mxu1 %vm24916_vm1, %v28433_v58 }
0x1b60   :  { %v14132_v13 = vpop.permute.xlu0 %14131  ;;  %22379 = vmatprep.subr.mxu1 %v28433_v58 }
0x1b62   :  { %22372 = vmatmul.mubr.msk.f32.vlgmr.msra.gmra.mrb[12].mxu1 %vm792_vm2, %v14132_v13 }
0x1b63   :  { %22381 = vmatprep.mubr.msk.f32.mxu1 %vm24916_vm1, %v28433_v58 }
0x1b75   :  { %v13038_v0 = vpop.xlane.xlu1 %13037 }
0x1b76   :  { %24599 = vrcp.f32 %v13038_v0 }
0x1b79   :  { %v13900_v17 = vpop.permute.xlu1 %13899 }
0x1b7d   :  { %v13898_v4 = vpop.permute.xlu1 %13897 }
0x1b80   :  { %v24600_v32 = vpop.eup %24599 }
0x1b81   :  { %v13054_v60 = vmul.f32 %v24600_v32, %v27493_v26  ;;  %v14056_v54 = vpop.permute.xlu1 %14055 }
0x1b83   :  { %22337 = vmatmul.mubr.msk.f32.vlgmr.msra.gmra.mrb[32].mxu0 %vm1401_vm3, %v13054_v60 }
0x1b84   :  { %22345 = vmatpush3.xpose.msk.msra.mxu0 %vm792_vm2, %v13744_v40  ;;  %22346 = vmatprep.mubr.msk.f32.mxu0 %vm24916_vm1, %v28433_v58 }
0x1b85   :  { %22354 = vmatprep.subr.mxu0 %v28433_v58  ;;  %v14054_v42 = vpop.permute.xlu1 %14053 }
0x1b87   :  { %22347 = vmatmul.mubr.msk.f32.vlgmr.msra.gmra.mrb[34].mxu0 %vm792_vm2, %v13742_v47 }
0x1b88   :  { %22355 = vmatpush3.xpose.msk.msra.mxu0 %vm792_vm2, %v13900_v17  ;;  %22356 = vmatprep.mubr.msk.f32.mxu0 %vm24916_vm1, %v28433_v58 }
0x1b89   :  { %22364 = vmatprep.subr.mxu0 %v28433_v58  ;;  %v14212_v43 = vpop.permute.xlu1 %14211 }
0x1b8b   :  { %22357 = vmatmul.mubr.msk.f32.vlgmr.msra.gmra.mrb[36].mxu0 %vm792_vm2, %v13898_v4 }
0x1b8c   :  { %22365 = vmatpush3.xpose.msk.msra.mxu0 %vm792_vm2, %v14056_v54  ;;  %22366 = vmatprep.mubr.msk.f32.mxu0 %vm24916_vm1, %v28433_v58 }
0x1b8d   :  { %22374 = vmatprep.subr.mxu0 %v28433_v58  ;;  %v14210_v16 = vpop.permute.xlu1 %14209 }
0x1b8f   :  { %22367 = vmatmul.mubr.msk.f32.vlgmr.msra.gmra.mrb[38].mxu0 %vm792_vm2, %v14054_v42 }
0x1b90   :  { %22375 = vmatpush3.xpose.msk.msra.mxu0 %vm792_vm2, %v14212_v43  ;;  %22376 = vmatprep.mubr.msk.f32.mxu0 %vm24916_vm1, %v28433_v58 }
0x1b91   :  { %22384 = vmatprep.subr.mxu0 %v28433_v58 }
0x1b93   :  { %22377 = vmatmul.mubr.msk.f32.vlgmr.msra.gmra.mrb[40].mxu0 %vm792_vm2, %v14210_v16 }
0x1b94   :  { %22386 = vmatprep.mubr.msk.f32.mxu0 %vm24916_vm1, %v28433_v58 }
0x1ba3   :  { %v27582_v24 = vpop.f32.mrb[254].mxu1 }
0x1ba4   :  { %v22303_v27 = vpop.f32.mrb[255].mxu1 }
0x1ba7   :  { %v27584_v5 = vpop.f32.mrb[0].mxu1 }
0x1ba8   :  { %v22313_v44 = vpop.f32.mrb[1].mxu1 }
0x1be8   :  { %v27586_v26 = vpop.f32.mrb[26].mxu0 }
0x1be9   :  { %v24226_v19 = vpack.i.bf16 %v27586_v26, %v27582_v24  ;;  %v22308_v28 = vpop.f32.mrb[27].mxu0 }
0x1bec   :  { %v27590_v37 = vpop.f32.mrb[28].mxu0 }
0x1bed   :  { %v24241_v56 = vpack.i.bf16 %v27590_v37, %v27584_v5  ;;  %v22318_v2 = vpop.f32.mrb[29].mxu0 }
0x1bf0   :  { %v27594_v49 = vpop.f32.mrb[2].mxu1 }
0x1bf1   :  { %v22323_v62 = vpop.f32.mrb[3].mxu1 }
0x1c21   :  { %v27596_v50 = vpop.f32.mrb[30].mxu0 }
0x1c22   :  { %v24256_v3 = vpack.i.bf16 %v27596_v50, %v27594_v49  ;;  %v22328_v61 = vpop.f32.mrb[31].mxu0 }
0x1c25   :  { %v27600_v40 = vpop.f32.mrb[4].mxu1 }
0x1c26   :  { %v22333_v1 = vpop.f32.mrb[5].mxu1 }
0x1c29   :  { %v13737_v29 = vpop.f32.mrb[6].mxu1 }
0x1c2a   :  { %v22343_v45 = vpop.f32.mrb[7].mxu1  ;;  %v14287_v48 = vsel %vm1401_vm3, %v13737_v29, -inf }
0x1c2b   :  { %14288 = vmax.xlane.f32.xlu0 %v14287_v48 }
0x1c2d   :  { %v13893_v31 = vpop.f32.mrb[8].mxu1 }
0x1c2e   :  { %v22353_v10 = vpop.f32.mrb[9].mxu1  ;;  %v14293_v8 = vsel %vm1401_vm3, %v13893_v31, -inf }
0x1c2f   :  { %14294 = vmax.xlane.f32.xlu0 %v14293_v8 }
0x1c31   :  { %v14049_v7 = vpop.f32.mrb[10].mxu1 }
0x1c32   :  { %v22363_v20 = vpop.f32.mrb[11].mxu1  ;;  %v14299_v16 = vsel %vm1401_vm3, %v14049_v7, -inf }
0x1c35   :  { %v14205_v12 = vpop.f32.mrb[12].mxu1 }
0x1c36   :  { %v22373_v11 = vpop.f32.mrb[13].mxu1  ;;  %v14305_v28 = vsel %vm1401_vm3, %v14205_v12, -inf }
0x1c56   :  { %v27604_v55 = vpop.f32.mrb[32].mxu0 }
0x1c57   :  { %v24271_v53 = vpack.i.bf16 %v27604_v55, %v27600_v40  ;;  %v22338_v13 = vpop.f32.mrb[33].mxu0 }
0x1c5a   :  { %v13815_v47 = vpop.f32.mrb[34].mxu0 }
0x1c5b   :  { %v22348_v0 = vpop.f32.mrb[35].mxu0  ;;  %v14290_v17 = vsel %vm1401_vm3, %v13815_v47, -inf }
0x1c5c   :  { %14291 = vmax.xlane.f32.xlu1 %v14290_v17 }
0x1c5e   :  { %v27609_v4 = vpop.f32.mrb[36].mxu0 }
0x1c5f   :  { %v22358_v32 = vpop.f32.mrb[37].mxu0  ;;  %v14296_v60 = vsel %vm1401_vm3, %v27609_v4, -inf }
0x1c60   :  { %14297 = vmax.xlane.f32.xlu0 %v14296_v60 }
0x1c62   :  { %v27613_v54 = vpop.f32.mrb[38].mxu0 }
0x1c63   :  { %v22368_v42 = vpop.f32.mrb[39].mxu0  ;;  %v14302_v43 = vsel %vm1401_vm3, %v27613_v54, -inf }
0x1c64   :  { %14303 = vmax.xlane.f32.xlu1 %v14302_v43  ;;  %14300 = vmax.xlane.f32.xlu0 %v14299_v16 }
0x1c66   :  { %v27618_v27 = vpop.f32.mrb[40].mxu0 }
0x1c67   :  { %v22378_v44 = vpop.f32.mrb[41].mxu0  ;;  %v14308_v2 = vsel %vm1401_vm3, %v27618_v27, -inf }
0x1c68   :  { %14306 = vmax.xlane.f32.xlu0 %v14305_v28 }
0x1c75   :  { %14451 = vrot.lane.b32.xlu1 %v26974_v25, %s24918_s6 }
0x1c79   :  { %14527 = vrot.lane.b32.xlu1 %v26898_v30, %s24918_s6 }
0x1c7e   :  { %14375 = vrot.lane.b32.xlu0 %v26955_v6, %s24918_s6 }
0x1c9d   :  { %14309 = vmax.xlane.f32.xlu1 %v14308_v2 }
0x1cae   :  { %14603 = vrot.lane.b32.xlu1 %v26892_v59, %s24918_s6 }
0x1cb8   :  { %v14289_v62 = vpop.xlane.xlu0 %14288 }
0x1cb9   :  { %v14311_v61 = vsub.f32 %v13737_v29, %v14289_v62 }
0x1cbb   :  { %v14319_v1 = vmul.f32 1.442695, %v14311_v61 }
0x1cbc   :  { %v14295_v45 = vpop.xlane.xlu0 %14294 }
0x1cbd   :  { %24601 = vpow2.f32 %v14319_v1  ;;  %v14313_v48 = vsub.f32 %v13893_v31, %v14295_v45  ;;  %v28465_v45 = vpack.i.bf16 %v27396_v39, %v27392_v57  ;;  %v28466_v39 = vpack.i.bf16 %v27400_v14, %v27394_v63 }
0x1cbf   :  { %v14323_v25 = vmul.f32 1.442695, %v14313_v48 }
0x1cc1   :  { %24603 = vpow2.f32 %v14323_v25 }
0x1cc7   :  { %v27631_v10 = vpop.eup %24601 }
0x1cc8   :  { %v14335_v30 = vsel %vm1401_vm3, %v27631_v10, 0.0 }
0x1cc9   :  { %14336 = vadd.xlane.f32.xlu0 %v14335_v30 }
0x1ccb   :  { %v27635_v6 = vpop.eup %24603 }
0x1ccc   :  { %v14341_v8 = vsel %vm1401_vm3, %v27635_v6, 0.0 }
0x1ccd   :  { %14342 = vadd.xlane.f32.xlu0 %v14341_v8 }
0x1ce3   :  { %14679 = vrot.lane.b32.xlu0 %v26928_v9, %s24918_s6 }
0x1ce9   :  { %v14292_v59 = vpop.xlane.xlu1 %14291 }
0x1cea   :  { %v14312_v29 = vsub.f32 %v13815_v47, %v14292_v59 }
0x1cec   :  { %v14321_v31 = vmul.f32 1.442695, %v14312_v29 }
0x1ced   :  { %v14298_v20 = vpop.xlane.xlu0 %14297 }
0x1cee   :  { %24605 = vpow2.f32 %v14321_v31  ;;  %v14314_v2 = vsub.f32 %v27609_v4, %v14298_v20 }
0x1cf0   :  { %v14325_v62 = vmul.f32 1.442695, %v14314_v2 }
0x1cf1   :  { %v14304_v11 = vpop.xlane.xlu1 %14303  ;;  %v14301_v13 = vpop.xlane.xlu0 %14300 }
0x1cf2   :  { %v14315_v0 = vsub.f32 %v14049_v7, %v14301_v13  ;;  %v14316_v61 = vsub.f32 %v27613_v54, %v14304_v11 }
0x1cf4   :  { %v14327_v17 = vmul.f32 1.442695, %v14315_v0  ;;  %v14329_v1 = vmul.f32 1.442695, %v14316_v61  ;;  %v19403_v61 = vld [vmem:[#allocation13] sm:$0xff]  }
0x1cf5   :  { %v14452_v32 = vpop.permute.xlu1 %14451  ;;  %v14307_v60 = vpop.xlane.xlu0 %14306 }
0x1cf6   :  { %v14317_v42 = vsub.f32 %v14205_v12, %v14307_v60  ;;  %22385 = vmatpush3.msra.mxu0 %v14452_v32  ;;  %24607 = vpow2.f32 %v14327_v17 }
0x1cf7   :  { %22394 = vmatprep.subr.mxu0 %v28433_v58 }
0x1cf8   :  { %v27642_v43 = vpop.eup %24605  ;;  %v14331_v16 = vmul.f32 1.442695, %v14317_v42 }
0x1cf9   :  { %v14376_v9 = vpop.permute.xlu0 %14375  ;;  %v14338_v47 = vsel %vm1401_vm3, %v27642_v43, 0.0  ;;  %v14528_v48 = vpop.permute.xlu1 %14527 }
0x1cfa   :  { %24609 = vpow2.f32 %v14331_v16  ;;  %14339 = vadd.xlane.f32.xlu1 %v14338_v47  ;;  %22380 = vmatpush3.msra.mxu1 %v14376_v9 }
0x1cfb   :  { %22389 = vmatprep.subr.mxu1 %v28433_v58  ;;  %24611 = vpow2.f32 %v14325_v62 }
0x1cfc   :  { %24613 = vpow2.f32 %v14329_v1  ;;  %v20135_v1 = vld [vmem:[#allocation13 + $0x8] sm:$0xff]  }
0x1d00   :  { %v27647_v7 = vpop.eup %24607 }
0x1d01   :  { %v14347_v12 = vsel %vm1401_vm3, %v27647_v7, 0.0 }
0x1d02   :  { %14348 = vadd.xlane.f32.xlu0 %v14347_v12 }
0x1d04   :  { %v27651_v44 = vpop.eup %24609 }
0x1d05   :  { %v14353_v28 = vsel %vm1401_vm3, %v27651_v44, 0.0  ;;  %v24612_v30 = vpop.eup %24611 }
0x1d06   :  { %14354 = vadd.xlane.f32.xlu0 %v14353_v28  ;;  %v14344_v8 = vsel %vm1401_vm3, %v24612_v30, 0.0  ;;  %v27667_v54 = vpop.eup %24613 }
0x1d0b   :  { %14755 = vrot.lane.b32.xlu1 %v26922_v33, %s24918_s6 }
0x1d1c   :  { %14831 = vrot.lane.b32.xlu0 %v26960_v36, %s24918_s6  ;;  %v14350_v36 = vsel %vm1401_vm3, %v27667_v54, 0.0 }
0x1d20   :  { %24222 = vrot.lane.b32.xlu0 %v28465_v45, %s24918_s6  ;;  %v20136_v45 = vld [vmem:[#allocation13 + $0x10] sm:$0xff]  }
0x1d2a   :  { %v14310_v25 = vpop.xlane.xlu1 %14309 }
0x1d2b   :  { %v14318_v33 = vsub.f32 %v27618_v27, %v14310_v25 }
0x1d2d   :  { %v14333_v4 = vmul.f32 1.442695, %v14318_v33 }
0x1d2e   :  { %v14604_v14 = vpop.permute.xlu1 %14603 }
0x1d2f   :  { %24615 = vpow2.f32 %v14333_v4  ;;  %14345 = vadd.xlane.f32.xlu1 %v14344_v8  ;;  %v20139_v8 = vld [vmem:[#allocation13 + $0x28] sm:$0xff]  }
0x1d33   :  { %14351 = vadd.xlane.f32.xlu1 %v14350_v36  ;;  %v20140_v36 = vld [vmem:[#allocation13 + $0x30] sm:$0xff]  }
0x1d39   :  { %v27671_v59 = vpop.eup %24615 }
0x1d3a   :  { %v14356_v57 = vsel %vm1401_vm3, %v27671_v59, 0.0 }
0x1d3b   :  { %14357 = vadd.xlane.f32.xlu1 %v14356_v57 }
0x1d4c   :  { %14907 = vrot.lane.b32.xlu1 %v26952_v41, %s24918_s6 }
0x1d50   :  { %24227 = vrot.lane.b32.xlu1 %v24226_v19, %s24907_s25 }
0x1d54   :  { %24237 = vrot.lane.b32.xlu1 %v28466_v39, %s24918_s6 }
0x1d56   :  { %v14337_v27 = vpop.xlane.xlu0 %14336 }
0x1d57   :  { %24617 = vrcp.f32 %v14337_v27 }
0x1d5a   :  { %v14343_v29 = vpop.xlane.xlu0 %14342 }
0x1d5b   :  { %24619 = vrcp.f32 %v14343_v29 }
0x1d5e   :  { %v14680_v63 = vpop.permute.xlu0 %14679 }
0x1d61   :  { %v24618_v31 = vpop.eup %24617 }
0x1d62   :  { %v14367_v20 = vmul.f32 %v24618_v31, %v27631_v10 }
0x1d64   :  { %22382 = vmatmul.mubr.msk.f32.vlgmr.msra.gmra.mrb[14].mxu1 %vm1401_vm3, %v14367_v20  ;;  %v28467_v20 = vpack.i.bf16 %v27404_v46, %v27406_v23  ;;  %v28468_v46 = vpack.i.bf16 %v27416_v51, %v27410_v35 }
0x1d65   :  { %v24620_v41 = vpop.eup %24619  ;;  %22390 = vmatpush3.msra.mxu1 %v14528_v48  ;;  %22391 = vmatprep.mubr.msk.f32.mxu1 %vm24916_vm1, %v28433_v58  ;;  %v20137_v48 = vld [vmem:[#allocation13 + $0x18] sm:$0xff]  }
0x1d66   :  { %v14369_v24 = vmul.f32 %v24620_v41, %v27635_v6  ;;  %22399 = vmatprep.subr.mxu1 %v28433_v58 }
0x1d68   :  { %22392 = vmatmul.mubr.msk.f32.vlgmr.msra.gmra.mrb[16].mxu1 %vm1401_vm3, %v14369_v24 }
0x1d69   :  { %22400 = vmatpush3.msra.mxu1 %v14680_v63  ;;  %22401 = vmatprep.mubr.msk.f32.mxu1 %vm24916_vm1, %v28433_v58 }
0x1d6a   :  { %22409 = vmatprep.subr.mxu1 %v28433_v58 }
0x1d87   :  { %v14340_v26 = vpop.xlane.xlu1 %14339 }
0x1d88   :  { %24621 = vrcp.f32 %v14340_v26 }
0x1d8b   :  { %v14756_v42 = vpop.permute.xlu1 %14755 }
0x1d8f   :  { %v14349_v19 = vpop.xlane.xlu0 %14348 }
0x1d90   :  { %24623 = vrcp.f32 %v14349_v19 }
0x1d92   :  { %v24622_v10 = vpop.eup %24621 }
0x1d93   :  { %v14368_v11 = vmul.f32 %v24622_v10, %v27642_v43  ;;  %v14355_v6 = vpop.xlane.xlu0 %14354 }
0x1d94   :  { %24625 = vrcp.f32 %v14355_v6 }
0x1d95   :  { %22387 = vmatmul.mubr.msk.f32.vlgmr.msra.gmra.mrb[42].mxu0 %vm1401_vm3, %v14368_v11 }
0x1d96   :  { %22395 = vmatpush3.msra.mxu0 %v14604_v14  ;;  %22396 = vmatprep.mubr.msk.f32.mxu0 %vm24916_vm1, %v28433_v58 }
0x1d97   :  { %22404 = vmatprep.subr.mxu0 %v28433_v58  ;;  %v14832_v17 = vpop.permute.xlu0 %14831 }
0x1d9a   :  { %v24624_v13 = vpop.eup %24623 }
0x1d9b   :  { %v14371_v0 = vmul.f32 %v24624_v13, %v27647_v7 }
0x1d9d   :  { %22402 = vmatmul.mubr.msk.f32.vlgmr.msra.gmra.mrb[18].mxu1 %vm1401_vm3, %v14371_v0 }
0x1d9e   :  { %v24626_v32 = vpop.eup %24625  ;;  %22410 = vmatpush3.msra.mxu1 %v14832_v17  ;;  %22411 = vmatprep.mubr.msk.f32.mxu1 %vm24916_vm1, %v28433_v58 }
0x1d9f   :  { %v14373_v60 = vmul.f32 %v24626_v32, %v27651_v44  ;;  %23226 = vmatprep.subr.bf16.mxu1 %v19403_v61 }
0x1da1   :  { %22412 = vmatmul.mubr.msk.f32.vlgmr.msra.gmra.mrb[20].mxu1 %vm1401_vm3, %v14373_v60 }
0x1da2   :  { %23228 = vmatpush3.bf16.msra.mxu1 %v19403_v61 }
0x1da3   :  { %23230 = vmatprep.subr.bf16.mxu1 %v20135_v1 }
0x1da6   :  { %23232 = vmatpush3.bf16.msra.mxu1 %v20135_v1 }
0x1da7   :  { %23234 = vmatprep.subr.bf16.mxu1 %v20136_v45 }
0x1daa   :  { %23236 = vmatpush3.bf16.msra.mxu1 %v20136_v45 }
0x1dab   :  { %23238 = vmatprep.subr.bf16.mxu1 %v20137_v48 }
0x1dae   :  { %23240 = vmatpush3.bf16.msra.mxu1 %v20137_v48 }
0x1dbc   :  { %v14346_v43 = vpop.xlane.xlu1 %14345 }
0x1dbd   :  { %24627 = vrcp.f32 %v14346_v43 }
0x1dc0   :  { %v14352_v16 = vpop.xlane.xlu1 %14351 }
0x1dc1   :  { %24629 = vrcp.f32 %v14352_v16 }
0x1dc7   :  { %v24628_v9 = vpop.eup %24627 }
0x1dc8   :  { %v14370_v47 = vmul.f32 %v24628_v9, %v24612_v30  ;;  %v14358_v7 = vpop.xlane.xlu1 %14357  ;;  %v20138_v30 = vld [vmem:[#allocation13 + $0x20] sm:$0xff]  }
0x1dc9   :  { %24631 = vrcp.f32 %v14358_v7  ;;  %23242 = vmatprep.subr.bf16.mxu1 %v20138_v30 }
0x1dca   :  { %22397 = vmatmul.mubr.msk.f32.vlgmr.msra.gmra.mrb[44].mxu0 %vm1401_vm3, %v14370_v47  ;;  %23244 = vmatpush3.bf16.msra.mxu1 %v20138_v30 }
0x1dcb   :  { %v24630_v12 = vpop.eup %24629  ;;  %22405 = vmatpush3.msra.mxu0 %v14756_v42  ;;  %22406 = vmatprep.mubr.msk.f32.mxu0 %vm24916_vm1, %v28433_v58 }
0x1dcc   :  { %v14372_v44 = vmul.f32 %v24630_v12, %v27667_v54  ;;  %v14908_v28 = vpop.permute.xlu1 %14907  ;;  %22414 = vmatprep.subr.mxu0 %v28433_v58  ;;  %23246 = vmatprep.subr.bf16.mxu1 %v20139_v8 }
0x1dce   :  { %22407 = vmatmul.mubr.msk.f32.vlgmr.msra.gmra.mrb[46].mxu0 %vm1401_vm3, %v14372_v44  ;;  %23248 = vmatpush3.bf16.msra.mxu1 %v20139_v8 }
0x1dcf   :  { %22415 = vmatpush3.msra.mxu0 %v14908_v28  ;;  %22416 = vmatprep.mubr.msk.f32.mxu0 %vm24916_vm1, %v28433_v58 }
0x1dd0   :  { %23250 = vmatprep.subr.bf16.mxu1 %v20140_v36  ;;  %v24228_v49 = vpop.permute.xlu1 %24227 }
0x1dd1   :  { %v24230_v6 = vunpack.i.h.bf16 %v24228_v49  ;;  %v24229_v13 = vunpack.i.l.bf16 %v24228_v49 }
0x1dd2   :  { %23252 = vmatpush3.bf16.msra.mxu1 %v20140_v36 }
0x1dd3   :  { %v24632_v2 = vpop.eup %24631 }
0x1dd4   :  { %v14374_v62 = vmul.f32 %v24632_v2, %v27671_v59  ;;  %v20141_v59 = vld [vmem:[#allocation13 + $0x38] sm:$0xff]   ;;  %v24238_v43 = vpop.permute.xlu1 %24237 }
0x1dd5   :  { %23254 = vmatprep.subr.bf16.mxu1 %v20141_v59  ;;  %v24240_v16 = vunpack.i.h.bf16 %v24238_v43  ;;  %v24239_v9 = vunpack.i.l.bf16 %v24238_v43  ;;  %v28473_v43 = vld [vmem:[#allocation30_spill] sm:$0xff] }
0x1dd6   :  { %22417 = vmatmul.mubr.msk.f32.vlgmr.msra.gmra.mrb[48].mxu0 %vm1401_vm3, %v14374_v62  ;;  %23256 = vmatpush3.bf16.msra.mxu1 %v20141_v59 }
0x1dd7   :  { %15905 = vmatprep.mubr.f32.mxu0 %v28433_v58  ;;  %v15081_v2 = vsel %vm792_vm2, %v27159_v15, %v24239_v9  ;;  %v28474_v9 = vld [vmem:[#allocation37_spill] sm:$0xff] }
0x1e37   :  { %v14447_v25 = vpop.f32.mrb[14].mxu1 }
0x1e38   :  { %v22383_v33 = vpop.f32.mrb[15].mxu1 }
0x1e3b   :  { %v14599_v4 = vpop.f32.mrb[16].mxu1 }
0x1e3c   :  { %v22393_v54 = vpop.f32.mrb[17].mxu1 }
0x1e68   :  { %v14523_v57 = vpop.f32.mrb[42].mxu0 }
0x1e69   :  { %v24231_v39 = vpack.i.bf16 %v14523_v57, %v14447_v25  ;;  %v22388_v27 = vpop.f32.mrb[43].mxu0 }
0x1e6b   :  { %24232 = vrot.lane.b32.xlu0 %v24231_v39, %s24917_s3 }
0x1e6f   :  { %24242 = vrot.lane.b32.xlu0 %v24241_v56, %s24907_s25  ;;  %v24223_v56 = vpop.permute.xlu0 %24222 }
0x1e70   :  { %v14751_v29 = vpop.f32.mrb[18].mxu1  ;;  %v24225_v50 = vunpack.i.h.bf16 %v24223_v56 }
0x1e71   :  { %v22403_v31 = vpop.f32.mrb[19].mxu1 }
0x1e72   :  { %v15080_v35 = vsel %vm792_vm2, %v27157_v21, %v24225_v50 }
0x1e73   :  { %24252 = vrot.lane.b32.xlu0 %v28467_v20, %s24918_s6  ;;  %v15088_v55 = vsel %vm6146_vm4, %v15080_v35, %v24230_v6 }
0x1e74   :  { %v14903_v41 = vpop.f32.mrb[20].mxu1 }
0x1e75   :  { %v22413_v24 = vpop.f32.mrb[21].mxu1 }
0x1e9d   :  { %v14675_v63 = vpop.f32.mrb[44].mxu0 }
0x1e9e   :  { %v24246_v14 = vpack.i.bf16 %v14675_v63, %v14599_v4  ;;  %v22398_v26 = vpop.f32.mrb[45].mxu0 }
0x1ea0   :  { %24247 = vrot.lane.b32.xlu1 %v24246_v14, %s24917_s3 }
0x1ea1   :  { %v14827_v19 = vpop.f32.mrb[46].mxu0 }
0x1ea2   :  { %v24261_v10 = vpack.i.bf16 %v14827_v19, %v14751_v29  ;;  %v22408_v11 = vpop.f32.mrb[47].mxu0 }
0x1ea4   :  { %24257 = vrot.lane.b32.xlu1 %v24256_v3, %s24907_s25  ;;  %24262 = vrot.lane.b32.xlu0 %v24261_v10, %s24917_s3  ;;  %v24224_v3 = vunpack.i.l.bf16 %v24223_v56 }
0x1ea6   :  { %v15079_v40 = vsel %vm792_vm2, %v27155_v38, %v24224_v3  ;;  %v15082_v38 = vsel %vm792_vm2, %v27161_v22, %v24240_v16  ;;  %v28470_v3 = vld [vmem:[#allocation28_spill] sm:$0xff] }
0x1ea8   :  { %24267 = vrot.lane.b32.xlu1 %v28468_v46, %s24918_s6  ;;  %24272 = vrot.lane.b32.xlu0 %v24271_v53, %s24907_s25  ;;  %v15087_v53 = vsel %vm6146_vm4, %v15079_v40, %v24229_v13  ;;  %v28471_v13 = vld [vmem:[#allocation29_spill] sm:$0xff] }
0x1ea9   :  { %v14979_v23 = vpop.f32.mrb[48].mxu0 }
0x1eaa   :  { %v24276_v5 = vpack.i.bf16 %v14979_v23, %v14903_v41  ;;  %v22418_v37 = vpop.f32.mrb[49].mxu0 }
0x1eab   :  { %v18813_v37 = vld [vmem:[#allocation2 + $0x20] ss:$0 sm:$0xff] }
0x1eac   :  { %24277 = vrot.lane.b32.xlu1 %v24276_v5, %s24917_s3 }
0x1edd   :  { %v24233_v0 = vpop.permute.xlu0 %24232 }
0x1ede   :  { %v24235_v51 = vunpack.i.h.bf16 %v24233_v0  ;;  %v24234_v17 = vunpack.i.l.bf16 %v24233_v0 }
0x1ee0   :  { %v15096_v32 = vsel %vm6155_vm5, %v15088_v55, %v24235_v51  ;;  %v15095_v60 = vsel %vm6155_vm5, %v15087_v53, %v24234_v17  ;;  %v28472_v55 = vld [vmem:[#allocation31_spill] sm:$0xff] }
0x1ee1   :  { %22451 = vmatprep.mubr.f32.mxu1 %v15095_v60  ;;  %v24243_v42 = vpop.permute.xlu0 %24242 }
0x1ee2   :  { %22452 = vmatmul.mubr.f32.vlgmr.msra.gmra.mrb[22].mxu1 %v15096_v32  ;;  %v24245_v21 = vunpack.i.h.bf16 %v24243_v42  ;;  %v24244_v47 = vunpack.i.l.bf16 %v24243_v42 }
0x1ee4   :  { %v15090_v62 = vsel %vm6146_vm4, %v15082_v38, %v24245_v21  ;;  %v15089_v45 = vsel %vm6146_vm4, %v15081_v2, %v24244_v47 }
0x1ee5   :  { %v24253_v7 = vpop.permute.xlu0 %24252 }
0x1ee6   :  { %v24255_v61 = vunpack.i.h.bf16 %v24253_v7  ;;  %v24254_v1 = vunpack.i.l.bf16 %v24253_v7  ;;  %v28475_v7 = vld [vmem:[#allocation32_spill] sm:$0xff] }
0x1ee8   :  { %v15084_v15 = vsel %vm792_vm2, %v27165_v52, %v24255_v61  ;;  %v15083_v36 = vsel %vm792_vm2, %v27163_v18, %v24254_v1  ;;  %v28469_v18 = vld [vmem:[#allocation40_spill] sm:$0xff]  ;;  %v28477_v1 = vld [vmem:[#allocation38_spill] sm:$0xff] }
0x1f12   :  { %v24248_v12 = vpop.permute.xlu1 %24247 }
0x1f13   :  { %v24250_v44 = vunpack.i.h.bf16 %v24248_v12  ;;  %v24249_v28 = vunpack.i.l.bf16 %v24248_v12 }
0x1f15   :  { %v15097_v48 = vsel %vm6155_vm5, %v15089_v45, %v24249_v28  ;;  %v15098_v25 = vsel %vm6155_vm5, %v15090_v62, %v24250_v44  ;;  %v28476_v62 = vld [vmem:[#allocation39_spill] sm:$0xff] }
0x1f16   :  { %v24258_v30 = vpop.permute.xlu1 %24257  ;;  %22454 = vmatprep.mubr.f32.mxu1 %v15097_v48  ;;  %v24263_v33 = vpop.permute.xlu0 %24262  ;;  %v15375_v48 = vld [vmem:[#allocation14] sm:$0xff] }
0x1f17   :  { %v24260_v4 = vunpack.i.h.bf16 %v24258_v30  ;;  %v24259_v22 = vunpack.i.l.bf16 %v24258_v30  ;;  %v24265_v8 = vunpack.i.h.bf16 %v24263_v33  ;;  %v24264_v54 = vunpack.i.l.bf16 %v24263_v33  ;;  %22455 = vmatmul.mubr.f32.gmra.mrb[24].mxu1 %v15098_v25  ;;  %v15383_v25 = vld [vmem:[#allocation14 + $0x40] sm:$0xff]  ;;  %v15376_v30 = vld [vmem:[#allocation14 + $0x8] sm:$0xff] }
0x1f18   :  { %v24013_v33 = vcombine.high %v15375_v48, %v15383_v25 }
0x1f19   :  { %v15092_v59 = vsel %vm6146_vm4, %v15084_v15, %v24260_v4  ;;  %v15091_v57 = vsel %vm6146_vm4, %v15083_v36, %v24259_v22  ;;  %v24014_v4 = vcombine.low %v15375_v48, %v15383_v25  ;;  %v15384_v22 = vld [vmem:[#allocation14 + $0x48] sm:$0xff]  ;;  %v15479_v48 = vld [vmem:[#allocation14 + $0x340] sm:$0xff] }
0x1f1a   :  { %v24268_v39 = vpop.permute.xlu1 %24267  ;;  %v24273_v27 = vpop.permute.xlu0 %24272  ;;  %v15099_v29 = vsel %vm6155_vm5, %v15091_v57, %v24264_v54  ;;  %v15100_v31 = vsel %vm6155_vm5, %v15092_v59, %v24265_v8  ;;  %v15391_v8 = vld [vmem:[#allocation14 + $0x80] sm:$0xff]  ;;  %v24029_v15 = vcombine.high %v15376_v30, %v15384_v22  ;;  %v24030_v36 = vcombine.low %v15376_v30, %v15384_v22  ;;  %v15392_v57 = vld [vmem:[#allocation14 + $0x88] sm:$0xff]  ;;  %23258 = vmatprep.subr.bf16.mxu0 %v24013_v33 }
0x1f1b   :  { %v24270_v20 = vunpack.i.h.bf16 %v24268_v39  ;;  %v24269_v41 = vunpack.i.l.bf16 %v24268_v39  ;;  %22457 = vmatprep.mubr.f32.mxu1 %v15099_v29  ;;  %v24275_v24 = vunpack.i.h.bf16 %v24273_v27  ;;  %v24274_v63 = vunpack.i.l.bf16 %v24273_v27  ;;  %v15399_v54 = vld [vmem:[#allocation14 + $0xc0] sm:$0xff]  ;;  %v15400_v39 = vld [vmem:[#allocation14 + $0xc8] sm:$0xff]  ;;  %23260 = vmatpush1.bf16.msra.mxu0 %v24014_v4 }
0x1f1c   :  { %22458 = vmatmul.mubr.f32.gmra.mrb[26].mxu1 %v15100_v31  ;;  %v24015_v59 = vcombine.high %v15391_v8, %v15399_v54  ;;  %v15407_v27 = vld [vmem:[#allocation14 + $0x100] sm:$0xff]  ;;  %v24031_v29 = vcombine.high %v15392_v57, %v15400_v39  ;;  %23290 = vmatprep.subr.bf16.mxu1 %v24029_v15  ;;  %v15472_v25 = vld [vmem:[#allocation14 + $0x308] sm:$0xff] }
0x1f1d   :  { %v15086_v52 = vsel %vm792_vm2, %v27175_v34, %v24270_v20  ;;  %v15085_v14 = vsel %vm792_vm2, %v28469_v18, %v24269_v41  ;;  %v15415_v31 = vld [vmem:[#allocation14 + $0x140] sm:$0xff]  ;;  %v15408_v20 = vld [vmem:[#allocation14 + $0x108] sm:$0xff]  ;;  %23292 = vmatpush1.bf16.msra.mxu1 %v24030_v36 }
0x1f1e   :  { %v24278_v26 = vpop.permute.xlu1 %24277  ;;  %v15094_v11 = vsel %vm6146_vm4, %v15086_v52, %v24275_v24  ;;  %v15093_v46 = vsel %vm6146_vm4, %v15085_v14, %v24274_v63  ;;  %v15416_v41 = vld [vmem:[#allocation14 + $0x148] sm:$0xff]  ;;  %v24016_v24 = vcombine.low %v15391_v8, %v15399_v54  ;;  %23262 = vmatprep.subr.bf16.mxu0 %v24015_v59  ;;  %v24032_v63 = vcombine.low %v15392_v57, %v15400_v39  ;;  %v15487_v54 = vld [vmem:[#allocation14 + $0x380] sm:$0xff] }
0x1f1f   :  { %v24280_v19 = vunpack.i.h.bf16 %v24278_v26  ;;  %v24279_v10 = vunpack.i.l.bf16 %v24278_v26  ;;  %v24017_v52 = vcombine.high %v15407_v27, %v15415_v31  ;;  %23294 = vmatprep.subr.bf16.mxu1 %v24031_v29  ;;  %v24033_v18 = vcombine.high %v15408_v20, %v15416_v41  ;;  %v15480_v33 = vld [vmem:[#allocation14 + $0x348] sm:$0xff]  ;;  %v15495_v15 = vld [vmem:[#allocation14 + $0x3c0] sm:$0xff] }
0x1f20   :  { %23264 = vmatpush1.bf16.msra.mxu0 %v24016_v24  ;;  %v24018_v14 = vcombine.low %v15407_v27, %v15415_v31  ;;  %v24034_v26 = vcombine.low %v15408_v20, %v15416_v41  ;;  %v24041_v22 = vcombine.high %v15472_v25, %v15480_v33  ;;  %v24042_v8 = vcombine.low %v15472_v25, %v15480_v33  ;;  %v15488_v36 = vld [vmem:[#allocation14 + $0x388] sm:$0xff]  ;;  %v15394_v25 = vld [vmem:[#allocation14 + $0x98] sm:$0xff] }
0x1f21   :  { %v15101_v23 = vsel %vm6155_vm5, %v15093_v46, %v24279_v10  ;;  %v15102_v5 = vsel %vm6155_vm5, %v15094_v11, %v24280_v19  ;;  %23296 = vmatpush1.bf16.msra.mxu1 %v24032_v63  ;;  %23266 = vmatprep.subr.bf16.mxu0 %v24017_v52  ;;  %v24027_v59 = vcombine.high %v15487_v54, %v15495_v15  ;;  %v15496_v57 = vld [vmem:[#allocation14 + $0x3c8] sm:$0xff] }
0x1f22   :  { %22460 = vmatprep.mubr.f32.mxu1 %v15101_v23  ;;  %23298 = vmatprep.subr.bf16.mxu1 %v24033_v18  ;;  %v24028_v39 = vcombine.low %v15487_v54, %v15495_v15  ;;  %v24043_v27 = vcombine.high %v15488_v36, %v15496_v57  ;;  %v24044_v29 = vcombine.low %v15488_v36, %v15496_v57  ;;  %v15409_v54 = vld [vmem:[#allocation14 + $0x110] sm:$0xff]  ;;  %v15418_v15 = vld [vmem:[#allocation14 + $0x158] sm:$0xff] }
0x1f23   :  { %22461 = vmatmul.mubr.f32.gmra.mrb[28].mxu1 %v15102_v5 }
0x1f24   :  { %16018 = vmatprep.mubr.f32.mxu1 %v28433_v58  ;;  %23268 = vmatpush1.bf16.msra.mxu0 %v24018_v14 }
0x1f25   :  { %23300 = vmatpush1.bf16.msra.mxu1 %v24034_v26 }
0x1fb5   :  { %v22453_v34 = vpop.f32.mrb[22].mxu1 }
0x1fb6   :  { %v15214_v56 = vadd.f32 %v22453_v34, %v18813_v37  ;;  %v15208_v49 = vpop.f32.mrb[23].mxu1 }
0x1fb7   :  { %v15209_v50 = vadd.f32 %v18813_v37, %v15208_v49  ;;  %v15431_v49 = vld [vmem:[#allocation14 + $0x1c0] sm:$0xff] }
0x1fb8   :  { %v27775_v6 = vadd.f32 %v15214_v56, %v28470_v3  ;;  %v15423_v56 = vld [vmem:[#allocation14 + $0x180] sm:$0xff] }
0x1fb9   :  { %v27778_v0 = vadd.f32 %v15209_v50, %v28471_v13  ;;  %v15424_v50 = vld [vmem:[#allocation14 + $0x188] sm:$0xff]  ;;  %v24019_v3 = vcombine.high %v15423_v56, %v15431_v49 }
0x1fba   :  { %15259 = vadd.xlane.f32.xlu1 %v27775_v6  ;;  %v15432_v13 = vld [vmem:[#allocation14 + $0x1c8] sm:$0xff] }
0x1fbb   :  { %15257 = vadd.xlane.f32.xlu0 %v27778_v0  ;;  %23270 = vmatprep.subr.bf16.mxu0 %v24019_v3 }
0x1fea   :  { %v22456_v35 = vpop.f32.mrb[24].mxu1 }
0x1feb   :  { %v15218_v51 = vpop.f32.mrb[25].mxu1  ;;  %v15224_v40 = vadd.f32 %v22456_v35, %v18813_v37  ;;  %v24020_v35 = vcombine.low %v15423_v56, %v15431_v49 }
0x1fec   :  { %v15219_v17 = vadd.f32 %v18813_v37, %v15218_v51  ;;  %v24035_v51 = vcombine.high %v15424_v50, %v15432_v13 }
0x1fed   :  { %v27787_v16 = vadd.f32 %v15224_v40, %v28473_v43  ;;  %23272 = vmatpush1.bf16.msra.mxu0 %v24020_v35  ;;  %v15440_v40 = vld [vmem:[#allocation14 + $0x208] sm:$0xff]  ;;  %v15377_v35 = vld [vmem:[#allocation14 + $0x10] sm:$0xff] }
0x1fee   :  { %v27783_v53 = vadd.f32 %v15219_v17, %v28472_v55  ;;  %23302 = vmatprep.subr.bf16.mxu1 %v24035_v51  ;;  %v15447_v17 = vld [vmem:[#allocation14 + $0x240] sm:$0xff]  ;;  %v15385_v51 = vld [vmem:[#allocation14 + $0x50] sm:$0xff] }
0x1fef   :  { %v22459_v32 = vpop.f32.mrb[26].mxu1 }
0x1ff0   :  { %v15234_v60 = vadd.f32 %v22459_v32, %v18813_v37  ;;  %v15228_v42 = vpop.f32.mrb[27].mxu1  ;;  %15261 = vadd.xlane.f32.xlu0 %v27783_v53  ;;  %v15448_v32 = vld [vmem:[#allocation14 + $0x248] sm:$0xff] }
0x1ff1   :  { %v15229_v47 = vadd.f32 %v18813_v37, %v15228_v42  ;;  %v24037_v42 = vcombine.high %v15440_v40, %v15448_v32  ;;  %v24038_v43 = vcombine.low %v15440_v40, %v15448_v32 }
0x1ff2   :  { %v27790_v21 = vadd.f32 %v15234_v60, %v28474_v9  ;;  %v15455_v9 = vld [vmem:[#allocation14 + $0x280] sm:$0xff] }
0x1ff3   :  { %v27795_v12 = vadd.f32 %v15229_v47, %v28475_v7  ;;  %v15463_v47 = vld [vmem:[#allocation14 + $0x2c0] sm:$0xff]  ;;  %v15456_v7 = vld [vmem:[#allocation14 + $0x288] sm:$0xff] }
0x1ff4   :  { %15267 = vadd.xlane.f32.xlu1 %v27790_v21  ;;  %15263 = vadd.xlane.f32.xlu0 %v27787_v16 }
0x1ff6   :  { %v22462_v38 = vpop.f32.mrb[28].mxu1 }
0x1ff7   :  { %v15244_v44 = vadd.f32 %v22462_v38, %v18813_v37  ;;  %v15238_v28 = vpop.f32.mrb[29].mxu1  ;;  %v24023_v38 = vcombine.high %v15455_v9, %v15463_v47 }
0x1ff8   :  { %v15239_v2 = vadd.f32 %v18813_v37, %v15238_v28  ;;  %15265 = vadd.xlane.f32.xlu0 %v27795_v12  ;;  %v24024_v28 = vcombine.low %v15455_v9, %v15463_v47 }
0x1ff9   :  { %v27799_v61 = vadd.f32 %v15244_v44, %v28476_v62  ;;  %v15464_v44 = vld [vmem:[#allocation14 + $0x2c8] sm:$0xff] }
0x1ffa   :  { %v27802_v45 = vadd.f32 %v15239_v2, %v28477_v1  ;;  %v24039_v2 = vcombine.high %v15456_v7, %v15464_v44  ;;  %v24040_v62 = vcombine.low %v15456_v7, %v15464_v44  ;;  %v15471_v1 = vld [vmem:[#allocation14 + $0x300] sm:$0xff] }
0x1ffb   :  { %15271 = vadd.xlane.f32.xlu1 %v27799_v61  ;;  %v24025_v30 = vcombine.high %v15471_v1, %v15479_v48  ;;  %v24026_v4 = vcombine.low %v15471_v1, %v15479_v48  ;;  %v15401_v48 = vld [vmem:[#allocation14 + $0xd0] sm:$0xff] }
0x1ffc   :  { %15269 = vadd.xlane.f32.xlu0 %v27802_v45 }
0x2047   :  { %v15260_v19 = vpop.xlane.xlu1 %15259 }
0x2048   :  { %v15274_v10 = vmul.f32 0.0078125, %v15260_v19  ;;  %v15258_v11 = vpop.xlane.xlu0 %15257 }
0x2049   :  { %v15273_v46 = vmul.f32 0.0078125, %v15258_v11 }
0x204a   :  { %v27807_v23 = vsub.f32 %v27775_v6, %v15274_v10  ;;  %v24036_v6 = vcombine.low %v15424_v50, %v15432_v13 }
0x204b   :  { %v27810_v5 = vsub.f32 %v27778_v0, %v15273_v46  ;;  %v15439_v0 = vld [vmem:[#allocation14 + $0x200] sm:$0xff] }
0x204c   :  { %v15290_v37 = vmul.f32 %v27807_v23, %v27807_v23  ;;  %23304 = vmatpush1.bf16.msra.mxu1 %v24036_v6  ;;  %v24021_v55 = vcombine.high %v15439_v0, %v15447_v17  ;;  %v24022_v60 = vcombine.low %v15439_v0, %v15447_v17  ;;  %v15378_v6 = vld [vmem:[#allocation14 + $0x18] sm:$0xff]  ;;  %v24045_v0 = vcombine.high %v15377_v35, %v15385_v51 }
0x204d   :  { %v15289_v34 = vmul.f32 %v27810_v5, %v27810_v5  ;;  %23306 = vmatprep.subr.bf16.mxu1 %v24037_v42  ;;  %v15386_v17 = vld [vmem:[#allocation14 + $0x58] sm:$0xff] }
0x204e   :  { %15299 = vadd.xlane.f32.xlu1 %v15290_v37  ;;  %23274 = vmatprep.subr.bf16.mxu0 %v24021_v55  ;;  %v24061_v40 = vcombine.high %v15378_v6, %v15386_v17  ;;  %v24062_v55 = vcombine.low %v15378_v6, %v15386_v17 }
0x204f   :  { %15297 = vadd.xlane.f32.xlu0 %v15289_v34  ;;  %23276 = vmatpush1.bf16.msra.mxu0 %v24022_v60 }
0x2050   :  { %23308 = vmatpush1.bf16.msra.mxu1 %v24038_v43  ;;  %23278 = vmatprep.subr.bf16.mxu0 %v24023_v38  ;;  %v27846_v38 = vld [vmem:[#allocation2 + $0x21] ss:$0 sm:$0xff] }
0x2051   :  { %23310 = vmatprep.subr.bf16.mxu1 %v24039_v2  ;;  %v27850_v2 = vld [vmem:[#allocation2 + $0x22] ss:$0 sm:$0xff] }
0x2053   :  { %23280 = vmatpush1.bf16.msra.mxu0 %v24024_v28 }
0x2054   :  { %23312 = vmatpush1.bf16.msra.mxu1 %v24040_v62  ;;  %23282 = vmatprep.subr.bf16.mxu0 %v24025_v30  ;;  %v15393_v62 = vld [vmem:[#allocation14 + $0x90] sm:$0xff]  ;;  %v15402_v30 = vld [vmem:[#allocation14 + $0xd8] sm:$0xff] }
0x2055   :  { %23314 = vmatprep.subr.bf16.mxu1 %v24041_v22  ;;  %v24047_v22 = vcombine.high %v15393_v62, %v15401_v48  ;;  %v24064_v57 = vcombine.low %v15394_v25, %v15402_v30 }
0x2057   :  { %23284 = vmatpush1.bf16.msra.mxu0 %v24026_v4 }
0x2058   :  { %23316 = vmatpush1.bf16.msra.mxu1 %v24042_v8  ;;  %23286 = vmatprep.subr.bf16.mxu0 %v24027_v59  ;;  %v24063_v8 = vcombine.high %v15394_v25, %v15402_v30  ;;  %v24048_v59 = vcombine.low %v15393_v62, %v15401_v48  ;;  %v27868_v25 = vld [vmem:[#allocation14 + $0x20] sm:$0xff] }
0x2059   :  { %23318 = vmatprep.subr.bf16.mxu1 %v24043_v27  ;;  %v27870_v30 = vld [vmem:[#allocation14 + $0x60] sm:$0xff] }
0x205b   :  { %23288 = vmatpush1.bf16.msra.mxu0 %v24028_v39 }
0x205c   :  { %23320 = vmatpush1.bf16.msra.mxu1 %v24044_v29  ;;  %23322 = vmatprep.subr.bf16.mxu0 %v24045_v0  ;;  %v15425_v29 = vld [vmem:[#allocation14 + $0x190] sm:$0xff] }
0x205d   :  { %23354 = vmatprep.subr.bf16.mxu1 %v24061_v40  ;;  %v15481_v40 = vld [vmem:[#allocation14 + $0x350] sm:$0xff] }
0x207d   :  { %v15262_v31 = vpop.xlane.xlu0 %15261 }
0x207e   :  { %v15275_v20 = vmul.f32 0.0078125, %v15262_v31  ;;  %v15433_v31 = vld [vmem:[#allocation14 + $0x1d0] sm:$0xff] }
0x2080   :  { %v27817_v41 = vsub.f32 %v27783_v53, %v15275_v20  ;;  %v15426_v20 = vld [vmem:[#allocation14 + $0x198] sm:$0xff] }
0x2081   :  { %v15268_v24 = vpop.xlane.xlu1 %15267  ;;  %v15264_v63 = vpop.xlane.xlu0 %15263 }
0x2082   :  { %v15278_v52 = vmul.f32 0.0078125, %v15268_v24  ;;  %v15276_v18 = vmul.f32 0.0078125, %v15264_v63  ;;  %v15291_v14 = vmul.f32 %v27817_v41, %v27817_v41  ;;  %v15434_v24 = vld [vmem:[#allocation14 + $0x1d8] sm:$0xff] }
0x2084   :  { %v27822_v26 = vsub.f32 %v27787_v16, %v15276_v18  ;;  %15301 = vadd.xlane.f32.xlu0 %v15291_v14  ;;  %v27825_v10 = vsub.f32 %v27790_v21, %v15278_v52  ;;  %v24051_v18 = vcombine.high %v15425_v29, %v15433_v31  ;;  %v24067_v14 = vcombine.high %v15426_v20, %v15434_v24 }
0x2085   :  { %v15266_v19 = vpop.xlane.xlu0 %15265 }
0x2086   :  { %v15277_v11 = vmul.f32 0.0078125, %v15266_v19  ;;  %v15292_v53 = vmul.f32 %v27822_v26, %v27822_v26  ;;  %v15294_v16 = vmul.f32 %v27825_v10, %v27825_v10  ;;  %v15441_v19 = vld [vmem:[#allocation14 + $0x210] sm:$0xff] }
0x2088   :  { %v27830_v46 = vsub.f32 %v27795_v12, %v15277_v11  ;;  %v15272_v37 = vpop.xlane.xlu1 %15271  ;;  %15303 = vadd.xlane.f32.xlu1 %v15292_v53  ;;  %v15449_v11 = vld [vmem:[#allocation14 + $0x250] sm:$0xff]  ;;  %v15442_v53 = vld [vmem:[#allocation14 + $0x218] sm:$0xff] }
0x2089   :  { %v15280_v34 = vmul.f32 0.0078125, %v15272_v37  ;;  %v15270_v56 = vpop.xlane.xlu0 %15269  ;;  %v15450_v37 = vld [vmem:[#allocation14 + $0x258] sm:$0xff] }
0x208a   :  { %v15279_v49 = vmul.f32 0.0078125, %v15270_v56  ;;  %v15293_v50 = vmul.f32 %v27830_v46, %v27830_v46  ;;  %v24068_v56 = vcombine.low %v15426_v20, %v15434_v24  ;;  %v24070_v6 = vcombine.low %v15442_v53, %v15450_v37 }
0x208b   :  { %v27837_v21 = vsub.f32 %v27799_v61, %v15280_v34  ;;  %v24046_v61 = vcombine.low %v15377_v35, %v15385_v51  ;;  %v24052_v34 = vcombine.low %v15425_v29, %v15433_v31  ;;  %v15466_v35 = vld [vmem:[#allocation14 + $0x2d8] sm:$0xff]  ;;  %v24054_v51 = vcombine.low %v15441_v19, %v15449_v11 }
0x208c   :  { %v27840_v3 = vsub.f32 %v27802_v45, %v15279_v49  ;;  %15307 = vadd.xlane.f32.xlu1 %v15294_v16  ;;  %15305 = vadd.xlane.f32.xlu0 %v15293_v50  ;;  %v24053_v49 = vcombine.high %v15441_v19, %v15449_v11  ;;  %v24069_v16 = vcombine.high %v15442_v53, %v15450_v37  ;;  %v15457_v50 = vld [vmem:[#allocation14 + $0x290] sm:$0xff] }
0x208d   :  { %v15296_v12 = vmul.f32 %v27837_v21, %v27837_v21 }
0x208e   :  { %v15295_v13 = vmul.f32 %v27840_v3, %v27840_v3 }
0x2090   :  { %15311 = vadd.xlane.f32.xlu1 %v15296_v12  ;;  %15309 = vadd.xlane.f32.xlu0 %v15295_v13  ;;  %v15465_v12 = vld [vmem:[#allocation14 + $0x2d0] sm:$0xff]  ;;  %v15458_v13 = vld [vmem:[#allocation14 + $0x298] sm:$0xff] }
0x2091   :  { %v24055_v0 = vcombine.high %v15457_v50, %v15465_v12  ;;  %v24071_v17 = vcombine.high %v15458_v13, %v15466_v35 }
0x20db   :  { %v15300_v45 = vpop.xlane.xlu1 %15299 }
0x20dc   :  { %v15314_v32 = vmul.f32 0.0078125, %v15300_v45  ;;  %v15298_v60 = vpop.xlane.xlu0 %15297  ;;  %v15482_v45 = vld [vmem:[#allocation14 + $0x358] sm:$0xff] }
0x20dd   :  { %v15313_v42 = vmul.f32 0.0078125, %v15298_v60  ;;  %v24072_v60 = vcombine.low %v15458_v13, %v15466_v35 }
0x20de   :  { %v15322_v43 = vadd.f32 1e-05, %v15314_v32  ;;  %v24056_v32 = vcombine.low %v15457_v50, %v15465_v12 }
0x20df   :  { %v15321_v9 = vadd.f32 1e-05, %v15313_v42 }
0x20e0   :  { %24633 = vrsqrt.f32 %v15322_v43 }
0x20e1   :  { %24635 = vrsqrt.f32 %v15321_v9  ;;  %v15489_v9 = vld [vmem:[#allocation14 + $0x390] sm:$0xff] }
0x20ea   :  { %v24634_v47 = vpop.eup %24633 }
0x20eb   :  { %v24636_v7 = vpop.eup %24635  ;;  %v15338_v44 = vmul.f32 %v24634_v47, %v27807_v23  ;;  %v15417_v23 = vld [vmem:[#allocation14 + $0x150] sm:$0xff] }
0x20ec   :  { %v15337_v28 = vmul.f32 %v24636_v7, %v27810_v5  ;;  %v15410_v5 = vld [vmem:[#allocation14 + $0x118] sm:$0xff]  ;;  %v24049_v39 = vcombine.high %v15409_v54, %v15417_v23  ;;  %v24050_v63 = vcombine.low %v15409_v54, %v15417_v23  ;;  %v15497_v47 = vld [vmem:[#allocation14 + $0x3d0] sm:$0xff]  ;;  %v24077_v23 = vcombine.high %v27868_v25, %v27870_v30 }
0x20ed   :  { %v15352_v33 = vmul.f32 %v27846_v38, %v15338_v44  ;;  %v24065_v27 = vcombine.high %v15410_v5, %v15418_v15  ;;  %v24066_v52 = vcombine.low %v15410_v5, %v15418_v15  ;;  %v15490_v7 = vld [vmem:[#allocation14 + $0x398] sm:$0xff] }
0x20ee   :  { %v15351_v1 = vmul.f32 %v27846_v38, %v15337_v28  ;;  %v15498_v44 = vld [vmem:[#allocation14 + $0x3d8] sm:$0xff] }
0x20ef   :  { %v27862_v36 = vadd.f32 %v27850_v2, %v15352_v33  ;;  %v24075_v48 = vcombine.high %v15490_v7, %v15498_v44  ;;  %v27872_v33 = vld [vmem:[#allocation14 + $0x28] sm:$0xff]  ;;  %v24076_v54 = vcombine.low %v15490_v7, %v15498_v44  ;;  %v24078_v7 = vcombine.low %v27868_v25, %v27870_v30 }
0x20f0   :  { %v27855_v4 = vadd.f32 %v27850_v2, %v15351_v1  ;;  %v24059_v1 = vcombine.high %v15489_v9, %v15497_v47 }
0x20f2   :  { %15906 = vmatmul.mubr.f32.vlgmr.msra.gmra.mrb[50].mxu0 %v27855_v4  ;;  %16019 = vmatmul.mubr.f32.vlgmr.msra.gmra.mrb[30].mxu1 %v27855_v4 }
0x20f3   :  { %15911 = vmatprep.mubr.f32.mxu0 %v28433_v58  ;;  %16024 = vmatprep.mubr.f32.mxu1 %v28433_v58 }
0x20f4   :  { %23324 = vmatpush1.bf16.msra.mxu0 %v24046_v61  ;;  %23356 = vmatpush1.bf16.msra.mxu1 %v24062_v55  ;;  %v15473_v61 = vld [vmem:[#allocation14 + $0x310] sm:$0xff]  ;;  %v15474_v55 = vld [vmem:[#allocation14 + $0x318] sm:$0xff] }
0x20f5   :  { %23326 = vmatprep.subr.bf16.mxu0 %v24047_v22  ;;  %23358 = vmatprep.subr.bf16.mxu1 %v24063_v8  ;;  %v24057_v42 = vcombine.high %v15473_v61, %v15481_v40  ;;  %v24073_v43 = vcombine.high %v15474_v55, %v15482_v45  ;;  %v24058_v28 = vcombine.low %v15473_v61, %v15481_v40  ;;  %v27874_v22 = vld [vmem:[#allocation14 + $0x68] sm:$0xff] }
0x20f6   :  { %15912 = vmatmul.mubr.f32.gmra.mrb[52].mxu0 %v27862_v36  ;;  %16025 = vmatmul.mubr.f32.gmra.mrb[32].mxu1 %v27862_v36  ;;  %v24074_v62 = vcombine.low %v15474_v55, %v15482_v45  ;;  %v24060_v8 = vcombine.low %v15489_v9, %v15497_v47  ;;  %v24093_v5 = vcombine.high %v27872_v33, %v27874_v22  ;;  %v15396_v9 = vld [vmem:[#allocation14 + $0xa8] sm:$0xff] }
0x20f7   :  { %15917 = vmatprep.mubr.f32.mxu0 %v28433_v58  ;;  %16030 = vmatprep.mubr.f32.mxu1 %v28433_v58  ;;  %v15404_v47 = vld [vmem:[#allocation14 + $0xe8] sm:$0xff]  ;;  %v24094_v44 = vcombine.low %v27872_v33, %v27874_v22  ;;  %v15427_v33 = vld [vmem:[#allocation14 + $0x1a0] sm:$0xff] }
0x20f8   :  { %23328 = vmatpush1.bf16.msra.mxu0 %v24048_v59  ;;  %23360 = vmatpush1.bf16.msra.mxu1 %v24064_v57  ;;  %v15435_v22 = vld [vmem:[#allocation14 + $0x1e0] sm:$0xff] }
0x20f9   :  { %23330 = vmatprep.subr.bf16.mxu0 %v24049_v39  ;;  %23362 = vmatprep.subr.bf16.mxu1 %v24065_v27 }
0x20fc   :  { %23332 = vmatpush1.bf16.msra.mxu0 %v24050_v63  ;;  %23364 = vmatpush1.bf16.msra.mxu1 %v24066_v52 }
0x20fd   :  { %23334 = vmatprep.subr.bf16.mxu0 %v24051_v18  ;;  %23366 = vmatprep.subr.bf16.mxu1 %v24067_v14 }
0x2100   :  { %23336 = vmatpush1.bf16.msra.mxu0 %v24052_v34  ;;  %23368 = vmatpush1.bf16.msra.mxu1 %v24068_v56 }
0x2101   :  { %23338 = vmatprep.subr.bf16.mxu0 %v24053_v49  ;;  %23370 = vmatprep.subr.bf16.mxu1 %v24069_v16 }
0x2104   :  { %23340 = vmatpush1.bf16.msra.mxu0 %v24054_v51  ;;  %23372 = vmatpush1.bf16.msra.mxu1 %v24070_v6 }
0x2105   :  { %23342 = vmatprep.subr.bf16.mxu0 %v24055_v0  ;;  %23374 = vmatprep.subr.bf16.mxu1 %v24071_v17 }
0x2108   :  { %23344 = vmatpush1.bf16.msra.mxu0 %v24056_v32  ;;  %23376 = vmatpush1.bf16.msra.mxu1 %v24072_v60 }
0x2109   :  { %23346 = vmatprep.subr.bf16.mxu0 %v24057_v42  ;;  %23378 = vmatprep.subr.bf16.mxu1 %v24073_v43  ;;  %v15395_v43 = vld [vmem:[#allocation14 + $0xa0] sm:$0xff] }
0x210c   :  { %23348 = vmatpush1.bf16.msra.mxu0 %v24058_v28  ;;  %23380 = vmatpush1.bf16.msra.mxu1 %v24074_v62  ;;  %v24095_v28 = vcombine.high %v15396_v9, %v15404_v47  ;;  %v15411_v62 = vld [vmem:[#allocation14 + $0x120] sm:$0xff] }
0x210d   :  { %23350 = vmatprep.subr.bf16.mxu0 %v24059_v1  ;;  %23382 = vmatprep.subr.bf16.mxu1 %v24075_v48  ;;  %v15419_v1 = vld [vmem:[#allocation14 + $0x160] sm:$0xff]  ;;  %v15412_v48 = vld [vmem:[#allocation14 + $0x128] sm:$0xff] }
0x210e   :  { %v24081_v25 = vcombine.high %v15411_v62, %v15419_v1 }
0x2110   :  { %23352 = vmatpush1.bf16.msra.mxu0 %v24060_v8  ;;  %23384 = vmatpush1.bf16.msra.mxu1 %v24076_v54  ;;  %v15420_v8 = vld [vmem:[#allocation14 + $0x168] sm:$0xff] }
0x2111   :  { %v15302_v15 = vpop.xlane.xlu0 %15301  ;;  %23386 = vmatprep.subr.bf16.mxu0 %v24077_v23  ;;  %23418 = vmatprep.subr.bf16.mxu1 %v24093_v5  ;;  %v24096_v23 = vcombine.low %v15396_v9, %v15404_v47  ;;  %v24097_v30 = vcombine.high %v15412_v48, %v15420_v8  ;;  %v15428_v5 = vld [vmem:[#allocation14 + $0x1a8] sm:$0xff]  ;;  %v15389_v9 = vld [vmem:[#allocation14 + $0x70] sm:$0xff]  ;;  %v15382_v47 = vld [vmem:[#allocation14 + $0x38] sm:$0xff] }
0x2112   :  { %v15315_v59 = vmul.f32 0.0078125, %v15302_v15  ;;  %v15436_v15 = vld [vmem:[#allocation14 + $0x1e8] sm:$0xff] }
0x2114   :  { %v15323_v57 = vadd.f32 1e-05, %v15315_v59  ;;  %v24082_v59 = vcombine.low %v15411_v62, %v15419_v1  ;;  %v15397_v1 = vld [vmem:[#allocation14 + $0xb0] sm:$0xff] }
0x2115   :  { %v15304_v39 = vpop.xlane.xlu1 %15303 }
0x2116   :  { %24637 = vrsqrt.f32 %v15323_v57  ;;  %v15316_v27 = vmul.f32 0.0078125, %v15304_v39  ;;  %v24098_v57 = vcombine.low %v15412_v48, %v15420_v8  ;;  %v24083_v39 = vcombine.high %v15427_v33, %v15435_v22  ;;  %v15405_v48 = vld [vmem:[#allocation14 + $0xf0] sm:$0xff]  ;;  %v15398_v8 = vld [vmem:[#allocation14 + $0xb8] sm:$0xff] }
0x2118   :  { %v15324_v29 = vadd.f32 1e-05, %v15316_v27  ;;  %v24099_v27 = vcombine.high %v15428_v5, %v15436_v15 }
0x2119   :  { %v15308_v31 = vpop.xlane.xlu1 %15307  ;;  %v15306_v20 = vpop.xlane.xlu0 %15305 }
0x211a   :  { %24639 = vrsqrt.f32 %v15324_v29  ;;  %v15318_v24 = vmul.f32 0.0078125, %v15308_v31  ;;  %v15317_v63 = vmul.f32 0.0078125, %v15306_v20  ;;  %v15443_v29 = vld [vmem:[#allocation14 + $0x220] sm:$0xff]  ;;  %v15444_v20 = vld [vmem:[#allocation14 + $0x228] sm:$0xff] }
0x211b   :  { %v15451_v31 = vld [vmem:[#allocation14 + $0x260] sm:$0xff] }
0x211c   :  { %v15326_v52 = vadd.f32 1e-05, %v15318_v24  ;;  %v15325_v18 = vadd.f32 1e-05, %v15317_v63  ;;  %v15452_v24 = vld [vmem:[#allocation14 + $0x268] sm:$0xff]  ;;  %v24084_v63 = vcombine.low %v15427_v33, %v15435_v22  ;;  %v15413_v22 = vld [vmem:[#allocation14 + $0x130] sm:$0xff] }
0x211d   :  { %v15312_v14 = vpop.xlane.xlu1 %15311  ;;  %v15310_v19 = vpop.xlane.xlu0 %15309 }
0x211e   :  { %24641 = vrsqrt.f32 %v15326_v52  ;;  %v15320_v11 = vmul.f32 0.0078125, %v15312_v14  ;;  %v15319_v53 = vmul.f32 0.0078125, %v15310_v19  ;;  %v24100_v52 = vcombine.low %v15428_v5, %v15436_v15  ;;  %v15459_v19 = vld [vmem:[#allocation14 + $0x2a0] sm:$0xff]  ;;  %v15421_v5 = vld [vmem:[#allocation14 + $0x170] sm:$0xff]  ;;  %v15414_v15 = vld [vmem:[#allocation14 + $0x138] sm:$0xff] }
0x211f   :  { %24643 = vrsqrt.f32 %v15325_v18  ;;  %v24085_v18 = vcombine.high %v15443_v29, %v15451_v31  ;;  %v24101_v14 = vcombine.high %v15444_v20, %v15452_v24 }
0x2120   :  { %v24638_v37 = vpop.eup %24637  ;;  %v15327_v34 = vadd.f32 1e-05, %v15319_v53  ;;  %v15328_v49 = vadd.f32 1e-05, %v15320_v11  ;;  %v15467_v11 = vld [vmem:[#allocation14 + $0x2e0] sm:$0xff]  ;;  %v15460_v53 = vld [vmem:[#allocation14 + $0x2a8] sm:$0xff] }
0x2121   :  { %v15339_v56 = vmul.f32 %v24638_v37, %v27817_v41  ;;  %v15468_v37 = vld [vmem:[#allocation14 + $0x2e8] sm:$0xff] }
0x2122   :  { %24645 = vrsqrt.f32 %v15327_v34  ;;  %v24086_v34 = vcombine.low %v15443_v29, %v15451_v31  ;;  %v15429_v31 = vld [vmem:[#allocation14 + $0x1b0] sm:$0xff] }
0x2123   :  { %v15353_v16 = vmul.f32 %v27846_v38, %v15339_v56  ;;  %24647 = vrsqrt.f32 %v15328_v49  ;;  %v24102_v56 = vcombine.low %v15444_v20, %v15452_v24  ;;  %v24087_v49 = vcombine.high %v15459_v19, %v15467_v11  ;;  %v15437_v20 = vld [vmem:[#allocation14 + $0x1f0] sm:$0xff]  ;;  %v15430_v24 = vld [vmem:[#allocation14 + $0x1b8] sm:$0xff] }
0x2124   :  { %v24640_v50 = vpop.eup %24639 }
0x2125   :  { %v27883_v12 = vadd.f32 %v27850_v2, %v15353_v16  ;;  %v15340_v13 = vmul.f32 %v24640_v50, %v27822_v26  ;;  %v24103_v16 = vcombine.high %v15460_v53, %v15468_v37  ;;  %v15475_v50 = vld [vmem:[#allocation14 + $0x320] sm:$0xff] }
0x2127   :  { %v15354_v35 = vmul.f32 %v27846_v38, %v15340_v13  ;;  %15918 = vmatmul.mubr.f32.gmra.mrb[54].mxu0 %v27883_v12  ;;  %16031 = vmatmul.mubr.f32.gmra.mrb[34].mxu1 %v27883_v12  ;;  %v15483_v13 = vld [vmem:[#allocation14 + $0x360] sm:$0xff] }
0x2128   :  { %v24642_v51 = vpop.eup %24641  ;;  %15923 = vmatprep.mubr.f32.mxu0 %v28433_v58  ;;  %16036 = vmatprep.mubr.f32.mxu1 %v28433_v58 }
0x2129   :  { %v24644_v41 = vpop.eup %24643  ;;  %v27892_v6 = vadd.f32 %v27850_v2, %v15354_v35  ;;  %v15342_v0 = vmul.f32 %v24642_v51, %v27825_v10  ;;  %v15476_v35 = vld [vmem:[#allocation14 + $0x328] sm:$0xff] }
0x212a   :  { %v15341_v26 = vmul.f32 %v24644_v41, %v27830_v46  ;;  %v15484_v51 = vld [vmem:[#allocation14 + $0x368] sm:$0xff]  ;;  %v24088_v41 = vcombine.low %v15459_v19, %v15467_v11  ;;  %v15445_v11 = vld [vmem:[#allocation14 + $0x230] sm:$0xff] }
0x212b   :  { %15924 = vmatmul.mubr.f32.gmra.mrb[56].mxu0 %v27892_v6  ;;  %16037 = vmatmul.mubr.f32.gmra.mrb[36].mxu1 %v27892_v6  ;;  %v15356_v40 = vmul.f32 %v27846_v38, %v15342_v0  ;;  %v24104_v0 = vcombine.low %v15460_v53, %v15468_v37  ;;  %v15453_v53 = vld [vmem:[#allocation14 + $0x270] sm:$0xff]  ;;  %v15446_v37 = vld [vmem:[#allocation14 + $0x238] sm:$0xff] }
0x212c   :  { %v15355_v17 = vmul.f32 %v27846_v38, %v15341_v26  ;;  %15929 = vmatprep.mubr.f32.mxu0 %v28433_v58  ;;  %16042 = vmatprep.mubr.f32.mxu1 %v28433_v58  ;;  %v24646_v61 = vpop.eup %24645  ;;  %v24089_v26 = vcombine.high %v15475_v50, %v15483_v13 }
0x212d   :  { %v15343_v10 = vmul.f32 %v24646_v61, %v27840_v3  ;;  %v24648_v45 = vpop.eup %24647  ;;  %v27911_v46 = vadd.f32 %v27850_v2, %v15356_v40  ;;  %v15491_v61 = vld [vmem:[#allocation14 + $0x3a0] sm:$0xff] }
0x212e   :  { %v27903_v55 = vadd.f32 %v27850_v2, %v15355_v17  ;;  %v15344_v32 = vmul.f32 %v24648_v45, %v27837_v21  ;;  %v24105_v17 = vcombine.high %v15476_v35, %v15484_v51  ;;  %v15499_v40 = vld [vmem:[#allocation14 + $0x3e0] sm:$0xff]  ;;  %v15500_v45 = vld [vmem:[#allocation14 + $0x3e8] sm:$0xff] }
0x212f   :  { %v15357_v60 = vmul.f32 %v27846_v38, %v15343_v10  ;;  %v15492_v10 = vld [vmem:[#allocation14 + $0x3a8] sm:$0xff] }
0x2130   :  { %15930 = vmatmul.mubr.f32.gmra.mrb[58].mxu0 %v27903_v55  ;;  %16043 = vmatmul.mubr.f32.gmra.mrb[38].mxu1 %v27903_v55  ;;  %v15358_v3 = vmul.f32 %v27846_v38, %v15344_v32  ;;  %v15403_v38 = vld [vmem:[#allocation14 + $0xe0] sm:$0xff]  ;;  %v24090_v32 = vcombine.low %v15475_v50, %v15483_v13  ;;  %v15461_v13 = vld [vmem:[#allocation14 + $0x2b0] sm:$0xff] }
0x2131   :  { %15935 = vmatprep.mubr.f32.mxu0 %v28433_v58  ;;  %16048 = vmatprep.mubr.f32.mxu1 %v28433_v58  ;;  %v27921_v42 = vadd.f32 %v27850_v2, %v15357_v60  ;;  %v24080_v54 = vcombine.low %v15395_v43, %v15403_v38  ;;  %v24106_v60 = vcombine.low %v15476_v35, %v15484_v51  ;;  %v15469_v35 = vld [vmem:[#allocation14 + $0x2f0] sm:$0xff]  ;;  %v15462_v51 = vld [vmem:[#allocation14 + $0x2b8] sm:$0xff] }
0x2132   :  { %v27928_v21 = vadd.f32 %v27850_v2, %v15358_v3  ;;  %v24079_v2 = vcombine.high %v15395_v43, %v15403_v38  ;;  %v24091_v3 = vcombine.high %v15491_v61, %v15499_v40  ;;  %v24107_v43 = vcombine.high %v15492_v10, %v15500_v45  ;;  %v15381_v38 = vld [vmem:[#allocation14 + $0x30] sm:$0xff] }
0x2134   :  { %15936 = vmatmul.mubr.f32.gmra.mrb[60].mxu0 %v27911_v46  ;;  %16049 = vmatmul.mubr.f32.gmra.mrb[40].mxu1 %v27911_v46 }
0x2135   :  { %15941 = vmatprep.mubr.f32.mxu0 %v28433_v58  ;;  %16054 = vmatprep.mubr.f32.mxu1 %v28433_v58 }
0x2138   :  { %15942 = vmatmul.mubr.f32.gmra.mrb[62].mxu0 %v27921_v42  ;;  %16055 = vmatmul.mubr.f32.gmra.mrb[42].mxu1 %v27921_v42 }
0x2139   :  { %15947 = vmatprep.mubr.f32.mxu0 %v28433_v58  ;;  %16060 = vmatprep.mubr.f32.mxu1 %v28433_v58 }
0x213c   :  { %15948 = vmatmul.mubr.f32.gmra.mrb[64].mxu0 %v27928_v21  ;;  %16061 = vmatmul.mubr.f32.gmra.mrb[44].mxu1 %v27928_v21 }
0x213d   :  { %16131 = vmatprep.mubr.f32.mxu0 %v28433_v58  ;;  %16244 = vmatprep.mubr.f32.mxu1 %v28433_v58 }
0x2140   :  { %16132 = vmatmul.mubr.f32.vlgmr.msra.gmra.mrb[66].mxu0 %v27855_v4  ;;  %16245 = vmatmul.mubr.f32.vlgmr.msra.gmra.mrb[46].mxu1 %v27855_v4 }
0x2141   :  { %23388 = vmatpush1.bf16.msra.mxu0 %v24078_v7  ;;  %23420 = vmatpush1.bf16.msra.mxu1 %v24094_v44  ;;  %v15390_v7 = vld [vmem:[#allocation14 + $0x78] sm:$0xff]  ;;  %v24092_v44 = vcombine.low %v15491_v61, %v15499_v40  ;;  %v15477_v40 = vld [vmem:[#allocation14 + $0x330] sm:$0xff] }
0x2142   :  { %16137 = vmatprep.mubr.f32.mxu0 %v28433_v58  ;;  %16250 = vmatprep.mubr.f32.mxu1 %v28433_v58  ;;  %v24125_v62 = vcombine.high %v15382_v47, %v15390_v7 }
0x2143   :  { %23390 = vmatprep.subr.bf16.mxu0 %v24079_v2  ;;  %23422 = vmatprep.subr.bf16.mxu1 %v24095_v28  ;;  %v24108_v2 = vcombine.low %v15492_v10, %v15500_v45  ;;  %v24109_v28 = vcombine.high %v15381_v38, %v15389_v9  ;;  %v15485_v10 = vld [vmem:[#allocation14 + $0x370] sm:$0xff]  ;;  %v15478_v45 = vld [vmem:[#allocation14 + $0x338] sm:$0xff] }
0x2144   :  { %16138 = vmatmul.mubr.f32.gmra.mrb[68].mxu0 %v27862_v36  ;;  %16251 = vmatmul.mubr.f32.gmra.mrb[48].mxu1 %v27862_v36 }
0x2145   :  { %23392 = vmatpush1.bf16.msra.mxu0 %v24080_v54  ;;  %23424 = vmatpush1.bf16.msra.mxu1 %v24096_v23  ;;  %v15406_v54 = vld [vmem:[#allocation14 + $0xf8] sm:$0xff]  ;;  %v24110_v23 = vcombine.low %v15381_v38, %v15389_v9  ;;  %v15493_v9 = vld [vmem:[#allocation14 + $0x3b0] sm:$0xff] }
0x2146   :  { %16143 = vmatprep.mubr.f32.mxu0 %v28433_v58  ;;  %16256 = vmatprep.mubr.f32.mxu1 %v28433_v58  ;;  %v24127_v33 = vcombine.high %v15398_v8, %v15406_v54 }
0x2147   :  { %23394 = vmatprep.subr.bf16.mxu0 %v24081_v25  ;;  %23426 = vmatprep.subr.bf16.mxu1 %v24097_v30  ;;  %v24126_v25 = vcombine.low %v15382_v47, %v15390_v7  ;;  %v24111_v30 = vcombine.high %v15397_v1, %v15405_v48  ;;  %v15501_v47 = vld [vmem:[#allocation14 + $0x3f0] sm:$0xff]  ;;  %v15494_v7 = vld [vmem:[#allocation14 + $0x3b8] sm:$0xff] }
0x2148   :  { %16144 = vmatmul.mubr.f32.gmra.mrb[70].mxu0 %v27883_v12  ;;  %16257 = vmatmul.mubr.f32.gmra.mrb[50].mxu1 %v27883_v12 }
0x2149   :  { %23396 = vmatpush1.bf16.msra.mxu0 %v24082_v59  ;;  %23428 = vmatpush1.bf16.msra.mxu1 %v24098_v57  ;;  %v15422_v59 = vld [vmem:[#allocation14 + $0x178] sm:$0xff]  ;;  %v24112_v57 = vcombine.low %v15397_v1, %v15405_v48  ;;  %v24124_v48 = vcombine.low %v15493_v9, %v15501_v47 }
0x214a   :  { %16149 = vmatprep.mubr.f32.mxu0 %v28433_v58  ;;  %16262 = vmatprep.mubr.f32.mxu1 %v28433_v58  ;;  %v24129_v29 = vcombine.high %v15414_v15, %v15422_v59 }
0x214b   :  { %23398 = vmatprep.subr.bf16.mxu0 %v24083_v39  ;;  %23430 = vmatprep.subr.bf16.mxu1 %v24099_v27  ;;  %v24128_v39 = vcombine.low %v15398_v8, %v15406_v54  ;;  %v24113_v27 = vcombine.high %v15413_v22, %v15421_v5  ;;  %v20149_v54 = vld [vmem:[#allocation16 + $0x40] sm:$0xff]  }
0x214c   :  { %16150 = vmatmul.mubr.f32.gmra.mrb[72].mxu0 %v27892_v6  ;;  %16263 = vmatmul.mubr.f32.gmra.mrb[52].mxu1 %v27892_v6 }
0x214d   :  { %23400 = vmatpush1.bf16.msra.mxu0 %v24084_v63  ;;  %23432 = vmatpush1.bf16.msra.mxu1 %v24100_v52  ;;  %v15438_v63 = vld [vmem:[#allocation14 + $0x1f8] sm:$0xff]  ;;  %v24114_v52 = vcombine.low %v15413_v22, %v15421_v5  ;;  %v20166_v22 = vld [vmem:[#allocation16 + $0xc8] sm:$0xff]  }
0x214e   :  { %16155 = vmatprep.mubr.f32.mxu0 %v28433_v58  ;;  %16268 = vmatprep.mubr.f32.mxu1 %v28433_v58  ;;  %v24131_v19 = vcombine.high %v15430_v24, %v15438_v63  ;;  %v20142_v5 = vld [vmem:[#allocation16 + $0x8] sm:$0xff]  }
0x214f   :  { %23402 = vmatprep.subr.bf16.mxu0 %v24085_v18  ;;  %23434 = vmatprep.subr.bf16.mxu1 %v24101_v14  ;;  %v24130_v18 = vcombine.low %v15414_v15, %v15422_v59  ;;  %v24115_v14 = vcombine.high %v15429_v31, %v15437_v20  ;;  %v20158_v15 = vld [vmem:[#allocation16 + $0x88] sm:$0xff]   ;;  %v20151_v59 = vld [vmem:[#allocation16 + $0x50] sm:$0xff]  }
0x2150   :  { %16156 = vmatmul.mubr.f32.gmra.mrb[74].mxu0 %v27903_v55  ;;  %16269 = vmatmul.mubr.f32.gmra.mrb[54].mxu1 %v27903_v55 }
0x2151   :  { %23404 = vmatpush1.bf16.msra.mxu0 %v24086_v34  ;;  %23436 = vmatpush1.bf16.msra.mxu1 %v24102_v56  ;;  %v15454_v34 = vld [vmem:[#allocation14 + $0x278] sm:$0xff]  ;;  %v24116_v56 = vcombine.low %v15429_v31, %v15437_v20 }
0x2152   :  { %16161 = vmatprep.mubr.f32.mxu0 %v28433_v58  ;;  %16274 = vmatprep.mubr.f32.mxu1 %v28433_v58  ;;  %v24133_v50 = vcombine.high %v15446_v37, %v15454_v34  ;;  %v20168_v31 = vld [vmem:[#allocation16 + $0xd8] sm:$0xff]  }
0x2153   :  { %23406 = vmatprep.subr.bf16.mxu0 %v24087_v49  ;;  %23438 = vmatprep.subr.bf16.mxu1 %v24103_v16  ;;  %v24132_v49 = vcombine.low %v15430_v24, %v15438_v63  ;;  %v24117_v16 = vcombine.high %v15445_v11, %v15453_v53  ;;  %v20144_v20 = vld [vmem:[#allocation16 + $0x18] sm:$0xff]   ;;  %v20153_v63 = vld [vmem:[#allocation16 + $0x60] sm:$0xff]  }
0x2154   :  { %16162 = vmatmul.mubr.f32.gmra.mrb[76].mxu0 %v27911_v46  ;;  %16275 = vmatmul.mubr.f32.gmra.mrb[56].mxu1 %v27911_v46  ;;  %v20160_v24 = vld [vmem:[#allocation16 + $0x98] sm:$0xff]  }
0x2155   :  { %23408 = vmatpush1.bf16.msra.mxu0 %v24088_v41  ;;  %23440 = vmatpush1.bf16.msra.mxu1 %v24104_v0  ;;  %v15470_v41 = vld [vmem:[#allocation14 + $0x2f8] sm:$0xff]  ;;  %v24118_v0 = vcombine.low %v15445_v11, %v15453_v53  ;;  %v20170_v11 = vld [vmem:[#allocation16 + $0xe8] sm:$0xff]  }
0x2156   :  { %16167 = vmatprep.mubr.f32.mxu0 %v28433_v58  ;;  %16280 = vmatprep.mubr.f32.mxu1 %v28433_v58  ;;  %v24135_v61 = vcombine.high %v15462_v51, %v15470_v41  ;;  %v20146_v53 = vld [vmem:[#allocation16 + $0x28] sm:$0xff]  }
0x2157   :  { %23410 = vmatprep.subr.bf16.mxu0 %v24089_v26  ;;  %23442 = vmatprep.subr.bf16.mxu1 %v24105_v17  ;;  %v24134_v26 = vcombine.low %v15446_v37, %v15454_v34  ;;  %v24119_v17 = vcombine.high %v15461_v13, %v15469_v35  ;;  %v20162_v37 = vld [vmem:[#allocation16 + $0xa8] sm:$0xff]   ;;  %v20155_v34 = vld [vmem:[#allocation16 + $0x70] sm:$0xff]  }
0x2158   :  { %16168 = vmatmul.mubr.f32.gmra.mrb[78].mxu0 %v27921_v42  ;;  %16281 = vmatmul.mubr.f32.gmra.mrb[58].mxu1 %v27921_v42 }
0x2159   :  { %23412 = vmatpush1.bf16.msra.mxu0 %v24090_v32  ;;  %23444 = vmatpush1.bf16.msra.mxu1 %v24106_v60  ;;  %v15486_v32 = vld [vmem:[#allocation14 + $0x378] sm:$0xff]  ;;  %v24120_v60 = vcombine.low %v15461_v13, %v15469_v35 }
0x215a   :  { %16173 = vmatprep.mubr.f32.mxu0 %v28433_v58  ;;  %16286 = vmatprep.mubr.f32.mxu1 %v28433_v58  ;;  %v24137_v38 = vcombine.high %v15478_v45, %v15486_v32  ;;  %v20172_v13 = vld [vmem:[#allocation16 + $0xf8] sm:$0xff]  }
0x215b   :  { %23414 = vmatprep.subr.bf16.mxu0 %v24091_v3  ;;  %23446 = vmatprep.subr.bf16.mxu1 %v24107_v43  ;;  %v24136_v3 = vcombine.low %v15462_v51, %v15470_v41  ;;  %v24121_v43 = vcombine.high %v15477_v40, %v15485_v10  ;;  %v20148_v35 = vld [vmem:[#allocation16 + $0x38] sm:$0xff]   ;;  %v20181_v41 = vld [vmem:[#allocation16 + $0x140] sm:$0xff]  }
0x215c   :  { %16174 = vmatmul.mubr.f32.gmra.mrb[80].mxu0 %v27928_v21  ;;  %16287 = vmatmul.mubr.f32.gmra.mrb[60].mxu1 %v27928_v21  ;;  %v20164_v51 = vld [vmem:[#allocation16 + $0xb8] sm:$0xff]  }
0x215d   :  { %23416 = vmatpush1.bf16.msra.mxu0 %v24092_v44  ;;  %23448 = vmatpush1.bf16.msra.mxu1 %v24108_v2  ;;  %v15502_v44 = vld [vmem:[#allocation14 + $0x3f8] sm:$0xff]  ;;  %v24122_v2 = vcombine.low %v15477_v40, %v15485_v10  ;;  %v28479_v40 = vld [vmem:[#allocation35_spill] sm:$0xff] }
0x215e   :  { %16357 = vmatprep.mubr.f32.mxu0 %v28433_v58  ;;  %16470 = vmatprep.mubr.f32.mxu1 %v28433_v58  ;;  %v24139_v1 = vcombine.high %v15494_v7, %v15502_v44  ;;  %v24140_v8 = vcombine.low %v15494_v7, %v15502_v44 }
0x215f   :  { %23450 = vmatprep.subr.bf16.mxu0 %v24109_v28  ;;  %23482 = vmatprep.subr.bf16.mxu1 %v24125_v62  ;;  %v24138_v28 = vcombine.low %v15478_v45, %v15486_v32  ;;  %v24123_v62 = vcombine.high %v15493_v9, %v15501_v47  ;;  %v28480_v45 = vld [vmem:[#allocation33_spill] sm:$0xff] }
0x2160   :  { %16358 = vmatmul.mubr.f32.vlgmr.msra.gmra.mrb[82].mxu0 %v27855_v4  ;;  %16471 = vmatmul.mubr.f32.vlgmr.msra.gmra.mrb[62].mxu1 %v27855_v4 }
0x2161   :  { %23452 = vmatpush1.bf16.msra.mxu0 %v24110_v23  ;;  %23484 = vmatpush1.bf16.msra.mxu1 %v24126_v25  ;;  %v20165_v23 = vld [vmem:[#allocation16 + $0xc0] sm:$0xff]  }
0x2162   :  { %16363 = vmatprep.mubr.f32.mxu0 %v28433_v58  ;;  %16476 = vmatprep.mubr.f32.mxu1 %v28433_v58  ;;  %v19435_v25 = vld [vmem:[#allocation16] sm:$0xff]  }
0x2163   :  { %23454 = vmatprep.subr.bf16.mxu0 %v24111_v30  ;;  %23486 = vmatprep.subr.bf16.mxu1 %v24127_v33  ;;  %v20157_v30 = vld [vmem:[#allocation16 + $0x80] sm:$0xff]   ;;  %v20150_v33 = vld [vmem:[#allocation16 + $0x48] sm:$0xff]  }
0x2164   :  { %16364 = vmatmul.mubr.f32.gmra.mrb[84].mxu0 %v27862_v36  ;;  %16477 = vmatmul.mubr.f32.gmra.mrb[64].mxu1 %v27862_v36 }
0x2165   :  { %23456 = vmatpush1.bf16.msra.mxu0 %v24112_v57  ;;  %23488 = vmatpush1.bf16.msra.mxu1 %v24128_v39  ;;  %v20167_v57 = vld [vmem:[#allocation16 + $0xd0] sm:$0xff]  }
0x2166   :  { %16369 = vmatprep.mubr.f32.mxu0 %v28433_v58  ;;  %16482 = vmatprep.mubr.f32.mxu1 %v28433_v58  ;;  %v20143_v39 = vld [vmem:[#allocation16 + $0x10] sm:$0xff]  }
0x2167   :  { %23458 = vmatprep.subr.bf16.mxu0 %v24113_v27  ;;  %23490 = vmatprep.subr.bf16.mxu1 %v24129_v29  ;;  %v20159_v27 = vld [vmem:[#allocation16 + $0x90] sm:$0xff]   ;;  %v20152_v29 = vld [vmem:[#allocation16 + $0x58] sm:$0xff]  }
0x2168   :  { %16370 = vmatmul.mubr.f32.gmra.mrb[86].mxu0 %v27883_v12  ;;  %16483 = vmatmul.mubr.f32.gmra.mrb[66].mxu1 %v27883_v12 }
0x2169   :  { %23460 = vmatpush1.bf16.msra.mxu0 %v24114_v52  ;;  %23492 = vmatpush1.bf16.msra.mxu1 %v24130_v18  ;;  %v20169_v52 = vld [vmem:[#allocation16 + $0xe0] sm:$0xff]  }
0x216a   :  { %16375 = vmatprep.mubr.f32.mxu0 %v28433_v58  ;;  %16488 = vmatprep.mubr.f32.mxu1 %v28433_v58  ;;  %v20145_v18 = vld [vmem:[#allocation16 + $0x20] sm:$0xff]  }
0x216b   :  { %23462 = vmatprep.subr.bf16.mxu0 %v24115_v14  ;;  %23494 = vmatprep.subr.bf16.mxu1 %v24131_v19  ;;  %v20161_v14 = vld [vmem:[#allocation16 + $0xa0] sm:$0xff]   ;;  %v20154_v19 = vld [vmem:[#allocation16 + $0x68] sm:$0xff]  }
0x216c   :  { %16376 = vmatmul.mubr.f32.gmra.mrb[88].mxu0 %v27892_v6  ;;  %16489 = vmatmul.mubr.f32.gmra.mrb[68].mxu1 %v27892_v6 }
0x216d   :  { %23464 = vmatpush1.bf16.msra.mxu0 %v24116_v56  ;;  %23496 = vmatpush1.bf16.msra.mxu1 %v24132_v49  ;;  %v20171_v56 = vld [vmem:[#allocation16 + $0xf0] sm:$0xff]  }
0x216e   :  { %16381 = vmatprep.mubr.f32.mxu0 %v28433_v58  ;;  %16494 = vmatprep.mubr.f32.mxu1 %v28433_v58  ;;  %v20147_v49 = vld [vmem:[#allocation16 + $0x30] sm:$0xff]  }
0x216f   :  { %23466 = vmatprep.subr.bf16.mxu0 %v24117_v16  ;;  %23498 = vmatprep.subr.bf16.mxu1 %v24133_v50  ;;  %v20163_v16 = vld [vmem:[#allocation16 + $0xb0] sm:$0xff]   ;;  %v20156_v50 = vld [vmem:[#allocation16 + $0x78] sm:$0xff]  }
0x2170   :  { %16382 = vmatmul.mubr.f32.gmra.mrb[90].mxu0 %v27903_v55  ;;  %16495 = vmatmul.mubr.f32.gmra.mrb[70].mxu1 %v27903_v55 }
0x2171   :  { %23468 = vmatpush1.bf16.msra.mxu0 %v24118_v0  ;;  %23500 = vmatpush1.bf16.msra.mxu1 %v24134_v26  ;;  %v20197_v0 = vld [vmem:[#allocation16 + $0x1c0] sm:$0xff]   ;;  %v28032_v26 = vld [vmem:[#allocation2 + $0x23] sm:$0xff] }
0x2172   :  { %16387 = vmatprep.mubr.f32.mxu0 %v28433_v58  ;;  %16500 = vmatprep.mubr.f32.mxu1 %v28433_v58  ;;  %v28040_v10 = vrot.slane %v28032_v26, %v28479_v40  ;;  %v28044_v32 = vrot.slane %v28032_v26, %v28480_v45 }
0x2173   :  { %23470 = vmatprep.subr.bf16.mxu0 %v24119_v17  ;;  %23502 = vmatprep.subr.bf16.mxu1 %v24135_v61  ;;  %v28478_v17 = vld [vmem:[#allocation34_spill] sm:$0xff] }
0x2174   :  { %16388 = vmatmul.mubr.f32.gmra.mrb[92].mxu0 %v27911_v46  ;;  %16501 = vmatmul.mubr.f32.gmra.mrb[72].mxu1 %v27911_v46  ;;  %v28036_v61 = vrot.slane %v28032_v26, %v28478_v17 }
0x2175   :  { %23472 = vmatpush1.bf16.msra.mxu0 %v24120_v60  ;;  %23504 = vmatpush1.bf16.msra.mxu1 %v24136_v3  ;;  %v28481_v60 = vld [vmem:[#allocation36_spill] sm:$0xff] }
0x2176   :  { %16393 = vmatprep.mubr.f32.mxu0 %v28433_v58  ;;  %16506 = vmatprep.mubr.f32.mxu1 %v28433_v58  ;;  %v28048_v3 = vrot.slane %v28032_v26, %v28481_v60 }
0x2177   :  { %23474 = vmatprep.subr.bf16.mxu0 %v24121_v43  ;;  %23506 = vmatprep.subr.bf16.mxu1 %v24137_v38 }
0x2178   :  { %16394 = vmatmul.mubr.f32.gmra.mrb[94].mxu0 %v27921_v42  ;;  %16507 = vmatmul.mubr.f32.gmra.mrb[74].mxu1 %v27921_v42 }
0x2179   :  { %23476 = vmatpush1.bf16.msra.mxu0 %v24122_v2  ;;  %23508 = vmatpush1.bf16.msra.mxu1 %v24138_v28 }
0x217a   :  { %16399 = vmatprep.mubr.f32.mxu0 %v28433_v58  ;;  %16512 = vmatprep.mubr.f32.mxu1 %v28433_v58 }
0x217b   :  { %23478 = vmatprep.subr.bf16.mxu0 %v24123_v62  ;;  %23510 = vmatprep.subr.bf16.mxu1 %v24139_v1 }
0x217c   :  { %16400 = vmatmul.mubr.f32.gmra.mrb[96].mxu0 %v27928_v21  ;;  %16513 = vmatmul.mubr.f32.gmra.mrb[76].mxu1 %v27928_v21 }
0x217d   :  { %23480 = vmatpush1.bf16.msra.mxu0 %v24124_v48  ;;  %23512 = vmatpush1.bf16.msra.mxu1 %v24140_v8 }
0x217e   :  { %16583 = vmatprep.mubr.f32.mxu0 %v28433_v58  ;;  %16696 = vmatprep.mubr.f32.mxu1 %v28433_v58 }
0x217f   :  { %23514 = vmatprep.subr.bf16.mxu0 %v20149_v54  ;;  %23546 = vmatprep.subr.bf16.mxu1 %v20165_v23 }
0x2180   :  { %16584 = vmatmul.mubr.f32.vlgmr.msra.gmra.mrb[98].mxu0 %v27855_v4  ;;  %16697 = vmatmul.mubr.f32.vlgmr.msra.gmra.mrb[78].mxu1 %v27855_v4 }
0x2181   :  { %16589 = vmatprep.mubr.f32.mxu0 %v28433_v58  ;;  %16702 = vmatprep.mubr.f32.mxu1 %v28433_v58 }
0x2182   :  { %23516 = vmatpush3.bf16.msra.mxu0 %v19435_v25  ;;  %23548 = vmatpush3.bf16.msra.mxu1 %v20157_v30 }
0x2183   :  { %23518 = vmatprep.subr.bf16.mxu0 %v20150_v33  ;;  %23550 = vmatprep.subr.bf16.mxu1 %v20166_v22 }
0x2184   :  { %16590 = vmatmul.mubr.f32.gmra.mrb[100].mxu0 %v27862_v36  ;;  %16703 = vmatmul.mubr.f32.gmra.mrb[80].mxu1 %v27862_v36 }
0x2185   :  { %16595 = vmatprep.mubr.f32.mxu0 %v28433_v58  ;;  %16708 = vmatprep.mubr.f32.mxu1 %v28433_v58 }
0x2186   :  { %23520 = vmatpush3.bf16.msra.mxu0 %v20142_v5  ;;  %23552 = vmatpush3.bf16.msra.mxu1 %v20158_v15  ;;  %v20173_v5 = vld [vmem:[#allocation16 + $0x100] sm:$0xff]  }
0x2187   :  { %23522 = vmatprep.subr.bf16.mxu0 %v20151_v59  ;;  %23554 = vmatprep.subr.bf16.mxu1 %v20167_v57  ;;  %v20189_v15 = vld [vmem:[#allocation16 + $0x180] sm:$0xff]  }
0x2188   :  { %16596 = vmatmul.mubr.f32.gmra.mrb[102].mxu0 %v27883_v12  ;;  %16709 = vmatmul.mubr.f32.gmra.mrb[82].mxu1 %v27883_v12 }
0x2189   :  { %16601 = vmatprep.mubr.f32.mxu0 %v28433_v58  ;;  %16714 = vmatprep.mubr.f32.mxu1 %v28433_v58 }
0x218a   :  { %23524 = vmatpush3.bf16.msra.mxu0 %v20143_v39  ;;  %23556 = vmatpush3.bf16.msra.mxu1 %v20159_v27  ;;  %v20182_v39 = vld [vmem:[#allocation16 + $0x148] sm:$0xff]  }
0x218b   :  { %23526 = vmatprep.subr.bf16.mxu0 %v20152_v29  ;;  %23558 = vmatprep.subr.bf16.mxu1 %v20168_v31  ;;  %v20198_v27 = vld [vmem:[#allocation16 + $0x1c8] sm:$0xff]  }
0x218c   :  { %16602 = vmatmul.mubr.f32.gmra.mrb[104].mxu0 %v27892_v6  ;;  %16715 = vmatmul.mubr.f32.gmra.mrb[84].mxu1 %v27892_v6 }
0x218d   :  { %16607 = vmatprep.mubr.f32.mxu0 %v28433_v58  ;;  %16720 = vmatprep.mubr.f32.mxu1 %v28433_v58 }
0x218e   :  { %23528 = vmatpush3.bf16.msra.mxu0 %v20144_v20  ;;  %23560 = vmatpush3.bf16.msra.mxu1 %v20160_v24 }
0x218f   :  { %23530 = vmatprep.subr.bf16.mxu0 %v20153_v63  ;;  %23562 = vmatprep.subr.bf16.mxu1 %v20169_v52  ;;  %v20174_v63 = vld [vmem:[#allocation16 + $0x108] sm:$0xff]  }
0x2190   :  { %16608 = vmatmul.mubr.f32.gmra.mrb[106].mxu0 %v27903_v55  ;;  %16721 = vmatmul.mubr.f32.gmra.mrb[86].mxu1 %v27903_v55  ;;  %v20190_v52 = vld [vmem:[#allocation16 + $0x188] sm:$0xff]  }
0x2191   :  { %16613 = vmatprep.mubr.f32.mxu0 %v28433_v58  ;;  %16726 = vmatprep.mubr.f32.mxu1 %v28433_v58 }
0x2192   :  { %23532 = vmatpush3.bf16.msra.mxu0 %v20145_v18  ;;  %23564 = vmatpush3.bf16.msra.mxu1 %v20161_v14  ;;  %v20183_v18 = vld [vmem:[#allocation16 + $0x150] sm:$0xff]  }
0x2193   :  { %23534 = vmatprep.subr.bf16.mxu0 %v20154_v19  ;;  %23566 = vmatprep.subr.bf16.mxu1 %v20170_v11  ;;  %v20199_v14 = vld [vmem:[#allocation16 + $0x1d0] sm:$0xff]  }
0x2194   :  { %16614 = vmatmul.mubr.f32.gmra.mrb[108].mxu0 %v27911_v46  ;;  %16727 = vmatmul.mubr.f32.gmra.mrb[88].mxu1 %v27911_v46  ;;  %v20175_v19 = vld [vmem:[#allocation16 + $0x110] sm:$0xff]  }
0x2195   :  { %16619 = vmatprep.mubr.f32.mxu0 %v28433_v58  ;;  %16732 = vmatprep.mubr.f32.mxu1 %v28433_v58  ;;  %v20191_v11 = vld [vmem:[#allocation16 + $0x190] sm:$0xff]  }
0x2196   :  { %23536 = vmatpush3.bf16.msra.mxu0 %v20146_v53  ;;  %23568 = vmatpush3.bf16.msra.mxu1 %v20162_v37  ;;  %v20184_v53 = vld [vmem:[#allocation16 + $0x158] sm:$0xff]  }
0x2197   :  { %23538 = vmatprep.subr.bf16.mxu0 %v20155_v34  ;;  %23570 = vmatprep.subr.bf16.mxu1 %v20171_v56  ;;  %v20200_v37 = vld [vmem:[#allocation16 + $0x1d8] sm:$0xff]  }
0x2198   :  { %16620 = vmatmul.mubr.f32.gmra.mrb[110].mxu0 %v27921_v42  ;;  %16733 = vmatmul.mubr.f32.gmra.mrb[90].mxu1 %v27921_v42  ;;  %v20176_v34 = vld [vmem:[#allocation16 + $0x118] sm:$0xff]  }
0x2199   :  { %16625 = vmatprep.mubr.f32.mxu0 %v28433_v58  ;;  %16738 = vmatprep.mubr.f32.mxu1 %v28433_v58  ;;  %v20192_v56 = vld [vmem:[#allocation16 + $0x198] sm:$0xff]  }
0x219a   :  { %23540 = vmatpush3.bf16.msra.mxu0 %v20147_v49  ;;  %23572 = vmatpush3.bf16.msra.mxu1 %v20163_v16  ;;  %v20185_v49 = vld [vmem:[#allocation16 + $0x160] sm:$0xff]  }
0x219b   :  { %23542 = vmatprep.subr.bf16.mxu0 %v20156_v50  ;;  %23574 = vmatprep.subr.bf16.mxu1 %v20172_v13  ;;  %v20201_v16 = vld [vmem:[#allocation16 + $0x1e0] sm:$0xff]  }
0x219c   :  { %16626 = vmatmul.mubr.f32.gmra.mrb[112].mxu0 %v27928_v21  ;;  %16739 = vmatmul.mubr.f32.gmra.mrb[92].mxu1 %v27928_v21  ;;  %v20177_v50 = vld [vmem:[#allocation16 + $0x120] sm:$0xff]  }
0x219d   :  { %v20193_v13 = vld [vmem:[#allocation16 + $0x1a0] sm:$0xff]  }
0x219e   :  { %23544 = vmatpush3.bf16.msra.mxu0 %v20148_v35  ;;  %23576 = vmatpush3.bf16.msra.mxu1 %v20164_v51  ;;  %v20186_v35 = vld [vmem:[#allocation16 + $0x168] sm:$0xff]  }
0x219f   :  { %23578 = vmatprep.subr.bf16.mxu0 %v20181_v41  ;;  %23610 = vmatprep.subr.bf16.mxu1 %v20197_v0  ;;  %v20202_v51 = vld [vmem:[#allocation16 + $0x1e8] sm:$0xff]  }
0x21a0   :  { %v20178_v41 = vld [vmem:[#allocation16 + $0x128] sm:$0xff]  }
0x21a1   :  { %v20194_v0 = vld [vmem:[#allocation16 + $0x1a8] sm:$0xff]  }
0x21c5   :  { %v15907_v43 = vpop.f32.mrb[50].mxu0  ;;  %v16020_v38 = vpop.f32.mrb[30].mxu1 }
0x21c6   :  { %v15908_v9 = vadd.f32 %v15907_v43, %v28036_v61  ;;  %v16021_v47 = vadd.f32 %v16020_v38, %v28040_v10  ;;  %v15909_v7 = vpop.f32.mrb[51].mxu0  ;;  %v16022_v44 = vpop.f32.mrb[31].mxu1  ;;  %v20187_v43 = vld [vmem:[#allocation16 + $0x170] sm:$0xff]  }
0x21c7   :  { %v15910_v2 = vadd.f32 %v15909_v7, %v28044_v32  ;;  %v16023_v28 = vadd.f32 %v16022_v44, %v28048_v3  ;;  %v20203_v38 = vld [vmem:[#allocation16 + $0x1f0] sm:$0xff]   ;;  %v20188_v7 = vld [vmem:[#allocation16 + $0x178] sm:$0xff]  }
0x21c8   :  { %v16745_v54 = vmax.f32 %v15908_v9, 0.0  ;;  %v16747_v23 = vmax.f32 %v16021_v47, 0.0  ;;  %v20179_v9 = vld [vmem:[#allocation16 + $0x130] sm:$0xff]   ;;  %v20204_v44 = vld [vmem:[#allocation16 + $0x1f8] sm:$0xff]  }
0x21c9   :  { %v16746_v62 = vmax.f32 %v15910_v2, 0.0  ;;  %v16748_v1 = vmax.f32 %v16023_v28, 0.0  ;;  %v15913_v48 = vpop.f32.mrb[52].mxu0  ;;  %v16026_v8 = vpop.f32.mrb[32].mxu1  ;;  %v20195_v47 = vld [vmem:[#allocation16 + $0x1b0] sm:$0xff]   ;;  %v20180_v2 = vld [vmem:[#allocation16 + $0x138] sm:$0xff]  }
0x21ca   :  { %v15914_v25 = vadd.f32 %v15913_v48, %v28036_v61  ;;  %v16027_v30 = vadd.f32 %v16026_v8, %v28040_v10  ;;  %v15915_v33 = vpop.f32.mrb[53].mxu0  ;;  %v16028_v22 = vpop.f32.mrb[33].mxu1  ;;  %v20196_v28 = vld [vmem:[#allocation16 + $0x1b8] sm:$0xff]  }
0x21cb   :  { %v15916_v59 = vadd.f32 %v15915_v33, %v28044_v32  ;;  %v16029_v57 = vadd.f32 %v16028_v22, %v28048_v3  ;;  %17456 = vmatprep.mubr.f32.mxu0 %v16746_v62  ;;  %17561 = vmatprep.mubr.f32.mxu1 %v16748_v1  ;;  %v20213_v62 = vld [vmem:[#allocation16 + $0x240] sm:$0xff]  }
0x21cc   :  { %17457 = vmatmul.mubr.f32.vlgmr.msra.gmra.mrb[114].mxu0 %v16745_v54  ;;  %17562 = vmatmul.mubr.f32.vlgmr.msra.gmra.mrb[94].mxu1 %v16747_v23  ;;  %v16761_v20 = vmax.f32 %v15914_v25, 0.0  ;;  %v16763_v24 = vmax.f32 %v16027_v30, 0.0  ;;  %v20229_v1 = vld [vmem:[#allocation16 + $0x2c0] sm:$0xff]  }
0x21cd   :  { %v16762_v29 = vmax.f32 %v15916_v59, 0.0  ;;  %v16764_v31 = vmax.f32 %v16029_v57, 0.0  ;;  %23580 = vmatpush3.bf16.msra.mxu0 %v20173_v5  ;;  %23612 = vmatpush3.bf16.msra.mxu1 %v20189_v15 }
0x21ce   :  { %23582 = vmatprep.subr.bf16.mxu0 %v20182_v39  ;;  %23614 = vmatprep.subr.bf16.mxu1 %v20198_v27 }
0x21cf   :  { %17461 = vmatprep.mubr.f32.mxu0 %v16762_v29  ;;  %17566 = vmatprep.mubr.f32.mxu1 %v16764_v31 }
0x21d0   :  { %17462 = vmatmul.mubr.f32.gmra.mrb[116].mxu0 %v16761_v20  ;;  %17567 = vmatmul.mubr.f32.gmra.mrb[96].mxu1 %v16763_v24 }
0x21d1   :  { %23584 = vmatpush3.bf16.msra.mxu0 %v20174_v63  ;;  %23616 = vmatpush3.bf16.msra.mxu1 %v20190_v52 }
0x21d2   :  { %23586 = vmatprep.subr.bf16.mxu0 %v20183_v18  ;;  %23618 = vmatprep.subr.bf16.mxu1 %v20199_v14 }
0x21d5   :  { %23588 = vmatpush3.bf16.msra.mxu0 %v20175_v19  ;;  %23620 = vmatpush3.bf16.msra.mxu1 %v20191_v11 }
0x21d6   :  { %23590 = vmatprep.subr.bf16.mxu0 %v20184_v53  ;;  %23622 = vmatprep.subr.bf16.mxu1 %v20200_v37 }
0x21d9   :  { %23592 = vmatpush3.bf16.msra.mxu0 %v20176_v34  ;;  %23624 = vmatpush3.bf16.msra.mxu1 %v20192_v56 }
0x21da   :  { %23594 = vmatprep.subr.bf16.mxu0 %v20185_v49  ;;  %23626 = vmatprep.subr.bf16.mxu1 %v20201_v16 }
0x21dd   :  { %23596 = vmatpush3.bf16.msra.mxu0 %v20177_v50  ;;  %23628 = vmatpush3.bf16.msra.mxu1 %v20193_v13 }
0x21de   :  { %23598 = vmatprep.subr.bf16.mxu0 %v20186_v35  ;;  %23630 = vmatprep.subr.bf16.mxu1 %v20202_v51 }
0x21e1   :  { %23600 = vmatpush3.bf16.msra.mxu0 %v20178_v41  ;;  %23632 = vmatpush3.bf16.msra.mxu1 %v20194_v0 }
0x21e2   :  { %23602 = vmatprep.subr.bf16.mxu0 %v20187_v43  ;;  %23634 = vmatprep.subr.bf16.mxu1 %v20203_v38 }
0x21e5   :  { %23604 = vmatpush3.bf16.msra.mxu0 %v20179_v9  ;;  %23636 = vmatpush3.bf16.msra.mxu1 %v20195_v47 }
0x21e6   :  { %23606 = vmatprep.subr.bf16.mxu0 %v20188_v7  ;;  %23638 = vmatprep.subr.bf16.mxu1 %v20204_v44 }
0x21e9   :  { %23608 = vmatpush3.bf16.msra.mxu0 %v20180_v2  ;;  %23640 = vmatpush3.bf16.msra.mxu1 %v20196_v28 }
0x21ea   :  { %23642 = vmatprep.subr.bf16.mxu0 %v20213_v62  ;;  %23674 = vmatprep.subr.bf16.mxu1 %v20229_v1 }
0x21fa   :  { %v15919_v48 = vpop.f32.mrb[54].mxu0  ;;  %v16032_v8 = vpop.f32.mrb[34].mxu1 }
0x21fb   :  { %v15920_v54 = vadd.f32 %v15919_v48, %v28036_v61  ;;  %v16033_v23 = vadd.f32 %v16032_v8, %v28040_v10  ;;  %v15921_v25 = vpop.f32.mrb[55].mxu0  ;;  %v16034_v30 = vpop.f32.mrb[35].mxu1 }
0x21fc   :  { %v15922_v33 = vadd.f32 %v15921_v25, %v28044_v32  ;;  %v16035_v22 = vadd.f32 %v16034_v30, %v28048_v3 }
0x21fd   :  { %v16777_v39 = vmax.f32 %v15920_v54, 0.0  ;;  %v16779_v27 = vmax.f32 %v16033_v23, 0.0 }
0x21fe   :  { %v16778_v5 = vmax.f32 %v15922_v33, 0.0  ;;  %v16780_v15 = vmax.f32 %v16035_v22, 0.0  ;;  %v15925_v59 = vpop.f32.mrb[56].mxu0  ;;  %v16038_v57 = vpop.f32.mrb[36].mxu1 }
0x21ff   :  { %v15926_v29 = vadd.f32 %v15925_v59, %v28036_v61  ;;  %v16039_v31 = vadd.f32 %v16038_v57, %v28040_v10  ;;  %v15927_v20 = vpop.f32.mrb[57].mxu0  ;;  %v16040_v24 = vpop.f32.mrb[37].mxu1  ;;  %v28482_v59 = vld [vmem:[#allocation26_spill] sm:$0xff] }
0x2200   :  { %v15928_v63 = vadd.f32 %v15927_v20, %v28044_v32  ;;  %v16041_v52 = vadd.f32 %v16040_v24, %v28048_v3  ;;  %17466 = vmatprep.mubr.f32.mxu0 %v16778_v5  ;;  %17571 = vmatprep.mubr.f32.mxu1 %v16780_v15  ;;  %v28080_v57 = vrot.slane %v28032_v26, %v28482_v59  ;;  %v28483_v20 = vld [vmem:[#allocation24_spill] sm:$0xff] }
0x2201   :  { %17467 = vmatmul.mubr.f32.gmra.mrb[118].mxu0 %v16777_v39  ;;  %17572 = vmatmul.mubr.f32.gmra.mrb[98].mxu1 %v16779_v27  ;;  %v16793_v19 = vmax.f32 %v15926_v29, 0.0  ;;  %v16795_v11 = vmax.f32 %v16039_v31, 0.0  ;;  %v28084_v24 = vrot.slane %v28032_v26, %v28483_v20 }
0x2202   :  { %v16794_v18 = vmax.f32 %v15928_v63, 0.0  ;;  %v16796_v14 = vmax.f32 %v16041_v52, 0.0  ;;  %v28484_v63 = vld [vmem:[#allocation27_spill] sm:$0xff] }
0x2203   :  { %v15931_v53 = vpop.f32.mrb[58].mxu0  ;;  %v16044_v37 = vpop.f32.mrb[38].mxu1  ;;  %v28088_v52 = vrot.slane %v28032_v26, %v28484_v63 }
0x2204   :  { %v15932_v34 = vadd.f32 %v15931_v53, %v28036_v61  ;;  %v16045_v56 = vadd.f32 %v16044_v37, %v28040_v10  ;;  %v15933_v49 = vpop.f32.mrb[59].mxu0  ;;  %v16046_v16 = vpop.f32.mrb[39].mxu1  ;;  %17471 = vmatprep.mubr.f32.mxu0 %v16794_v18  ;;  %17576 = vmatprep.mubr.f32.mxu1 %v16796_v14 }
0x2205   :  { %v15934_v50 = vadd.f32 %v15933_v49, %v28044_v32  ;;  %v16047_v13 = vadd.f32 %v16046_v16, %v28048_v3  ;;  %17472 = vmatmul.mubr.f32.gmra.mrb[120].mxu0 %v16793_v19  ;;  %17577 = vmatmul.mubr.f32.gmra.mrb[100].mxu1 %v16795_v11  ;;  %v28485_v49 = vld [vmem:[#allocation25_spill] sm:$0xff] }
0x2206   :  { %v16809_v43 = vmax.f32 %v15932_v34, 0.0  ;;  %v16811_v38 = vmax.f32 %v16045_v56, 0.0  ;;  %v28096_v16 = vrot.slane %v28032_v26, %v28485_v49 }
0x2207   :  { %v16810_v35 = vmax.f32 %v15934_v50, 0.0  ;;  %v16812_v51 = vmax.f32 %v16047_v13, 0.0  ;;  %v15937_v41 = vpop.f32.mrb[60].mxu0  ;;  %v16050_v0 = vpop.f32.mrb[40].mxu1 }
0x2208   :  { %v15938_v9 = vadd.f32 %v15937_v41, %v28036_v61  ;;  %v16051_v47 = vadd.f32 %v16050_v0, %v28040_v10  ;;  %v15939_v7 = vpop.f32.mrb[61].mxu0  ;;  %v16052_v44 = vpop.f32.mrb[41].mxu1 }
0x2209   :  { %v15940_v2 = vadd.f32 %v15939_v7, %v28044_v32  ;;  %v16053_v28 = vadd.f32 %v16052_v44, %v28048_v3  ;;  %17476 = vmatprep.mubr.f32.mxu0 %v16810_v35  ;;  %17581 = vmatprep.mubr.f32.mxu1 %v16812_v51 }
0x220a   :  { %17477 = vmatmul.mubr.f32.gmra.mrb[122].mxu0 %v16809_v43  ;;  %17582 = vmatmul.mubr.f32.gmra.mrb[102].mxu1 %v16811_v38  ;;  %v16825_v54 = vmax.f32 %v15938_v9, 0.0  ;;  %v16827_v23 = vmax.f32 %v16051_v47, 0.0 }
0x220b   :  { %v16826_v62 = vmax.f32 %v15940_v2, 0.0  ;;  %v16828_v1 = vmax.f32 %v16053_v28, 0.0  ;;  %v15943_v48 = vpop.f32.mrb[62].mxu0  ;;  %v16056_v8 = vpop.f32.mrb[42].mxu1 }
0x220c   :  { %v15944_v25 = vadd.f32 %v15943_v48, %v28036_v61  ;;  %v16057_v30 = vadd.f32 %v16056_v8, %v28040_v10  ;;  %v15945_v33 = vpop.f32.mrb[63].mxu0  ;;  %v16058_v22 = vpop.f32.mrb[43].mxu1  ;;  %v20205_v8 = vld [vmem:[#allocation16 + $0x200] sm:$0xff]  }
0x220d   :  { %v15946_v5 = vadd.f32 %v15945_v33, %v28044_v32  ;;  %v16059_v15 = vadd.f32 %v16058_v22, %v28048_v3  ;;  %17481 = vmatprep.mubr.f32.mxu0 %v16826_v62  ;;  %17586 = vmatprep.mubr.f32.mxu1 %v16828_v1  ;;  %v20230_v33 = vld [vmem:[#allocation16 + $0x2c8] sm:$0xff]  }
0x220e   :  { %17482 = vmatmul.mubr.f32.gmra.mrb[124].mxu0 %v16825_v54  ;;  %17587 = vmatmul.mubr.f32.gmra.mrb[104].mxu1 %v16827_v23  ;;  %v16841_v18 = vmax.f32 %v15944_v25, 0.0  ;;  %v16843_v14 = vmax.f32 %v16057_v30, 0.0  ;;  %v20221_v54 = vld [vmem:[#allocation16 + $0x280] sm:$0xff]   ;;  %v20214_v30 = vld [vmem:[#allocation16 + $0x248] sm:$0xff]  }
0x220f   :  { %v16842_v39 = vmax.f32 %v15946_v5, 0.0  ;;  %v16844_v27 = vmax.f32 %v16059_v15, 0.0  ;;  %v15949_v29 = vpop.f32.mrb[64].mxu0  ;;  %v16062_v31 = vpop.f32.mrb[44].mxu1 }
0x2210   :  { %v15950_v19 = vadd.f32 %v15949_v29, %v28036_v61  ;;  %v16063_v11 = vadd.f32 %v16062_v31, %v28040_v10  ;;  %v15951_v53 = vpop.f32.mrb[65].mxu0  ;;  %v16064_v37 = vpop.f32.mrb[45].mxu1 }
0x2211   :  { %v15952_v34 = vadd.f32 %v15951_v53, %v28044_v32  ;;  %v16065_v56 = vadd.f32 %v16064_v37, %v28048_v3  ;;  %17486 = vmatprep.mubr.f32.mxu0 %v16842_v39  ;;  %17591 = vmatprep.mubr.f32.mxu1 %v16844_v27  ;;  %v20222_v53 = vld [vmem:[#allocation16 + $0x288] sm:$0xff]  }
0x2212   :  { %17487 = vmatmul.mubr.f32.gmra.mrb[126].mxu0 %v16841_v18  ;;  %17592 = vmatmul.mubr.f32.gmra.mrb[106].mxu1 %v16843_v14  ;;  %v16857_v51 = vmax.f32 %v15950_v19, 0.0  ;;  %v16859_v10 = vmax.f32 %v16063_v11, 0.0  ;;  %v20206_v11 = vld [vmem:[#allocation16 + $0x208] sm:$0xff]  }
0x2213   :  { %v16858_v50 = vmax.f32 %v15952_v34, 0.0  ;;  %v16860_v13 = vmax.f32 %v16065_v56, 0.0  ;;  %v16133_v35 = vpop.f32.mrb[66].mxu0  ;;  %v16246_v61 = vpop.f32.mrb[46].mxu1  ;;  %v20215_v56 = vld [vmem:[#allocation16 + $0x250] sm:$0xff]  }
0x2214   :  { %v16134_v41 = vadd.f32 %v16133_v35, %v28080_v57  ;;  %v16247_v32 = vadd.f32 %v16246_v61, %v28084_v24  ;;  %v16135_v0 = vpop.f32.mrb[67].mxu0  ;;  %v16248_v3 = vpop.f32.mrb[47].mxu1 }
0x2215   :  { %v16136_v43 = vadd.f32 %v16135_v0, %v28088_v52  ;;  %v16249_v38 = vadd.f32 %v16248_v3, %v28096_v16  ;;  %17491 = vmatprep.mubr.f32.mxu0 %v16858_v50  ;;  %17596 = vmatprep.mubr.f32.mxu1 %v16860_v13  ;;  %v20231_v50 = vld [vmem:[#allocation16 + $0x2d0] sm:$0xff]  }
0x2216   :  { %17492 = vmatmul.mubr.f32.gmra.mrb[128].mxu0 %v16857_v51  ;;  %17597 = vmatmul.mubr.f32.gmra.mrb[108].mxu1 %v16859_v10  ;;  %v16749_v44 = vmax.f32 %v16134_v41, 0.0  ;;  %v16751_v2 = vmax.f32 %v16247_v32, 0.0 }
0x2217   :  { %v16750_v26 = vmax.f32 %v16136_v43, 0.0  ;;  %v16752_v9 = vmax.f32 %v16249_v38, 0.0  ;;  %v16139_v47 = vpop.f32.mrb[68].mxu0  ;;  %v16252_v7 = vpop.f32.mrb[48].mxu1  ;;  %v20207_v38 = vld [vmem:[#allocation16 + $0x210] sm:$0xff]  }
0x2218   :  { %v16140_v28 = vadd.f32 %v16139_v47, %v28080_v57  ;;  %v16253_v62 = vadd.f32 %v16252_v7, %v28084_v24  ;;  %v16141_v1 = vpop.f32.mrb[69].mxu0  ;;  %v16254_v48 = vpop.f32.mrb[49].mxu1  ;;  %v20216_v7 = vld [vmem:[#allocation16 + $0x258] sm:$0xff]  }
0x2219   :  { %v16142_v23 = vadd.f32 %v16141_v1, %v28088_v52  ;;  %v16255_v25 = vadd.f32 %v16254_v48, %v28096_v16  ;;  %17666 = vmatprep.mubr.f32.mxu0 %v16750_v26  ;;  %17771 = vmatprep.mubr.f32.mxu1 %v16752_v9  ;;  %v20223_v26 = vld [vmem:[#allocation16 + $0x290] sm:$0xff]  }
0x221a   :  { %17667 = vmatmul.mubr.f32.vlgmr.msra.gmra.mrb[130].mxu0 %v16749_v44  ;;  %17772 = vmatmul.mubr.f32.vlgmr.msra.gmra.mrb[110].mxu1 %v16751_v2  ;;  %v16765_v27 = vmax.f32 %v16140_v28, 0.0  ;;  %v16767_v29 = vmax.f32 %v16253_v62, 0.0  ;;  %v20232_v44 = vld [vmem:[#allocation16 + $0x2d8] sm:$0xff]  }
0x221b   :  { %v16766_v22 = vmax.f32 %v16142_v23, 0.0  ;;  %v16768_v5 = vmax.f32 %v16255_v25, 0.0  ;;  %v16145_v15 = vpop.f32.mrb[70].mxu0  ;;  %v16258_v39 = vpop.f32.mrb[50].mxu1  ;;  %23644 = vmatpush3.bf16.msra.mxu0 %v20205_v8  ;;  %23676 = vmatpush3.bf16.msra.mxu1 %v20221_v54 }
0x221c   :  { %v16146_v31 = vadd.f32 %v16145_v15, %v28080_v57  ;;  %v16259_v18 = vadd.f32 %v16258_v39, %v28084_v24  ;;  %v16147_v14 = vpop.f32.mrb[71].mxu0  ;;  %v16260_v19 = vpop.f32.mrb[51].mxu1  ;;  %23646 = vmatprep.subr.bf16.mxu0 %v20214_v30  ;;  %23678 = vmatprep.subr.bf16.mxu1 %v20230_v33  ;;  %v20208_v33 = vld [vmem:[#allocation16 + $0x218] sm:$0xff]   ;;  %v20217_v39 = vld [vmem:[#allocation16 + $0x260] sm:$0xff]  }
0x221d   :  { %v16148_v37 = vadd.f32 %v16147_v14, %v28088_v52  ;;  %v16261_v34 = vadd.f32 %v16260_v19, %v28096_v16  ;;  %17671 = vmatprep.mubr.f32.mxu0 %v16766_v22  ;;  %17776 = vmatprep.mubr.f32.mxu1 %v16768_v5  ;;  %v20224_v22 = vld [vmem:[#allocation16 + $0x298] sm:$0xff]  }
0x221e   :  { %17672 = vmatmul.mubr.f32.gmra.mrb[132].mxu0 %v16765_v27  ;;  %17777 = vmatmul.mubr.f32.gmra.mrb[112].mxu1 %v16767_v29  ;;  %v16781_v10 = vmax.f32 %v16146_v31, 0.0  ;;  %v16783_v41 = vmax.f32 %v16259_v18, 0.0  ;;  %v20233_v27 = vld [vmem:[#allocation16 + $0x2e0] sm:$0xff]  }
0x221f   :  { %v16782_v13 = vmax.f32 %v16148_v37, 0.0  ;;  %v16784_v35 = vmax.f32 %v16261_v34, 0.0  ;;  %v16151_v61 = vpop.f32.mrb[72].mxu0  ;;  %v16264_v51 = vpop.f32.mrb[52].mxu1  ;;  %23648 = vmatpush3.bf16.msra.mxu0 %v20206_v11  ;;  %23680 = vmatpush3.bf16.msra.mxu1 %v20222_v53 }
0x2220   :  { %v16152_v32 = vadd.f32 %v16151_v61, %v28080_v57  ;;  %v16265_v0 = vadd.f32 %v16264_v51, %v28084_v24  ;;  %v16153_v3 = vpop.f32.mrb[73].mxu0  ;;  %v16266_v43 = vpop.f32.mrb[53].mxu1  ;;  %23650 = vmatprep.subr.bf16.mxu0 %v20215_v56  ;;  %23682 = vmatprep.subr.bf16.mxu1 %v20231_v50  ;;  %v20209_v50 = vld [vmem:[#allocation16 + $0x220] sm:$0xff]   ;;  %v20218_v51 = vld [vmem:[#allocation16 + $0x268] sm:$0xff]  }
0x2221   :  { %v16154_v9 = vadd.f32 %v16153_v3, %v28088_v52  ;;  %v16267_v47 = vadd.f32 %v16266_v43, %v28096_v16  ;;  %17676 = vmatprep.mubr.f32.mxu0 %v16782_v13  ;;  %17781 = vmatprep.mubr.f32.mxu1 %v16784_v35  ;;  %v20225_v13 = vld [vmem:[#allocation16 + $0x2a0] sm:$0xff]   ;;  %v28122_v43 = vld [vmem:[#allocation2 + $0x2b] sm:$0xff] }
0x2222   :  { %17677 = vmatmul.mubr.f32.gmra.mrb[134].mxu0 %v16781_v10  ;;  %17782 = vmatmul.mubr.f32.gmra.mrb[114].mxu1 %v16783_v41  ;;  %v16797_v48 = vmax.f32 %v16152_v32, 0.0  ;;  %v16799_v8 = vmax.f32 %v16265_v0, 0.0  ;;  %v20234_v10 = vld [vmem:[#allocation16 + $0x2e8] sm:$0xff]  }
0x2223   :  { %v16798_v2 = vmax.f32 %v16154_v9, 0.0  ;;  %v16800_v28 = vmax.f32 %v16267_v47, 0.0  ;;  %v16157_v62 = vpop.f32.mrb[74].mxu0  ;;  %v16270_v1 = vpop.f32.mrb[54].mxu1  ;;  %23652 = vmatpush3.bf16.msra.mxu0 %v20207_v38  ;;  %23684 = vmatpush3.bf16.msra.mxu1 %v20223_v26 }
0x2224   :  { %v16158_v54 = vadd.f32 %v16157_v62, %v28080_v57  ;;  %v16271_v23 = vadd.f32 %v16270_v1, %v28084_v24  ;;  %v16159_v25 = vpop.f32.mrb[75].mxu0  ;;  %v16272_v30 = vpop.f32.mrb[55].mxu1  ;;  %23654 = vmatprep.subr.bf16.mxu0 %v20216_v7  ;;  %23686 = vmatprep.subr.bf16.mxu1 %v20232_v44 }
0x2225   :  { %v16160_v5 = vadd.f32 %v16159_v25, %v28088_v52  ;;  %v16273_v15 = vadd.f32 %v16272_v30, %v28096_v16  ;;  %17681 = vmatprep.mubr.f32.mxu0 %v16798_v2  ;;  %17786 = vmatprep.mubr.f32.mxu1 %v16800_v28  ;;  %v20210_v2 = vld [vmem:[#allocation16 + $0x228] sm:$0xff]  }
0x2226   :  { %17682 = vmatmul.mubr.f32.gmra.mrb[136].mxu0 %v16797_v48  ;;  %17787 = vmatmul.mubr.f32.gmra.mrb[116].mxu1 %v16799_v8  ;;  %v16813_v19 = vmax.f32 %v16158_v54, 0.0  ;;  %v16815_v11 = vmax.f32 %v16271_v23, 0.0  ;;  %v20226_v28 = vld [vmem:[#allocation16 + $0x2a8] sm:$0xff]   ;;  %v20219_v48 = vld [vmem:[#allocation16 + $0x270] sm:$0xff]   ;;  %v28130_v54 = vrot.slane %v28122_v43, %v28478_v17 }
0x2227   :  { %v16814_v29 = vmax.f32 %v16160_v5, 0.0  ;;  %v16816_v31 = vmax.f32 %v16273_v15, 0.0  ;;  %v16163_v18 = vpop.f32.mrb[76].mxu0  ;;  %v16276_v14 = vpop.f32.mrb[56].mxu1  ;;  %23656 = vmatpush3.bf16.msra.mxu0 %v20208_v33  ;;  %23688 = vmatpush3.bf16.msra.mxu1 %v20224_v22  ;;  %v20235_v8 = vld [vmem:[#allocation16 + $0x2f0] sm:$0xff]   ;;  %v28134_v22 = vrot.slane %v28122_v43, %v28479_v40  ;;  %v28138_v5 = vrot.slane %v28122_v43, %v28480_v45 }
0x2228   :  { %v16164_v53 = vadd.f32 %v16163_v18, %v28080_v57  ;;  %v16277_v37 = vadd.f32 %v16276_v14, %v28084_v24  ;;  %v16165_v34 = vpop.f32.mrb[77].mxu0  ;;  %v16278_v56 = vpop.f32.mrb[57].mxu1  ;;  %23658 = vmatprep.subr.bf16.mxu0 %v20217_v39  ;;  %23690 = vmatprep.subr.bf16.mxu1 %v20233_v27  ;;  %v20211_v18 = vld [vmem:[#allocation16 + $0x230] sm:$0xff]   ;;  %v28146_v45 = vrot.slane %v28122_v43, %v28481_v60  ;;  %v20212_v60 = vld [vmem:[#allocation16 + $0x238] sm:$0xff]  }
0x2229   :  { %v16166_v35 = vadd.f32 %v16165_v34, %v28088_v52  ;;  %v16279_v61 = vadd.f32 %v16278_v56, %v28096_v16  ;;  %17686 = vmatprep.mubr.f32.mxu0 %v16814_v29  ;;  %17791 = vmatprep.mubr.f32.mxu1 %v16816_v31  ;;  %v20227_v14 = vld [vmem:[#allocation16 + $0x2b0] sm:$0xff]  }
0x222a   :  { %17687 = vmatmul.mubr.f32.gmra.mrb[138].mxu0 %v16813_v19  ;;  %17792 = vmatmul.mubr.f32.gmra.mrb[118].mxu1 %v16815_v11  ;;  %v16829_v38 = vmax.f32 %v16164_v53, 0.0  ;;  %v16831_v26 = vmax.f32 %v16277_v37, 0.0  ;;  %v20220_v11 = vld [vmem:[#allocation16 + $0x278] sm:$0xff]  }
0x222b   :  { %v16830_v41 = vmax.f32 %v16166_v35, 0.0  ;;  %v16832_v32 = vmax.f32 %v16279_v61, 0.0  ;;  %v16169_v0 = vpop.f32.mrb[78].mxu0  ;;  %v16282_v3 = vpop.f32.mrb[58].mxu1  ;;  %23660 = vmatpush3.bf16.msra.mxu0 %v20209_v50  ;;  %23692 = vmatpush3.bf16.msra.mxu1 %v20225_v13  ;;  %v20228_v61 = vld [vmem:[#allocation16 + $0x2b8] sm:$0xff]  }
0x222c   :  { %v16170_v9 = vadd.f32 %v16169_v0, %v28080_v57  ;;  %v16283_v47 = vadd.f32 %v16282_v3, %v28084_v24  ;;  %v16171_v7 = vpop.f32.mrb[79].mxu0  ;;  %v16284_v44 = vpop.f32.mrb[59].mxu1  ;;  %23662 = vmatprep.subr.bf16.mxu0 %v20218_v51  ;;  %23694 = vmatprep.subr.bf16.mxu1 %v20234_v10 }
0x222d   :  { %v16172_v62 = vadd.f32 %v16171_v7, %v28088_v52  ;;  %v16285_v1 = vadd.f32 %v16284_v44, %v28096_v16  ;;  %17691 = vmatprep.mubr.f32.mxu0 %v16830_v41  ;;  %17796 = vmatprep.mubr.f32.mxu1 %v16832_v32  ;;  %v20245_v41 = vld [vmem:[#allocation16 + $0x340] sm:$0xff]  }
0x222e   :  { %17692 = vmatmul.mubr.f32.gmra.mrb[140].mxu0 %v16829_v38  ;;  %17797 = vmatmul.mubr.f32.gmra.mrb[120].mxu1 %v16831_v26  ;;  %v16845_v15 = vmax.f32 %v16170_v9, 0.0  ;;  %v16847_v39 = vmax.f32 %v16283_v47, 0.0  ;;  %v20261_v32 = vld [vmem:[#allocation16 + $0x3c0] sm:$0xff]  }
0x222f   :  { %v16846_v23 = vmax.f32 %v16172_v62, 0.0  ;;  %v16848_v25 = vmax.f32 %v16285_v1, 0.0  ;;  %v16175_v30 = vpop.f32.mrb[80].mxu0  ;;  %v16288_v33 = vpop.f32.mrb[60].mxu1  ;;  %23664 = vmatpush3.bf16.msra.mxu0 %v20210_v2  ;;  %23696 = vmatpush3.bf16.msra.mxu1 %v20226_v28  ;;  %v20237_v62 = vld [vmem:[#allocation16 + $0x300] sm:$0xff]  }
0x2230   :  { %v16176_v27 = vadd.f32 %v16175_v30, %v28080_v57  ;;  %v16289_v17 = vadd.f32 %v16288_v33, %v28084_v24  ;;  %v16177_v29 = vpop.f32.mrb[81].mxu0  ;;  %v16290_v31 = vpop.f32.mrb[61].mxu1  ;;  %23666 = vmatprep.subr.bf16.mxu0 %v20219_v48  ;;  %23698 = vmatprep.subr.bf16.mxu1 %v20235_v8  ;;  %v20236_v57 = vld [vmem:[#allocation16 + $0x2f8] sm:$0xff]   ;;  %v20253_v1 = vld [vmem:[#allocation16 + $0x380] sm:$0xff]  }
0x2231   :  { %v16178_v19 = vadd.f32 %v16177_v29, %v28088_v52  ;;  %v16291_v40 = vadd.f32 %v16290_v31, %v28096_v16  ;;  %17696 = vmatprep.mubr.f32.mxu0 %v16846_v23  ;;  %17801 = vmatprep.mubr.f32.mxu1 %v16848_v25  ;;  %v20246_v23 = vld [vmem:[#allocation16 + $0x348] sm:$0xff]  }
0x2232   :  { %17697 = vmatmul.mubr.f32.gmra.mrb[142].mxu0 %v16845_v15  ;;  %17802 = vmatmul.mubr.f32.gmra.mrb[122].mxu1 %v16847_v39  ;;  %v16861_v56 = vmax.f32 %v16176_v27, 0.0  ;;  %v16863_v52 = vmax.f32 %v16289_v17, 0.0  ;;  %v20262_v25 = vld [vmem:[#allocation16 + $0x3c8] sm:$0xff]  }
0x2233   :  { %v16862_v24 = vmax.f32 %v16178_v19, 0.0  ;;  %v16864_v53 = vmax.f32 %v16291_v40, 0.0  ;;  %v16359_v37 = vpop.f32.mrb[82].mxu0  ;;  %v16472_v34 = vpop.f32.mrb[62].mxu1  ;;  %23668 = vmatpush3.bf16.msra.mxu0 %v20211_v18  ;;  %23700 = vmatpush3.bf16.msra.mxu1 %v20227_v14  ;;  %v20238_v19 = vld [vmem:[#allocation16 + $0x308] sm:$0xff]  }
0x2234   :  { %v16360_v16 = vadd.f32 %v16359_v37, %v28130_v54  ;;  %v16473_v50 = vadd.f32 %v16472_v34, %v28134_v22  ;;  %v16361_v13 = vpop.f32.mrb[83].mxu0  ;;  %v16474_v35 = vpop.f32.mrb[63].mxu1  ;;  %23670 = vmatprep.subr.bf16.mxu0 %v20220_v11  ;;  %23702 = vmatprep.subr.bf16.mxu1 %v20236_v57  ;;  %v20254_v40 = vld [vmem:[#allocation16 + $0x388] sm:$0xff]  }
0x2235   :  { %v16362_v51 = vadd.f32 %v16361_v13, %v28138_v5  ;;  %v16475_v10 = vadd.f32 %v16474_v35, %v28146_v45  ;;  %17701 = vmatprep.mubr.f32.mxu0 %v16862_v24  ;;  %17806 = vmatprep.mubr.f32.mxu1 %v16864_v53  ;;  %v20247_v24 = vld [vmem:[#allocation16 + $0x350] sm:$0xff]  }
0x2236   :  { %17702 = vmatmul.mubr.f32.gmra.mrb[144].mxu0 %v16861_v56  ;;  %17807 = vmatmul.mubr.f32.gmra.mrb[124].mxu1 %v16863_v52  ;;  %v16753_v9 = vmax.f32 %v16360_v16, 0.0  ;;  %v16755_v47 = vmax.f32 %v16473_v50, 0.0  ;;  %v20263_v53 = vld [vmem:[#allocation16 + $0x3d0] sm:$0xff]  }
0x2237   :  { %v16754_v0 = vmax.f32 %v16362_v51, 0.0  ;;  %v16756_v3 = vmax.f32 %v16475_v10, 0.0  ;;  %v16365_v38 = vpop.f32.mrb[84].mxu0  ;;  %v16478_v26 = vpop.f32.mrb[64].mxu1  ;;  %23672 = vmatpush3.bf16.msra.mxu0 %v20212_v60  ;;  %23704 = vmatpush3.bf16.msra.mxu1 %v20228_v61  ;;  %v20239_v51 = vld [vmem:[#allocation16 + $0x310] sm:$0xff]  }
0x2238   :  { %v16366_v7 = vadd.f32 %v16365_v38, %v28130_v54  ;;  %v16479_v44 = vadd.f32 %v16478_v26, %v28134_v22  ;;  %v16367_v2 = vpop.f32.mrb[85].mxu0  ;;  %v16480_v28 = vpop.f32.mrb[65].mxu1  ;;  %23706 = vmatprep.subr.bf16.mxu0 %v20245_v41  ;;  %23738 = vmatprep.subr.bf16.mxu1 %v20261_v32  ;;  %v20255_v10 = vld [vmem:[#allocation16 + $0x390] sm:$0xff]  }
0x2239   :  { %v16368_v48 = vadd.f32 %v16367_v2, %v28138_v5  ;;  %v16481_v8 = vadd.f32 %v16480_v28, %v28146_v45  ;;  %17876 = vmatprep.mubr.f32.mxu0 %v16754_v0  ;;  %17981 = vmatprep.mubr.f32.mxu1 %v16756_v3  ;;  %v20248_v0 = vld [vmem:[#allocation16 + $0x358] sm:$0xff]  }
0x223a   :  { %17877 = vmatmul.mubr.f32.vlgmr.msra.gmra.mrb[146].mxu0 %v16753_v9  ;;  %17982 = vmatmul.mubr.f32.vlgmr.msra.gmra.mrb[126].mxu1 %v16755_v47  ;;  %v16769_v27 = vmax.f32 %v16366_v7, 0.0  ;;  %v16771_v17 = vmax.f32 %v16479_v44, 0.0  ;;  %v20264_v3 = vld [vmem:[#allocation16 + $0x3d8] sm:$0xff]  }
0x223b   :  { %v16770_v30 = vmax.f32 %v16368_v48, 0.0  ;;  %v16772_v33 = vmax.f32 %v16481_v8, 0.0  ;;  %v16371_v15 = vpop.f32.mrb[86].mxu0  ;;  %v16484_v39 = vpop.f32.mrb[66].mxu1  ;;  %23708 = vmatpush3.bf16.msra.mxu0 %v20237_v62  ;;  %23740 = vmatpush3.bf16.msra.mxu1 %v20253_v1  ;;  %v20240_v48 = vld [vmem:[#allocation16 + $0x318] sm:$0xff]  }
0x223c   :  { %v16372_v29 = vadd.f32 %v16371_v15, %v28130_v54  ;;  %v16485_v31 = vadd.f32 %v16484_v39, %v28134_v22  ;;  %v16373_v18 = vpop.f32.mrb[87].mxu0  ;;  %v16486_v14 = vpop.f32.mrb[67].mxu1  ;;  %23710 = vmatprep.subr.bf16.mxu0 %v20246_v23  ;;  %23742 = vmatprep.subr.bf16.mxu1 %v20262_v25  ;;  %v20256_v8 = vld [vmem:[#allocation16 + $0x398] sm:$0xff]  }
0x223d   :  { %v16374_v11 = vadd.f32 %v16373_v18, %v28138_v5  ;;  %v16487_v57 = vadd.f32 %v16486_v14, %v28146_v45  ;;  %17881 = vmatprep.mubr.f32.mxu0 %v16770_v30  ;;  %17986 = vmatprep.mubr.f32.mxu1 %v16772_v33  ;;  %v20249_v30 = vld [vmem:[#allocation16 + $0x360] sm:$0xff]  }
0x223e   :  { %17882 = vmatmul.mubr.f32.gmra.mrb[148].mxu0 %v16769_v27  ;;  %17987 = vmatmul.mubr.f32.gmra.mrb[128].mxu1 %v16771_v17  ;;  %v16785_v16 = vmax.f32 %v16372_v29, 0.0  ;;  %v16787_v50 = vmax.f32 %v16485_v31, 0.0  ;;  %v20265_v33 = vld [vmem:[#allocation16 + $0x3e0] sm:$0xff]  }
0x223f   :  { %v16786_v37 = vmax.f32 %v16374_v11, 0.0  ;;  %v16788_v34 = vmax.f32 %v16487_v57, 0.0  ;;  %v16377_v56 = vpop.f32.mrb[88].mxu0  ;;  %v16490_v52 = vpop.f32.mrb[68].mxu1  ;;  %23712 = vmatpush3.bf16.msra.mxu0 %v20238_v19  ;;  %23744 = vmatpush3.bf16.msra.mxu1 %v20254_v40  ;;  %v20241_v11 = vld [vmem:[#allocation16 + $0x320] sm:$0xff]  }
0x2240   :  { %v16378_v13 = vadd.f32 %v16377_v56, %v28130_v54  ;;  %v16491_v35 = vadd.f32 %v16490_v52, %v28134_v22  ;;  %v16379_v60 = vpop.f32.mrb[89].mxu0  ;;  %v16492_v61 = vpop.f32.mrb[69].mxu1  ;;  %23714 = vmatprep.subr.bf16.mxu0 %v20247_v24  ;;  %23746 = vmatprep.subr.bf16.mxu1 %v20263_v53  ;;  %v20257_v57 = vld [vmem:[#allocation16 + $0x3a0] sm:$0xff]  }
0x2241   :  { %v16380_v41 = vadd.f32 %v16379_v60, %v28138_v5  ;;  %v16493_v32 = vadd.f32 %v16492_v61, %v28146_v45  ;;  %17886 = vmatprep.mubr.f32.mxu0 %v16786_v37  ;;  %17991 = vmatprep.mubr.f32.mxu1 %v16788_v34  ;;  %v20250_v37 = vld [vmem:[#allocation16 + $0x368] sm:$0xff]  }
0x2242   :  { %17887 = vmatmul.mubr.f32.gmra.mrb[150].mxu0 %v16785_v16  ;;  %17992 = vmatmul.mubr.f32.gmra.mrb[130].mxu1 %v16787_v50  ;;  %v16801_v7 = vmax.f32 %v16378_v13, 0.0  ;;  %v16803_v44 = vmax.f32 %v16491_v35, 0.0  ;;  %v20266_v34 = vld [vmem:[#allocation16 + $0x3e8] sm:$0xff]  }
0x2243   :  { %v16802_v38 = vmax.f32 %v16380_v41, 0.0  ;;  %v16804_v26 = vmax.f32 %v16493_v32, 0.0  ;;  %v16383_v9 = vpop.f32.mrb[90].mxu0  ;;  %v16496_v47 = vpop.f32.mrb[70].mxu1  ;;  %23716 = vmatpush3.bf16.msra.mxu0 %v20239_v51  ;;  %23748 = vmatpush3.bf16.msra.mxu1 %v20255_v10  ;;  %v20242_v41 = vld [vmem:[#allocation16 + $0x328] sm:$0xff]  }
0x2244   :  { %v16384_v2 = vadd.f32 %v16383_v9, %v28130_v54  ;;  %v16497_v28 = vadd.f32 %v16496_v47, %v28134_v22  ;;  %v16385_v62 = vpop.f32.mrb[91].mxu0  ;;  %v16498_v1 = vpop.f32.mrb[71].mxu1  ;;  %23718 = vmatprep.subr.bf16.mxu0 %v20248_v0  ;;  %23750 = vmatprep.subr.bf16.mxu1 %v20264_v3  ;;  %v20258_v32 = vld [vmem:[#allocation16 + $0x3a8] sm:$0xff]   ;;  %v28178_v9 = vrot.slane %v28122_v43, %v28482_v59 }
0x2245   :  { %v16386_v23 = vadd.f32 %v16385_v62, %v28138_v5  ;;  %v16499_v25 = vadd.f32 %v16498_v1, %v28146_v45  ;;  %17891 = vmatprep.mubr.f32.mxu0 %v16802_v38  ;;  %17996 = vmatprep.mubr.f32.mxu1 %v16804_v26  ;;  %v20251_v38 = vld [vmem:[#allocation16 + $0x370] sm:$0xff]   ;;  %v28186_v62 = vrot.slane %v28122_v43, %v28484_v63 }
0x2246   :  { %17892 = vmatmul.mubr.f32.gmra.mrb[152].mxu0 %v16801_v7  ;;  %17997 = vmatmul.mubr.f32.gmra.mrb[132].mxu1 %v16803_v44  ;;  %v16817_v29 = vmax.f32 %v16384_v2, 0.0  ;;  %v16819_v31 = vmax.f32 %v16497_v28, 0.0  ;;  %v20267_v26 = vld [vmem:[#allocation16 + $0x3f0] sm:$0xff]   ;;  %v28182_v28 = vrot.slane %v28122_v43, %v28483_v20  ;;  %v28194_v63 = vrot.slane %v28122_v43, %v28485_v49  ;;  %v20244_v49 = vld [vmem:[#allocation16 + $0x338] sm:$0xff]  }
0x2247   :  { %v16818_v15 = vmax.f32 %v16386_v23, 0.0  ;;  %v16820_v39 = vmax.f32 %v16499_v25, 0.0  ;;  %v16389_v27 = vpop.f32.mrb[92].mxu0  ;;  %v16502_v17 = vpop.f32.mrb[72].mxu1  ;;  %23720 = vmatpush3.bf16.msra.mxu0 %v20240_v48  ;;  %23752 = vmatpush3.bf16.msra.mxu1 %v20256_v8  ;;  %v20260_v43 = vld [vmem:[#allocation16 + $0x3b8] sm:$0xff]  }
0x2248   :  { %v16390_v18 = vadd.f32 %v16389_v27, %v28130_v54  ;;  %v16503_v14 = vadd.f32 %v16502_v17, %v28134_v22  ;;  %v16391_v19 = vpop.f32.mrb[93].mxu0  ;;  %v16504_v40 = vpop.f32.mrb[73].mxu1  ;;  %23722 = vmatprep.subr.bf16.mxu0 %v20249_v30  ;;  %23754 = vmatprep.subr.bf16.mxu1 %v20265_v33  ;;  %v20243_v30 = vld [vmem:[#allocation16 + $0x330] sm:$0xff]  }
0x2249   :  { %v16392_v24 = vadd.f32 %v16391_v19, %v28138_v5  ;;  %v16505_v53 = vadd.f32 %v16504_v40, %v28146_v45  ;;  %17896 = vmatprep.mubr.f32.mxu0 %v16818_v15  ;;  %18001 = vmatprep.mubr.f32.mxu1 %v16820_v39  ;;  %v20259_v33 = vld [vmem:[#allocation16 + $0x3b0] sm:$0xff]   ;;  %v20252_v39 = vld [vmem:[#allocation16 + $0x378] sm:$0xff]  }
0x224a   :  { %17897 = vmatmul.mubr.f32.gmra.mrb[154].mxu0 %v16817_v29  ;;  %18002 = vmatmul.mubr.f32.gmra.mrb[134].mxu1 %v16819_v31  ;;  %v16833_v13 = vmax.f32 %v16390_v18, 0.0  ;;  %v16835_v35 = vmax.f32 %v16503_v14, 0.0 }
0x224b   :  { %v16834_v56 = vmax.f32 %v16392_v24, 0.0  ;;  %v16836_v52 = vmax.f32 %v16505_v53, 0.0  ;;  %v16395_v16 = vpop.f32.mrb[94].mxu0  ;;  %v16508_v50 = vpop.f32.mrb[74].mxu1  ;;  %23724 = vmatpush3.bf16.msra.mxu0 %v20241_v11  ;;  %23756 = vmatpush3.bf16.msra.mxu1 %v20257_v57 }
0x224c   :  { %v16396_v60 = vadd.f32 %v16395_v16, %v28130_v54  ;;  %v16509_v61 = vadd.f32 %v16508_v50, %v28134_v22  ;;  %v16397_v51 = vpop.f32.mrb[95].mxu0  ;;  %v16510_v10 = vpop.f32.mrb[75].mxu1  ;;  %23726 = vmatprep.subr.bf16.mxu0 %v20250_v37  ;;  %23758 = vmatprep.subr.bf16.mxu1 %v20266_v34 }
0x224d   :  { %v16398_v0 = vadd.f32 %v16397_v51, %v28138_v5  ;;  %v16511_v3 = vadd.f32 %v16510_v10, %v28146_v45  ;;  %17901 = vmatprep.mubr.f32.mxu0 %v16834_v56  ;;  %18006 = vmatprep.mubr.f32.mxu1 %v16836_v52 }
0x224e   :  { %17902 = vmatmul.mubr.f32.gmra.mrb[156].mxu0 %v16833_v13  ;;  %18007 = vmatmul.mubr.f32.gmra.mrb[136].mxu1 %v16835_v35  ;;  %v16849_v1 = vmax.f32 %v16396_v60, 0.0  ;;  %v16851_v48 = vmax.f32 %v16509_v61, 0.0 }
0x224f   :  { %v16850_v47 = vmax.f32 %v16398_v0, 0.0  ;;  %v16852_v7 = vmax.f32 %v16511_v3, 0.0  ;;  %v16401_v44 = vpop.f32.mrb[96].mxu0  ;;  %v16514_v2 = vpop.f32.mrb[76].mxu1  ;;  %23728 = vmatpush3.bf16.msra.mxu0 %v20242_v41  ;;  %23760 = vmatpush3.bf16.msra.mxu1 %v20258_v32 }
0x2250   :  { %v16402_v8 = vadd.f32 %v16401_v44, %v28130_v54  ;;  %v16515_v59 = vadd.f32 %v16514_v2, %v28134_v22  ;;  %v16403_v23 = vpop.f32.mrb[97].mxu0  ;;  %v16516_v25 = vpop.f32.mrb[77].mxu1  ;;  %23730 = vmatprep.subr.bf16.mxu0 %v20251_v38  ;;  %23762 = vmatprep.subr.bf16.mxu1 %v20267_v26  ;;  %v20268_v54 = vld [vmem:[#allocation16 + $0x3f8] sm:$0xff]  }
0x2251   :  { %v16404_v15 = vadd.f32 %v16403_v23, %v28138_v5  ;;  %v16517_v20 = vadd.f32 %v16516_v25, %v28146_v45  ;;  %17906 = vmatprep.mubr.f32.mxu0 %v16850_v47  ;;  %18011 = vmatprep.mubr.f32.mxu1 %v16852_v7 }
0x2252   :  { %17907 = vmatmul.mubr.f32.gmra.mrb[158].mxu0 %v16849_v1  ;;  %18012 = vmatmul.mubr.f32.gmra.mrb[138].mxu1 %v16851_v48  ;;  %v16865_v31 = vmax.f32 %v16402_v8, 0.0  ;;  %v16867_v5 = vmax.f32 %v16515_v59, 0.0 }
0x2253   :  { %v16866_v22 = vmax.f32 %v16404_v15, 0.0  ;;  %v16868_v27 = vmax.f32 %v16517_v20, 0.0  ;;  %v16585_v17 = vpop.f32.mrb[98].mxu0  ;;  %v16698_v29 = vpop.f32.mrb[78].mxu1  ;;  %23732 = vmatpush3.bf16.msra.mxu0 %v20243_v30  ;;  %23764 = vmatpush3.bf16.msra.mxu1 %v20259_v33 }
0x2254   :  { %v16586_v45 = vadd.f32 %v16585_v17, %v28178_v9  ;;  %v16699_v18 = vadd.f32 %v16698_v29, %v28182_v28  ;;  %v16587_v14 = vpop.f32.mrb[99].mxu0  ;;  %v16700_v19 = vpop.f32.mrb[79].mxu1  ;;  %23734 = vmatprep.subr.bf16.mxu0 %v20252_v39  ;;  %23766 = vmatprep.subr.bf16.mxu1 %v20268_v54 }
0x2255   :  { %v16588_v40 = vadd.f32 %v16587_v14, %v28186_v62  ;;  %v16701_v11 = vadd.f32 %v16700_v19, %v28194_v63  ;;  %17911 = vmatprep.mubr.f32.mxu0 %v16866_v22  ;;  %18016 = vmatprep.mubr.f32.mxu1 %v16868_v27 }
0x2256   :  { %17912 = vmatmul.mubr.f32.gmra.mrb[160].mxu0 %v16865_v31  ;;  %18017 = vmatmul.mubr.f32.gmra.mrb[140].mxu1 %v16867_v5  ;;  %v16757_v34 = vmax.f32 %v16586_v45, 0.0  ;;  %v16759_v56 = vmax.f32 %v16699_v18, 0.0 }
0x2257   :  { %v16758_v57 = vmax.f32 %v16588_v40, 0.0  ;;  %v16760_v24 = vmax.f32 %v16701_v11, 0.0  ;;  %v16591_v53 = vpop.f32.mrb[100].mxu0  ;;  %v16704_v37 = vpop.f32.mrb[80].mxu1  ;;  %23736 = vmatpush3.bf16.msra.mxu0 %v20244_v49  ;;  %23768 = vmatpush3.bf16.msra.mxu1 %v20260_v43 }
0x2258   :  { %v16592_v52 = vadd.f32 %v16591_v53, %v28178_v9  ;;  %v16705_v16 = vadd.f32 %v16704_v37, %v28182_v28  ;;  %v16593_v50 = vpop.f32.mrb[101].mxu0  ;;  %v16706_v13 = vpop.f32.mrb[81].mxu1 }
0x2259   :  { %v16594_v35 = vadd.f32 %v16593_v50, %v28186_v62  ;;  %v16707_v60 = vadd.f32 %v16706_v13, %v28194_v63  ;;  %18086 = vmatprep.mubr.f32.mxu0 %v16758_v57  ;;  %18191 = vmatprep.mubr.f32.mxu1 %v16760_v24 }
0x225a   :  { %18087 = vmatmul.mubr.f32.vlgmr.msra.gmra.mrb[162].mxu0 %v16757_v34  ;;  %18192 = vmatmul.mubr.f32.vlgmr.msra.gmra.mrb[142].mxu1 %v16759_v56  ;;  %v16773_v32 = vmax.f32 %v16592_v52, 0.0  ;;  %v16775_v0 = vmax.f32 %v16705_v16, 0.0 }
0x225b   :  { %v16774_v61 = vmax.f32 %v16594_v35, 0.0  ;;  %v16776_v51 = vmax.f32 %v16707_v60, 0.0  ;;  %v16597_v10 = vpop.f32.mrb[102].mxu0  ;;  %v16710_v41 = vpop.f32.mrb[82].mxu1 }
0x225c   :  { %v16598_v3 = vadd.f32 %v16597_v10, %v28178_v9  ;;  %v16711_v38 = vadd.f32 %v16710_v41, %v28182_v28  ;;  %v16599_v26 = vpop.f32.mrb[103].mxu0  ;;  %v16712_v47 = vpop.f32.mrb[83].mxu1 }
0x225d   :  { %v16600_v7 = vadd.f32 %v16599_v26, %v28186_v62  ;;  %v16713_v44 = vadd.f32 %v16712_v47, %v28194_v63  ;;  %18091 = vmatprep.mubr.f32.mxu0 %v16774_v61  ;;  %18196 = vmatprep.mubr.f32.mxu1 %v16776_v51 }
0x225e   :  { %18092 = vmatmul.mubr.f32.gmra.mrb[164].mxu0 %v16773_v32  ;;  %18197 = vmatmul.mubr.f32.gmra.mrb[144].mxu1 %v16775_v0  ;;  %v16789_v59 = vmax.f32 %v16598_v3, 0.0  ;;  %v16791_v23 = vmax.f32 %v16711_v38, 0.0 }
0x225f   :  { %v16790_v2 = vmax.f32 %v16600_v7, 0.0  ;;  %v16792_v1 = vmax.f32 %v16713_v44, 0.0  ;;  %v16603_v48 = vpop.f32.mrb[104].mxu0  ;;  %v16716_v8 = vpop.f32.mrb[84].mxu1 }
0x2260   :  { %v16604_v25 = vadd.f32 %v16603_v48, %v28178_v9  ;;  %v16717_v30 = vadd.f32 %v16716_v8, %v28182_v28  ;;  %v16605_v33 = vpop.f32.mrb[105].mxu0  ;;  %v16718_v15 = vpop.f32.mrb[85].mxu1 }
0x2261   :  { %v16606_v20 = vadd.f32 %v16605_v33, %v28186_v62  ;;  %v16719_v39 = vadd.f32 %v16718_v15, %v28194_v63  ;;  %18096 = vmatprep.mubr.f32.mxu0 %v16790_v2  ;;  %18201 = vmatprep.mubr.f32.mxu1 %v16792_v1 }
0x2262   :  { %18097 = vmatmul.mubr.f32.gmra.mrb[166].mxu0 %v16789_v59  ;;  %18202 = vmatmul.mubr.f32.gmra.mrb[146].mxu1 %v16791_v23  ;;  %v16805_v29 = vmax.f32 %v16604_v25, 0.0  ;;  %v16807_v31 = vmax.f32 %v16717_v30, 0.0 }
0x2263   :  { %v16806_v54 = vmax.f32 %v16606_v20, 0.0  ;;  %v16808_v22 = vmax.f32 %v16719_v39, 0.0  ;;  %v16609_v27 = vpop.f32.mrb[106].mxu0  ;;  %v16722_v17 = vpop.f32.mrb[86].mxu1 }
0x2264   :  { %v16610_v5 = vadd.f32 %v16609_v27, %v28178_v9  ;;  %v16723_v45 = vadd.f32 %v16722_v17, %v28182_v28  ;;  %v16611_v18 = vpop.f32.mrb[107].mxu0  ;;  %v16724_v14 = vpop.f32.mrb[87].mxu1 }
0x2265   :  { %v16612_v19 = vadd.f32 %v16611_v18, %v28186_v62  ;;  %v16725_v49 = vadd.f32 %v16724_v14, %v28194_v63  ;;  %18101 = vmatprep.mubr.f32.mxu0 %v16806_v54  ;;  %18206 = vmatprep.mubr.f32.mxu1 %v16808_v22 }
0x2266   :  { %18102 = vmatmul.mubr.f32.gmra.mrb[168].mxu0 %v16805_v29  ;;  %18207 = vmatmul.mubr.f32.gmra.mrb[148].mxu1 %v16807_v31  ;;  %v16821_v24 = vmax.f32 %v16610_v5, 0.0  ;;  %v16823_v53 = vmax.f32 %v16723_v45, 0.0 }
0x2267   :  { %v16822_v43 = vmax.f32 %v16612_v19, 0.0  ;;  %v16824_v40 = vmax.f32 %v16725_v49, 0.0  ;;  %v16615_v11 = vpop.f32.mrb[108].mxu0  ;;  %v16728_v57 = vpop.f32.mrb[88].mxu1 }
0x2268   :  { %v16616_v37 = vadd.f32 %v16615_v11, %v28178_v9  ;;  %v16729_v34 = vadd.f32 %v16728_v57, %v28182_v28  ;;  %v16617_v56 = vpop.f32.mrb[109].mxu0  ;;  %v16730_v52 = vpop.f32.mrb[89].mxu1 }
0x2269   :  { %v16618_v16 = vadd.f32 %v16617_v56, %v28186_v62  ;;  %v16731_v50 = vadd.f32 %v16730_v52, %v28194_v63  ;;  %18106 = vmatprep.mubr.f32.mxu0 %v16822_v43  ;;  %18211 = vmatprep.mubr.f32.mxu1 %v16824_v40 }
0x226a   :  { %18107 = vmatmul.mubr.f32.gmra.mrb[170].mxu0 %v16821_v24  ;;  %18212 = vmatmul.mubr.f32.gmra.mrb[150].mxu1 %v16823_v53  ;;  %v16837_v51 = vmax.f32 %v16616_v37, 0.0  ;;  %v16839_v10 = vmax.f32 %v16729_v34, 0.0 }
0x226b   :  { %v16838_v13 = vmax.f32 %v16618_v16, 0.0  ;;  %v16840_v35 = vmax.f32 %v16731_v50, 0.0  ;;  %v16621_v60 = vpop.f32.mrb[110].mxu0  ;;  %v16734_v61 = vpop.f32.mrb[90].mxu1 }
0x226c   :  { %v16622_v41 = vadd.f32 %v16621_v60, %v28178_v9  ;;  %v16735_v32 = vadd.f32 %v16734_v61, %v28182_v28  ;;  %v16623_v0 = vpop.f32.mrb[111].mxu0  ;;  %v16736_v3 = vpop.f32.mrb[91].mxu1 }
0x226d   :  { %v16624_v38 = vadd.f32 %v16623_v0, %v28186_v62  ;;  %v16737_v26 = vadd.f32 %v16736_v3, %v28194_v63  ;;  %18111 = vmatprep.mubr.f32.mxu0 %v16838_v13  ;;  %18216 = vmatprep.mubr.f32.mxu1 %v16840_v35 }
0x226e   :  { %18112 = vmatmul.mubr.f32.gmra.mrb[172].mxu0 %v16837_v51  ;;  %18217 = vmatmul.mubr.f32.gmra.mrb[152].mxu1 %v16839_v10  ;;  %v16853_v1 = vmax.f32 %v16622_v41, 0.0  ;;  %v16855_v48 = vmax.f32 %v16735_v32, 0.0 }
0x226f   :  { %v16854_v47 = vmax.f32 %v16624_v38, 0.0  ;;  %v16856_v7 = vmax.f32 %v16737_v26, 0.0  ;;  %v16627_v44 = vpop.f32.mrb[112].mxu0  ;;  %v16740_v2 = vpop.f32.mrb[92].mxu1 }
0x2270   :  { %v16628_v8 = vadd.f32 %v16627_v44, %v28178_v9  ;;  %v16741_v59 = vadd.f32 %v16740_v2, %v28182_v28  ;;  %v16629_v23 = vpop.f32.mrb[113].mxu0  ;;  %v16742_v25 = vpop.f32.mrb[93].mxu1 }
0x2271   :  { %v16630_v30 = vadd.f32 %v16629_v23, %v28186_v62  ;;  %v16743_v33 = vadd.f32 %v16742_v25, %v28194_v63  ;;  %18116 = vmatprep.mubr.f32.mxu0 %v16854_v47  ;;  %18221 = vmatprep.mubr.f32.mxu1 %v16856_v7  ;;  %v18816_v62 = vld [vmem:[#allocation2 + $0x33] ss:$0 sm:$0xff] }
0x2272   :  { %18117 = vmatmul.mubr.f32.gmra.mrb[174].mxu0 %v16853_v1  ;;  %18222 = vmatmul.mubr.f32.gmra.mrb[154].mxu1 %v16855_v48  ;;  %v16869_v39 = vmax.f32 %v16628_v8, 0.0  ;;  %v16871_v54 = vmax.f32 %v16741_v59, 0.0 }
0x2273   :  { %v16870_v15 = vmax.f32 %v16630_v30, 0.0  ;;  %v16872_v20 = vmax.f32 %v16743_v33, 0.0 }
0x2275   :  { %18121 = vmatprep.mubr.f32.mxu0 %v16870_v15  ;;  %18226 = vmatprep.mubr.f32.mxu1 %v16872_v20 }
0x2276   :  { %18122 = vmatmul.mubr.f32.gmra.mrb[176].mxu0 %v16869_v39  ;;  %18227 = vmatmul.mubr.f32.gmra.mrb[156].mxu1 %v16871_v54 }
0x2277   :  { %22495 = vmatprep.mubr.msk.f32.mxu0 %vm24916_vm1, %v28433_v58 }
0x229f   :  { %v21145_v9 = vpop.f32.mrb[114].mxu0  ;;  %v21201_v28 = vpop.f32.mrb[94].mxu1 }
0x22a0   :  { %v21146_v22 = vpop.f32.mrb[115].mxu0  ;;  %v21202_v63 = vpop.f32.mrb[95].mxu1 }
0x22a1   :  { %v21147_v27 = vadd.f32 %v21146_v22, %v21145_v9  ;;  %v21203_v17 = vadd.f32 %v21202_v63, %v21201_v28 }
0x22a3   :  { %v17459_v29 = vadd.f32 %v21147_v27, %v18816_v62  ;;  %v21148_v31 = vpop.f32.mrb[116].mxu0  ;;  %v21204_v5 = vpop.f32.mrb[96].mxu1 }
0x22a4   :  { %v21149_v45 = vpop.f32.mrb[117].mxu0  ;;  %v21205_v18 = vpop.f32.mrb[97].mxu1 }
0x22a5   :  { %v17564_v14 = vadd.f32 %v21203_v17, %v17459_v29  ;;  %v21150_v19 = vadd.f32 %v21149_v45, %v21148_v31  ;;  %v21206_v49 = vadd.f32 %v21205_v18, %v21204_v5 }
0x22a7   :  { %v17464_v43 = vadd.f32 %v21150_v19, %v18816_v62 }
0x22a9   :  { %v28230_v40 = vadd.f32 %v21206_v49, %v17464_v43 }
0x22d4   :  { %v21151_v11 = vpop.f32.mrb[118].mxu0  ;;  %v21207_v57 = vpop.f32.mrb[98].mxu1 }
0x22d5   :  { %v21152_v24 = vpop.f32.mrb[119].mxu0  ;;  %v21208_v53 = vpop.f32.mrb[99].mxu1 }
0x22d6   :  { %v21153_v37 = vadd.f32 %v21152_v24, %v21151_v11  ;;  %v21209_v34 = vadd.f32 %v21208_v53, %v21207_v57 }
0x22d8   :  { %v17469_v56 = vadd.f32 %v21153_v37, %v18816_v62  ;;  %v21154_v52 = vpop.f32.mrb[120].mxu0  ;;  %v21210_v16 = vpop.f32.mrb[100].mxu1 }
0x22d9   :  { %v21155_v50 = vpop.f32.mrb[121].mxu0  ;;  %v21211_v13 = vpop.f32.mrb[101].mxu1 }
0x22da   :  { %v17574_v35 = vadd.f32 %v21209_v34, %v17469_v56  ;;  %v21156_v60 = vadd.f32 %v21155_v50, %v21154_v52  ;;  %v21212_v61 = vadd.f32 %v21211_v13, %v21210_v16 }
0x22dc   :  { %v17474_v51 = vadd.f32 %v21156_v60, %v18816_v62 }
0x22dd   :  { %v21157_v10 = vpop.f32.mrb[122].mxu0  ;;  %v21213_v41 = vpop.f32.mrb[102].mxu1 }
0x22de   :  { %v17579_v32 = vadd.f32 %v21212_v61, %v17474_v51  ;;  %v21158_v0 = vpop.f32.mrb[123].mxu0  ;;  %v21214_v3 = vpop.f32.mrb[103].mxu1 }
0x22df   :  { %v21159_v38 = vadd.f32 %v21158_v0, %v21157_v10  ;;  %v21215_v26 = vadd.f32 %v21214_v3, %v21213_v41 }
0x22e1   :  { %v17479_v47 = vadd.f32 %v21159_v38, %v18816_v62  ;;  %v21160_v7 = vpop.f32.mrb[124].mxu0  ;;  %v21216_v44 = vpop.f32.mrb[104].mxu1 }
0x22e2   :  { %v21161_v2 = vpop.f32.mrb[125].mxu0  ;;  %v21217_v1 = vpop.f32.mrb[105].mxu1 }
0x22e3   :  { %v17584_v48 = vadd.f32 %v21215_v26, %v17479_v47  ;;  %v21162_v8 = vadd.f32 %v21161_v2, %v21160_v7  ;;  %v21218_v59 = vadd.f32 %v21217_v1, %v21216_v44 }
0x22e5   :  { %v17484_v23 = vadd.f32 %v21162_v8, %v18816_v62  ;;  %v21163_v25 = vpop.f32.mrb[126].mxu0  ;;  %v21219_v30 = vpop.f32.mrb[106].mxu1 }
0x22e6   :  { %v21164_v33 = vpop.f32.mrb[127].mxu0  ;;  %v21220_v15 = vpop.f32.mrb[107].mxu1 }
0x22e7   :  { %v17589_v20 = vadd.f32 %v21218_v59, %v17484_v23  ;;  %v21165_v39 = vadd.f32 %v21164_v33, %v21163_v25  ;;  %v21221_v54 = vadd.f32 %v21220_v15, %v21219_v30 }
0x22e9   :  { %v17489_v9 = vadd.f32 %v21165_v39, %v18816_v62  ;;  %v21166_v28 = vpop.f32.mrb[128].mxu0  ;;  %v21222_v22 = vpop.f32.mrb[108].mxu1 }
0x22ea   :  { %v21167_v63 = vpop.f32.mrb[129].mxu0  ;;  %v21223_v27 = vpop.f32.mrb[109].mxu1 }
0x22eb   :  { %v17594_v17 = vadd.f32 %v21221_v54, %v17489_v9  ;;  %v21168_v29 = vadd.f32 %v21167_v63, %v21166_v28  ;;  %v21224_v31 = vadd.f32 %v21223_v27, %v21222_v22 }
0x22ed   :  { %v17494_v5 = vadd.f32 %v21168_v29, %v18816_v62  ;;  %v21257_v45 = vpop.f32.mrb[130].mxu0  ;;  %v21313_v18 = vpop.f32.mrb[110].mxu1 }
0x22ee   :  { %v21258_v19 = vpop.f32.mrb[131].mxu0  ;;  %v21314_v49 = vpop.f32.mrb[111].mxu1 }
0x22ef   :  { %v17599_v43 = vadd.f32 %v21224_v31, %v17494_v5  ;;  %v21259_v11 = vadd.f32 %v21258_v19, %v21257_v45  ;;  %v21315_v57 = vadd.f32 %v21314_v49, %v21313_v18 }
0x22f1   :  { %v17669_v24 = vadd.f32 %v21259_v11, %v17564_v14  ;;  %v21260_v53 = vpop.f32.mrb[132].mxu0  ;;  %v21316_v37 = vpop.f32.mrb[112].mxu1 }
0x22f2   :  { %v21261_v34 = vpop.f32.mrb[133].mxu0  ;;  %v21317_v56 = vpop.f32.mrb[113].mxu1 }
0x22f3   :  { %v17774_v52 = vadd.f32 %v21315_v57, %v17669_v24  ;;  %v21262_v16 = vadd.f32 %v21261_v34, %v21260_v53  ;;  %v21318_v50 = vadd.f32 %v21317_v56, %v21316_v37 }
0x22f5   :  { %v17674_v13 = vadd.f32 %v21262_v16, %v28230_v40  ;;  %v21263_v60 = vpop.f32.mrb[134].mxu0  ;;  %v21319_v61 = vpop.f32.mrb[114].mxu1 }
0x22f6   :  { %v21264_v62 = vpop.f32.mrb[135].mxu0  ;;  %v21320_v51 = vpop.f32.mrb[115].mxu1 }
0x22f7   :  { %v17779_v10 = vadd.f32 %v21318_v50, %v17674_v13  ;;  %v21265_v41 = vadd.f32 %v21264_v62, %v21263_v60  ;;  %v21321_v0 = vadd.f32 %v21320_v51, %v21319_v61 }
0x22f9   :  { %v17679_v3 = vadd.f32 %v21265_v41, %v17574_v35  ;;  %v21266_v38 = vpop.f32.mrb[136].mxu0  ;;  %v21322_v26 = vpop.f32.mrb[116].mxu1 }
0x22fa   :  { %v21267_v14 = vpop.f32.mrb[137].mxu0  ;;  %v21323_v47 = vpop.f32.mrb[117].mxu1 }
0x22fb   :  { %v17784_v7 = vadd.f32 %v21321_v0, %v17679_v3  ;;  %v21268_v44 = vadd.f32 %v21267_v14, %v21266_v38  ;;  %v21324_v2 = vadd.f32 %v21323_v47, %v21322_v26 }
0x22fd   :  { %v17684_v1 = vadd.f32 %v21268_v44, %v17579_v32  ;;  %v21269_v8 = vpop.f32.mrb[138].mxu0  ;;  %v21325_v59 = vpop.f32.mrb[118].mxu1 }
0x22fe   :  { %v21270_v23 = vpop.f32.mrb[139].mxu0  ;;  %v21326_v40 = vpop.f32.mrb[119].mxu1 }
0x22ff   :  { %v17789_v25 = vadd.f32 %v21324_v2, %v17684_v1  ;;  %v21271_v30 = vadd.f32 %v21270_v23, %v21269_v8  ;;  %v21327_v33 = vadd.f32 %v21326_v40, %v21325_v59 }
0x2301   :  { %v17689_v15 = vadd.f32 %v21271_v30, %v17584_v48  ;;  %v21272_v39 = vpop.f32.mrb[140].mxu0  ;;  %v21328_v54 = vpop.f32.mrb[120].mxu1 }
0x2302   :  { %v21273_v9 = vpop.f32.mrb[141].mxu0  ;;  %v21329_v35 = vpop.f32.mrb[121].mxu1 }
0x2303   :  { %v17794_v28 = vadd.f32 %v21327_v33, %v17689_v15  ;;  %v21274_v22 = vadd.f32 %v21273_v9, %v21272_v39  ;;  %v21330_v63 = vadd.f32 %v21329_v35, %v21328_v54 }
0x2305   :  { %v17694_v27 = vadd.f32 %v21274_v22, %v17589_v20  ;;  %v21275_v29 = vpop.f32.mrb[142].mxu0  ;;  %v21331_v31 = vpop.f32.mrb[122].mxu1 }
0x2306   :  { %v21276_v5 = vpop.f32.mrb[143].mxu0  ;;  %v21332_v32 = vpop.f32.mrb[123].mxu1 }
0x2307   :  { %v17799_v45 = vadd.f32 %v21330_v63, %v17694_v27  ;;  %v21277_v18 = vadd.f32 %v21276_v5, %v21275_v29  ;;  %v21333_v19 = vadd.f32 %v21332_v32, %v21331_v31 }
0x2309   :  { %v17699_v49 = vadd.f32 %v21277_v18, %v17594_v17  ;;  %v21278_v11 = vpop.f32.mrb[144].mxu0  ;;  %v21334_v57 = vpop.f32.mrb[124].mxu1 }
0x230a   :  { %v21279_v24 = vpop.f32.mrb[145].mxu0  ;;  %v21335_v48 = vpop.f32.mrb[125].mxu1 }
0x230b   :  { %v17804_v53 = vadd.f32 %v21333_v19, %v17699_v49  ;;  %v21280_v37 = vadd.f32 %v21279_v24, %v21278_v11  ;;  %v21336_v34 = vadd.f32 %v21335_v48, %v21334_v57 }
0x230d   :  { %v17704_v56 = vadd.f32 %v21280_v37, %v17599_v43  ;;  %v21369_v16 = vpop.f32.mrb[146].mxu0  ;;  %v21425_v50 = vpop.f32.mrb[126].mxu1 }
0x230e   :  { %v21370_v13 = vpop.f32.mrb[147].mxu0  ;;  %v21426_v20 = vpop.f32.mrb[127].mxu1 }
0x230f   :  { %v17809_v60 = vadd.f32 %v21336_v34, %v17704_v56  ;;  %v21371_v61 = vadd.f32 %v21370_v13, %v21369_v16  ;;  %v21427_v62 = vadd.f32 %v21426_v20, %v21425_v50 }
0x2311   :  { %v17879_v51 = vadd.f32 %v21371_v61, %v17774_v52  ;;  %v21372_v41 = vpop.f32.mrb[148].mxu0  ;;  %v21428_v0 = vpop.f32.mrb[128].mxu1 }
0x2312   :  { %v21373_v3 = vpop.f32.mrb[149].mxu0  ;;  %v21429_v17 = vpop.f32.mrb[129].mxu1 }
0x2313   :  { %v17984_v38 = vadd.f32 %v21427_v62, %v17879_v51  ;;  %v21374_v26 = vadd.f32 %v21373_v3, %v21372_v41  ;;  %v21430_v14 = vadd.f32 %v21429_v17, %v21428_v0 }
0x2315   :  { %v17884_v47 = vadd.f32 %v21374_v26, %v17779_v10  ;;  %v21375_v44 = vpop.f32.mrb[150].mxu0  ;;  %v21431_v2 = vpop.f32.mrb[130].mxu1 }
0x2316   :  { %v21376_v1 = vpop.f32.mrb[151].mxu0  ;;  %v21432_v43 = vpop.f32.mrb[131].mxu1 }
0x2317   :  { %v17989_v8 = vadd.f32 %v21430_v14, %v17884_v47  ;;  %v21377_v59 = vadd.f32 %v21376_v1, %v21375_v44  ;;  %v21433_v23 = vadd.f32 %v21432_v43, %v21431_v2 }
0x2319   :  { %v17889_v40 = vadd.f32 %v21377_v59, %v17784_v7  ;;  %v21378_v30 = vpop.f32.mrb[152].mxu0  ;;  %v21434_v33 = vpop.f32.mrb[132].mxu1 }
0x231a   :  { %v21379_v15 = vpop.f32.mrb[153].mxu0  ;;  %v21435_v52 = vpop.f32.mrb[133].mxu1 }
0x231b   :  { %v17994_v39 = vadd.f32 %v21433_v23, %v17889_v40  ;;  %v21380_v54 = vadd.f32 %v21379_v15, %v21378_v30  ;;  %v21436_v9 = vadd.f32 %v21435_v52, %v21434_v33 }
0x231d   :  { %v17894_v35 = vadd.f32 %v21380_v54, %v17789_v25  ;;  %v21381_v22 = vpop.f32.mrb[154].mxu0  ;;  %v21437_v63 = vpop.f32.mrb[134].mxu1 }
0x231e   :  { %v21382_v27 = vpop.f32.mrb[155].mxu0  ;;  %v21438_v10 = vpop.f32.mrb[135].mxu1 }
0x231f   :  { %v28233_v29 = vadd.f32 %v21436_v9, %v17894_v35  ;;  %v21383_v31 = vadd.f32 %v21382_v27, %v21381_v22  ;;  %v21439_v5 = vadd.f32 %v21438_v10, %v21437_v63 }
0x2321   :  { %v17899_v32 = vadd.f32 %v21383_v31, %v17794_v28  ;;  %v21384_v18 = vpop.f32.mrb[156].mxu0  ;;  %v21440_v19 = vpop.f32.mrb[136].mxu1 }
0x2322   :  { %v21385_v7 = vpop.f32.mrb[157].mxu0  ;;  %v21441_v49 = vpop.f32.mrb[137].mxu1 }
0x2323   :  { %v28235_v11 = vadd.f32 %v21439_v5, %v17899_v32  ;;  %v21386_v57 = vadd.f32 %v21385_v7, %v21384_v18  ;;  %v21442_v24 = vadd.f32 %v21441_v49, %v21440_v19 }
0x2325   :  { %v17904_v48 = vadd.f32 %v21386_v57, %v17799_v45  ;;  %v21387_v37 = vpop.f32.mrb[158].mxu0  ;;  %v21443_v25 = vpop.f32.mrb[138].mxu1 }
0x2326   :  { %v21388_v34 = vpop.f32.mrb[159].mxu0  ;;  %v21444_v56 = vpop.f32.mrb[139].mxu1 }
0x2327   :  { %v28237_v16 = vadd.f32 %v21442_v24, %v17904_v48  ;;  %v21389_v50 = vadd.f32 %v21388_v34, %v21387_v37  ;;  %v21445_v13 = vadd.f32 %v21444_v56, %v21443_v25 }
0x2329   :  { %v17909_v20 = vadd.f32 %v21389_v50, %v17804_v53  ;;  %v21390_v61 = vpop.f32.mrb[160].mxu0  ;;  %v21446_v28 = vpop.f32.mrb[140].mxu1 }
0x232a   :  { %v21391_v62 = vpop.f32.mrb[161].mxu0  ;;  %v21447_v51 = vpop.f32.mrb[141].mxu1 }
0x232b   :  { %v28239_v41 = vadd.f32 %v21445_v13, %v17909_v20  ;;  %v21392_v0 = vadd.f32 %v21391_v62, %v21390_v61  ;;  %v21448_v3 = vadd.f32 %v21447_v51, %v21446_v28 }
0x232d   :  { %v17914_v17 = vadd.f32 %v21392_v0, %v17809_v60  ;;  %v21481_v26 = vpop.f32.mrb[162].mxu0  ;;  %v21537_v45 = vpop.f32.mrb[142].mxu1 }
0x232e   :  { %v21482_v14 = vpop.f32.mrb[163].mxu0  ;;  %v21538_v47 = vpop.f32.mrb[143].mxu1 }
0x232f   :  { %v28241_v44 = vadd.f32 %v21448_v3, %v17914_v17  ;;  %v21483_v2 = vadd.f32 %v21482_v14, %v21481_v26  ;;  %v21539_v1 = vadd.f32 %v21538_v47, %v21537_v45 }
0x2331   :  { %v18089_v43 = vadd.f32 %v21483_v2, %v17984_v38  ;;  %v21484_v59 = vpop.f32.mrb[164].mxu0  ;;  %v21540_v53 = vpop.f32.mrb[144].mxu1 }
0x2332   :  { %v21485_v23 = vpop.f32.mrb[165].mxu0  ;;  %v21541_v40 = vpop.f32.mrb[145].mxu1 }
0x2333   :  { %v18194_v30 = vadd.f32 %v21539_v1, %v18089_v43  ;;  %v21486_v33 = vadd.f32 %v21485_v23, %v21484_v59  ;;  %v21542_v15 = vadd.f32 %v21541_v40, %v21540_v53 }
0x2335   :  { %v18094_v52 = vadd.f32 %v21486_v33, %v17989_v8  ;;  %v21487_v54 = vpop.f32.mrb[166].mxu0  ;;  %v21543_v9 = vpop.f32.mrb[146].mxu1  ;;  %v28244_v60 = vadd.f32 %v18194_v30, %v27855_v4 }
0x2336   :  { %v21488_v35 = vpop.f32.mrb[167].mxu0  ;;  %v21544_v22 = vpop.f32.mrb[147].mxu1 }
0x2337   :  { %v18199_v63 = vadd.f32 %v21542_v15, %v18094_v52  ;;  %v21489_v27 = vadd.f32 %v21488_v35, %v21487_v54  ;;  %v21545_v10 = vadd.f32 %v21544_v22, %v21543_v9  ;;  %18242 = vadd.xlane.f32.xlu0 %v28244_v60 }
0x2339   :  { %v18099_v38 = vadd.f32 %v21489_v27, %v17994_v39  ;;  %v21490_v31 = vpop.f32.mrb[168].mxu0  ;;  %v21546_v5 = vpop.f32.mrb[148].mxu1  ;;  %v18233_v32 = vadd.f32 %v18199_v63, %v27862_v36 }
0x233a   :  { %v21491_v18 = vpop.f32.mrb[169].mxu0  ;;  %v21547_v19 = vpop.f32.mrb[149].mxu1 }
0x233b   :  { %v18204_v8 = vadd.f32 %v21545_v10, %v18099_v38  ;;  %v21492_v7 = vadd.f32 %v21491_v18, %v21490_v31  ;;  %v21548_v49 = vadd.f32 %v21547_v19, %v21546_v5  ;;  %18244 = vadd.xlane.f32.xlu1 %v18233_v32 }
0x233d   :  { %v18104_v4 = vadd.f32 %v21492_v7, %v28233_v29  ;;  %v21493_v57 = vpop.f32.mrb[170].mxu0  ;;  %v21549_v24 = vpop.f32.mrb[150].mxu1  ;;  %v18234_v48 = vadd.f32 %v18204_v8, %v27883_v12 }
0x233e   :  { %v21494_v37 = vpop.f32.mrb[171].mxu0  ;;  %v21550_v25 = vpop.f32.mrb[151].mxu1 }
0x233f   :  { %v18209_v34 = vadd.f32 %v21548_v49, %v18104_v4  ;;  %v21495_v39 = vadd.f32 %v21494_v37, %v21493_v57  ;;  %v21551_v56 = vadd.f32 %v21550_v25, %v21549_v24  ;;  %18246 = vadd.xlane.f32.xlu0 %v18234_v48 }
0x2341   :  { %v18109_v36 = vadd.f32 %v21495_v39, %v28235_v11  ;;  %v21496_v50 = vpop.f32.mrb[172].mxu0  ;;  %v21552_v13 = vpop.f32.mrb[152].mxu1  ;;  %v18235_v20 = vadd.f32 %v18209_v34, %v27892_v6 }
0x2342   :  { %v21497_v61 = vpop.f32.mrb[173].mxu0  ;;  %v21553_v28 = vpop.f32.mrb[153].mxu1 }
0x2343   :  { %v18214_v62 = vadd.f32 %v21551_v56, %v18109_v36  ;;  %v21498_v29 = vadd.f32 %v21497_v61, %v21496_v50  ;;  %v21554_v51 = vadd.f32 %v21553_v28, %v21552_v13  ;;  %18248 = vadd.xlane.f32.xlu1 %v18235_v20  ;;  %v24919_v36 = vmov 0.0|0.0   ;;  %v19947_v50 = vld [vmem:[%s28370_s4] sm:$0xff]   ;;  %v20269_v13 = vld [vmem:[%s28370_s4 + $0x8] sm:$0xff]   ;;  %v20271_v61 = vld [vmem:[%s28370_s4 + $0x18] sm:$0xff]  }
0x2344   :  { %23769 = vmatprep.subr.bf16.mxu0 %v24919_v36  ;;  %v20272_v28 = vld [vmem:[%s28370_s4 + $0x20] sm:$0xff]  }
0x2345   :  { %v18114_v12 = vadd.f32 %v21498_v29, %v28237_v16  ;;  %v21499_v0 = vpop.f32.mrb[174].mxu0  ;;  %v21555_v3 = vpop.f32.mrb[154].mxu1  ;;  %v18236_v17 = vadd.f32 %v18214_v62, %v27903_v55  ;;  %23771 = vmatpush3.bf16.msra.mxu0 %v19947_v50  ;;  %v20273_v62 = vld [vmem:[%s28370_s4 + $0x28] sm:$0xff]   ;;  %v20274_v29 = vld [vmem:[%s28370_s4 + $0x30] sm:$0xff]  }
0x2346   :  { %v21500_v26 = vpop.f32.mrb[175].mxu0  ;;  %v21556_v45 = vpop.f32.mrb[155].mxu1  ;;  %23772 = vmatprep.subr.bf16.mxu0 %v24919_v36 }
0x2347   :  { %v18219_v14 = vadd.f32 %v21554_v51, %v18114_v12  ;;  %v21501_v11 = vadd.f32 %v21500_v26, %v21499_v0  ;;  %v21557_v47 = vadd.f32 %v21556_v45, %v21555_v3  ;;  %18250 = vadd.xlane.f32.xlu0 %v18236_v17  ;;  %v20275_v51 = vld [vmem:[%s28370_s4 + $0x38] sm:$0xff]  }
0x2349   :  { %v18119_v6 = vadd.f32 %v21501_v11, %v28239_v41  ;;  %v21502_v2 = vpop.f32.mrb[176].mxu0  ;;  %v21558_v1 = vpop.f32.mrb[156].mxu1  ;;  %v18237_v43 = vadd.f32 %v18219_v14, %v27911_v46  ;;  %23774 = vmatpush3.bf16.msra.mxu0 %v20269_v13 }
0x234a   :  { %v21503_v59 = vpop.f32.mrb[177].mxu0  ;;  %v21559_v53 = vpop.f32.mrb[157].mxu1  ;;  %23775 = vmatprep.subr.bf16.mxu0 %v24919_v36 }
0x234b   :  { %v18224_v23 = vadd.f32 %v21557_v47, %v18119_v6  ;;  %v21504_v16 = vadd.f32 %v21503_v59, %v21502_v2  ;;  %v21560_v40 = vadd.f32 %v21559_v53, %v21558_v1  ;;  %18252 = vadd.xlane.f32.xlu1 %v18237_v43 }
0x234d   :  { %v18124_v55 = vadd.f32 %v21504_v16, %v28241_v44  ;;  %v18238_v30 = vadd.f32 %v18224_v23, %v27921_v42 }
0x234f   :  { %v18229_v33 = vadd.f32 %v21560_v40, %v18124_v55  ;;  %18254 = vadd.xlane.f32.xlu0 %v18238_v30 }
0x2351   :  { %v18239_v15 = vadd.f32 %v18229_v33, %v27928_v21 }
0x2353   :  { %18256 = vadd.xlane.f32.xlu1 %v18239_v15 }
0x23c4   :  { %v18243_v41 = vpop.xlane.xlu0 %18242 }
0x23c5   :  { %v18258_v52 = vmul.f32 0.0078125, %v18243_v41 }
0x23c7   :  { %v28260_v54 = vsub.f32 %v28244_v60, %v18258_v52 }
0x23c8   :  { %v18245_v46 = vpop.xlane.xlu1 %18244 }
0x23c9   :  { %v18259_v9 = vmul.f32 0.0078125, %v18245_v46  ;;  %v18274_v35 = vmul.f32 %v28260_v54, %v28260_v54 }
0x23cb   :  { %v28264_v22 = vsub.f32 %v18233_v32, %v18259_v9  ;;  %18282 = vadd.xlane.f32.xlu0 %v18274_v35 }
0x23cc   :  { %v18247_v44 = vpop.xlane.xlu0 %18246 }
0x23cd   :  { %v18260_v42 = vmul.f32 0.0078125, %v18247_v44  ;;  %v18275_v63 = vmul.f32 %v28264_v22, %v28264_v22 }
0x23cf   :  { %v28268_v21 = vsub.f32 %v18234_v48, %v18260_v42  ;;  %18284 = vadd.xlane.f32.xlu1 %v18275_v63  ;;  %v18817_v63 = vld [vmem:[#allocation2 + $0x34] ss:$0 sm:$0xff] }
0x23d0   :  { %v18249_v27 = vpop.xlane.xlu1 %18248 }
0x23d1   :  { %v18261_v10 = vmul.f32 0.0078125, %v18249_v27  ;;  %v18276_v60 = vmul.f32 %v28268_v21, %v28268_v21 }
0x23d3   :  { %v28272_v38 = vsub.f32 %v18235_v20, %v18261_v10  ;;  %18286 = vadd.xlane.f32.xlu0 %v18276_v60  ;;  %v20270_v20 = vld [vmem:[%s28370_s4 + $0x10] sm:$0xff]  }
0x23d4   :  { %v18251_v31 = vpop.xlane.xlu0 %18250  ;;  %23777 = vmatpush3.bf16.msra.mxu0 %v20270_v20 }
0x23d5   :  { %v18262_v5 = vmul.f32 0.0078125, %v18251_v31  ;;  %v18277_v32 = vmul.f32 %v28272_v38, %v28272_v38  ;;  %23778 = vmatprep.subr.bf16.mxu0 %v24919_v36 }
0x23d7   :  { %v28276_v18 = vsub.f32 %v18236_v17, %v18262_v5  ;;  %18288 = vadd.xlane.f32.xlu1 %v18277_v32 }
0x23d8   :  { %v18253_v19 = vpop.xlane.xlu1 %18252  ;;  %23780 = vmatpush3.bf16.msra.mxu0 %v20271_v61 }
0x23d9   :  { %v18263_v8 = vmul.f32 0.0078125, %v18253_v19  ;;  %v18278_v7 = vmul.f32 %v28276_v18, %v28276_v18  ;;  %23781 = vmatprep.subr.bf16.mxu0 %v24919_v36 }
0x23db   :  { %v28280_v49 = vsub.f32 %v18237_v43, %v18263_v8  ;;  %18290 = vadd.xlane.f32.xlu0 %v18278_v7 }
0x23dc   :  { %v18255_v4 = vpop.xlane.xlu0 %18254  ;;  %23783 = vmatpush3.bf16.msra.mxu0 %v20272_v28 }
0x23dd   :  { %v18264_v57 = vmul.f32 0.0078125, %v18255_v4  ;;  %v18279_v24 = vmul.f32 %v28280_v49, %v28280_v49  ;;  %23784 = vmatprep.subr.bf16.mxu0 %v24919_v36 }
0x23df   :  { %v28284_v48 = vsub.f32 %v18238_v30, %v18264_v57  ;;  %18292 = vadd.xlane.f32.xlu1 %v18279_v24 }
0x23e0   :  { %v18257_v37 = vpop.xlane.xlu1 %18256  ;;  %23786 = vmatpush3.bf16.msra.mxu0 %v20273_v62 }
0x23e1   :  { %v18265_v25 = vmul.f32 0.0078125, %v18257_v37  ;;  %v18280_v34 = vmul.f32 %v28284_v48, %v28284_v48  ;;  %23787 = vmatprep.subr.bf16.mxu0 %v24919_v36 }
0x23e3   :  { %v28288_v39 = vsub.f32 %v18239_v15, %v18265_v25  ;;  %18294 = vadd.xlane.f32.xlu0 %v18280_v34 }
0x23e4   :  { %23789 = vmatpush3.bf16.msra.mxu0 %v20274_v29 }
0x23e5   :  { %v18281_v56 = vmul.f32 %v28288_v39, %v28288_v39  ;;  %23790 = vmatprep.subr.bf16.mxu0 %v24919_v36 }
0x23e7   :  { %18296 = vadd.xlane.f32.xlu1 %v18281_v56 }
0x23e8   :  { %23792 = vmatpush3.bf16.msra.mxu0 %v20275_v51 }
0x23e9   :  { %23793 = vmatprep.subr.bf16.mxu0 %v24919_v36 }
0x2458   :  { %v18283_v12 = vpop.xlane.xlu0 %18282 }
0x2459   :  { %v18298_v17 = vmul.f32 0.0078125, %v18283_v12 }
0x245b   :  { %v18306_v11 = vadd.f32 1e-05, %v18298_v17 }
0x245c   :  { %v18285_v0 = vpop.xlane.xlu1 %18284 }
0x245d   :  { %v18299_v3 = vmul.f32 0.0078125, %v18285_v0 }
0x245f   :  { %v18307_v45 = vadd.f32 1e-05, %v18299_v3 }
0x2460   :  { %v18287_v26 = vpop.xlane.xlu0 %18286 }
0x2461   :  { %v18300_v14 = vmul.f32 0.0078125, %v18287_v26  ;;  %24649 = vrsqrt.f32 %v18307_v45  ;;  %v19979_v45 = vld [vmem:[%s28371_s5] sm:$0xff]  }
0x2462   :  { %24651 = vrsqrt.f32 %v18306_v11 }
0x2463   :  { %v18308_v47 = vadd.f32 1e-05, %v18300_v14  ;;  %v18819_v14 = vld [vmem:[#allocation2 + $0x2] ss:$0 sm:$0xff] }
0x2464   :  { %v18289_v6 = vpop.xlane.xlu1 %18288 }
0x2465   :  { %v18301_v2 = vmul.f32 0.0078125, %v18289_v6  ;;  %24653 = vrsqrt.f32 %v18308_v47 }
0x2467   :  { %v18309_v1 = vadd.f32 1e-05, %v18301_v2 }
0x2468   :  { %v18291_v43 = vpop.xlane.xlu0 %18290 }
0x2469   :  { %24655 = vrsqrt.f32 %v18309_v1  ;;  %v18302_v59 = vmul.f32 0.0078125, %v18291_v43  ;;  %v18820_v1 = vld [vmem:[#allocation2 + $0x3] ss:$0 sm:$0xff] }
0x246b   :  { %v18310_v53 = vadd.f32 1e-05, %v18302_v59  ;;  %v24650_v40 = vpop.eup %24649 }
0x246c   :  { %v18293_v23 = vpop.xlane.xlu1 %18292  ;;  %v24652_v30 = vpop.eup %24651  ;;  %v18323_v52 = vmul.f32 %v24650_v40, %v28264_v22  ;;  %v18818_v22 = vld [vmem:[#allocation2 + $0x35] ss:$0 sm:$0xff] }
0x246d   :  { %24657 = vrsqrt.f32 %v18310_v53  ;;  %v18303_v16 = vmul.f32 0.0078125, %v18293_v23  ;;  %v18322_v35 = vmul.f32 %v24652_v30, %v28260_v54 }
0x246e   :  { %v18337_v10 = vmul.f32 %v18817_v63, %v18323_v52 }
0x246f   :  { %v18311_v55 = vadd.f32 1e-05, %v18303_v16  ;;  %v24654_v15 = vpop.eup %24653  ;;  %v18336_v32 = vmul.f32 %v18817_v63, %v18322_v35 }
0x2470   :  { %v18295_v33 = vpop.xlane.xlu0 %18294  ;;  %v18324_v44 = vmul.f32 %v24654_v15, %v28268_v21  ;;  %v18351_v7 = vadd.f32 %v18818_v22, %v18337_v10 }
0x2471   :  { %24659 = vrsqrt.f32 %v18311_v55  ;;  %v18304_v41 = vmul.f32 0.0078125, %v18295_v33  ;;  %v18350_v57 = vadd.f32 %v18818_v22, %v18336_v32 }
0x2472   :  { %v18338_v19 = vmul.f32 %v18817_v63, %v18324_v44 }
0x2473   :  { %v24656_v46 = vpop.eup %24655  ;;  %v18312_v9 = vadd.f32 1e-05, %v18304_v41  ;;  %v18358_v25 = vadd.f32 %v18351_v7, %v18350_v57 }
0x2474   :  { %v18297_v42 = vpop.xlane.xlu1 %18296  ;;  %v18325_v60 = vmul.f32 %v24656_v46, %v28272_v38  ;;  %v18352_v21 = vadd.f32 %v18818_v22, %v18338_v19 }
0x2475   :  { %24661 = vrsqrt.f32 %v18312_v9  ;;  %v18305_v27 = vmul.f32 0.0078125, %v18297_v42 }
0x2476   :  { %v18339_v4 = vmul.f32 %v18817_v63, %v18325_v60  ;;  %v18359_v50 = vadd.f32 %v18358_v25, %v18352_v21 }
0x2477   :  { %v24658_v31 = vpop.eup %24657  ;;  %v18313_v5 = vadd.f32 1e-05, %v18305_v27 }
0x2478   :  { %v18326_v8 = vmul.f32 %v24658_v31, %v28276_v18  ;;  %v18353_v34 = vadd.f32 %v18818_v22, %v18339_v4 }
0x2479   :  { %24663 = vrsqrt.f32 %v18313_v5 }
0x247a   :  { %v18340_v24 = vmul.f32 %v18817_v63, %v18326_v8  ;;  %v18360_v61 = vadd.f32 %v18359_v50, %v18353_v34 }
0x247b   :  { %v24660_v54 = vpop.eup %24659 }
0x247c   :  { %v18327_v37 = vmul.f32 %v24660_v54, %v28280_v49  ;;  %v18354_v13 = vadd.f32 %v18818_v22, %v18340_v24 }
0x247e   :  { %v18341_v56 = vmul.f32 %v18817_v63, %v18327_v37  ;;  %v18361_v29 = vadd.f32 %v18360_v61, %v18354_v13 }
0x247f   :  { %v24662_v38 = vpop.eup %24661 }
0x2480   :  { %v18328_v20 = vmul.f32 %v24662_v38, %v28284_v48  ;;  %v18355_v18 = vadd.f32 %v18818_v22, %v18341_v56  ;;  %v20276_v48 = vld [vmem:[%s28371_s5 + $0x8] sm:$0xff]  }
0x2482   :  { %v18342_v28 = vmul.f32 %v18817_v63, %v18328_v20  ;;  %v18362_v0 = vadd.f32 %v18361_v29, %v18355_v18 }
0x2483   :  { %v24664_v62 = vpop.eup %24663 }
0x2484   :  { %v18356_v51 = vadd.f32 %v18818_v22, %v18342_v28  ;;  %v18329_v12 = vmul.f32 %v24664_v62, %v28288_v39  ;;  %v20277_v39 = vld [vmem:[%s28371_s5 + $0x10] sm:$0xff]  }
0x2486   :  { %v18343_v3 = vmul.f32 %v18817_v63, %v18329_v12  ;;  %v18363_v17 = vadd.f32 %v18362_v0, %v18356_v51 }
0x2488   :  { %v18357_v49 = vadd.f32 %v18818_v22, %v18343_v3 }
0x248a   :  { %v18364_v26 = vadd.f32 %v18363_v17, %v18357_v49 }
0x248c   :  { %22496 = vmatmul.mubr.f32.vlgmr.msra.gmra.mrb[178].mxu0 %v18364_v26 }
0x248d   :  { %23795 = vmatpush3.bf16.msra.mxu0 %v19979_v45  ;;  %22514 = vmatprep.mubr.msk.f32.mxu0 %vm24916_vm1, %v28433_v58  ;;  %v20278_v58 = vld [vmem:[%s28371_s5 + $0x18] sm:$0xff]   ;;  %s24920_s5 = smov [#allocation17]  }
0x248e   :  { %23796 = vmatprep.subr.bf16.mxu0 %v24919_v36  ;;  %s18592_s1 = sshll.u32 %s24920_s5, 4  ;;  %s18593_s1 = int_to_ptr.vmem [resolvable:$true] %s18592_s1 }
0x248f   :  { %s24867_s29 = scalar_lea.vmem %s18593_s1, 128  ;;  %p24872_p3 = scmp.lt.s32.totalorder %s18593_s1, %s18593_s1 }
0x2490   :  { %p24868_p2 = scmp.ne.s32.totalorder %s18593_s1, %s24867_s29  ;;  %p24873_p4 = scmp.lt.s32.totalorder %s24867_s29, %s24867_s29 }
0x2491   :  { %23798 = vmatpush3.bf16.msra.mxu0 %v20276_v48 }
0x2492   :  { %23799 = vmatprep.subr.bf16.mxu0 %v24919_v36  ;;  %p24874_p5 = por %p24873_p4, %p24872_p3 }
0x2494   :  { %p24875_p6 = pnand %p24874_p5, %p24868_p2 }
0x2495   :  { %23801 = vmatpush3.bf16.msra.mxu0 %v20277_v39 }
0x2496   :  { %23802 = vmatprep.subr.bf16.mxu0 %v24919_v36 }
0x2499   :  { %23804 = vmatpush3.bf16.msra.mxu0 %v20278_v58 }
0x255f   :  { %v18470_v11 = vpop.f32.mrb[178].mxu0 }
0x2560   :  { %v18471_v47 = vadd.f32 %v18819_v14, %v18470_v11  ;;  %v22497_v6 = vpop.f32.mrb[179].mxu0 }
0x2562   :  { %v18474_v2 = vmax.f32 %v18471_v47, 0.0 }
0x2564   :  { %22515 = vmatmul.mubr.msk.f32.vlgmr.msra.gmra.mrb[180].mxu0 %vm6146_vm4, %v18474_v2 }
0x2637   :  { %v18567_v43 = vpop.f32.mrb[180].mxu0 }
0x2638   :  { %v18568_v59 = vadd.f32 %v18820_v1, %v18567_v43  ;;  %v22516_v53 = vpop.f32.mrb[181].mxu0 }
0x263a   :  { %v18572_v23 = vsel %vm18571_vm6, %v18568_v59, -inf }
0x263b   :  { %18573 = vmax.xlane.f32.xlu0 %v18572_v23 }
0x26c8   :  { %v18574_v36 = vpop.xlane.xlu0 %18573 }
0x26c9   :  { %v18575_v16 = vsub.f32 %v18568_v59, %v18574_v36 }
0x26cb   :  { %v18576_v40 = vmul.f32 1.442695, %v18575_v16 }
0x26cd   :  { %24665 = vpow2.f32 %v18576_v40 }
0x26d7   :  { %v24666_v55 = vpop.eup %24665 }
0x26d8   :  { %v18578_v30 = vsel %vm18571_vm6, %v24666_v55, 0.0 }
0x26d9   :  { %18579 = vadd.xlane.f32.xlu1 %v18578_v30 }
0x2766   :  { %v18580_v33 = vpop.xlane.xlu1 %18579 }
0x2767   :  { %24667 = vlog2.f32 %v18580_v33 }
0x2771   :  { %v24668_v15 = vpop.eup %24667 }
0x2772   :  { %v18582_v41 = vmul.f32 0.6931472, %v24668_v15 }
0x2774   :  { %v18583_v52 = vadd.f32 %v18582_v41, %v18574_v36 }
0x2776   :  { %v18584_v46 = vsub.f32 %v18568_v59, %v18583_v52 }
0x2778   :  { %18585 = vst.msk [vmem:[#allocation17] sm:$0xff] %vm18571_vm6, %v18584_v46 }
0x2779   :  { %24878 = shalt.err (!%p24875_p6)
}
0x277a   :  { %s24879_s6 = scalar_lea.hbm %s28380_s14, 128 }
0x277b   :  { %p24880_p7 = scmp.ne.s32.totalorder %s28380_s14, %s24879_s6  ;;  %p24883_p8 = scmp.lt.u32.totalorder %s24879_s6, %s28380_s14 }
0x277d   :  { %p24885_p9 = pnand %p24883_p8, %p24880_p7 }
0x277f   :  { %24888 = shalt.err (!%p24885_p9)
}
0x2780   :  { %18595 = dma.vmem_to_hbm [thread:$0]  %s18593_s1, 128, %s28380_s14, [#allocation4]  }
0x2781   :  { %24899 = dma.done.wait [#allocation4], 128  }
0x2782   :  { %24900 = vsyncadd [#allocation4], 4294967168 }
0x2783   :  { %18599 = vsyncpa [#allocation3], 1 }
0x2784   :  { %18600 = vsyncpa [#allocation6], 1 }
0x2785   :  { %18601 = vsyncpa [#allocation9], 1 }
0x2786   :  { %18602 = vsyncpa [#allocation12], 1 }
0x2787   :  { %18603 = vsyncpa [#allocation15], 1 }
0x2788   :  { %18604 = vsyncpa [#allocation4], 1 }

</bundles_post_ra>
